<compile_context>
chip_gen: v7x
topology: tpu7x:2x2x1
jax: 0.10.0
libtpu: 0.0.40
codegen_flags: <defaults>
</compile_context>

<pallas_src>
import jax
import jax.numpy as jnp
from jax.experimental import pallas as pl
from jax.experimental.pallas import tpu as pltpu


def _conv1d_relu(x, w_ref, b_ref, keep_prev, keep_next):
    """Conv1d(k=3, p=1) + ReLU over the flattened (M, Cin) block.

    x:         (M, Cin) f32, M = block_b * T rows (time-major within each seq).
    w_ref:     Ref (3, Cin, Cout) bf16; tap order [x[t-1], x[t], x[t+1]].
    b_ref:     Ref (1, Cout) f32.
    keep_prev: (M, 1) f32 {0,1}; 0 where local t == 0      (left zero pad).
    keep_next: (M, 1) f32 {0,1}; 0 where local t == T - 1  (right zero pad).
    """
    m = x.shape[0]
    # Shifted copies via XLU sublane rolls of the (small) input tile; the
    # masks zero rows that would otherwise read across a sequence boundary
    # (or the circular wrap of the roll).
    x_prev = pltpu.roll(x, shift=1, axis=0) * keep_prev
    x_next = pltpu.roll(x, shift=m - 1, axis=0) * keep_next
    # Three per-tap MXU matmuls accumulated in f32 (no lane-misaligned concat).
    acc = jnp.dot(x.astype(jnp.bfloat16), w_ref[1],
                  preferred_element_type=jnp.float32)
    acc = acc + jnp.dot(x_prev.astype(jnp.bfloat16), w_ref[0],
                        preferred_element_type=jnp.float32)
    acc = acc + jnp.dot(x_next.astype(jnp.bfloat16), w_ref[2],
                        preferred_element_type=jnp.float32)
    return jnp.maximum(acc + b_ref[...], 0.0)


def eeg_cnn_kernel(x_ref, w1_ref, b1_ref, w2_ref, b2_ref, w3_ref, b3_ref,
                   out_ref):
    block_b, t, cin = x_ref.shape
    m = block_b * t
    # Layout-preserving flatten (requires t % 8 == 0, enforced in the wrapper).
    x = x_ref[...].reshape(m, cin)

    # Boundary masks, hoisted once per grid step and reused by all 3 layers.
    # A 3-D iota over (block_b, T, 1) avoids a `% T` when T isn't a power of 2.
    t_idx = jax.lax.broadcasted_iota(jnp.int32, (block_b, t, 1), 1).reshape(m, 1)
    keep_prev = (t_idx != 0).astype(jnp.float32)
    keep_next = (t_idx != t - 1).astype(jnp.float32)

    h = _conv1d_relu(x, w1_ref, b1_ref, keep_prev, keep_next)
    h = _conv1d_relu(h, w2_ref, b2_ref, keep_prev, keep_next)
    h = _conv1d_relu(h, w3_ref, b3_ref, keep_prev, keep_next)

    out_ref[...] = h.reshape(out_ref.shape).astype(out_ref.dtype)


def _resident(a):
    """BlockSpec for a small array kept whole in VMEM across the grid."""
    nd = a.ndim
    return pl.BlockSpec(a.shape, lambda b, _nd=nd: (0,) * _nd)


def _pick_block_b(batch, seq_len, max_block_rows):
    """Sequences per grid step: as many as the row budget allows."""
    cap = max(1, max_block_rows // max(seq_len, 1))
    return min(cap, batch)


def eeg_cnn_preprocessor(x, packed_params, *, block_b=None,
                         max_block_rows=4096, out_dtype=jnp.float32):
    """x: (B, T, num_channels) float32 -> (B, T, d_model) out_dtype."""
    (w1, b1), (w2, b2), (w3, b3) = packed_params
    batch, seq_len, cin = x.shape
    d_model = w3.shape[2]
    if seq_len % 8 != 0:
        raise ValueError(
            "seq_len must be a multiple of 8 (got %d) so the "
            "(block_b, T, C) <-> (M, C) reshapes stay layout-preserving"
            % seq_len)
    # TODO(synk): for very long recordings (seq_len >> max_block_rows) add a T
    # grid axis with a +/-1 row halo instead of one whole-sequence block.
    if block_b is None:
        block_b = _pick_block_b(batch, seq_len, max_block_rows)
    block_b = max(1, min(block_b, batch))

    # Host-pad non-divisible batches instead of degrading to block_b=1.
    pad_b = (-batch) % block_b
    if pad_b:
        x = jnp.pad(x, ((0, pad_b), (0, 0), (0, 0)))
    padded_batch = batch + pad_b
    grid = (padded_batch // block_b,)

    out = pl.pallas_call(
        eeg_cnn_kernel,
        out_shape=jax.ShapeDtypeStruct((padded_batch, seq_len, d_model),
                                       out_dtype),
        grid_spec=pltpu.PrefetchScalarGridSpec(
            num_scalar_prefetch=0,
            grid=grid,
            in_specs=[
                pl.BlockSpec((block_b, seq_len, cin), lambda b: (b, 0, 0)),
                _resident(w1), _resident(b1),
                _resident(w2), _resident(b2),
                _resident(w3), _resident(b3),
            ],
            out_specs=pl.BlockSpec((block_b, seq_len, d_model),
                                   lambda b: (b, 0, 0)),
        ),
        compiler_params=pltpu.CompilerParams(
            dimension_semantics=("parallel",),
            vmem_limit_bytes=40 * 1024 * 1024),
    )(x, w1, b1, w2, b2, w3, b3)
    return out[:batch] if pad_b else out


def init_params(key, num_channels, cnn_out_channels, d_model):
    """Deterministic synthetic weights in PyTorch Conv1d layout (out, in, k).

    Weight values are rounded through bf16 so the bf16 copies fed to the MXU
    equal the f32 weights used by the reference exactly.
    """
    dims = [(num_channels, cnn_out_channels),
            (cnn_out_channels, cnn_out_channels),
            (cnn_out_channels, d_model)]
    params = []
    for cin, cout in dims:
        key, kw, kb = jax.random.split(key, 3)
        w = jax.random.normal(kw, (cout, cin, 3), jnp.float32) * 0.1
        w = w.astype(jnp.bfloat16).astype(jnp.float32)
        b = jax.random.normal(kb, (cout,), jnp.float32) * 0.1
        params.append((w, b))
    return params


def pack_params(params):
    """(out, in, 3) f32 -> ((3, in, out) bf16 per-tap weights, (1, out) f32 bias).

    Tap order on the leading axis is [k=0 -> x[t-1], k=1 -> x[t], k=2 -> x[t+1]],
    matching PyTorch Conv1d cross-correlation with padding=1.  Packed once on
    the host so the kernel never reshapes or slices weights per step.
    """
    packed = []
    for w, b in params:
        cout = w.shape[0]
        w_kio = jnp.transpose(w, (2, 1, 0))          # (3, in, out)
        packed.append((w_kio.astype(jnp.bfloat16), b.reshape(1, cout)))
    return packed


def reference_forward(x, params):
    """Pure-JAX reference matching PyTorch Conv1d NCW cross-correlation semantics."""
    h = jnp.transpose(x, (0, 2, 1))                       # (B, C, T)
    for w, b in params:                                   # w: (out, in, 3)
        h = jax.lax.conv_general_dilated(
            h, w, window_strides=(1,), padding=((1, 1),),
            dimension_numbers=("NCH", "OIH", "NCH"))
        h = jnp.maximum(h + b[None, :, None], 0.0)
    return jnp.transpose(h, (0, 2, 1))                    # (B, T, d_model)


if __name__ == "__main__":
    # Module defaults: num_channels=14, cnn_out_channels=32, d_model=128, T=256.
    batch = 4
    seq_len = 256
    num_channels = 14
    cnn_out_channels = 32
    d_model = 128

    key = jax.random.PRNGKey(0)
    kx, kp = jax.random.split(key)
    x = jax.random.normal(kx, (batch, seq_len, num_channels), jnp.float32)
    params = init_params(kp, num_channels, cnn_out_channels, d_model)
    packed = pack_params(params)

    out = jax.block_until_ready(eeg_cnn_preprocessor(x, packed))
    ref = reference_forward(x, params)

    assert out.shape == (batch, seq_len, d_model)
    # bf16 MXU operands with f32 accumulation vs. f32 reference: ~1e-3 error.
    assert jnp.allclose(out, ref, atol=1e-2, rtol=1e-2), \
        float(jnp.max(jnp.abs(out - ref)))
    print("KERNEL_OK")
</pallas_src>

<mosaic_0001>
module attributes {stable_mosaic.version = 11 : i64} {
  func.func @eeg_cnn_kernel(%arg0: i32, %arg1: memref<4x256x14xf32, #tpu.memory_space<vmem>>, %arg2: memref<3x14x32xbf16, #tpu.memory_space<vmem>>, %arg3: memref<1x32xf32, #tpu.memory_space<vmem>>, %arg4: memref<3x32x32xbf16, #tpu.memory_space<vmem>>, %arg5: memref<1x32xf32, #tpu.memory_space<vmem>>, %arg6: memref<3x32x128xbf16, #tpu.memory_space<vmem>>, %arg7: memref<1x128xf32, #tpu.memory_space<vmem>>, %arg8: memref<4x256x128xf32, #tpu.memory_space<vmem>>) attributes {dimension_semantics = [#tpu.dimension_semantics<parallel>], iteration_bounds = array<i64: 1>, scalar_prefetch = 0 : i64, scratch_operands = 0 : i64, tpu.core_type = #tpu.core_type<tc>, window_params = [{transform_indices = @transform_0, window_bounds = array<i64: 4, 256, 14>}, {pipeline_mode = #tpu.pipeline_mode<synchronous>, transform_indices = @transform_1, window_bounds = array<i64: 3, 14, 32>}, {pipeline_mode = #tpu.pipeline_mode<synchronous>, transform_indices = @transform_2, window_bounds = array<i64: 1, 32>}, {pipeline_mode = #tpu.pipeline_mode<synchronous>, transform_indices = @transform_3, window_bounds = array<i64: 3, 32, 32>}, {pipeline_mode = #tpu.pipeline_mode<synchronous>, transform_indices = @transform_4, window_bounds = array<i64: 1, 32>}, {pipeline_mode = #tpu.pipeline_mode<synchronous>, transform_indices = @transform_5, window_bounds = array<i64: 3, 32, 128>}, {pipeline_mode = #tpu.pipeline_mode<synchronous>, transform_indices = @transform_6, window_bounds = array<i64: 1, 128>}, {transform_indices = @transform_7, window_bounds = array<i64: 4, 256, 128>}]} {
    %c0 = arith.constant 0 : index
    %c0_0 = arith.constant 0 : index
    %c0_1 = arith.constant 0 : index
    %0 = vector.load %arg1[%c0, %c0_0, %c0_1] : memref<4x256x14xf32, #tpu.memory_space<vmem>>, vector<4x256x14xf32>
    %1 = vector.shape_cast %0 : vector<4x256x14xf32> to vector<1024x14xf32>
    %2 = tpu.iota {dimensions = array<i32: 1>} : vector<4x256x1xi32>
    %3 = vector.shape_cast %2 : vector<4x256x1xi32> to vector<1024x1xi32>
    %c0_i32 = arith.constant 0 : i32
    %4 = vector.broadcast %c0_i32 : i32 to vector<1024x1xi32>
    %5 = arith.cmpi ne, %3, %4 : vector<1024x1xi32>
    %6 = arith.extui %5 : vector<1024x1xi1> to vector<1024x1xi32>
    %7 = arith.sitofp %6 : vector<1024x1xi32> to vector<1024x1xf32>
    %c255_i32 = arith.constant 255 : i32
    %8 = vector.broadcast %c255_i32 : i32 to vector<1024x1xi32>
    %9 = arith.cmpi ne, %3, %8 : vector<1024x1xi32>
    %10 = arith.extui %9 : vector<1024x1xi1> to vector<1024x1xi32>
    %11 = arith.sitofp %10 : vector<1024x1xi32> to vector<1024x1xf32>
    %c1_i32 = arith.constant 1 : i32
    %12 = tpu.dynamic_rotate %1 by %c1_i32 dim 0 : vector<1024x14xf32>, i32 -> vector<1024x14xf32>
    %13 = vector.broadcast %7 : vector<1024x1xf32> to vector<1024x14xf32>
    %14 = arith.mulf %12, %13 : vector<1024x14xf32>
    %c1023_i32 = arith.constant 1023 : i32
    %15 = tpu.dynamic_rotate %1 by %c1023_i32 dim 0 : vector<1024x14xf32>, i32 -> vector<1024x14xf32>
    %16 = vector.broadcast %11 : vector<1024x1xf32> to vector<1024x14xf32>
    %17 = arith.mulf %15, %16 : vector<1024x14xf32>
    %18 = arith.truncf %1 : vector<1024x14xf32> to vector<1024x14xbf16>
    %c1 = arith.constant 1 : index
    %c0_2 = arith.constant 0 : index
    %c0_3 = arith.constant 0 : index
    %19 = vector.load %arg2[%c1, %c0_2, %c0_3] : memref<3x14x32xbf16, #tpu.memory_space<vmem>>, vector<1x14x32xbf16>
    %20 = vector.shape_cast %19 : vector<1x14x32xbf16> to vector<14x32xbf16>
    %cst = arith.constant dense<0.000000e+00> : vector<1024x32xf32>
    %21 = tpu.matmul %18, %20, %cst {dimension_numbers = #tpu.dot_dimension_numbers<[1], [0], [0], [1], [0, 0, 1, 1], [], []>} : vector<1024x14xbf16>, vector<14x32xbf16>, vector<1024x32xf32> -> vector<1024x32xf32>
    %22 = arith.truncf %14 : vector<1024x14xf32> to vector<1024x14xbf16>
    %c0_4 = arith.constant 0 : index
    %c0_5 = arith.constant 0 : index
    %c0_6 = arith.constant 0 : index
    %23 = vector.load %arg2[%c0_4, %c0_5, %c0_6] : memref<3x14x32xbf16, #tpu.memory_space<vmem>>, vector<1x14x32xbf16>
    %24 = vector.shape_cast %23 : vector<1x14x32xbf16> to vector<14x32xbf16>
    %cst_7 = arith.constant dense<0.000000e+00> : vector<1024x32xf32>
    %25 = tpu.matmul %22, %24, %cst_7 {dimension_numbers = #tpu.dot_dimension_numbers<[1], [0], [0], [1], [0, 0, 1, 1], [], []>} : vector<1024x14xbf16>, vector<14x32xbf16>, vector<1024x32xf32> -> vector<1024x32xf32>
    %26 = arith.addf %21, %25 : vector<1024x32xf32>
    %27 = arith.truncf %17 : vector<1024x14xf32> to vector<1024x14xbf16>
    %c2 = arith.constant 2 : index
    %c0_8 = arith.constant 0 : index
    %c0_9 = arith.constant 0 : index
    %28 = vector.load %arg2[%c2, %c0_8, %c0_9] : memref<3x14x32xbf16, #tpu.memory_space<vmem>>, vector<1x14x32xbf16>
    %29 = vector.shape_cast %28 : vector<1x14x32xbf16> to vector<14x32xbf16>
    %cst_10 = arith.constant dense<0.000000e+00> : vector<1024x32xf32>
    %30 = tpu.matmul %27, %29, %cst_10 {dimension_numbers = #tpu.dot_dimension_numbers<[1], [0], [0], [1], [0, 0, 1, 1], [], []>} : vector<1024x14xbf16>, vector<14x32xbf16>, vector<1024x32xf32> -> vector<1024x32xf32>
    %31 = arith.addf %26, %30 : vector<1024x32xf32>
    %c0_11 = arith.constant 0 : index
    %c0_12 = arith.constant 0 : index
    %32 = vector.load %arg3[%c0_11, %c0_12] : memref<1x32xf32, #tpu.memory_space<vmem>>, vector<1x32xf32>
    %33 = vector.broadcast %32 : vector<1x32xf32> to vector<1024x32xf32>
    %34 = arith.addf %31, %33 : vector<1024x32xf32>
    %cst_13 = arith.constant 0.000000e+00 : f32
    %35 = vector.broadcast %cst_13 : f32 to vector<1024x32xf32>
    %36 = arith.maximumf %34, %35 : vector<1024x32xf32>
    %c1_i32_14 = arith.constant 1 : i32
    %37 = tpu.dynamic_rotate %36 by %c1_i32_14 dim 0 : vector<1024x32xf32>, i32 -> vector<1024x32xf32>
    %38 = vector.broadcast %7 : vector<1024x1xf32> to vector<1024x32xf32>
    %39 = arith.mulf %37, %38 : vector<1024x32xf32>
    %c1023_i32_15 = arith.constant 1023 : i32
    %40 = tpu.dynamic_rotate %36 by %c1023_i32_15 dim 0 : vector<1024x32xf32>, i32 -> vector<1024x32xf32>
    %41 = vector.broadcast %11 : vector<1024x1xf32> to vector<1024x32xf32>
    %42 = arith.mulf %40, %41 : vector<1024x32xf32>
    %43 = arith.truncf %36 : vector<1024x32xf32> to vector<1024x32xbf16>
    %c1_16 = arith.constant 1 : index
    %c0_17 = arith.constant 0 : index
    %c0_18 = arith.constant 0 : index
    %44 = vector.load %arg4[%c1_16, %c0_17, %c0_18] : memref<3x32x32xbf16, #tpu.memory_space<vmem>>, vector<1x32x32xbf16>
    %45 = vector.shape_cast %44 : vector<1x32x32xbf16> to vector<32x32xbf16>
    %cst_19 = arith.constant dense<0.000000e+00> : vector<1024x32xf32>
    %46 = tpu.matmul %43, %45, %cst_19 {dimension_numbers = #tpu.dot_dimension_numbers<[1], [0], [0], [1], [0, 0, 1, 1], [], []>} : vector<1024x32xbf16>, vector<32x32xbf16>, vector<1024x32xf32> -> vector<1024x32xf32>
    %47 = arith.truncf %39 : vector<1024x32xf32> to vector<1024x32xbf16>
    %c0_20 = arith.constant 0 : index
    %c0_21 = arith.constant 0 : index
    %c0_22 = arith.constant 0 : index
    %48 = vector.load %arg4[%c0_20, %c0_21, %c0_22] : memref<3x32x32xbf16, #tpu.memory_space<vmem>>, vector<1x32x32xbf16>
    %49 = vector.shape_cast %48 : vector<1x32x32xbf16> to vector<32x32xbf16>
    %cst_23 = arith.constant dense<0.000000e+00> : vector<1024x32xf32>
    %50 = tpu.matmul %47, %49, %cst_23 {dimension_numbers = #tpu.dot_dimension_numbers<[1], [0], [0], [1], [0, 0, 1, 1], [], []>} : vector<1024x32xbf16>, vector<32x32xbf16>, vector<1024x32xf32> -> vector<1024x32xf32>
    %51 = arith.addf %46, %50 : vector<1024x32xf32>
    %52 = arith.truncf %42 : vector<1024x32xf32> to vector<1024x32xbf16>
    %c2_24 = arith.constant 2 : index
    %c0_25 = arith.constant 0 : index
    %c0_26 = arith.constant 0 : index
    %53 = vector.load %arg4[%c2_24, %c0_25, %c0_26] : memref<3x32x32xbf16, #tpu.memory_space<vmem>>, vector<1x32x32xbf16>
    %54 = vector.shape_cast %53 : vector<1x32x32xbf16> to vector<32x32xbf16>
    %cst_27 = arith.constant dense<0.000000e+00> : vector<1024x32xf32>
    %55 = tpu.matmul %52, %54, %cst_27 {dimension_numbers = #tpu.dot_dimension_numbers<[1], [0], [0], [1], [0, 0, 1, 1], [], []>} : vector<1024x32xbf16>, vector<32x32xbf16>, vector<1024x32xf32> -> vector<1024x32xf32>
    %56 = arith.addf %51, %55 : vector<1024x32xf32>
    %c0_28 = arith.constant 0 : index
    %c0_29 = arith.constant 0 : index
    %57 = vector.load %arg5[%c0_28, %c0_29] : memref<1x32xf32, #tpu.memory_space<vmem>>, vector<1x32xf32>
    %58 = vector.broadcast %57 : vector<1x32xf32> to vector<1024x32xf32>
    %59 = arith.addf %56, %58 : vector<1024x32xf32>
    %cst_30 = arith.constant 0.000000e+00 : f32
    %60 = vector.broadcast %cst_30 : f32 to vector<1024x32xf32>
    %61 = arith.maximumf %59, %60 : vector<1024x32xf32>
    %c1_i32_31 = arith.constant 1 : i32
    %62 = tpu.dynamic_rotate %61 by %c1_i32_31 dim 0 : vector<1024x32xf32>, i32 -> vector<1024x32xf32>
    %63 = vector.broadcast %7 : vector<1024x1xf32> to vector<1024x32xf32>
    %64 = arith.mulf %62, %63 : vector<1024x32xf32>
    %c1023_i32_32 = arith.constant 1023 : i32
    %65 = tpu.dynamic_rotate %61 by %c1023_i32_32 dim 0 : vector<1024x32xf32>, i32 -> vector<1024x32xf32>
    %66 = vector.broadcast %11 : vector<1024x1xf32> to vector<1024x32xf32>
    %67 = arith.mulf %65, %66 : vector<1024x32xf32>
    %68 = arith.truncf %61 : vector<1024x32xf32> to vector<1024x32xbf16>
    %c1_33 = arith.constant 1 : index
    %c0_34 = arith.constant 0 : index
    %c0_35 = arith.constant 0 : index
    %69 = vector.load %arg6[%c1_33, %c0_34, %c0_35] : memref<3x32x128xbf16, #tpu.memory_space<vmem>>, vector<1x32x128xbf16>
    %70 = vector.shape_cast %69 : vector<1x32x128xbf16> to vector<32x128xbf16>
    %cst_36 = arith.constant dense<0.000000e+00> : vector<1024x128xf32>
    %71 = tpu.matmul %68, %70, %cst_36 {dimension_numbers = #tpu.dot_dimension_numbers<[1], [0], [0], [1], [0, 0, 1, 1], [], []>} : vector<1024x32xbf16>, vector<32x128xbf16>, vector<1024x128xf32> -> vector<1024x128xf32>
    %72 = arith.truncf %64 : vector<1024x32xf32> to vector<1024x32xbf16>
    %c0_37 = arith.constant 0 : index
    %c0_38 = arith.constant 0 : index
    %c0_39 = arith.constant 0 : index
    %73 = vector.load %arg6[%c0_37, %c0_38, %c0_39] : memref<3x32x128xbf16, #tpu.memory_space<vmem>>, vector<1x32x128xbf16>
    %74 = vector.shape_cast %73 : vector<1x32x128xbf16> to vector<32x128xbf16>
    %cst_40 = arith.constant dense<0.000000e+00> : vector<1024x128xf32>
    %75 = tpu.matmul %72, %74, %cst_40 {dimension_numbers = #tpu.dot_dimension_numbers<[1], [0], [0], [1], [0, 0, 1, 1], [], []>} : vector<1024x32xbf16>, vector<32x128xbf16>, vector<1024x128xf32> -> vector<1024x128xf32>
    %76 = arith.addf %71, %75 : vector<1024x128xf32>
    %77 = arith.truncf %67 : vector<1024x32xf32> to vector<1024x32xbf16>
    %c2_41 = arith.constant 2 : index
    %c0_42 = arith.constant 0 : index
    %c0_43 = arith.constant 0 : index
    %78 = vector.load %arg6[%c2_41, %c0_42, %c0_43] : memref<3x32x128xbf16, #tpu.memory_space<vmem>>, vector<1x32x128xbf16>
    %79 = vector.shape_cast %78 : vector<1x32x128xbf16> to vector<32x128xbf16>
    %cst_44 = arith.constant dense<0.000000e+00> : vector<1024x128xf32>
    %80 = tpu.matmul %77, %79, %cst_44 {dimension_numbers = #tpu.dot_dimension_numbers<[1], [0], [0], [1], [0, 0, 1, 1], [], []>} : vector<1024x32xbf16>, vector<32x128xbf16>, vector<1024x128xf32> -> vector<1024x128xf32>
    %81 = arith.addf %76, %80 : vector<1024x128xf32>
    %c0_45 = arith.constant 0 : index
    %c0_46 = arith.constant 0 : index
    %82 = vector.load %arg7[%c0_45, %c0_46] : memref<1x128xf32, #tpu.memory_space<vmem>>, vector<1x128xf32>
    %83 = vector.broadcast %82 : vector<1x128xf32> to vector<1024x128xf32>
    %84 = arith.addf %81, %83 : vector<1024x128xf32>
    %cst_47 = arith.constant 0.000000e+00 : f32
    %85 = vector.broadcast %cst_47 : f32 to vector<1024x128xf32>
    %86 = arith.maximumf %84, %85 : vector<1024x128xf32>
    %87 = vector.shape_cast %86 : vector<1024x128xf32> to vector<4x256x128xf32>
    %c0_48 = arith.constant 0 : index
    %c0_49 = arith.constant 0 : index
    %c0_50 = arith.constant 0 : index
    %88 = vector.load %arg8[%c0_48, %c0_49, %c0_50] : memref<4x256x128xf32, #tpu.memory_space<vmem>>, vector<4x256x128xf32>
    tpu.vector_store %arg8[%c0_48, %c0_49, %c0_50], %87 {strides = array<i32>} : memref<4x256x128xf32, #tpu.memory_space<vmem>>, vector<4x256x128xf32>,
    return
  }
  func.func @transform_0(%arg0: i32) -> (i32, i32, i32) {
    %c0_i32 = arith.constant 0 : i32
    %c0_i32_0 = arith.constant 0 : i32
    %c0_i32_1 = arith.constant 0 : i32
    return %arg0, %c0_i32, %c0_i32_0 : i32, i32, i32
  }
  func.func @transform_1(%arg0: i32) -> (i32, i32, i32) {
    %c0_i32 = arith.constant 0 : i32
    %c0_i32_0 = arith.constant 0 : i32
    %c0_i32_1 = arith.constant 0 : i32
    %c0_i32_2 = arith.constant 0 : i32
    return %c0_i32, %c0_i32_0, %c0_i32_1 : i32, i32, i32
  }
  func.func @transform_2(%arg0: i32) -> (i32, i32) {
    %c0_i32 = arith.constant 0 : i32
    %c0_i32_0 = arith.constant 0 : i32
    %c0_i32_1 = arith.constant 0 : i32
    return %c0_i32, %c0_i32_0 : i32, i32
  }
  func.func @transform_3(%arg0: i32) -> (i32, i32, i32) {
    %c0_i32 = arith.constant 0 : i32
    %c0_i32_0 = arith.constant 0 : i32
    %c0_i32_1 = arith.constant 0 : i32
    %c0_i32_2 = arith.constant 0 : i32
    return %c0_i32, %c0_i32_0, %c0_i32_1 : i32, i32, i32
  }
  func.func @transform_4(%arg0: i32) -> (i32, i32) {
    %c0_i32 = arith.constant 0 : i32
    %c0_i32_0 = arith.constant 0 : i32
    %c0_i32_1 = arith.constant 0 : i32
    return %c0_i32, %c0_i32_0 : i32, i32
  }
  func.func @transform_5(%arg0: i32) -> (i32, i32, i32) {
    %c0_i32 = arith.constant 0 : i32
    %c0_i32_0 = arith.constant 0 : i32
    %c0_i32_1 = arith.constant 0 : i32
    %c0_i32_2 = arith.constant 0 : i32
    return %c0_i32, %c0_i32_0, %c0_i32_1 : i32, i32, i32
  }
  func.func @transform_6(%arg0: i32) -> (i32, i32) {
    %c0_i32 = arith.constant 0 : i32
    %c0_i32_0 = arith.constant 0 : i32
    %c0_i32_1 = arith.constant 0 : i32
    return %c0_i32, %c0_i32_0 : i32, i32
  }
  func.func @transform_7(%arg0: i32) -> (i32, i32, i32) {
    %c0_i32 = arith.constant 0 : i32
    %c0_i32_0 = arith.constant 0 : i32
    %c0_i32_1 = arith.constant 0 : i32
    return %arg0, %c0_i32, %c0_i32_0 : i32, i32, i32
  }
}

</mosaic_0001>

<bundles_post_ra>
// kernel: tpu_custom_call.1
= control target key start
LH: loop header
LB: loop body
LE: loop exit
PB: predicated region body
PF: predicated region fallthrough
CT: control target
= control target key end

     0   :  { %vm1482_vm0 = vcmask 1046528   ;;  %v156_v1 = vlaneseq  ;;  %vm1289_vm1 = vcmask 113664   ;;  %v14562_v24 = vmov 0.0   ;;  %s23287_s0 = inlined_call_operand.vmem [shape: f32[4,256,14], index: 0, kind: input, shape index: {}]   ;;  %s23288_s1 = inlined_call_operand.vmem [shape: bf16[3,14,32], index: 1, kind: input, shape index: {}]   ;;  %s23289_s2 = inlined_call_operand.vmem [shape: f32[1,32], index: 2, kind: input, shape index: {}]   ;;  %s23290_s3 = inlined_call_operand.vmem [shape: bf16[3,32,32], index: 3, kind: input, shape index: {}]   ;;  %s23291_s4 = inlined_call_operand.vmem [shape: f32[1,32], index: 4, kind: input, shape index: {}]   ;;  %s23292_s5 = inlined_call_operand.vmem [shape: bf16[3,32,128], index: 5, kind: input, shape index: {}]   ;;  %s23293_s6 = inlined_call_operand.vmem [shape: f32[1,128], index: 6, kind: input, shape index: {}]   ;;  %s23294_s7 = inlined_call_operand.hbm [shape: f32[4,256,128], index: 7, kind: output, shape index: {}]  }
   0x1   :  { %v14609_v0 = vld [vmem:[%s23287_s0] sm:$0xff]  ;;  %v14515_v2 = vld [vmem:[%s23288_s1 + $0x8] sm:$0x7f]   ;;  %v14631_v9 = vld [vmem:[%s23287_s0 + $0x10] sm:$0xff] }
   0x2   :  { %24038 = vst [vmem:[#allocation5_spill] sm:$0xff] %v14609_v0  ;;  %v14516_v3 = vld [vmem:[%s23288_s1] sm:$0x7f]   ;;  %v14620_v4 = vld [vmem:[%s23287_s0 + $0x8] sm:$0xff]  ;;  %14508 = vmatprep.subr.msk.bf16.mxu0 %vm1482_vm0, %v14515_v2  ;;  %v2229_v5 = vsel %vm1482_vm0, %v14515_v2, 0  ;;  %v381_v6 = vrot.slane %v14609_v0, 7 }
   0x3   :  { %v382_v7 = vrot.slane %v14620_v4, 7  ;;  %v1151_v8 = vpack.c.bf16 %v14620_v4, %v14609_v0  ;;  %v31_v10 = vld [vmem:[%s23287_s0 + $0x18] sm:$0xff]  ;;  %12686 = vmatpush3.bf16.msra.mxu0 %v2229_v5  ;;  %14507 = vmatprep.subr.msk.bf16.mxu1 %vm1482_vm0, %v14516_v3  ;;  %v1484_v12 = vsel %vm1482_vm0, %v14516_v3, 0  ;;  %v14643_v13 = vshrl.u32 %v156_v1, 7  ;;  %v14652_v19 = vld [vmem:[%s23287_s0 + $0x20] sm:$0xff]  ;;  %v14685_v30 = vld [vmem:[%s23287_s0 + $0x28] sm:$0xff] }
   0x4   :  { %v14639_v11 = vld [vmem:[%s23287_s0 + $0x3f8] sm:$0xff]  ;;  %v383_v14 = vrot.slane %v14631_v9, 7  ;;  %v384_v15 = vrot.slane %v31_v10, 7  ;;  %12556 = vmatpush3.bf16.msra.mxu1 %v1484_v12  ;;  %v768_v16 = vrot.slane %v14631_v9, 1  ;;  %v769_v17 = vrot.slane %v31_v10, 1  ;;  %v14696_v35 = vld [vmem:[%s23287_s0 + $0x30] sm:$0xff] }
   0x5   :  { %24039 = vst [vmem:[#allocation6_spill] sm:$0xff] %v14639_v11  ;;  %12687 = vmatprep.mubr.msk.bf16.mxu0 %vm1289_vm1, %v1151_v8  ;;  %v1152_v18 = vpack.c.bf16 %v31_v10, %v14631_v9  ;;  %vm894_vm2 = vcmp.lt.s32.totalorder %v14643_v13, 7  ;;  %v188_v20 = vadd.s32 248, %v14643_v13  ;;  %vm189_vm3 = vcmp.ne.s32.totalorder %v14643_v13, 0  ;;  %14509 = vmatprep.subr.msk.bf16.mxu1 %vm1482_vm0, %v14515_v2  ;;  %v14517_v22 = vld [vmem:[%s23288_s1 + $0x10] sm:$0x7f]  }
   0x6   :  { %v23296_v21 = vrot.slane %v14639_v11, 7  ;;  %v14666_v23 = vsel %vm894_vm2, %v768_v16, %v769_v17  ;;  %v14669_v25 = vsel %vm189_vm3, 1.0, %v14562_v24  ;;  %vm509_vm4 = vcmp.lt.s32.totalorder %v14643_v13, 1  ;;  %14510 = vmatprep.subr.msk.bf16.mxu0 %vm1482_vm0, %v14517_v22  ;;  %v14701_v36 = vld [vmem:[%s23287_s0 + $0x38] sm:$0xff]  ;;  %v14720_v46 = vld [vmem:[%s23287_s0 + $0x40] sm:$0xff]  ;;  %v14725_v47 = vld [vmem:[%s23287_s0 + $0x48] sm:$0xff] }
   0x7   :  { %12688 = vmatmul.mubr.msk.bf16.vlgmr.msra.gmra.mrb[0].mxu0 %vm1289_vm1, %v1152_v18  ;;  %24040 = vst [vmem:[#allocation7_spill] sm:$0xff] %v14669_v25  ;;  %v385_v26 = vrot.slane %v14652_v19, 7  ;;  %vm316_vm5 = vcmp.ne.s32.totalorder %v188_v20, 255  ;;  %v636_v27 = vsel %vm509_vm4, %v381_v6, %v382_v7  ;;  %v634_v29 = vsel %vm509_vm4, %v383_v14, %v384_v15  ;;  %v14747_v56 = vld [vmem:[%s23287_s0 + $0x50] sm:$0xff]  ;;  %v14752_v57 = vld [vmem:[%s23287_s0 + $0x58] sm:$0xff]  ;;  %v14762_v60 = vld [vmem:[%s23287_s0 + $0x60] sm:$0xff] }
   0x8   :  { %v637_v28 = vsel %vm509_vm4, %v23296_v21, %v381_v6  ;;  %v14687_v31 = vsel %vm316_vm5, 1.0, %v14562_v24  ;;  %v635_v33 = vsel %vm509_vm4, %v382_v7, %v383_v14  ;;  %v3041_v34 = vsel %vm1482_vm0, %v14517_v22, 0  ;;  %v14767_v61 = vld [vmem:[%s23287_s0 + $0x68] sm:$0xff]  ;;  %v14788_v12 = vld [vmem:[%s23287_s0 + $0x70] sm:$0xff]  ;;  %v14793_v14 = vld [vmem:[%s23287_s0 + $0x78] sm:$0xff] }
   0x9   :  { %24041 = vst [vmem:[#allocation8_spill] sm:$0xff] %v14687_v31  ;;  %v638_v32 = vmul.f32 %v14669_v25, %v637_v28  ;;  %v1219_v37 = vpack.c.bf16 %v634_v29, %v635_v33  ;;  %12816 = vmatpush3.bf16.msra.mxu0 %v3041_v34  ;;  %v386_v38 = vrot.slane %v14685_v30, 7  ;;  %v770_v39 = vrot.slane %v14652_v19, 1  ;;  %v14802_v18 = vld [vmem:[%s23287_s0 + $0x80] sm:$0xff]  ;;  %v14807_v20 = vld [vmem:[%s23287_s0 + $0x88] sm:$0xff] }
   0xa   :  { %v1153_v41 = vpack.c.bf16 %v14685_v30, %v14652_v19  ;;  %v387_v42 = vrot.slane %v14696_v35, 7  ;;  %v388_v43 = vrot.slane %v14701_v36, 7  ;;  %v1154_v45 = vpack.c.bf16 %v14701_v36, %v14696_v35 }
   0xb   :  { %v1218_v40 = vpack.c.bf16 %v636_v27, %v638_v32  ;;  %v14713_v44 = vsel %vm894_vm2, %v769_v17, %v770_v39  ;;  %v632_v48 = vsel %vm509_vm4, %v385_v26, %v386_v38  ;;  %v633_v49 = vsel %vm509_vm4, %v384_v15, %v385_v26 }
   0xc   :  { %12691 = vmatprep.mubr.msk.bf16.mxu0 %vm1289_vm1, %v1153_v41  ;;  %v389_v50 = vrot.slane %v14720_v46, 7  ;;  %v1220_v51 = vpack.c.bf16 %v632_v48, %v633_v49  ;;  %v390_v52 = vrot.slane %v14725_v47, 7  ;;  %v630_v53 = vsel %vm509_vm4, %v387_v42, %v388_v43 }
   0xd   :  { %12557 = vmatprep.mubr.msk.bf16.mxu1 %vm1289_vm1, %v1218_v40  ;;  %v631_v54 = vsel %vm509_vm4, %v386_v38, %v387_v42  ;;  %v1155_v55 = vpack.c.bf16 %v14725_v47, %v14720_v46  ;;  %v391_v63 = vrot.slane %v14747_v56, 7  ;;  %v392_v1 = vrot.slane %v14752_v57, 7  ;;  %v14827_v38 = vld [vmem:[%s23287_s0 + $0x90] sm:$0xff]  ;;  %v14833_v40 = vld [vmem:[%s23287_s0 + $0x98] sm:$0xff] }
   0xe   :  { %12558 = vmatmul.mubr.msk.bf16.vlgmr.msra.gmra.mrb[0].mxu1 %vm1289_vm1, %v1219_v37  ;;  %v628_v58 = vsel %vm509_vm4, %v389_v50, %v390_v52  ;;  %v629_v59 = vsel %vm509_vm4, %v388_v43, %v389_v50  ;;  %v1221_v62 = vpack.c.bf16 %v630_v53, %v631_v54  ;;  %v1156_v2 = vpack.c.bf16 %v14752_v57, %v14747_v56  ;;  %v14842_v43 = vld [vmem:[%s23287_s0 + $0xa0] sm:$0xff] }
   0xf   :  { %13738 = vmatpush3.bf16.msra.mxu1 %v2229_v5  ;;  %12692 = vmatmul.mubr.msk.bf16.gmra.mrb[4].mxu0 %vm1289_vm1, %v1154_v45  ;;  %v1222_v3 = vpack.c.bf16 %v628_v58, %v629_v59  ;;  %v393_v5 = vrot.slane %v14762_v60, 7  ;;  %v394_v6 = vrot.slane %v14767_v61, 7  ;;  %v1157_v7 = vpack.c.bf16 %v14767_v61, %v14762_v60  ;;  %v14847_v45 = vld [vmem:[%s23287_s0 + $0xa8] sm:$0xff] }
  0x10   :  { %12561 = vmatprep.mubr.msk.bf16.mxu1 %vm1289_vm1, %v1220_v51  ;;  %12695 = vmatprep.mubr.msk.bf16.mxu0 %vm1289_vm1, %v1155_v55  ;;  %v626_v8 = vsel %vm509_vm4, %v391_v63, %v392_v1  ;;  %v627_v10 = vsel %vm509_vm4, %v390_v52, %v391_v63  ;;  %v395_v24 = vrot.slane %v14788_v12, 7  ;;  %v396_v26 = vrot.slane %v14793_v14, 7  ;;  %v14873_v63 = vld [vmem:[%s23287_s0 + $0xb8] sm:$0xff] }
  0x11   :  { %v624_v15 = vsel %vm509_vm4, %v393_v5, %v394_v6  ;;  %v625_v17 = vsel %vm509_vm4, %v392_v1, %v393_v5  ;;  %v1223_v22 = vpack.c.bf16 %v626_v8, %v627_v10  ;;  %v1158_v27 = vpack.c.bf16 %v14793_v14, %v14788_v12  ;;  %v14887_v5 = vld [vmem:[%s23287_s0 + $0xc8] sm:$0xff] }
  0x12   :  { %v1224_v28 = vpack.c.bf16 %v624_v15, %v625_v17  ;;  %v397_v29 = vrot.slane %v14802_v18, 7  ;;  %v398_v32 = vrot.slane %v14807_v20, 7  ;;  %v1159_v33 = vpack.c.bf16 %v14807_v20, %v14802_v18 }
  0x13   :  { %v622_v34 = vsel %vm509_vm4, %v395_v24, %v396_v26  ;;  %v623_v37 = vsel %vm509_vm4, %v394_v6, %v395_v24  ;;  %v399_v49 = vrot.slane %v14827_v38, 7  ;;  %v400_v50 = vrot.slane %v14833_v40, 7 }
  0x14   :  { %v620_v41 = vsel %vm509_vm4, %v397_v29, %v398_v32  ;;  %v621_v42 = vsel %vm509_vm4, %v396_v26, %v397_v29  ;;  %v1225_v48 = vpack.c.bf16 %v622_v34, %v623_v37  ;;  %v1160_v51 = vpack.c.bf16 %v14833_v40, %v14827_v38 }
  0x15   :  { %v1226_v52 = vpack.c.bf16 %v620_v41, %v621_v42  ;;  %v401_v53 = vrot.slane %v14842_v43, 7  ;;  %v402_v54 = vrot.slane %v14847_v45, 7  ;;  %v1161_v55 = vpack.c.bf16 %v14847_v45, %v14842_v43 }
  0x16   :  { %12562 = vmatmul.mubr.msk.bf16.gmra.mrb[4].mxu1 %vm1289_vm1, %v1221_v62  ;;  %v618_v58 = vsel %vm509_vm4, %v399_v49, %v400_v50  ;;  %v619_v59 = vsel %vm509_vm4, %v398_v32, %v399_v49  ;;  %v14867_v62 = vld [vmem:[%s23287_s0 + $0xb0] sm:$0xff]  ;;  %v404_v8 = vrot.slane %v14873_v63, 7 }
  0x17   :  { %12696 = vmatmul.mubr.msk.bf16.gmra.mrb[8].mxu0 %vm1289_vm1, %v1156_v2  ;;  %12565 = vmatprep.mubr.msk.bf16.mxu1 %vm1289_vm1, %v1222_v3  ;;  %v616_v1 = vsel %vm509_vm4, %v401_v53, %v402_v54  ;;  %v617_v2 = vsel %vm509_vm4, %v400_v50, %v401_v53  ;;  %v14882_v3 = vld [vmem:[%s23287_s0 + $0xc0] sm:$0xff]  ;;  %v1227_v6 = vpack.c.bf16 %v618_v58, %v619_v59 }
  0x18   :  { %12699 = vmatprep.mubr.msk.bf16.mxu0 %vm1289_vm1, %v1157_v7  ;;  %v403_v7 = vrot.slane %v14867_v62, 7  ;;  %v1162_v10 = vpack.c.bf16 %v14873_v63, %v14867_v62  ;;  %v1228_v15 = vpack.c.bf16 %v616_v1, %v617_v2  ;;  %v405_v17 = vrot.slane %v14882_v3, 7 }
  0x19   :  { %v1163_v24 = vpack.c.bf16 %v14887_v5, %v14882_v3 }
  0x1e   :  { %12566 = vmatmul.mubr.msk.bf16.gmra.mrb[8].mxu1 %vm1289_vm1, %v1223_v22  ;;  %v406_v22 = vrot.slane %v14887_v5, 7 }
  0x1f   :  { %12700 = vmatmul.mubr.msk.bf16.gmra.mrb[12].mxu0 %vm1289_vm1, %v1158_v27  ;;  %12569 = vmatprep.mubr.msk.bf16.mxu1 %vm1289_vm1, %v1224_v28 }
  0x20   :  { %12703 = vmatprep.mubr.msk.bf16.mxu0 %vm1289_vm1, %v1159_v33 }
  0x26   :  { %12570 = vmatmul.mubr.msk.bf16.gmra.mrb[12].mxu1 %vm1289_vm1, %v1225_v48 }
  0x27   :  { %12704 = vmatmul.mubr.msk.bf16.gmra.mrb[16].mxu0 %vm1289_vm1, %v1160_v51  ;;  %12573 = vmatprep.mubr.msk.bf16.mxu1 %vm1289_vm1, %v1226_v52 }
  0x28   :  { %12707 = vmatprep.mubr.msk.bf16.mxu0 %vm1289_vm1, %v1161_v55 }
  0x2e   :  { %12574 = vmatmul.mubr.msk.bf16.gmra.mrb[16].mxu1 %vm1289_vm1, %v1227_v6 }
  0x2f   :  { %12 = vsyncpa [#allocation3], 0  ;;  %12708 = vmatmul.mubr.msk.bf16.gmra.mrb[20].mxu0 %vm1289_vm1, %v1162_v10  ;;  %12577 = vmatprep.mubr.msk.bf16.mxu1 %vm1289_vm1, %v1228_v15  ;;  %v614_v26 = vsel %vm509_vm4, %v403_v7, %v404_v8  ;;  %v615_v27 = vsel %vm509_vm4, %v402_v54, %v403_v7  ;;  %v14908_v28 = vld [vmem:[%s23287_s0 + $0xd0] sm:$0xff]  ;;  %v14913_v29 = vld [vmem:[%s23287_s0 + $0xd8] sm:$0xff]  ;;  %v612_v32 = vsel %vm509_vm4, %v405_v17, %v406_v22  ;;  %v777_v9 = vrot.slane %v14752_v57, 1  ;;  %s14563_s14 = smov [#allocation2]  }
  0x30   :  { %12711 = vmatprep.mubr.msk.bf16.mxu0 %vm1289_vm1, %v1163_v24  ;;  %v613_v33 = vsel %vm509_vm4, %v404_v8, %v405_v17  ;;  %v14922_v34 = vld [vmem:[%s23287_s0 + $0xe0] sm:$0xff]  ;;  %v14927_v37 = vld [vmem:[%s23287_s0 + $0xe8] sm:$0xff]  ;;  %v1229_v41 = vpack.c.bf16 %v614_v26, %v615_v27  ;;  %v407_v42 = vrot.slane %v14908_v28, 7  ;;  %v408_v48 = vrot.slane %v14913_v29, 7  ;;  %v14953_v59 = vld [vmem:[%s23287_s0 + $0xf0] sm:$0xff]  ;;  %s11337_s15 = sshll.u32 %s14563_s14, 4  ;;  %s11338_s15 = int_to_ptr.vmem [resolvable:$true] %s11337_s15 }
  0x31   :  { %v1164_v49 = vpack.c.bf16 %v14913_v29, %v14908_v28  ;;  %v1230_v50 = vpack.c.bf16 %v612_v32, %v613_v33  ;;  %v409_v51 = vrot.slane %v14922_v34, 7  ;;  %v410_v52 = vrot.slane %v14927_v37, 7  ;;  %v14940_v54 = vld [vmem:[%s23287_s0 + $0x100] sm:$0xff]  ;;  %v14958_v1 = vld [vmem:[%s23287_s0 + $0xf8] sm:$0xff]  ;;  %v14968_v8 = vld [vmem:[%s23287_s0 + $0x108] sm:$0xff]  ;;  %s14538_s16 = scalar_lea.vmem %s11338_s15, 16384  ;;  %p14543_p1 = scmp.lt.s32.totalorder %s11338_s15, %s11338_s15 }
  0x32   :  { %v1165_v53 = vpack.c.bf16 %v14927_v37, %v14922_v34  ;;  %v610_v55 = vsel %vm509_vm4, %v407_v42, %v408_v48  ;;  %v611_v58 = vsel %vm509_vm4, %v406_v22, %v407_v42  ;;  %v413_v7 = vrot.slane %v14940_v54, 7  ;;  %v15055_v57 = vld [vmem:[%s23287_s0 + $0x130] sm:$0xff]  ;;  %p14539_p0 = scmp.ne.s32.totalorder %s11338_s15, %s14538_s16  ;;  %p14544_p2 = scmp.lt.s32.totalorder %s14538_s16, %s14538_s16 }
  0x33   :  { %v608_v2 = vsel %vm509_vm4, %v409_v51, %v410_v52  ;;  %v609_v6 = vsel %vm509_vm4, %v408_v48, %v409_v51  ;;  %v1231_v10 = vpack.c.bf16 %v610_v55, %v611_v58  ;;  %v412_v15 = vrot.slane %v14958_v1, 7  ;;  %v14991_v48 = vld [vmem:[%s23287_s0 + $0x110] sm:$0xff] }
  0x34   :  { %v411_v17 = vrot.slane %v14953_v59, 7  ;;  %v1166_v22 = vpack.c.bf16 %v14958_v1, %v14953_v59  ;;  %v1232_v24 = vpack.c.bf16 %v608_v2, %v609_v6  ;;  %v414_v26 = vrot.slane %v14968_v8, 7  ;;  %v14536_v13 = vld [vmem:[%s23292_s5 + $0x10] sm:$0xff]   ;;  %p14545_p3 = por %p14544_p2, %p14543_p1 }
  0x35   :  { %v1167_v27 = vpack.c.bf16 %v14968_v8, %v14940_v54  ;;  %v605_v32 = vsel %vm509_vm4, %v412_v15, %v413_v7  ;;  %v767_v51 = vrot.slane %v14620_v4, 1  ;;  %v23295_v55 = vrot.slane %v14609_v0, 1 }
  0x36   :  { %12578 = vmatmul.mubr.msk.bf16.gmra.mrb[20].mxu1 %vm1289_vm1, %v1229_v41  ;;  %v606_v33 = vsel %vm509_vm4, %v411_v17, %v412_v15  ;;  %v607_v41 = vsel %vm509_vm4, %v410_v52, %v411_v17  ;;  %v670_v42 = vmul.f32 %v14669_v25, %v605_v32  ;;  %v15004_v52 = vld [vmem:[%s23287_s0 + $0x120] sm:$0xff]  ;;  %v415_v2 = vrot.slane %v14991_v48, 7  ;;  %p14546_p4 = pnand %p14545_p3, %p14539_p0 }
  0x37   :  { %12712 = vmatmul.mubr.msk.bf16.gmra.mrb[24].mxu0 %vm1289_vm1, %v1164_v49  ;;  %12581 = vmatprep.mubr.msk.bf16.mxu1 %vm1289_vm1, %v1230_v50  ;;  %v14996_v49 = vld [vmem:[%s23287_s0 + $0x118] sm:$0xff]  ;;  %v604_v50 = vsel %vm509_vm4, %v413_v7, %v414_v26  ;;  %v1233_v58 = vpack.c.bf16 %v606_v33, %v607_v41  ;;  %v771_v6 = vrot.slane %v14685_v30, 1  ;;  %v772_v15 = vrot.slane %v14696_v35, 1 }
  0x38   :  { %12715 = vmatprep.mubr.msk.bf16.mxu0 %vm1289_vm1, %v1165_v53  ;;  %v15009_v53 = vld [vmem:[%s23287_s0 + $0x128] sm:$0xff]  ;;  %v416_v7 = vrot.slane %v14996_v49, 7  ;;  %v1168_v4 = vpack.c.bf16 %v14996_v49, %v14991_v48  ;;  %v417_v17 = vrot.slane %v15004_v52, 7  ;;  %v774_v32 = vrot.slane %v14720_v46, 1 }
  0x39   :  { %v15028_v30 = vsel %vm894_vm2, %v767_v51, %v768_v16  ;;  %v775_v33 = vrot.slane %v14725_v47, 1  ;;  %v776_v35 = vrot.slane %v14747_v56, 1  ;;  %v603_v41 = vsel %vm509_vm4, %v414_v26, %v415_v2  ;;  %v15060_v26 = vld [vmem:[%s23287_s0 + $0x138] sm:$0xff] }
  0x3a   :  { %v602_v16 = vsel %vm509_vm4, %v415_v2, %v416_v7  ;;  %v778_v56 = vrot.slane %v14762_v60, 1  ;;  %v15068_v60 = vsel %vm894_vm2, %v771_v6, %v772_v15  ;;  %v15079_v2 = vld [vmem:[%s23287_s0 + $0x148] sm:$0xff]  ;;  %v1170_v19 = vpack.c.bf16 %v15060_v26, %v15055_v57 }
  0x3b   :  { %v783_v21 = vrot.slane %v14807_v20, 1  ;;  %v785_v47 = vrot.slane %v14833_v40, 1  ;;  %v786_v46 = vrot.slane %v14842_v43, 1  ;;  %v787_v40 = vrot.slane %v14847_v45, 1  ;;  %v15144_v43 = vld [vmem:[%s23287_s0 + $0x150] sm:$0xff] }
  0x3c   :  { %v790_v45 = vrot.slane %v14882_v3, 1  ;;  %vm4896_vm6 = vcmask 261120  }
  0x3e   :  { %12582 = vmatmul.mubr.msk.bf16.gmra.mrb[24].mxu1 %vm1289_vm1, %v1231_v10  ;;  %v1234_v10 = vpack.c.bf16 %v604_v50, %v670_v42  ;;  %v601_v50 = vsel %vm509_vm4, %v416_v7, %v417_v17  ;;  %v15085_v7 = vsel %vm894_vm2, %v770_v39, %v771_v6  ;;  %v784_v6 = vrot.slane %v14827_v38, 1 }
  0x3f   :  { %12716 = vmatmul.mubr.msk.bf16.gmra.mrb[28].mxu0 %vm1289_vm1, %v1166_v22  ;;  %12585 = vmatprep.mubr.msk.bf16.mxu1 %vm1289_vm1, %v1232_v24  ;;  %v418_v22 = vrot.slane %v15009_v53, 7  ;;  %v1169_v24 = vpack.c.bf16 %v15009_v53, %v15004_v52  ;;  %v15137_v38 = vsel %vm894_vm2, %v776_v35, %v777_v9 }
  0x40   :  { %12719 = vmatprep.mubr.msk.bf16.mxu0 %vm1289_vm1, %v1167_v27  ;;  %v773_v27 = vrot.slane %v14701_v36, 1  ;;  %v15039_v36 = vsel %vm894_vm2, %v23295_v55, %v767_v51  ;;  %v779_v51 = vrot.slane %v14767_v61, 1  ;;  %v420_v55 = vrot.slane %v15060_v26, 7 }
  0x41   :  { %v600_v42 = vsel %vm509_vm4, %v417_v17, %v418_v22  ;;  %v1235_v17 = vpack.c.bf16 %v602_v16, %v603_v41  ;;  %v782_v16 = vrot.slane %v14802_v18, 1 }
  0x42   :  { %v15093_v61 = vsel %vm894_vm2, %v772_v15, %v773_v27  ;;  %v1236_v39 = vpack.c.bf16 %v600_v42, %v601_v50  ;;  %v781_v15 = vrot.slane %v14793_v14, 1  ;;  %v15112_v42 = vsel %vm894_vm2, %v775_v33, %v776_v35 }
  0x43   :  { %v15116_v50 = vsel %vm894_vm2, %v774_v32, %v775_v33  ;;  %v15120_v14 = vsel %vm894_vm2, %v777_v9, %v778_v56  ;;  %v15149_v33 = vld [vmem:[%s23287_s0 + $0x158] sm:$0xff]  ;;  %v788_v9 = vrot.slane %v14867_v62, 1 }
  0x44   :  { %v15178_v62 = vsel %vm894_vm2, %v781_v15, %v782_v16  ;;  %v424_v18 = vrot.slane %v15149_v33, 7  ;;  %v1172_v0 = vpack.c.bf16 %v15149_v33, %v15144_v43 }
  0x46   :  { %12586 = vmatmul.mubr.msk.bf16.gmra.mrb[28].mxu1 %vm1289_vm1, %v1233_v58  ;;  %v15074_v58 = vld [vmem:[%s23287_s0 + $0x140] sm:$0xff] }
  0x47   :  { %12720 = vmatmul.mubr.msk.bf16.gmra.mrb[32].mxu0 %vm1289_vm1, %v1168_v4  ;;  %12589 = vmatprep.mubr.msk.bf16.mxu1 %vm1289_vm1, %v1234_v10  ;;  %v15089_v4 = vsel %vm894_vm2, %v773_v27, %v774_v32  ;;  %v780_v10 = vrot.slane %v14788_v12, 1  ;;  %v421_v27 = vrot.slane %v15074_v58, 7  ;;  %v422_v12 = vrot.slane %v15079_v2, 7 }
  0x48   :  { %12723 = vmatprep.mubr.msk.bf16.mxu0 %vm1289_vm1, %v1169_v24  ;;  %v419_v24 = vrot.slane %v15055_v57, 7  ;;  %v1171_v41 = vpack.c.bf16 %v15079_v2, %v15074_v58 }
  0x49   :  { %v597_v35 = vsel %vm509_vm4, %v420_v55, %v421_v27 }
  0x4a   :  { %v598_v32 = vsel %vm509_vm4, %v419_v24, %v420_v55  ;;  %v599_v20 = vsel %vm509_vm4, %v418_v22, %v419_v24  ;;  %v596_v22 = vsel %vm509_vm4, %v421_v27, %v422_v12  ;;  %v15166_v24 = vld [vmem:[%s23287_s0 + $0x168] sm:$0xff]  ;;  %v15174_v55 = vsel %vm894_vm2, %v778_v56, %v779_v51 }
  0x4b   :  { %24042 = vst [vmem:[#allocation9_spill] sm:$0xff] %v15174_v55  ;;  %v1237_v27 = vpack.c.bf16 %v598_v32, %v599_v20  ;;  %v1238_v11 = vpack.c.bf16 %v596_v22, %v597_v35  ;;  %v15189_v56 = vsel %vm894_vm2, %v780_v10, %v781_v15  ;;  %v15200_v55 = vsel %vm894_vm2, %v783_v21, %v784_v6 }
  0x4c   :  { %24043 = vst [vmem:[#allocation10_spill] sm:$0xff] %v15189_v56  ;;  %v15208_v15 = vsel %vm894_vm2, %v785_v47, %v786_v46  ;;  %v791_v22 = vrot.slane %v14887_v5, 1  ;;  %v792_v35 = vrot.slane %v14908_v28, 1  ;;  %v793_v20 = vrot.slane %v14913_v29, 1 }
  0x4d   :  { %24044 = vst [vmem:[#allocation11_spill] sm:$0xff] %v15208_v15  ;;  %v794_v56 = vrot.slane %v14922_v34, 1  ;;  %v15225_v28 = vsel %vm894_vm2, %v784_v6, %v785_v47  ;;  %v795_v29 = vrot.slane %v14927_v37, 1  ;;  %v796_v6 = vrot.slane %v14953_v59, 1 }
  0x4e   :  { %12590 = vmatmul.mubr.msk.bf16.gmra.mrb[32].mxu1 %vm1289_vm1, %v1235_v17  ;;  %v15161_v17 = vld [vmem:[%s23287_s0 + $0x160] sm:$0xff]  ;;  %24045 = vst [vmem:[#allocation12_spill] sm:$0xff] %v15225_v28  ;;  %v798_v37 = vrot.slane %v14940_v54, 1 }
  0x4f   :  { %12724 = vmatmul.mubr.msk.bf16.gmra.mrb[36].mxu0 %vm1289_vm1, %v1170_v19  ;;  %12593 = vmatprep.mubr.msk.bf16.mxu1 %vm1289_vm1, %v1236_v39  ;;  %v15170_v19 = vsel %vm894_vm2, %v779_v51, %v780_v10  ;;  %v789_v39 = vrot.slane %v14873_v63, 1  ;;  %v425_v51 = vrot.slane %v15161_v17, 7  ;;  %v426_v63 = vrot.slane %v15166_v24, 7 }
  0x50   :  { %12727 = vmatprep.mubr.msk.bf16.mxu0 %vm1289_vm1, %v1171_v41  ;;  %v423_v41 = vrot.slane %v15144_v43, 7  ;;  %v1173_v32 = vpack.c.bf16 %v15166_v24, %v15161_v17  ;;  %v15204_v10 = vsel %vm894_vm2, %v782_v16, %v783_v21  ;;  %v15254_v16 = vld [vmem:[%s23287_s0 + $0x188] sm:$0xff] }
  0x51   :  { %v592_v34 = vsel %vm509_vm4, %v425_v51, %v426_v63  ;;  %v593_v47 = vsel %vm509_vm4, %v424_v18, %v425_v51  ;;  %v15266_v59 = vsel %vm894_vm2, %v789_v39, %v790_v45 }
  0x52   :  { %v594_v21 = vsel %vm509_vm4, %v423_v41, %v424_v18  ;;  %v595_v5 = vsel %vm509_vm4, %v422_v12, %v423_v41  ;;  %v15249_v12 = vld [vmem:[%s23287_s0 + $0x180] sm:$0xff]  ;;  %v15262_v18 = vsel %vm894_vm2, %v786_v46, %v787_v40  ;;  %v797_v41 = vrot.slane %v14958_v1, 1 }
  0x53   :  { %24046 = vst [vmem:[#allocation13_spill] sm:$0xff] %v15262_v18  ;;  %v1239_v51 = vpack.c.bf16 %v594_v21, %v595_v5  ;;  %v1240_v15 = vpack.c.bf16 %v592_v34, %v593_v47  ;;  %v15277_v46 = vsel %vm894_vm2, %v788_v9, %v789_v39  ;;  %v430_v1 = vrot.slane %v15254_v16, 7 }
  0x54   :  { %24047 = vst [vmem:[#allocation14_spill] sm:$0xff] %v15277_v46  ;;  %v1175_v21 = vpack.c.bf16 %v15254_v16, %v15249_v12  ;;  %v15288_v18 = vsel %vm894_vm2, %v791_v22, %v792_v35  ;;  %v15296_v39 = vsel %vm894_vm2, %v793_v20, %v794_v56  ;;  %v799_v34 = vrot.slane %v14968_v8, 1 }
  0x55   :  { %24048 = vst [vmem:[#allocation15_spill] sm:$0xff] %v15296_v39  ;;  %v800_v47 = vrot.slane %v14991_v48, 1  ;;  %v801_v5 = vrot.slane %v14996_v49, 1  ;;  %v802_v46 = vrot.slane %v15004_v52, 1  ;;  %v15313_v48 = vsel %vm894_vm2, %v792_v35, %v793_v20  ;;  %v15320_v52 = vld [vmem:[%s23287_s0 + $0x190] sm:$0xff]  ;;  %v15337_v35 = vld [vmem:[%s23287_s0 + $0x1a0] sm:$0xff] }
  0x56   :  { %12594 = vmatmul.mubr.msk.bf16.gmra.mrb[36].mxu1 %vm1289_vm1, %v1237_v27  ;;  %v15258_v27 = vsel %vm894_vm2, %v787_v40, %v788_v9  ;;  %v429_v40 = vrot.slane %v15249_v12, 7  ;;  %v15292_v9 = vsel %vm894_vm2, %v790_v45, %v791_v22  ;;  %24049 = vst [vmem:[#allocation16_spill] sm:$0xff] %v15313_v48  ;;  %v803_v49 = vrot.slane %v15009_v53, 1 }
  0x57   :  { %12728 = vmatmul.mubr.msk.bf16.gmra.mrb[40].mxu0 %vm1289_vm1, %v1172_v0  ;;  %12597 = vmatprep.mubr.msk.bf16.mxu1 %vm1289_vm1, %v1238_v11  ;;  %v15232_v0 = vld [vmem:[%s23287_s0 + $0x170] sm:$0xff]  ;;  %v15237_v11 = vld [vmem:[%s23287_s0 + $0x178] sm:$0xff]  ;;  %v804_v22 = vrot.slane %v15055_v57, 1  ;;  %v990_v57 = vsel %vm894_vm2, %v797_v41, %v798_v37  ;;  %v15362_v39 = vsel %vm894_vm2, %v796_v6, %v797_v41  ;;  %v806_v41 = vrot.slane %v15074_v58, 1 }
  0x58   :  { %12731 = vmatprep.mubr.msk.bf16.mxu0 %vm1289_vm1, %v1173_v32  ;;  %v427_v32 = vrot.slane %v15232_v0, 7  ;;  %v428_v3 = vrot.slane %v15237_v11, 7  ;;  %v1174_v28 = vpack.c.bf16 %v15237_v11, %v15232_v0  ;;  %24051 = vst [vmem:[#allocation18_spill] sm:$0xff] %v15362_v39  ;;  %v810_v39 = vrot.slane %v15161_v17, 1 }
  0x59   :  { %v811_v17 = vrot.slane %v15166_v24, 1  ;;  %v15429_v24 = vld [vmem:[%s23287_s0 + $0x1c8] sm:$0xff] }
  0x5a   :  { %v590_v45 = vsel %vm509_vm4, %v427_v32, %v428_v3  ;;  %v591_v8 = vsel %vm509_vm4, %v426_v63, %v427_v32  ;;  %v588_v63 = vsel %vm509_vm4, %v429_v40, %v430_v1  ;;  %v589_v20 = vsel %vm509_vm4, %v428_v3, %v429_v40 }
  0x5b   :  { %v15350_v3 = vsel %vm894_vm2, %v794_v56, %v795_v29  ;;  %v1241_v32 = vpack.c.bf16 %v590_v45, %v591_v8  ;;  %v431_v40 = vrot.slane %v15320_v52, 7  ;;  %v1242_v48 = vpack.c.bf16 %v588_v63, %v589_v20 }
  0x5c   :  { %24050 = vst [vmem:[#allocation17_spill] sm:$0xff] %v15350_v3  ;;  %v15365_v56 = vmul.f32 %v14687_v31, %v990_v57  ;;  %v433_v45 = vrot.slane %v15337_v35, 7  ;;  %v15376_v63 = vsel %vm894_vm2, %v799_v34, %v800_v47  ;;  %v807_v20 = vrot.slane %v15079_v2, 1  ;;  %v15401_v2 = vld [vmem:[%s23287_s0 + $0x1b0] sm:$0xff] }
  0x5d   :  { %v808_v57 = vrot.slane %v15144_v43, 1  ;;  %v809_v3 = vrot.slane %v15149_v33, 1  ;;  %v587_v58 = vsel %vm509_vm4, %v430_v1, %v431_v40  ;;  %v15406_v43 = vld [vmem:[%s23287_s0 + $0x1b8] sm:$0xff] }
  0x5e   :  { %12598 = vmatmul.mubr.msk.bf16.gmra.mrb[40].mxu1 %vm1289_vm1, %v1239_v51  ;;  %v15346_v51 = vsel %vm894_vm2, %v795_v29, %v796_v6  ;;  %v805_v29 = vrot.slane %v15060_v26, 1  ;;  %v15380_v6 = vsel %vm894_vm2, %v798_v37, %v799_v34  ;;  %v15384_v26 = vsel %vm894_vm2, %v801_v5, %v802_v46 }
  0x5f   :  { %12732 = vmatmul.mubr.msk.bf16.gmra.mrb[44].mxu0 %vm1289_vm1, %v1174_v28  ;;  %12601 = vmatprep.mubr.msk.bf16.mxu1 %vm1289_vm1, %v1240_v15  ;;  %v15325_v15 = vld [vmem:[%s23287_s0 + $0x198] sm:$0xff]  ;;  %v15342_v28 = vld [vmem:[%s23287_s0 + $0x1a8] sm:$0xff] }
  0x60   :  { %12735 = vmatprep.mubr.msk.bf16.mxu0 %vm1289_vm1, %v1175_v21  ;;  %v432_v21 = vrot.slane %v15325_v15, 7  ;;  %v1176_v54 = vpack.c.bf16 %v15325_v15, %v15320_v52  ;;  %v434_v8 = vrot.slane %v15342_v28, 7  ;;  %v1177_v53 = vpack.c.bf16 %v15342_v28, %v15337_v35 }
  0x62   :  { %v586_v37 = vsel %vm509_vm4, %v431_v40, %v432_v21  ;;  %v584_v1 = vsel %vm509_vm4, %v433_v45, %v434_v8  ;;  %v585_v34 = vsel %vm509_vm4, %v432_v21, %v433_v45  ;;  %v15435_v40 = vsel %vm894_vm2, %v803_v49, %v804_v22 }
  0x63   :  { %v436_v21 = vrot.slane %v15406_v43, 7  ;;  %v1178_v45 = vpack.c.bf16 %v15406_v43, %v15401_v2  ;;  %v1244_v33 = vpack.c.bf16 %v584_v1, %v585_v34  ;;  %v813_v34 = vrot.slane %v15237_v11, 1 }
  0x66   :  { %12602 = vmatmul.mubr.msk.bf16.gmra.mrb[44].mxu1 %vm1289_vm1, %v1241_v32  ;;  %v15424_v32 = vld [vmem:[%s23287_s0 + $0x1c0] sm:$0xff] }
  0x67   :  { %12736 = vmatmul.mubr.msk.bf16.gmra.mrb[48].mxu0 %vm1289_vm1, %v1176_v54  ;;  %12605 = vmatprep.mubr.msk.bf16.mxu1 %vm1289_vm1, %v1242_v48  ;;  %v15418_v54 = vsel %vm894_vm2, %v800_v47, %v801_v5  ;;  %v812_v48 = vrot.slane %v15232_v0, 1  ;;  %v15439_v0 = vsel %vm894_vm2, %v802_v46, %v803_v49  ;;  %v1243_v5 = vpack.c.bf16 %v586_v37, %v587_v58 }
  0x68   :  { %12739 = vmatprep.mubr.msk.bf16.mxu0 %vm1289_vm1, %v1177_v53  ;;  %24052 = vst [vmem:[#allocation19_spill] sm:$0xff] %v15418_v54  ;;  %24053 = vst [vmem:[#allocation20_spill] sm:$0xff] %v15439_v0  ;;  %v435_v47 = vrot.slane %v15401_v2, 7  ;;  %v15449_v54 = vsel %vm894_vm2, %v805_v29, %v806_v41  ;;  %v15453_v46 = vsel %vm894_vm2, %v804_v22, %v805_v29  ;;  %v437_v49 = vrot.slane %v15424_v32, 7 }
  0x69   :  { %24054 = vst [vmem:[#allocation21_spill] sm:$0xff] %v15453_v46  ;;  %v438_v37 = vrot.slane %v15429_v24, 7  ;;  %v1179_v58 = vpack.c.bf16 %v15429_v24, %v15424_v32  ;;  %v814_v53 = vrot.slane %v15249_v12, 1  ;;  %v15465_v0 = vsel %vm894_vm2, %v807_v20, %v808_v57 }
  0x6a   :  { %24055 = vst [vmem:[#allocation22_spill] sm:$0xff] %v15465_v0  ;;  %v15469_v22 = vsel %vm894_vm2, %v806_v41, %v807_v20  ;;  %v582_v29 = vsel %vm509_vm4, %v435_v47, %v436_v21  ;;  %v583_v1 = vsel %vm509_vm4, %v434_v8, %v435_v47  ;;  %v15480_v12 = vsel %vm894_vm2, %v809_v3, %v810_v39  ;;  %v15493_v47 = vld [vmem:[%s23287_s0 + $0x1d0] sm:$0xff] }
  0x6b   :  { %24056 = vst [vmem:[#allocation23_spill] sm:$0xff] %v15469_v22  ;;  %24057 = vst [vmem:[#allocation24_spill] sm:$0xff] %v15480_v12  ;;  %v815_v46 = vrot.slane %v15254_v16, 1  ;;  %v816_v41 = vrot.slane %v15320_v52, 1  ;;  %v817_v20 = vrot.slane %v15325_v15, 1  ;;  %v819_v8 = vrot.slane %v15342_v28, 1 }
  0x6c   :  { %v15498_v16 = vld [vmem:[%s23287_s0 + $0x1d8] sm:$0xff]  ;;  %v580_v52 = vsel %vm509_vm4, %v437_v49, %v438_v37  ;;  %v581_v15 = vsel %vm509_vm4, %v436_v21, %v437_v49  ;;  %v820_v28 = vrot.slane %v15401_v2, 1  ;;  %v15529_v49 = vsel %vm894_vm2, %v810_v39, %v811_v17 }
  0x6d   :  { %v440_v2 = vrot.slane %v15498_v16, 7  ;;  %v1246_v21 = vpack.c.bf16 %v580_v52, %v581_v15  ;;  %v821_v0 = vrot.slane %v15406_v43, 1  ;;  %v822_v52 = vrot.slane %v15424_v32, 1  ;;  %v15554_v15 = vld [vmem:[%s23287_s0 + $0x200] sm:$0xff] }
  0x6e   :  { %12606 = vmatmul.mubr.msk.bf16.gmra.mrb[48].mxu1 %vm1289_vm1, %v1243_v5  ;;  %v818_v5 = vrot.slane %v15337_v35, 1  ;;  %v15506_v35 = vsel %vm894_vm2, %v808_v57, %v809_v3  ;;  %v15523_v3 = vsel %vm894_vm2, %v811_v17, %v812_v48  ;;  %v439_v57 = vrot.slane %v15493_v47, 7 }
  0x6f   :  { %12740 = vmatmul.mubr.msk.bf16.gmra.mrb[52].mxu0 %vm1289_vm1, %v1178_v45  ;;  %12609 = vmatprep.mubr.msk.bf16.mxu1 %vm1289_vm1, %v1244_v33  ;;  %24058 = vst [vmem:[#allocation25_spill] sm:$0xff] %v15506_v35  ;;  %v1245_v33 = vpack.c.bf16 %v582_v29, %v583_v1  ;;  %v15512_v45 = vld [vmem:[%s23287_s0 + $0x1e0] sm:$0xff]  ;;  %v15533_v1 = vsel %vm894_vm2, %v813_v34, %v814_v53 }
  0x70   :  { %12743 = vmatprep.mubr.msk.bf16.mxu0 %vm1289_vm1, %v1179_v58  ;;  %v15517_v58 = vld [vmem:[%s23287_s0 + $0x1e8] sm:$0xff]  ;;  %v1180_v29 = vpack.c.bf16 %v15498_v16, %v15493_v47  ;;  %v15541_v35 = vsel %vm894_vm2, %v812_v48, %v813_v34  ;;  %v441_v12 = vrot.slane %v15512_v45, 7  ;;  %v15558_v48 = vsel %vm894_vm2, %v815_v46, %v816_v41 }
  0x71   :  { %24059 = vst [vmem:[#allocation26_spill] sm:$0xff] %v15541_v35  ;;  %v442_v39 = vrot.slane %v15517_v58, 7  ;;  %v1181_v17 = vpack.c.bf16 %v15517_v58, %v15512_v45  ;;  %24060 = vst [vmem:[#allocation27_spill] sm:$0xff] %v15558_v48  ;;  %v15562_v34 = vsel %vm894_vm2, %v814_v53, %v815_v46  ;;  %v578_v43 = vsel %vm509_vm4, %v439_v57, %v440_v2 }
  0x72   :  { %24061 = vst [vmem:[#allocation28_spill] sm:$0xff] %v15562_v34  ;;  %v579_v32 = vsel %vm509_vm4, %v438_v37, %v439_v57  ;;  %v15573_v11 = vsel %vm894_vm2, %v817_v20, %v818_v5  ;;  %v823_v35 = vrot.slane %v15429_v24, 1  ;;  %v824_v53 = vrot.slane %v15493_v47, 1  ;;  %v90_v37 = vld [vmem:[%s23287_s0 + $0x1f0] sm:$0xff] }
  0x73   :  { %24062 = vst [vmem:[#allocation29_spill] sm:$0xff] %v15573_v11  ;;  %v825_v46 = vrot.slane %v15498_v16, 1  ;;  %v576_v24 = vsel %vm509_vm4, %v441_v12, %v442_v39  ;;  %v577_v47 = vsel %vm509_vm4, %v440_v2, %v441_v12  ;;  %v445_v16 = vrot.slane %v15554_v15, 7 }
  0x74   :  { %v1247_v57 = vpack.c.bf16 %v578_v43, %v579_v32  ;;  %v15606_v12 = vsel %vm894_vm2, %v819_v8, %v820_v28  ;;  %v443_v2 = vrot.slane %v90_v37, 7  ;;  %v1248_v43 = vpack.c.bf16 %v576_v24, %v577_v47  ;;  %v24078_v32 = vld [vmem:[#allocation12_spill] sm:$0xff] }
  0x75   :  { %v15620_v22 = vsel %vm894_vm2, %v820_v28, %v821_v0  ;;  %v828_v48 = vrot.slane %v90_v37, 1  ;;  %v15630_v24 = vsel %vm894_vm2, %v823_v35, %v824_v53  ;;  %v15634_v47 = vsel %vm894_vm2, %v822_v52, %v823_v35 }
  0x76   :  { %12610 = vmatmul.mubr.msk.bf16.gmra.mrb[52].mxu1 %vm1289_vm1, %v1245_v33  ;;  %v91_v33 = vld [vmem:[%s23287_s0 + $0x1f8] sm:$0xff]  ;;  %v575_v35 = vsel %vm509_vm4, %v442_v39, %v443_v2 }
  0x77   :  { %12744 = vmatmul.mubr.msk.bf16.gmra.mrb[56].mxu0 %vm1289_vm1, %v1180_v29  ;;  %12613 = vmatprep.mubr.msk.bf16.mxu1 %vm1289_vm1, %v1246_v21  ;;  %v15594_v21 = vsel %vm894_vm2, %v816_v41, %v817_v20  ;;  %v826_v29 = vrot.slane %v15512_v45, 1  ;;  %v444_v34 = vrot.slane %v91_v33, 7  ;;  %v15610_v41 = vsel %vm894_vm2, %v818_v5, %v819_v8  ;;  %v15664_v39 = vld [vmem:[%s23287_s0 + $0x218] sm:$0xff] }
  0x78   :  { %12747 = vmatprep.mubr.msk.bf16.mxu0 %vm1289_vm1, %v1181_v17  ;;  %24063 = vst [vmem:[#allocation30_spill] sm:$0xff] %v15594_v21  ;;  %v15600_v17 = vld [vmem:[%s23287_s0 + $0x208] sm:$0xff]  ;;  %v15614_v20 = vsel %vm894_vm2, %v821_v0, %v822_v52  ;;  %v1182_v45 = vpack.c.bf16 %v91_v33, %v90_v37  ;;  %v827_v8 = vrot.slane %v15517_v58, 1  ;;  %v15653_v37 = vld [vmem:[%s23287_s0 + $0x210] sm:$0xff]  ;;  %v24064_v0 = vpack.c.bf16 %v15028_v30, %v15039_v36 }
  0x79   :  { %v446_v21 = vrot.slane %v15600_v17, 7  ;;  %v573_v11 = vsel %vm509_vm4, %v444_v34, %v445_v16  ;;  %v15641_v28 = vsel %vm894_vm2, %v825_v46, %v826_v29  ;;  %v574_v58 = vsel %vm509_vm4, %v443_v2, %v444_v34  ;;  %v15673_v34 = vld [vmem:[%s23287_s0 + $0x220] sm:$0xff]  ;;  %v15678_v30 = vld [vmem:[%s23287_s0 + $0x228] sm:$0xff] }
  0x7a   :  { %v702_v52 = vmul.f32 %v14669_v25, %v573_v11  ;;  %v15668_v11 = vsel %vm894_vm2, %v824_v53, %v825_v46  ;;  %v447_v53 = vrot.slane %v15653_v37, 7  ;;  %v15689_v46 = vsel %vm894_vm2, %v826_v29, %v827_v8 }
  0x7b   :  { %v23321_v2 = vrot.slane %v15554_v15, 1 }
  0x7e   :  { %12614 = vmatmul.mubr.msk.bf16.gmra.mrb[56].mxu1 %vm1289_vm1, %v1247_v57  ;;  %v829_v57 = vrot.slane %v91_v33, 1  ;;  %v15684_v33 = vsel %vm894_vm2, %v827_v8, %v828_v48 }
  0x7f   :  { %12748 = vmatmul.mubr.msk.bf16.gmra.mrb[60].mxu0 %vm1289_vm1, %v1182_v45  ;;  %12617 = vmatprep.mubr.msk.bf16.mxu1 %vm1289_vm1, %v1248_v43  ;;  %v572_v45 = vsel %vm509_vm4, %v445_v16, %v446_v21  ;;  %v1249_v16 = vpack.c.bf16 %v574_v58, %v575_v35  ;;  %v449_v58 = vrot.slane %v15673_v34, 7  ;;  %v450_v35 = vrot.slane %v15678_v30, 7 }
  0x80   :  { %12817 = vmatprep.mubr.msk.bf16.mxu0 %vm1289_vm1, %v24064_v0  ;;  %v1250_v43 = vpack.c.bf16 %v572_v45, %v702_v52  ;;  %v448_v0 = vrot.slane %v15664_v39, 7  ;;  %v15697_v36 = vsel %vm894_vm2, %v828_v48, %v829_v57  ;;  %v958_v29 = vsel %vm894_vm2, %v829_v57, %v23321_v2  ;;  %v24072_v2 = vld [vmem:[#allocation10_spill] sm:$0xff] }
  0x81   :  { %v15706_v8 = vmul.f32 %v14687_v31, %v958_v29  ;;  %v24065_v52 = vpack.c.bf16 %v14713_v44, %v14666_v23  ;;  %v571_v45 = vsel %vm509_vm4, %v446_v21, %v447_v53  ;;  %v24066_v29 = vpack.c.bf16 %v15068_v60, %v15085_v7  ;;  %v15736_v21 = vld [vmem:[%s23287_s0 + $0x238] sm:$0xff]  ;;  %v15741_v60 = vld [vmem:[%s23287_s0 + $0x240] sm:$0xff]  ;;  %v15746_v7 = vld [vmem:[%s23287_s0 + $0x248] sm:$0xff] }
  0x82   :  { %v570_v48 = vsel %vm509_vm4, %v447_v53, %v448_v0  ;;  %v568_v23 = vsel %vm509_vm4, %v449_v58, %v450_v35  ;;  %v569_v44 = vsel %vm509_vm4, %v448_v0, %v449_v58  ;;  %v452_v58 = vrot.slane %v15736_v21, 7 }
  0x83   :  { %v1251_v53 = vpack.c.bf16 %v570_v48, %v571_v45  ;;  %v24067_v57 = vpack.c.bf16 %v15089_v4, %v15093_v61  ;;  %v15773_v61 = vld [vmem:[%s23287_s0 + $0x250] sm:$0xff]  ;;  %v24073_v5 = vpack.c.bf16 %v15178_v62, %v24072_v2  ;;  %v15862_v2 = vld [vmem:[%s23287_s0 + $0x298] sm:$0xff] }
  0x86   :  { %12618 = vmatmul.mubr.msk.bf16.gmra.mrb[60].mxu1 %vm1289_vm1, %v1249_v16  ;;  %v15731_v16 = vld [vmem:[%s23287_s0 + $0x230] sm:$0xff] }
  0x87   :  { %12818 = vmatmul.mubr.msk.bf16.vlgmr.msra.gmra.mrb[0].mxu0 %vm1289_vm1, %v24065_v52  ;;  %12621 = vmatprep.mubr.msk.bf16.mxu1 %vm1289_vm1, %v1250_v43  ;;  %v1252_v43 = vpack.c.bf16 %v568_v23, %v569_v44  ;;  %v451_v0 = vrot.slane %v15731_v16, 7  ;;  %v453_v52 = vrot.slane %v15741_v60, 7  ;;  %v24068_v23 = vpack.c.bf16 %v15112_v42, %v15116_v50  ;;  %v15783_v42 = vld [vmem:[%s23287_s0 + $0x260] sm:$0xff]  ;;  %v15788_v50 = vld [vmem:[%s23287_s0 + $0x268] sm:$0xff] }
  0x88   :  { %12821 = vmatprep.mubr.msk.bf16.mxu0 %vm1289_vm1, %v24066_v29  ;;  %v454_v29 = vrot.slane %v15746_v7, 7 }
  0x89   :  { %v566_v48 = vsel %vm509_vm4, %v451_v0, %v452_v58  ;;  %v567_v45 = vsel %vm509_vm4, %v450_v35, %v451_v0  ;;  %v565_v4 = vsel %vm509_vm4, %v452_v58, %v453_v52  ;;  %v15778_v35 = vld [vmem:[%s23287_s0 + $0x258] sm:$0xff]  ;;  %v457_v58 = vrot.slane %v15783_v42, 7 }
  0x8a   :  { %v564_v44 = vsel %vm509_vm4, %v453_v52, %v454_v29  ;;  %v456_v0 = vrot.slane %v15778_v35, 7  ;;  %v458_v52 = vrot.slane %v15788_v50, 7 }
  0x8e   :  { %12622 = vmatmul.mubr.msk.bf16.gmra.mrb[64].mxu1 %vm1289_vm1, %v1251_v53  ;;  %v1254_v53 = vpack.c.bf16 %v564_v44, %v565_v4  ;;  %v24070_v44 = vld [vmem:[#allocation9_spill] sm:$0xff] }
  0x8f   :  { %12822 = vmatmul.mubr.msk.bf16.gmra.mrb[4].mxu0 %vm1289_vm1, %v24067_v57  ;;  %12625 = vmatprep.mubr.msk.bf16.mxu1 %vm1289_vm1, %v1252_v43  ;;  %v1253_v57 = vpack.c.bf16 %v566_v48, %v567_v45  ;;  %v455_v43 = vrot.slane %v15773_v61, 7  ;;  %v24071_v4 = vpack.c.bf16 %v15170_v19, %v24070_v44  ;;  %v15825_v19 = vld [vmem:[%s23287_s0 + $0x280] sm:$0xff] }
  0x90   :  { %12825 = vmatprep.mubr.msk.bf16.mxu0 %vm1289_vm1, %v24068_v23  ;;  %v24069_v23 = vpack.c.bf16 %v15120_v14, %v15137_v38  ;;  %v561_v14 = vsel %vm509_vm4, %v456_v0, %v457_v58  ;;  %v15815_v38 = vld [vmem:[%s23287_s0 + $0x270] sm:$0xff]  ;;  %v461_v44 = vrot.slane %v15825_v19, 7 }
  0x91   :  { %v562_v48 = vsel %vm509_vm4, %v455_v43, %v456_v0  ;;  %v563_v45 = vsel %vm509_vm4, %v454_v29, %v455_v43  ;;  %v15820_v29 = vld [vmem:[%s23287_s0 + $0x278] sm:$0xff] }
  0x92   :  { %v1255_v43 = vpack.c.bf16 %v562_v48, %v563_v45 }
  0x96   :  { %12626 = vmatmul.mubr.msk.bf16.gmra.mrb[68].mxu1 %vm1289_vm1, %v1253_v57  ;;  %v560_v57 = vsel %vm509_vm4, %v457_v58, %v458_v52  ;;  %v459_v58 = vrot.slane %v15815_v38, 7 }
  0x97   :  { %12826 = vmatmul.mubr.msk.bf16.gmra.mrb[8].mxu0 %vm1289_vm1, %v24069_v23  ;;  %12629 = vmatprep.mubr.msk.bf16.mxu1 %vm1289_vm1, %v1254_v53  ;;  %v15830_v53 = vld [vmem:[%s23287_s0 + $0x288] sm:$0xff]  ;;  %v1256_v0 = vpack.c.bf16 %v560_v57, %v561_v14  ;;  %v460_v23 = vrot.slane %v15820_v29, 7  ;;  %v24074_v57 = vpack.c.bf16 %v15200_v55, %v15204_v10  ;;  %v15867_v55 = vld [vmem:[%s23287_s0 + $0x2a0] sm:$0xff] }
  0x98   :  { %12829 = vmatprep.mubr.msk.bf16.mxu0 %vm1289_vm1, %v24071_v4  ;;  %v462_v4 = vrot.slane %v15830_v53, 7  ;;  %v559_v45 = vsel %vm509_vm4, %v458_v52, %v459_v58  ;;  %24075 = vst [vmem:[#allocation9_spill] sm:$0xff] %v15867_v55  ;;  %v15872_v10 = vld [vmem:[%s23287_s0 + $0x2a8] sm:$0xff] }
  0x99   :  { %v558_v48 = vsel %vm509_vm4, %v459_v58, %v460_v23  ;;  %v557_v62 = vsel %vm509_vm4, %v460_v23, %v461_v44  ;;  %24076 = vst [vmem:[#allocation10_spill] sm:$0xff] %v15872_v10  ;;  %v464_v58 = vrot.slane %v15862_v2, 7  ;;  %v465_v23 = vrot.slane %v15867_v55, 7 }
  0x9a   :  { %v556_v14 = vsel %vm509_vm4, %v461_v44, %v462_v4  ;;  %v1257_v52 = vpack.c.bf16 %v558_v48, %v559_v45  ;;  %v466_v44 = vrot.slane %v15872_v10, 7  ;;  %v24085_v10 = vld [vmem:[#allocation14_spill] sm:$0xff] }
  0x9b   :  { %v24086_v55 = vpack.c.bf16 %v15266_v59, %v24085_v10  ;;  %v15946_v10 = vld [vmem:[%s23287_s0 + $0x2d8] sm:$0xff] }
  0x9e   :  { %12630 = vmatmul.mubr.msk.bf16.gmra.mrb[72].mxu1 %vm1289_vm1, %v1255_v43  ;;  %v1258_v43 = vpack.c.bf16 %v556_v14, %v557_v62  ;;  %v24080_v14 = vld [vmem:[#allocation13_spill] sm:$0xff] }
  0x9f   :  { %12830 = vmatmul.mubr.msk.bf16.gmra.mrb[12].mxu0 %vm1289_vm1, %v24073_v5  ;;  %12633 = vmatprep.mubr.msk.bf16.mxu1 %vm1289_vm1, %v1256_v0  ;;  %v15857_v5 = vld [vmem:[%s23287_s0 + $0x290] sm:$0xff]  ;;  %v24081_v62 = vpack.c.bf16 %v15258_v27, %v24080_v14  ;;  %v15909_v27 = vld [vmem:[%s23287_s0 + $0x2c0] sm:$0xff] }
  0xa0   :  { %12833 = vmatprep.mubr.msk.bf16.mxu0 %vm1289_vm1, %v24074_v57  ;;  %v463_v0 = vrot.slane %v15857_v5, 7  ;;  %v24077_v57 = vld [vmem:[#allocation11_spill] sm:$0xff]  ;;  %24083 = vst [vmem:[#allocation12_spill] sm:$0xff] %v15909_v27  ;;  %v469_v14 = vrot.slane %v15909_v27, 7  ;;  %v24091_v27 = vld [vmem:[#allocation16_spill] sm:$0xff] }
  0xa1   :  { %v24079_v31 = vpack.c.bf16 %v24077_v57, %v24078_v32  ;;  %v553_v32 = vsel %vm509_vm4, %v464_v58, %v465_v23 }
  0xa2   :  { %v554_v48 = vsel %vm509_vm4, %v463_v0, %v464_v58  ;;  %v555_v45 = vsel %vm509_vm4, %v462_v4, %v463_v0  ;;  %v15904_v4 = vld [vmem:[%s23287_s0 + $0x2b8] sm:$0xff] }
  0xa3   :  { %24082 = vst [vmem:[#allocation11_spill] sm:$0xff] %v15904_v4  ;;  %v1259_v0 = vpack.c.bf16 %v554_v48, %v555_v45  ;;  %v468_v57 = vrot.slane %v15904_v4, 7 }
  0xa5   :  { %v549_v59 = vsel %vm509_vm4, %v468_v57, %v469_v14 }
  0xa6   :  { %12634 = vmatmul.mubr.msk.bf16.gmra.mrb[76].mxu1 %vm1289_vm1, %v1257_v52  ;;  %v552_v52 = vsel %vm509_vm4, %v465_v23, %v466_v44 }
  0xa7   :  { %12834 = vmatmul.mubr.msk.bf16.gmra.mrb[16].mxu0 %vm1289_vm1, %v24079_v31  ;;  %12637 = vmatprep.mubr.msk.bf16.mxu1 %vm1289_vm1, %v1258_v43  ;;  %v15899_v31 = vld [vmem:[%s23287_s0 + $0x2b0] sm:$0xff]  ;;  %v15914_v43 = vld [vmem:[%s23287_s0 + $0x2c8] sm:$0xff]  ;;  %v1260_v58 = vpack.c.bf16 %v552_v52, %v553_v32  ;;  %v24087_v52 = vpack.c.bf16 %v15288_v18, %v15292_v9  ;;  %v15951_v18 = vld [vmem:[%s23287_s0 + $0x2e0] sm:$0xff] }
  0xa8   :  { %12837 = vmatprep.mubr.msk.bf16.mxu0 %vm1289_vm1, %v24081_v62  ;;  %24084 = vst [vmem:[#allocation13_spill] sm:$0xff] %v15914_v43  ;;  %v467_v23 = vrot.slane %v15899_v31, 7  ;;  %v470_v62 = vrot.slane %v15914_v43, 7  ;;  %v15956_v9 = vld [vmem:[%s23287_s0 + $0x2e8] sm:$0xff]  ;;  %v24090_v43 = vld [vmem:[#allocation15_spill] sm:$0xff] }
  0xa9   :  { %24088 = vst [vmem:[#allocation14_spill] sm:$0xff] %v15956_v9  ;;  %v24092_v4 = vpack.c.bf16 %v24090_v43, %v24091_v27  ;;  %v15993_v43 = vld [vmem:[%s23287_s0 + $0x2f0] sm:$0xff] }
  0xaa   :  { %v550_v48 = vsel %vm509_vm4, %v467_v23, %v468_v57  ;;  %v551_v45 = vsel %vm509_vm4, %v466_v44, %v467_v23  ;;  %v548_v32 = vsel %vm509_vm4, %v469_v14, %v470_v62  ;;  %v472_v23 = vrot.slane %v15946_v10, 7 }
  0xab   :  { %v1261_v44 = vpack.c.bf16 %v550_v48, %v551_v45  ;;  %v473_v57 = vrot.slane %v15951_v18, 7  ;;  %v474_v14 = vrot.slane %v15956_v9, 7 }
  0xad   :  { %v545_v27 = vsel %vm509_vm4, %v472_v23, %v473_v57 }
  0xae   :  { %12638 = vmatmul.mubr.msk.bf16.gmra.mrb[80].mxu1 %vm1289_vm1, %v1259_v0  ;;  %v1262_v0 = vpack.c.bf16 %v548_v32, %v549_v59  ;;  %v15980_v32 = vld [vmem:[%s23287_s0 + $0x2f8] sm:$0xff]  ;;  %v24093_v59 = vld [vmem:[#allocation17_spill] sm:$0xff] }
  0xaf   :  { %12838 = vmatmul.mubr.msk.bf16.gmra.mrb[20].mxu0 %vm1289_vm1, %v24086_v55  ;;  %12641 = vmatprep.mubr.msk.bf16.mxu1 %vm1289_vm1, %v1260_v58  ;;  %v15941_v55 = vld [vmem:[%s23287_s0 + $0x2d0] sm:$0xff] }
  0xb0   :  { %12841 = vmatprep.mubr.msk.bf16.mxu0 %vm1289_vm1, %v24087_v52  ;;  %v471_v58 = vrot.slane %v15941_v55, 7  ;;  %v15965_v52 = vld [vmem:[%s23287_s0 + $0x300] sm:$0xff] }
  0xb1   :  { %24089 = vst [vmem:[#allocation31_spill] sm:$0xff] %v15965_v52 }
  0xb2   :  { %v546_v48 = vsel %vm509_vm4, %v471_v58, %v472_v23  ;;  %v547_v45 = vsel %vm509_vm4, %v470_v62, %v471_v58  ;;  %v477_v62 = vrot.slane %v15965_v52, 7  ;;  %v476_v58 = vrot.slane %v15980_v32, 7  ;;  %v24095_v52 = vld [vmem:[#allocation18_spill] sm:$0xff] }
  0xb3   :  { %v24096_v9 = vpack.c.bf16 %v15365_v56, %v24095_v52  ;;  %v16031_v52 = vld [vmem:[%s23287_s0 + $0x318] sm:$0xff] }
  0xb6   :  { %12642 = vmatmul.mubr.msk.bf16.gmra.mrb[84].mxu1 %vm1289_vm1, %v1261_v44  ;;  %v24094_v44 = vpack.c.bf16 %v15346_v51, %v24093_v59  ;;  %v1263_v51 = vpack.c.bf16 %v546_v48, %v547_v45 }
  0xb7   :  { %12842 = vmatmul.mubr.msk.bf16.gmra.mrb[24].mxu0 %vm1289_vm1, %v24092_v4  ;;  %12645 = vmatprep.mubr.msk.bf16.mxu1 %vm1289_vm1, %v1262_v0  ;;  %v544_v4 = vsel %vm509_vm4, %v473_v57, %v474_v14  ;;  %v15999_v0 = vld [vmem:[%s23287_s0 + $0x308] sm:$0xff]  ;;  %v541_v57 = vsel %vm509_vm4, %v476_v58, %v477_v62 }
  0xb8   :  { %12845 = vmatprep.mubr.msk.bf16.mxu0 %vm1289_vm1, %v24094_v44  ;;  %v1264_v59 = vpack.c.bf16 %v544_v4, %v545_v27  ;;  %v475_v44 = vrot.slane %v15993_v43, 7  ;;  %v478_v23 = vrot.slane %v15999_v0, 7  ;;  %v734_v4 = vmul.f32 %v14669_v25, %v541_v57  ;;  %v24099_v57 = vld [vmem:[#allocation19_spill] sm:$0xff]  ;;  %v24107_v25 = vld [vmem:[#allocation21_spill] sm:$0xff] }
  0xb9   :  { %v24097_v27 = vpack.c.bf16 %v15376_v63, %v15380_v6  ;;  %v16041_v63 = vld [vmem:[%s23287_s0 + $0x328] sm:$0xff] }
  0xba   :  { %v542_v48 = vsel %vm509_vm4, %v475_v44, %v476_v58  ;;  %v543_v45 = vsel %vm509_vm4, %v474_v14, %v475_v44  ;;  %v540_v56 = vsel %vm509_vm4, %v477_v62, %v478_v23  ;;  %v16036_v14 = vld [vmem:[%s23287_s0 + $0x320] sm:$0xff]  ;;  %24098 = vst [vmem:[#allocation15_spill] sm:$0xff] %v16041_v63  ;;  %v480_v58 = vrot.slane %v16031_v52, 7 }
  0xbb   :  { %v1265_v6 = vpack.c.bf16 %v542_v48, %v543_v45  ;;  %v1266_v62 = vpack.c.bf16 %v540_v56, %v734_v4  ;;  %v482_v44 = vrot.slane %v16041_v63, 7  ;;  %v24101_v4 = vld [vmem:[#allocation20_spill] sm:$0xff]  ;;  %v24108_v63 = vpack.c.bf16 %v15449_v54, %v24107_v25  ;;  %v16110_v54 = vld [vmem:[%s23287_s0 + $0x350] sm:$0xff] }
  0xbc   :  { %v24102_v56 = vpack.c.bf16 %v15435_v40, %v24101_v4  ;;  %v16078_v40 = vld [vmem:[%s23287_s0 + $0x340] sm:$0xff]  ;;  %24112 = vst [vmem:[#allocation20_spill] sm:$0xff] %v16110_v54 }
  0xbd   :  { %24105 = vst [vmem:[#allocation18_spill] sm:$0xff] %v16078_v40  ;;  %v485_v4 = vrot.slane %v16078_v40, 7 }
  0xbe   :  { %12646 = vmatmul.mubr.msk.bf16.gmra.mrb[88].mxu1 %vm1289_vm1, %v1263_v51 }
  0xbf   :  { %12846 = vmatmul.mubr.msk.bf16.gmra.mrb[28].mxu0 %vm1289_vm1, %v24096_v9  ;;  %12649 = vmatprep.mubr.msk.bf16.mxu1 %vm1289_vm1, %v1264_v59  ;;  %v16026_v9 = vld [vmem:[%s23287_s0 + $0x310] sm:$0xff]  ;;  %v481_v59 = vrot.slane %v16036_v14, 7 }
  0xc0   :  { %12849 = vmatprep.mubr.msk.bf16.mxu0 %vm1289_vm1, %v24097_v27  ;;  %v479_v51 = vrot.slane %v16026_v9, 7  ;;  %v24100_v27 = vpack.c.bf16 %v15384_v26, %v24099_v57 }
  0xc1   :  { %v537_v26 = vsel %vm509_vm4, %v480_v58, %v481_v59 }
  0xc2   :  { %v538_v48 = vsel %vm509_vm4, %v479_v51, %v480_v58  ;;  %v539_v45 = vsel %vm509_vm4, %v478_v23, %v479_v51  ;;  %v16073_v23 = vld [vmem:[%s23287_s0 + $0x338] sm:$0xff]  ;;  %v16083_v51 = vld [vmem:[%s23287_s0 + $0x348] sm:$0xff] }
  0xc3   :  { %24104 = vst [vmem:[#allocation17_spill] sm:$0xff] %v16073_v23  ;;  %24106 = vst [vmem:[#allocation19_spill] sm:$0xff] %v16083_v51  ;;  %v1267_v58 = vpack.c.bf16 %v538_v48, %v539_v45 }
  0xc6   :  { %12650 = vmatmul.mubr.msk.bf16.gmra.mrb[92].mxu1 %vm1289_vm1, %v1265_v6  ;;  %v536_v6 = vsel %vm509_vm4, %v481_v59, %v482_v44 }
  0xc7   :  { %12850 = vmatmul.mubr.msk.bf16.gmra.mrb[32].mxu0 %vm1289_vm1, %v24100_v27  ;;  %12653 = vmatprep.mubr.msk.bf16.mxu1 %vm1289_vm1, %v1266_v62  ;;  %v16068_v62 = vld [vmem:[%s23287_s0 + $0x330] sm:$0xff]  ;;  %v1268_v59 = vpack.c.bf16 %v536_v6, %v537_v26  ;;  %v484_v27 = vrot.slane %v16073_v23, 7  ;;  %v24109_v6 = vld [vmem:[#allocation22_spill] sm:$0xff]  ;;  %v24117_v23 = vld [vmem:[#allocation25_spill] sm:$0xff] }
  0xc8   :  { %12853 = vmatprep.mubr.msk.bf16.mxu0 %vm1289_vm1, %v24102_v56  ;;  %24103 = vst [vmem:[#allocation16_spill] sm:$0xff] %v16068_v62  ;;  %v483_v57 = vrot.slane %v16068_v62, 7  ;;  %v486_v56 = vrot.slane %v16083_v51, 7  ;;  %v24110_v26 = vld [vmem:[#allocation23_spill] sm:$0xff]  ;;  %v24116_v51 = vld [vmem:[#allocation24_spill] sm:$0xff] }
  0xc9   :  { %v24111_v40 = vpack.c.bf16 %v24109_v6, %v24110_v26  ;;  %v533_v25 = vsel %vm509_vm4, %v484_v27, %v485_v4  ;;  %v24118_v62 = vpack.c.bf16 %v24116_v51, %v24117_v23  ;;  %v16157_v51 = vld [vmem:[%s23287_s0 + $0x378] sm:$0xff] }
  0xca   :  { %v534_v48 = vsel %vm509_vm4, %v483_v57, %v484_v27  ;;  %v535_v45 = vsel %vm509_vm4, %v482_v44, %v483_v57  ;;  %v16120_v44 = vld [vmem:[%s23287_s0 + $0x360] sm:$0xff]  ;;  %v487_v27 = vrot.slane %v16110_v54, 7  ;;  %24121 = vst [vmem:[#allocation25_spill] sm:$0xff] %v16157_v51 }
  0xcb   :  { %24114 = vst [vmem:[#allocation22_spill] sm:$0xff] %v16120_v44  ;;  %v489_v6 = vrot.slane %v16120_v44, 7  ;;  %v24133_v44 = vld [vmem:[#allocation29_spill] sm:$0xff] }
  0xce   :  { %12654 = vmatmul.mubr.msk.bf16.gmra.mrb[96].mxu1 %vm1289_vm1, %v1267_v58  ;;  %v532_v58 = vsel %vm509_vm4, %v485_v4, %v486_v56 }
  0xcf   :  { %12854 = vmatmul.mubr.msk.bf16.gmra.mrb[36].mxu0 %vm1289_vm1, %v24108_v63  ;;  %12657 = vmatprep.mubr.msk.bf16.mxu1 %vm1289_vm1, %v1268_v59  ;;  %v16115_v63 = vld [vmem:[%s23287_s0 + $0x358] sm:$0xff]  ;;  %v1269_v59 = vpack.c.bf16 %v534_v48, %v535_v45  ;;  %v1270_v57 = vpack.c.bf16 %v532_v58, %v533_v25  ;;  %v531_v45 = vsel %vm509_vm4, %v486_v56, %v487_v27 }
  0xd0   :  { %12857 = vmatprep.mubr.msk.bf16.mxu0 %vm1289_vm1, %v24111_v40  ;;  %24113 = vst [vmem:[#allocation21_spill] sm:$0xff] %v16115_v63  ;;  %v16125_v40 = vld [vmem:[%s23287_s0 + $0x368] sm:$0xff]  ;;  %v488_v4 = vrot.slane %v16115_v63, 7  ;;  %v24119_v58 = vpack.c.bf16 %v15523_v3, %v15529_v49  ;;  %v16162_v3 = vld [vmem:[%s23287_s0 + $0x380] sm:$0xff] }
  0xd1   :  { %24115 = vst [vmem:[#allocation23_spill] sm:$0xff] %v16125_v40  ;;  %v490_v26 = vrot.slane %v16125_v40, 7  ;;  %24122 = vst [vmem:[#allocation32_spill] sm:$0xff] %v16162_v3  ;;  %v16167_v49 = vld [vmem:[%s23287_s0 + $0x388] sm:$0xff] }
  0xd2   :  { %v530_v48 = vsel %vm509_vm4, %v487_v27, %v488_v4  ;;  %v529_v23 = vsel %vm509_vm4, %v488_v4, %v489_v6  ;;  %24123 = vst [vmem:[#allocation33_spill] sm:$0xff] %v16167_v49  ;;  %v492_v27 = vrot.slane %v16157_v51, 7  ;;  %v493_v4 = vrot.slane %v16162_v3, 7  ;;  %v24134_v63 = vld [vmem:[#allocation30_spill] sm:$0xff] }
  0xd3   :  { %v528_v25 = vsel %vm509_vm4, %v489_v6, %v490_v26  ;;  %v1271_v56 = vpack.c.bf16 %v530_v48, %v531_v45  ;;  %v494_v6 = vrot.slane %v16167_v49, 7  ;;  %v24135_v54 = vpack.c.bf16 %v24133_v44, %v24134_v63  ;;  %v16249_v44 = vld [vmem:[%s23287_s0 + $0x3b8] sm:$0xff] }
  0xd6   :  { %12658 = vmatmul.mubr.msk.bf16.gmra.mrb[100].mxu1 %vm1289_vm1, %v1269_v59  ;;  %v1272_v59 = vpack.c.bf16 %v528_v25, %v529_v23  ;;  %v24126_v25 = vld [vmem:[#allocation27_spill] sm:$0xff]  ;;  %v24127_v23 = vld [vmem:[#allocation28_spill] sm:$0xff] }
  0xd7   :  { %12858 = vmatmul.mubr.msk.bf16.gmra.mrb[40].mxu0 %vm1289_vm1, %v24118_v62  ;;  %12661 = vmatprep.mubr.msk.bf16.mxu1 %vm1289_vm1, %v1270_v57  ;;  %v16152_v62 = vld [vmem:[%s23287_s0 + $0x370] sm:$0xff]  ;;  %v24128_v3 = vpack.c.bf16 %v24126_v25, %v24127_v23 }
  0xd8   :  { %12861 = vmatprep.mubr.msk.bf16.mxu0 %vm1289_vm1, %v24119_v58  ;;  %24120 = vst [vmem:[#allocation24_spill] sm:$0xff] %v16152_v62  ;;  %v491_v57 = vrot.slane %v16152_v62, 7  ;;  %v24124_v58 = vld [vmem:[#allocation26_spill] sm:$0xff] }
  0xd9   :  { %v24125_v40 = vpack.c.bf16 %v15533_v1, %v24124_v58  ;;  %v525_v1 = vsel %vm509_vm4, %v492_v27, %v493_v4 }
  0xda   :  { %v526_v48 = vsel %vm509_vm4, %v491_v57, %v492_v27  ;;  %v527_v45 = vsel %vm509_vm4, %v490_v26, %v491_v57  ;;  %v16199_v26 = vld [vmem:[%s23287_s0 + $0x398] sm:$0xff]  ;;  %v16211_v57 = vld [vmem:[%s23287_s0 + $0x3a8] sm:$0xff] }
  0xdb   :  { %v498_v62 = vrot.slane %v16211_v57, 7 }
  0xde   :  { %12662 = vmatmul.mubr.msk.bf16.gmra.mrb[104].mxu1 %vm1289_vm1, %v1271_v56  ;;  %v524_v56 = vsel %vm509_vm4, %v493_v4, %v494_v6  ;;  %v1273_v4 = vpack.c.bf16 %v526_v48, %v527_v45 }
  0xdf   :  { %12862 = vmatmul.mubr.msk.bf16.gmra.mrb[44].mxu0 %vm1289_vm1, %v24125_v40  ;;  %12665 = vmatprep.mubr.msk.bf16.mxu1 %vm1289_vm1, %v1272_v59  ;;  %v16194_v40 = vld [vmem:[%s23287_s0 + $0x390] sm:$0xff]  ;;  %v1274_v25 = vpack.c.bf16 %v524_v56, %v525_v1  ;;  %v24136_v56 = vpack.c.bf16 %v15606_v12, %v15610_v41  ;;  %v16256_v12 = vld [vmem:[%s23287_s0 + $0x3c0] sm:$0xff]  ;;  %v16261_v41 = vld [vmem:[%s23287_s0 + $0x3c8] sm:$0xff] }
  0xe0   :  { %12865 = vmatprep.mubr.msk.bf16.mxu0 %vm1289_vm1, %v24128_v3  ;;  %v16206_v3 = vld [vmem:[%s23287_s0 + $0x3a0] sm:$0xff]  ;;  %v495_v23 = vrot.slane %v16194_v40, 7  ;;  %24138 = vst [vmem:[#allocation30_spill] sm:$0xff] %v16261_v41 }
  0xe1   :  { %v16201_v59 = vpop.f32.mrb[0].mxu1  ;;  %v497_v51 = vrot.slane %v16206_v3, 7 }
  0xe2   :  { %24129 = vst [vmem:[#allocation26_spill] sm:$0xff] %v16201_v59  ;;  %v16213_v27 = vpop.f32.mrb[1].mxu1  ;;  %v496_v59 = vrot.slane %v16199_v26, 7  ;;  %v523_v45 = vsel %vm509_vm4, %v494_v6, %v495_v23 }
  0xe3   :  { %24130 = vst [vmem:[#allocation27_spill] sm:$0xff] %v16213_v27  ;;  %v16215_v58 = vpop.f32.mrb[2].mxu1  ;;  %v520_v1 = vsel %vm509_vm4, %v497_v51, %v498_v62  ;;  %v24142_v27 = vpack.c.bf16 %v15614_v20, %v15620_v22  ;;  %v16294_v20 = vld [vmem:[%s23287_s0 + $0x3d0] sm:$0xff] }
  0xe4   :  { %24131 = vst [vmem:[#allocation28_spill] sm:$0xff] %v16215_v58  ;;  %v16219_v49 = vpop.f32.mrb[3].mxu1  ;;  %v522_v48 = vsel %vm509_vm4, %v495_v23, %v496_v59  ;;  %v521_v63 = vsel %vm509_vm4, %v496_v59, %v497_v51  ;;  %v502_v58 = vrot.slane %v16261_v41, 7  ;;  %v832_v41 = vrot.slane %v15653_v37, 1 }
  0xe5   :  { %24132 = vst [vmem:[#allocation34_spill] sm:$0xff] %v16219_v49  ;;  %v1275_v59 = vpack.c.bf16 %v522_v48, %v523_v45  ;;  %v501_v49 = vrot.slane %v16256_v12, 7 }
  0xe6   :  { %12666 = vmatmul.mubr.msk.bf16.gmra.mrb[108].mxu1 %vm1289_vm1, %v1273_v4 }
  0xe7   :  { %12866 = vmatmul.mubr.msk.bf16.gmra.mrb[48].mxu0 %vm1289_vm1, %v24135_v54  ;;  %12669 = vmatprep.mubr.msk.bf16.mxu1 %vm1289_vm1, %v1274_v25  ;;  %v16244_v54 = vld [vmem:[%s23287_s0 + $0x3b0] sm:$0xff]  ;;  %v1276_v25 = vpack.c.bf16 %v520_v1, %v521_v63  ;;  %v24143_v1 = vpack.c.bf16 %v15630_v24, %v15634_v47  ;;  %v516_v63 = vsel %vm509_vm4, %v501_v49, %v502_v58  ;;  %v16306_v24 = vld [vmem:[%s23287_s0 + $0x3e0] sm:$0xff]  ;;  %v16311_v47 = vld [vmem:[%s23287_s0 + $0x3e8] sm:$0xff] }
  0xe8   :  { %12869 = vmatprep.mubr.msk.bf16.mxu0 %vm1289_vm1, %v24136_v56  ;;  %v499_v23 = vrot.slane %v16244_v54, 7  ;;  %v500_v56 = vrot.slane %v16249_v44, 7  ;;  %24145 = vst [vmem:[#allocation39_spill] sm:$0xff] %v16306_v24  ;;  %24146 = vst [vmem:[#allocation40_spill] sm:$0xff] %v16311_v47 }
  0xe9   :  { %v16251_v6 = vpop.f32.mrb[4].mxu1 }
  0xea   :  { %24137 = vst [vmem:[#allocation29_spill] sm:$0xff] %v16251_v6  ;;  %v16263_v51 = vpop.f32.mrb[5].mxu1  ;;  %v518_v48 = vsel %vm509_vm4, %v499_v23, %v500_v56  ;;  %v519_v45 = vsel %vm509_vm4, %v498_v62, %v499_v23  ;;  %v517_v22 = vsel %vm509_vm4, %v500_v56, %v501_v49  ;;  %v16299_v62 = vld [vmem:[%s23287_s0 + $0x3d8] sm:$0xff]  ;;  %v503_v56 = vrot.slane %v16294_v20, 7 }
  0xeb   :  { %24139 = vst [vmem:[#allocation35_spill] sm:$0xff] %v16263_v51  ;;  %v16265_v4 = vpop.f32.mrb[6].mxu1  ;;  %v1278_v23 = vpack.c.bf16 %v516_v63, %v517_v22  ;;  %v831_v51 = vrot.slane %v15600_v17, 1  ;;  %v24151_v22 = vpack.c.bf16 %v15684_v33, %v15689_v46  ;;  %v24153_v33 = vrot.slane %v15554_v15, 1 }
  0xec   :  { %24140 = vst [vmem:[#allocation36_spill] sm:$0xff] %v16265_v4  ;;  %v16269_v6 = vpop.f32.mrb[7].mxu1  ;;  %v506_v4 = vrot.slane %v16311_v47, 7  ;;  %v515_v63 = vsel %vm509_vm4, %v502_v58, %v503_v56  ;;  %v835_v47 = vrot.slane %v15678_v30, 1 }
  0xed   :  { %24141 = vst [vmem:[#allocation37_spill] sm:$0xff] %v16269_v6  ;;  %v505_v6 = vrot.slane %v16306_v24, 7  ;;  %v956_v58 = vsel %vm894_vm2, %v831_v51, %v832_v41  ;;  %v957_v46 = vsel %vm894_vm2, %v24153_v33, %v831_v51  ;;  %v836_v24 = vrot.slane %v15731_v16, 1 }
  0xee   :  { %12670 = vmatmul.mubr.msk.bf16.gmra.mrb[112].mxu1 %vm1289_vm1, %v1275_v59  ;;  %v1277_v59 = vpack.c.bf16 %v518_v48, %v519_v45  ;;  %v24150_v48 = vpack.c.bf16 %v15641_v28, %v15668_v11  ;;  %v16346_v11 = vld [vmem:[%s23287_s0 + $0x3f0] sm:$0xff]  ;;  %v24154_v51 = vpack.c.bf16 %v15706_v8, %v15697_v36 }
  0xef   :  { %12870 = vmatmul.mubr.msk.bf16.gmra.mrb[52].mxu0 %vm1289_vm1, %v24142_v27  ;;  %12673 = vmatprep.mubr.msk.bf16.mxu1 %vm1289_vm1, %v1276_v25  ;;  %v952_v33 = vsel %vm894_vm2, %v835_v47, %v836_v24 }
  0xf0   :  { %12873 = vmatprep.mubr.msk.bf16.mxu0 %vm1289_vm1, %v24143_v1  ;;  %v504_v1 = vrot.slane %v16299_v62, 7 }
  0xf1   :  { %v16301_v27 = vpop.f32.mrb[8].mxu1 }
  0xf2   :  { %24144 = vst [vmem:[#allocation38_spill] sm:$0xff] %v16301_v27  ;;  %v16313_v49 = vpop.f32.mrb[9].mxu1  ;;  %v514_v45 = vsel %vm509_vm4, %v503_v56, %v504_v1  ;;  %v513_v28 = vsel %vm509_vm4, %v504_v1, %v505_v6  ;;  %v507_v1 = vrot.slane %v16346_v11, 7 }
  0xf3   :  { %24147 = vst [vmem:[#allocation41_spill] sm:$0xff] %v16313_v49  ;;  %v16315_v25 = vpop.f32.mrb[10].mxu1  ;;  %v834_v49 = vrot.slane %v15673_v34, 1 }
  0xf4   :  { %24148 = vst [vmem:[#allocation42_spill] sm:$0xff] %v16315_v25  ;;  %v16319_v27 = vpop.f32.mrb[11].mxu1  ;;  %v2808_v25 = vpack.c.bf16 %v956_v58, %v957_v46 }
  0xf5   :  { %24149 = vst [vmem:[#allocation43_spill] sm:$0xff] %v16319_v27  ;;  %v953_v46 = vsel %vm894_vm2, %v834_v49, %v835_v47  ;;  %v840_v47 = vrot.slane %v15773_v61, 1 }
  0xf6   :  { %12674 = vmatmul.mubr.msk.bf16.gmra.mrb[116].mxu1 %vm1289_vm1, %v1277_v59  ;;  %v512_v59 = vsel %vm509_vm4, %v505_v6, %v506_v4 }
  0xf7   :  { %12874 = vmatmul.mubr.msk.bf16.gmra.mrb[56].mxu0 %vm1289_vm1, %v24150_v48  ;;  %12677 = vmatprep.mubr.msk.bf16.mxu1 %vm1289_vm1, %v1278_v23  ;;  %v1279_v48 = vpack.c.bf16 %v514_v45, %v515_v63  ;;  %v1280_v6 = vpack.c.bf16 %v512_v59, %v513_v28  ;;  %v24155_v45 = vld [vmem:[#allocation6_spill] sm:$0xff]  ;;  %v511_v28 = vsel %vm509_vm4, %v506_v4, %v507_v1 }
  0xf8   :  { %12877 = vmatprep.mubr.msk.bf16.mxu0 %vm1289_vm1, %v24151_v22  ;;  %v24156_v63 = vrot.slane %v24155_v45, 7  ;;  %v838_v45 = vrot.slane %v15741_v60, 1 }
  0xf9   :  { %v16348_v23 = vpop.f32.mrb[12].mxu1 }
  0xfa   :  { %24152 = vst [vmem:[#allocation44_spill] sm:$0xff] %v16348_v23  ;;  %v16356_v56 = vpop.f32.mrb[13].mxu1  ;;  %v833_v23 = vrot.slane %v15664_v39, 1  ;;  %v510_v59 = vsel %vm509_vm4, %v507_v1, %v24156_v63  ;;  %v1183_v1 = vpack.c.bf16 %v15600_v17, %v15554_v15  ;;  %v839_v63 = vrot.slane %v15746_v7, 1 }
  0xfb   :  { %v16358_v22 = vpop.f32.mrb[14].mxu1 }
  0xfc   :  { %v16361_v27 = vpop.f32.mrb[15].mxu1  ;;  %v954_v58 = vsel %vm894_vm2, %v833_v23, %v834_v49  ;;  %v955_v36 = vsel %vm894_vm2, %v832_v41, %v833_v23  ;;  %v2810_v41 = vpack.c.bf16 %v952_v33, %v953_v46  ;;  %v837_v23 = vrot.slane %v15736_v21, 1 }
  0xfe   :  { %12678 = vmatmul.mubr.msk.bf16.gmra.mrb[120].mxu1 %vm1289_vm1, %v1279_v48  ;;  %v950_v15 = vsel %vm894_vm2, %v837_v23, %v838_v45  ;;  %v951_v17 = vsel %vm894_vm2, %v836_v24, %v837_v23  ;;  %v843_v23 = vrot.slane %v15788_v50, 1 }
  0xff   :  { %12878 = vmatmul.mubr.msk.bf16.gmra.mrb[60].mxu0 %vm1289_vm1, %v24154_v51  ;;  %12681 = vmatprep.mubr.msk.bf16.mxu1 %vm1289_vm1, %v1280_v6  ;;  %v1281_v6 = vpack.c.bf16 %v510_v59, %v511_v28  ;;  %v948_v59 = vsel %vm894_vm2, %v839_v63, %v840_v47  ;;  %v949_v28 = vsel %vm894_vm2, %v838_v45, %v839_v63  ;;  %v844_v45 = vrot.slane %v15815_v38, 1 }
 0x100   :  { %12881 = vmatprep.mubr.msk.bf16.mxu0 %vm1289_vm1, %v2808_v25  ;;  %v2809_v25 = vpack.c.bf16 %v954_v58, %v955_v36  ;;  %v1184_v36 = vpack.c.bf16 %v15664_v39, %v15653_v37  ;;  %v2811_v46 = vpack.c.bf16 %v950_v15, %v951_v17  ;;  %v1186_v17 = vpack.c.bf16 %v15736_v21, %v15731_v16 }
 0x101   :  { %v16384_v8 = vpop.f32.mrb[16].mxu1 }
 0x102   :  { %v16390_v48 = vpop.f32.mrb[17].mxu1 }
 0x103   :  { %v16392_v4 = vpop.f32.mrb[18].mxu1 }
 0x104   :  { %v16396_v51 = vpop.f32.mrb[19].mxu1 }
 0x106   :  { %12682 = vmatmul.mubr.msk.bf16.gmra.mrb[124].mxu1 %vm1289_vm1, %v1281_v6  ;;  %v1185_v6 = vpack.c.bf16 %v15678_v30, %v15673_v34  ;;  %v944_v30 = vsel %vm894_vm2, %v843_v23, %v844_v45 }
 0x107   :  { %12882 = vmatmul.mubr.msk.bf16.gmra.mrb[64].mxu0 %vm1289_vm1, %v2809_v25  ;;  %12751 = vmatprep.mubr.msk.bf16.mxu1 %vm1289_vm1, %v1183_v1  ;;  %v2812_v25 = vpack.c.bf16 %v948_v59, %v949_v28  ;;  %v841_v1 = vrot.slane %v15778_v35, 1 }
 0x108   :  { %12885 = vmatprep.mubr.msk.bf16.mxu0 %vm1289_vm1, %v2810_v41  ;;  %v842_v41 = vrot.slane %v15783_v42, 1 }
 0x109   :  { %v16410_v49 = vpop.f32.mrb[20].mxu1  ;;  %v947_v39 = vsel %vm894_vm2, %v840_v47, %v841_v1 }
 0x10a   :  { %v16416_v58 = vpop.f32.mrb[21].mxu1  ;;  %v946_v37 = vsel %vm894_vm2, %v841_v1, %v842_v41  ;;  %v945_v63 = vsel %vm894_vm2, %v842_v41, %v843_v23  ;;  %v847_v1 = vrot.slane %v15830_v53, 1  ;;  %v848_v41 = vrot.slane %v15857_v5, 1 }
 0x10b   :  { %24157 = vst [vmem:[#allocation6_spill] sm:$0xff] %v16416_v58  ;;  %v16420_v33 = vpop.f32.mrb[22].mxu1  ;;  %v2813_v28 = vpack.c.bf16 %v946_v37, %v947_v39  ;;  %v1188_v39 = vpack.c.bf16 %v15778_v35, %v15773_v61 }
 0x10c   :  { %24158 = vst [vmem:[#allocation45_spill] sm:$0xff] %v16420_v33  ;;  %v16424_v24 = vpop.f32.mrb[23].mxu1 }
 0x10d   :  { %24159 = vst [vmem:[#allocation46_spill] sm:$0xff] %v16424_v24 }
 0x10e   :  { %12752 = vmatmul.mubr.msk.bf16.vlgmr.msra.gmra.mrb[64].mxu1 %vm1289_vm1, %v1184_v36  ;;  %v1187_v36 = vpack.c.bf16 %v15746_v7, %v15741_v60  ;;  %v940_v7 = vsel %vm894_vm2, %v847_v1, %v848_v41 }
 0x10f   :  { %12886 = vmatmul.mubr.msk.bf16.gmra.mrb[68].mxu0 %vm1289_vm1, %v2811_v46  ;;  %12755 = vmatprep.mubr.msk.bf16.mxu1 %vm1289_vm1, %v1185_v6  ;;  %v2814_v46 = vpack.c.bf16 %v944_v30, %v945_v63  ;;  %v845_v6 = vrot.slane %v15820_v29, 1 }
 0x110   :  { %12889 = vmatprep.mubr.msk.bf16.mxu0 %vm1289_vm1, %v2812_v25  ;;  %v846_v25 = vrot.slane %v15825_v19, 1 }
 0x111   :  { %v16438_v34 = vpop.f32.mrb[24].mxu1  ;;  %v943_v21 = vsel %vm894_vm2, %v844_v45, %v845_v6 }
 0x112   :  { %24160 = vst [vmem:[#allocation47_spill] sm:$0xff] %v16438_v34  ;;  %v16444_v15 = vpop.f32.mrb[25].mxu1  ;;  %v942_v16 = vsel %vm894_vm2, %v845_v6, %v846_v25  ;;  %v941_v23 = vsel %vm894_vm2, %v846_v25, %v847_v1  ;;  %v852_v1 = vrot.slane %v15899_v31, 1  ;;  %v24228_v34 = vld [vmem:[#allocation5_spill] sm:$0xff] }
 0x113   :  { %24161 = vst [vmem:[#allocation48_spill] sm:$0xff] %v16444_v15  ;;  %v16448_v59 = vpop.f32.mrb[26].mxu1  ;;  %v2815_v63 = vpack.c.bf16 %v942_v16, %v943_v21 }
 0x114   :  { %24162 = vst [vmem:[#allocation49_spill] sm:$0xff] %v16448_v59  ;;  %v16452_v47 = vpop.f32.mrb[27].mxu1 }
 0x115   :  { %24163 = vst [vmem:[#allocation50_spill] sm:$0xff] %v16452_v47  ;;  %v24226_v47 = vld [vmem:[#allocation28_spill] sm:$0xff] }
 0x116   :  { %12756 = vmatmul.mubr.msk.bf16.gmra.mrb[68].mxu1 %vm1289_vm1, %v1186_v17  ;;  %v1189_v17 = vpack.c.bf16 %v15788_v50, %v15783_v42 }
 0x117   :  { %12890 = vmatmul.mubr.msk.bf16.gmra.mrb[72].mxu0 %vm1289_vm1, %v2813_v28  ;;  %12759 = vmatprep.mubr.msk.bf16.mxu1 %vm1289_vm1, %v1187_v36  ;;  %v2816_v28 = vpack.c.bf16 %v940_v7, %v941_v23  ;;  %v849_v36 = vrot.slane %v15862_v2, 1  ;;  %v1190_v7 = vpack.c.bf16 %v15820_v29, %v15815_v38 }
 0x118   :  { %12893 = vmatprep.mubr.msk.bf16.mxu0 %vm1289_vm1, %v2814_v46  ;;  %v24168_v46 = vld [vmem:[#allocation9_spill] sm:$0xff] }
 0x119   :  { %v16466_v60 = vpop.f32.mrb[28].mxu1  ;;  %v850_v6 = vrot.slane %v24168_v46, 1  ;;  %v939_v35 = vsel %vm894_vm2, %v848_v41, %v849_v36 }
 0x11a   :  { %24164 = vst [vmem:[#allocation51_spill] sm:$0xff] %v16466_v60  ;;  %v16472_v37 = vpop.f32.mrb[29].mxu1  ;;  %v24169_v60 = vld [vmem:[#allocation10_spill] sm:$0xff] }
 0x11b   :  { %24165 = vst [vmem:[#allocation52_spill] sm:$0xff] %v16472_v37  ;;  %v16476_v30 = vpop.f32.mrb[30].mxu1  ;;  %v851_v25 = vrot.slane %v24169_v60, 1  ;;  %v938_v61 = vsel %vm894_vm2, %v849_v36, %v850_v6 }
 0x11c   :  { %24166 = vst [vmem:[#allocation53_spill] sm:$0xff] %v16476_v30  ;;  %v16480_v45 = vpop.f32.mrb[31].mxu1  ;;  %v24176_v30 = vld [vmem:[#allocation13_spill] sm:$0xff] }
 0x11d   :  { %24167 = vst [vmem:[#allocation54_spill] sm:$0xff] %v16480_v45  ;;  %v936_v50 = vsel %vm894_vm2, %v851_v25, %v852_v1  ;;  %v937_v16 = vsel %vm894_vm2, %v850_v6, %v851_v25  ;;  %v855_v6 = vrot.slane %v24176_v30, 1  ;;  %v856_v25 = vrot.slane %v15941_v55, 1 }
 0x11e   :  { %12760 = vmatmul.mubr.msk.bf16.gmra.mrb[72].mxu1 %vm1289_vm1, %v1188_v39  ;;  %v2817_v39 = vpack.c.bf16 %v938_v61, %v939_v35 }
 0x11f   :  { %12894 = vmatmul.mubr.msk.bf16.gmra.mrb[76].mxu0 %vm1289_vm1, %v2815_v63  ;;  %12763 = vmatprep.mubr.msk.bf16.mxu1 %vm1289_vm1, %v1189_v17  ;;  %v1191_v63 = vpack.c.bf16 %v15830_v53, %v15825_v19  ;;  %v2818_v17 = vpack.c.bf16 %v936_v50, %v937_v16  ;;  %v932_v53 = vsel %vm894_vm2, %v855_v6, %v856_v25 }
 0x120   :  { %12897 = vmatprep.mubr.msk.bf16.mxu0 %vm1289_vm1, %v2816_v28  ;;  %v24174_v28 = vld [vmem:[#allocation11_spill] sm:$0xff]  ;;  %v1192_v50 = vpack.c.bf16 %v15862_v2, %v15857_v5 }
 0x121   :  { %v16494_v42 = vpop.f32.mrb[32].mxu1  ;;  %v853_v36 = vrot.slane %v24174_v28, 1 }
 0x122   :  { %24170 = vst [vmem:[#allocation9_spill] sm:$0xff] %v16494_v42  ;;  %v16500_v21 = vpop.f32.mrb[33].mxu1  ;;  %v24175_v42 = vld [vmem:[#allocation12_spill] sm:$0xff] }
 0x123   :  { %24171 = vst [vmem:[#allocation10_spill] sm:$0xff] %v16500_v21  ;;  %v16504_v23 = vpop.f32.mrb[34].mxu1  ;;  %v854_v45 = vrot.slane %v24175_v42, 1  ;;  %v935_v29 = vsel %vm894_vm2, %v852_v1, %v853_v36 }
 0x124   :  { %24172 = vst [vmem:[#allocation55_spill] sm:$0xff] %v16504_v23  ;;  %v16508_v41 = vpop.f32.mrb[35].mxu1 }
 0x125   :  { %24173 = vst [vmem:[#allocation56_spill] sm:$0xff] %v16508_v41  ;;  %v934_v38 = vsel %vm894_vm2, %v853_v36, %v854_v45  ;;  %v933_v61 = vsel %vm894_vm2, %v854_v45, %v855_v6  ;;  %v858_v36 = vrot.slane %v15951_v18, 1  ;;  %v860_v6 = vrot.slane %v15993_v43, 1  ;;  %v24224_v41 = vld [vmem:[#allocation27_spill] sm:$0xff] }
 0x126   :  { %12764 = vmatmul.mubr.msk.bf16.gmra.mrb[76].mxu1 %vm1289_vm1, %v1190_v7  ;;  %v2819_v7 = vpack.c.bf16 %v934_v38, %v935_v29 }
 0x127   :  { %12898 = vmatmul.mubr.msk.bf16.gmra.mrb[80].mxu0 %vm1289_vm1, %v2817_v39  ;;  %12767 = vmatprep.mubr.msk.bf16.mxu1 %vm1289_vm1, %v1191_v63  ;;  %v1193_v39 = vpack.c.bf16 %v24169_v60, %v24168_v46  ;;  %v2820_v63 = vpack.c.bf16 %v932_v53, %v933_v61  ;;  %v861_v60 = vrot.slane %v15980_v32, 1  ;;  %v24182_v46 = vld [vmem:[#allocation31_spill] sm:$0xff] }
 0x128   :  { %12901 = vmatprep.mubr.msk.bf16.mxu0 %vm1289_vm1, %v2818_v17  ;;  %v857_v17 = vrot.slane %v15946_v10, 1  ;;  %v862_v38 = vrot.slane %v24182_v46, 1 }
 0x129   :  { %v16522_v19 = vpop.f32.mrb[36].mxu1 }
 0x12a   :  { %24177 = vst [vmem:[#allocation11_spill] sm:$0xff] %v16522_v19  ;;  %v16528_v35 = vpop.f32.mrb[37].mxu1  ;;  %v24181_v19 = vld [vmem:[#allocation14_spill] sm:$0xff]  ;;  %v930_v5 = vsel %vm894_vm2, %v857_v17, %v858_v36  ;;  %v931_v2 = vsel %vm894_vm2, %v856_v25, %v857_v17 }
 0x12b   :  { %24178 = vst [vmem:[#allocation12_spill] sm:$0xff] %v16528_v35  ;;  %v16532_v16 = vpop.f32.mrb[38].mxu1  ;;  %v859_v45 = vrot.slane %v24181_v19, 1  ;;  %v2821_v25 = vpack.c.bf16 %v930_v5, %v931_v2 }
 0x12c   :  { %24179 = vst [vmem:[#allocation13_spill] sm:$0xff] %v16532_v16  ;;  %v16536_v1 = vpop.f32.mrb[39].mxu1  ;;  %v863_v16 = vrot.slane %v15999_v0, 1 }
 0x12d   :  { %24180 = vst [vmem:[#allocation57_spill] sm:$0xff] %v16536_v1  ;;  %v928_v53 = vsel %vm894_vm2, %v859_v45, %v860_v6  ;;  %v929_v61 = vsel %vm894_vm2, %v858_v36, %v859_v45  ;;  %v926_v1 = vsel %vm894_vm2, %v861_v60, %v862_v38  ;;  %v864_v36 = vrot.slane %v16026_v9, 1 }
 0x12e   :  { %12768 = vmatmul.mubr.msk.bf16.gmra.mrb[80].mxu1 %vm1289_vm1, %v1192_v50  ;;  %v925_v5 = vsel %vm894_vm2, %v862_v38, %v863_v16  ;;  %v24193_v38 = vld [vmem:[#allocation16_spill] sm:$0xff] }
 0x12f   :  { %12902 = vmatmul.mubr.msk.bf16.gmra.mrb[84].mxu0 %vm1289_vm1, %v2819_v7  ;;  %12771 = vmatprep.mubr.msk.bf16.mxu1 %vm1289_vm1, %v1193_v39  ;;  %v1194_v7 = vpack.c.bf16 %v24174_v28, %v15899_v31  ;;  %v24187_v31 = vld [vmem:[#allocation8_spill] sm:$0xff]  ;;  %v924_v45 = vsel %vm894_vm2, %v863_v16, %v864_v36 }
 0x130   :  { %12905 = vmatprep.mubr.msk.bf16.mxu0 %vm1289_vm1, %v2820_v63  ;;  %v1195_v63 = vpack.c.bf16 %v24176_v30, %v24175_v42  ;;  %v1118_v28 = vmul.f32 %v24187_v31, %v926_v1  ;;  %v927_v30 = vsel %vm894_vm2, %v860_v6, %v861_v60  ;;  %v2824_v60 = vpack.c.bf16 %v924_v45, %v925_v5 }
 0x131   :  { %v16552_v29 = vpop.f32.mrb[40].mxu1  ;;  %v1198_v45 = vpack.c.bf16 %v15980_v32, %v15993_v43 }
 0x132   :  { %24183 = vst [vmem:[#allocation14_spill] sm:$0xff] %v16552_v29  ;;  %v16558_v50 = vpop.f32.mrb[41].mxu1  ;;  %v2822_v29 = vpack.c.bf16 %v928_v53, %v929_v61  ;;  %v1196_v53 = vpack.c.bf16 %v15946_v10, %v15941_v55  ;;  %v2823_v1 = vpack.c.bf16 %v1118_v28, %v927_v30 }
 0x133   :  { %24184 = vst [vmem:[#allocation31_spill] sm:$0xff] %v16558_v50  ;;  %v16562_v39 = vpop.f32.mrb[42].mxu1 }
 0x134   :  { %24185 = vst [vmem:[#allocation58_spill] sm:$0xff] %v16562_v39  ;;  %v16566_v17 = vpop.f32.mrb[43].mxu1 }
 0x135   :  { %24186 = vst [vmem:[#allocation59_spill] sm:$0xff] %v16566_v17 }
 0x136   :  { %12772 = vmatmul.mubr.msk.bf16.gmra.mrb[84].mxu1 %vm1289_vm1, %v1194_v7  ;;  %v865_v7 = vrot.slane %v16031_v52, 1 }
 0x137   :  { %12906 = vmatmul.mubr.msk.bf16.gmra.mrb[88].mxu0 %vm1289_vm1, %v2821_v25  ;;  %12775 = vmatprep.mubr.msk.bf16.mxu1 %vm1289_vm1, %v1195_v63  ;;  %v866_v25 = vrot.slane %v16036_v14, 1  ;;  %v24192_v63 = vld [vmem:[#allocation15_spill] sm:$0xff] }
 0x138   :  { %12909 = vmatprep.mubr.msk.bf16.mxu0 %vm1289_vm1, %v2822_v29  ;;  %v1197_v29 = vpack.c.bf16 %v24181_v19, %v15951_v18  ;;  %v867_v16 = vrot.slane %v24192_v63, 1  ;;  %v923_v10 = vsel %vm894_vm2, %v864_v36, %v865_v7 }
 0x139   :  { %v16579_v42 = vpop.f32.mrb[44].mxu1  ;;  %v922_v55 = vsel %vm894_vm2, %v865_v7, %v866_v25 }
 0x13a   :  { %24188 = vst [vmem:[#allocation60_spill] sm:$0xff] %v16579_v42  ;;  %v16585_v2 = vpop.f32.mrb[45].mxu1  ;;  %v921_v28 = vsel %vm894_vm2, %v866_v25, %v867_v16  ;;  %v884_v42 = vrot.slane %v16244_v54, 1 }
 0x13b   :  { %24189 = vst [vmem:[#allocation61_spill] sm:$0xff] %v16585_v2  ;;  %v16589_v61 = vpop.f32.mrb[46].mxu1  ;;  %v868_v2 = vrot.slane %v24193_v38, 1 }
 0x13c   :  { %24190 = vst [vmem:[#allocation62_spill] sm:$0xff] %v16589_v61  ;;  %v16593_v6 = vpop.f32.mrb[47].mxu1  ;;  %v24200_v61 = vld [vmem:[#allocation19_spill] sm:$0xff] }
 0x13d   :  { %24191 = vst [vmem:[#allocation63_spill] sm:$0xff] %v16593_v6  ;;  %v920_v19 = vsel %vm894_vm2, %v867_v16, %v868_v2  ;;  %v871_v25 = vrot.slane %v24200_v61, 1  ;;  %v24201_v16 = vld [vmem:[#allocation20_spill] sm:$0xff] }
 0x13e   :  { %12776 = vmatmul.mubr.msk.bf16.gmra.mrb[88].mxu1 %vm1289_vm1, %v1196_v53  ;;  %v2825_v53 = vpack.c.bf16 %v922_v55, %v923_v10 }
 0x13f   :  { %12910 = vmatmul.mubr.msk.bf16.gmra.mrb[92].mxu0 %vm1289_vm1, %v2823_v1  ;;  %12779 = vmatprep.mubr.msk.bf16.mxu1 %vm1289_vm1, %v1197_v29  ;;  %v1199_v1 = vpack.c.bf16 %v15999_v0, %v24182_v46  ;;  %v2826_v29 = vpack.c.bf16 %v920_v19, %v921_v28  ;;  %v1200_v19 = vpack.c.bf16 %v16031_v52, %v16026_v9  ;;  %v24210_v9 = vld [vmem:[#allocation25_spill] sm:$0xff] }
 0x140   :  { %12913 = vmatprep.mubr.msk.bf16.mxu0 %vm1289_vm1, %v2824_v60  ;;  %v24198_v60 = vld [vmem:[#allocation17_spill] sm:$0xff]  ;;  %v877_v52 = vrot.slane %v24210_v9, 1 }
 0x141   :  { %v16607_v18 = vpop.f32.mrb[48].mxu1  ;;  %v869_v7 = vrot.slane %v24198_v60, 1 }
 0x142   :  { %24194 = vst [vmem:[#allocation15_spill] sm:$0xff] %v16607_v18  ;;  %v16613_v30 = vpop.f32.mrb[49].mxu1  ;;  %v24199_v18 = vld [vmem:[#allocation18_spill] sm:$0xff] }
 0x143   :  { %24195 = vst [vmem:[#allocation16_spill] sm:$0xff] %v16613_v30  ;;  %v16617_v5 = vpop.f32.mrb[50].mxu1  ;;  %v870_v6 = vrot.slane %v24199_v18, 1  ;;  %v872_v30 = vrot.slane %v24201_v16, 1  ;;  %v919_v43 = vsel %vm894_vm2, %v868_v2, %v869_v7 }
 0x144   :  { %24196 = vst [vmem:[#allocation64_spill] sm:$0xff] %v16617_v5  ;;  %v16621_v36 = vpop.f32.mrb[51].mxu1  ;;  %v24208_v5 = vld [vmem:[#allocation23_spill] sm:$0xff] }
 0x145   :  { %24197 = vst [vmem:[#allocation65_spill] sm:$0xff] %v16621_v36  ;;  %v918_v32 = vsel %vm894_vm2, %v869_v7, %v870_v6  ;;  %v916_v46 = vsel %vm894_vm2, %v871_v25, %v872_v30  ;;  %v917_v55 = vsel %vm894_vm2, %v870_v6, %v871_v25  ;;  %v875_v6 = vrot.slane %v24208_v5, 1  ;;  %v24209_v25 = vld [vmem:[#allocation24_spill] sm:$0xff] }
 0x146   :  { %12780 = vmatmul.mubr.msk.bf16.gmra.mrb[92].mxu1 %vm1289_vm1, %v1198_v45  ;;  %v2827_v45 = vpack.c.bf16 %v918_v32, %v919_v43 }
 0x147   :  { %12914 = vmatmul.mubr.msk.bf16.gmra.mrb[96].mxu0 %vm1289_vm1, %v2825_v53  ;;  %12783 = vmatprep.mubr.msk.bf16.mxu1 %vm1289_vm1, %v1199_v1  ;;  %v1201_v53 = vpack.c.bf16 %v24192_v63, %v16036_v14  ;;  %v2828_v1 = vpack.c.bf16 %v916_v46, %v917_v55  ;;  %v1202_v14 = vpack.c.bf16 %v24198_v60, %v24193_v38  ;;  %v880_v38 = vrot.slane %v16194_v40, 1 }
 0x148   :  { %12917 = vmatprep.mubr.msk.bf16.mxu0 %vm1289_vm1, %v2826_v29  ;;  %v24206_v29 = vld [vmem:[#allocation21_spill] sm:$0xff] }
 0x149   :  { %v16635_v0 = vpop.f32.mrb[52].mxu1  ;;  %v873_v7 = vrot.slane %v24206_v29, 1  ;;  %v1204_v50 = vpack.c.bf16 %v24206_v29, %v24201_v16  ;;  %v24217_v16 = vld [vmem:[#allocation30_spill] sm:$0xff] }
 0x14a   :  { %24202 = vst [vmem:[#allocation17_spill] sm:$0xff] %v16635_v0  ;;  %v16641_v10 = vpop.f32.mrb[53].mxu1  ;;  %v24207_v0 = vld [vmem:[#allocation22_spill] sm:$0xff]  ;;  %v887_v29 = vrot.slane %v24217_v16, 1 }
 0x14b   :  { %24203 = vst [vmem:[#allocation18_spill] sm:$0xff] %v16641_v10  ;;  %v16645_v28 = vpop.f32.mrb[54].mxu1  ;;  %v874_v36 = vrot.slane %v24207_v0, 1  ;;  %v876_v10 = vrot.slane %v24209_v25, 1  ;;  %v915_v43 = vsel %vm894_vm2, %v872_v30, %v873_v7 }
 0x14c   :  { %24204 = vst [vmem:[#allocation19_spill] sm:$0xff] %v16645_v28  ;;  %v16649_v2 = vpop.f32.mrb[55].mxu1  ;;  %v24211_v28 = vld [vmem:[#allocation32_spill] sm:$0xff] }
 0x14d   :  { %24205 = vst [vmem:[#allocation20_spill] sm:$0xff] %v16649_v2  ;;  %v878_v32 = vrot.slane %v24211_v28, 1  ;;  %v914_v63 = vsel %vm894_vm2, %v873_v7, %v874_v36  ;;  %v912_v55 = vsel %vm894_vm2, %v875_v6, %v876_v10  ;;  %v16683_v30 = vsel %vm894_vm2, %v876_v10, %v877_v52 }
 0x14e   :  { %12784 = vmatmul.mubr.msk.bf16.gmra.mrb[96].mxu1 %vm1289_vm1, %v1200_v19  ;;  %v913_v19 = vsel %vm894_vm2, %v874_v36, %v875_v6  ;;  %v881_v7 = vrot.slane %v16199_v26, 1  ;;  %v2829_v36 = vpack.c.bf16 %v914_v63, %v915_v43  ;;  %v1203_v6 = vpack.c.bf16 %v24200_v61, %v24199_v18 }
 0x14f   :  { %12918 = vmatmul.mubr.msk.bf16.gmra.mrb[100].mxu0 %vm1289_vm1, %v2827_v45  ;;  %12787 = vmatprep.mubr.msk.bf16.mxu1 %vm1289_vm1, %v1201_v53  ;;  %v24213_v45 = vld [vmem:[#allocation33_spill] sm:$0xff]  ;;  %v2830_v39 = vpack.c.bf16 %v912_v55, %v913_v19  ;;  %v885_v10 = vrot.slane %v16249_v44, 1  ;;  %v888_v19 = vrot.slane %v16294_v20, 1 }
 0x150   :  { %12921 = vmatprep.mubr.msk.bf16.mxu0 %vm1289_vm1, %v2828_v1  ;;  %v879_v53 = vrot.slane %v24213_v45, 1  ;;  %v16679_v1 = vsel %vm894_vm2, %v877_v52, %v878_v32  ;;  %v886_v52 = vrot.slane %v16256_v12, 1  ;;  %v16712_v55 = vsel %vm894_vm2, %v880_v38, %v881_v7 }
 0x151   :  { %v16667_v46 = vpop.f32.mrb[56].mxu1  ;;  %v2831_v63 = vpack.c.bf16 %v16679_v1, %v16683_v30  ;;  %v1205_v30 = vpack.c.bf16 %v24208_v5, %v24207_v0  ;;  %v16769_v0 = vld [vmem:[%s23287_s0 + $0x3f8] sm:$0xff] }
 0x152   :  { %24212 = vst [vmem:[#allocation21_spill] sm:$0xff] %v16667_v46  ;;  %v16675_v60 = vpop.f32.mrb[57].mxu1  ;;  %v882_v46 = vrot.slane %v16206_v3, 1  ;;  %v908_v61 = vsel %vm894_vm2, %v879_v53, %v880_v38  ;;  %v909_v18 = vsel %vm894_vm2, %v878_v32, %v879_v53  ;;  %v889_v53 = vrot.slane %v16299_v62, 1  ;;  %v24218_v38 = vld [vmem:[#allocation39_spill] sm:$0xff] }
 0x153   :  { %24214 = vst [vmem:[#allocation22_spill] sm:$0xff] %v16675_v60  ;;  %v16687_v2 = vpop.f32.mrb[58].mxu1  ;;  %v883_v60 = vrot.slane %v16211_v57, 1  ;;  %v890_v1 = vrot.slane %v24218_v38, 1  ;;  %v893_v5 = vrot.slane %v16769_v0, 1 }
 0x154   :  { %24215 = vst [vmem:[#allocation23_spill] sm:$0xff] %v16687_v2  ;;  %v16693_v17 = vpop.f32.mrb[59].mxu1  ;;  %v16708_v43 = vsel %vm894_vm2, %v881_v7, %v882_v46  ;;  %v892_v2 = vrot.slane %v16346_v11, 1 }
 0x155   :  { %24216 = vst [vmem:[#allocation24_spill] sm:$0xff] %v16693_v17  ;;  %v16720_v32 = vsel %vm894_vm2, %v883_v60, %v884_v42  ;;  %v16779_v35 = vsel %vm894_vm2, %v889_v53, %v890_v1 }
 0x156   :  { %12788 = vmatmul.mubr.msk.bf16.gmra.mrb[100].mxu1 %vm1289_vm1, %v1202_v14  ;;  %v16724_v14 = vsel %vm894_vm2, %v882_v46, %v883_v60  ;;  %v16739_v46 = vsel %vm894_vm2, %v884_v42, %v885_v10  ;;  %v16754_v42 = vld [vmem:[%s23289_s2] ss:$0 sm:$0xff] }
 0x157   :  { %12922 = vmatmul.mubr.msk.bf16.gmra.mrb[104].mxu0 %vm1289_vm1, %v2829_v36  ;;  %12791 = vmatprep.mubr.msk.bf16.mxu1 %vm1289_vm1, %v1203_v6  ;;  %v16735_v36 = vsel %vm894_vm2, %v885_v10, %v886_v52  ;;  %v2832_v6 = vpack.c.bf16 %v908_v61, %v909_v18  ;;  %v16760_v61 = vsel %vm894_vm2, %v887_v29, %v888_v19 }
 0x158   :  { %12925 = vmatprep.mubr.msk.bf16.mxu0 %vm1289_vm1, %v2830_v39  ;;  %v16764_v18 = vsel %vm894_vm2, %v886_v52, %v887_v29  ;;  %v16783_v52 = vsel %vm894_vm2, %v888_v19, %v889_v53 }
 0x159   :  { %v16741_v60 = vpop.f32.mrb[60].mxu1 }
 0x15a   :  { %24219 = vst [vmem:[#allocation25_spill] sm:$0xff] %v16741_v60  ;;  %v16749_v7 = vpop.f32.mrb[61].mxu1  ;;  %v12819_v17 = vpop.f32.mrb[0].mxu0 }
 0x15b   :  { %24220 = vst [vmem:[#allocation32_spill] sm:$0xff] %v16749_v7  ;;  %v16772_v39 = vpop.f32.mrb[62].mxu1  ;;  %v24222_v7 = vld [vmem:[#allocation26_spill] sm:$0xff]  ;;  %v3077_v10 = vpop.f32.mrb[1].mxu0 }
 0x15c   :  { %24221 = vst [vmem:[#allocation33_spill] sm:$0xff] %v16772_v39  ;;  %v13739_v60 = vadd.f32 %v12819_v17, %v24222_v7  ;;  %v16785_v29 = vpop.f32.mrb[63].mxu1  ;;  %v13740_v23 = vadd.f32 %v3077_v10, %v24224_v41  ;;  %v12820_v21 = vpop.f32.mrb[2].mxu0  ;;  %v24225_v7 = vld [vmem:[#allocation40_spill] sm:$0xff]  ;;  %v24227_v10 = vld [vmem:[#allocation34_spill] sm:$0xff] }
 0x15d   :  { %24223 = vst [vmem:[#allocation30_spill] sm:$0xff] %v16785_v29  ;;  %v891_v39 = vrot.slane %v24225_v7, 1  ;;  %v13741_v59 = vadd.f32 %v12820_v21, %v24226_v47  ;;  %v3080_v15 = vpop.f32.mrb[3].mxu0 }
 0x15e   :  { %v3725_v37 = vadd.f32 %v13739_v60, %v16754_v42  ;;  %12792 = vmatmul.mubr.msk.bf16.gmra.mrb[104].mxu1 %vm1289_vm1, %v1204_v50  ;;  %v3723_v41 = vadd.f32 %v13740_v23, %v16754_v42  ;;  %v13742_v17 = vadd.f32 %v3080_v15, %v24227_v10  ;;  %v24229_v60 = vrot.slane %v24228_v34, 1  ;;  %v24234_v10 = vld [vmem:[#allocation35_spill] sm:$0xff] }
 0x15f   :  { %v3726_v19 = vadd.f32 %v13741_v59, %v16754_v42  ;;  %12926 = vmatmul.mubr.msk.bf16.gmra.mrb[108].mxu0 %vm1289_vm1, %v2831_v63  ;;  %12795 = vmatprep.mubr.msk.bf16.mxu1 %vm1289_vm1, %v1205_v30  ;;  %v16826_v59 = vsel %vm894_vm2, %v890_v1, %v891_v39 }
 0x160   :  { %v1022_v47 = vsel %vm894_vm2, %v893_v5, %v24229_v60  ;;  %v16807_v21 = vmax.f32 %v3725_v37, 0.0  ;;  %v16816_v50 = vmax.f32 %v3723_v41, 0.0  ;;  %v3724_v34 = vadd.f32 %v13742_v17, %v16754_v42  ;;  %12929 = vmatprep.mubr.msk.bf16.mxu0 %vm1289_vm1, %v2832_v6 }
 0x161   :  { %v16822_v37 = vsel %vm894_vm2, %v891_v39, %v892_v2  ;;  %v16829_v30 = vmax.f32 %v3726_v19, 0.0  ;;  %v16833_v41 = vsel %vm894_vm2, %v892_v2, %v893_v5  ;;  %v16836_v17 = vmul.f32 %v24187_v31, %v1022_v47  ;;  %v24233_v5 = vld [vmem:[#allocation29_spill] sm:$0xff] }
 0x162   :  { %24230 = vst [vmem:[#allocation39_spill] sm:$0xff] %v16807_v21  ;;  %v3981_v63 = vrot.slane %v16807_v21, 7  ;;  %v4365_v6 = vrot.slane %v16807_v21, 1  ;;  %v16841_v15 = vmax.f32 %v3724_v34, 0.0  ;;  %v12823_v1 = vpop.f32.mrb[4].mxu0  ;;  %v24239_v58 = vrot.slane %v16816_v50, 7 }
 0x163   :  { %24231 = vst [vmem:[#allocation26_spill] sm:$0xff] %v16829_v30  ;;  %v3982_v39 = vrot.slane %v16829_v30, 7  ;;  %v4366_v19 = vrot.slane %v16829_v30, 1  ;;  %v13743_v23 = vadd.f32 %v12823_v1, %v24233_v5  ;;  %v3093_v47 = vpop.f32.mrb[5].mxu0  ;;  %v24236_v5 = vld [vmem:[#allocation36_spill] sm:$0xff] }
 0x164   :  { %24232 = vst [vmem:[#allocation27_spill] sm:$0xff] %v16841_v15  ;;  %v3980_v29 = vrot.slane %v16841_v15, 7  ;;  %v4364_v53 = vrot.slane %v16841_v15, 1  ;;  %v13744_v31 = vadd.f32 %v3093_v47, %v24234_v10  ;;  %v12824_v60 = vpop.f32.mrb[6].mxu0  ;;  %v24237_v47 = vpack.c.bf16 %v24210_v9, %v24209_v25  ;;  %v24238_v15 = vld [vmem:[#allocation37_spill] sm:$0xff] }
 0x165   :  { %v16855_v24 = vsel %vm509_vm4, %v3981_v63, %v3982_v39  ;;  %v16859_v2 = vsel %vm894_vm2, %v4365_v6, %v4366_v19  ;;  %v3729_v1 = vadd.f32 %v13743_v23, %v16754_v42  ;;  %v13745_v21 = vadd.f32 %v12824_v60, %v24236_v5  ;;  %v3096_v30 = vpop.f32.mrb[7].mxu0  ;;  %v24252_v60 = vld [vmem:[#allocation41_spill] sm:$0xff] }
 0x166   :  { %24235 = vst [vmem:[#allocation40_spill] sm:$0xff] %v16859_v2  ;;  %v16865_v10 = vsel %vm509_vm4, %v3980_v29, %v3981_v63  ;;  %12796 = vmatmul.mubr.msk.bf16.gmra.mrb[108].mxu1 %vm1289_vm1, %v24237_v47  ;;  %v3727_v34 = vadd.f32 %v13744_v31, %v16754_v42  ;;  %v13746_v33 = vadd.f32 %v3096_v30, %v24238_v15 }
 0x167   :  { %v16877_v23 = vsel %vm509_vm4, %v24239_v58, %v3980_v29  ;;  %v16881_v63 = vmax.f32 %v3729_v1, 0.0  ;;  %v3730_v5 = vadd.f32 %v13745_v21, %v16754_v42  ;;  %v24241_v25 = vpack.c.bf16 %v16708_v43, %v16712_v55 }
 0x168   :  { %v24242_v31 = vpack.c.bf16 %v24213_v45, %v24211_v28  ;;  %v16894_v58 = vsel %vm894_vm2, %v4364_v53, %v4365_v6  ;;  %v16896_v9 = vmax.f32 %v3727_v34, 0.0  ;;  %v3728_v29 = vadd.f32 %v13746_v33, %v16754_v42 }
 0x169   :  { %24240 = vst [vmem:[#allocation28_spill] sm:$0xff] %v16881_v63  ;;  %12930 = vmatmul.mubr.msk.bf16.gmra.mrb[112].mxu0 %vm1289_vm1, %v24241_v25  ;;  %24243 = vst [vmem:[#allocation34_spill] sm:$0xff] %v16894_v58  ;;  %v24245_v21 = vpack.c.bf16 %v16720_v32, %v16724_v14  ;;  %v24246_v28 = vrot.slane %v16816_v50, 1  ;;  %v16911_v55 = vmax.f32 %v3730_v5, 0.0  ;;  %v3985_v14 = vrot.slane %v16881_v63, 7  ;;  %v24250_v5 = vld [vmem:[#allocation38_spill] sm:$0xff] }
 0x16a   :  { %12799 = vmatprep.mubr.msk.bf16.mxu1 %vm1289_vm1, %v24242_v31  ;;  %24244 = vst [vmem:[#allocation5_spill] sm:$0xff] %v16896_v9  ;;  %v3983_v30 = vrot.slane %v16896_v9, 7  ;;  %v4367_v6 = vrot.slane %v16896_v9, 1  ;;  %v16922_v34 = vmax.f32 %v3728_v29, 0.0 }
 0x16b   :  { %12933 = vmatprep.mubr.msk.bf16.mxu0 %vm1289_vm1, %v24245_v21  ;;  %v16909_v45 = vsel %vm894_vm2, %v24246_v28, %v4364_v53  ;;  %24248 = vst [vmem:[#allocation35_spill] sm:$0xff] %v16911_v55  ;;  %v12827_v53 = vpop.f32.mrb[8].mxu0  ;;  %v3986_v47 = vrot.slane %v16911_v55, 7 }
 0x16c   :  { %24247 = vst [vmem:[#allocation29_spill] sm:$0xff] %v16909_v45  ;;  %24249 = vst [vmem:[#allocation36_spill] sm:$0xff] %v16922_v34  ;;  %v13747_v25 = vadd.f32 %v12827_v53, %v24250_v5  ;;  %v3109_v31 = vpop.f32.mrb[9].mxu0  ;;  %v16931_v28 = vsel %vm894_vm2, %v4366_v19, %v4367_v6  ;;  %v3984_v32 = vrot.slane %v16922_v34, 7  ;;  %v4368_v29 = vrot.slane %v16922_v34, 1  ;;  %v24253_v5 = vld [vmem:[#allocation42_spill] sm:$0xff] }
 0x16d   :  { %24251 = vst [vmem:[#allocation37_spill] sm:$0xff] %v16931_v28  ;;  %v13748_v33 = vadd.f32 %v3109_v31, %v24252_v60  ;;  %v12828_v15 = vpop.f32.mrb[10].mxu0  ;;  %v16942_v21 = vsel %vm509_vm4, %v3982_v39, %v3983_v30  ;;  %v24254_v19 = vpack.c.bf16 %v16199_v26, %v16194_v40  ;;  %v24255_v31 = vld [vmem:[#allocation43_spill] sm:$0xff]  ;;  %v24257_v40 = vpack.c.bf16 %v16735_v36, %v16739_v46 }
 0x16e   :  { %v3733_v53 = vadd.f32 %v13747_v25, %v16754_v42  ;;  %v13749_v1 = vadd.f32 %v12828_v15, %v24253_v5  ;;  %v3112_v45 = vpop.f32.mrb[11].mxu0  ;;  %v16952_v43 = vsel %vm509_vm4, %v3983_v30, %v3984_v32  ;;  %v16956_v15 = vsel %vm509_vm4, %v3985_v14, %v3986_v47  ;;  %v24374_v34 = vld [vmem:[#allocation11_spill] sm:$0xff] }
 0x16f   :  { %12800 = vmatmul.mubr.msk.bf16.gmra.mrb[112].mxu1 %vm1289_vm1, %v24254_v19  ;;  %v3731_v60 = vadd.f32 %v13748_v33, %v16754_v42  ;;  %v13750_v58 = vadd.f32 %v3112_v45, %v24255_v31  ;;  %v24258_v26 = vpack.c.bf16 %v16211_v57, %v16206_v3  ;;  %v16973_v33 = vsel %vm509_vm4, %v3984_v32, %v3985_v14  ;;  %v14518_v3 = vld [vmem:[%s23290_s3] sm:$0xff]  }
 0x170   :  { %v16958_v25 = vmax.f32 %v3733_v53, 0.0  ;;  %v3734_v39 = vadd.f32 %v13749_v1, %v16754_v42  ;;  %v24260_v36 = vpack.c.bf16 %v16760_v61, %v16764_v18  ;;  %v4370_v32 = vrot.slane %v16911_v55, 1  ;;  %12945 = vmatprep.subr.bf16.mxu1 %v14518_v3 }
 0x171   :  { %12934 = vmatmul.mubr.msk.bf16.gmra.mrb[116].mxu0 %vm1289_vm1, %v24257_v40  ;;  %12803 = vmatprep.mubr.msk.bf16.mxu1 %vm1289_vm1, %v24258_v26  ;;  %v16975_v30 = vmax.f32 %v3731_v60, 0.0  ;;  %v3732_v1 = vadd.f32 %v13750_v58, %v16754_v42  ;;  %v24262_v61 = vrot.slane %v16881_v63, 1  ;;  %v17006_v31 = vsel %vm894_vm2, %v4367_v6, %v4368_v29  ;;  %v24266_v26 = vld [vmem:[#allocation44_spill] sm:$0xff] }
 0x172   :  { %24256 = vst [vmem:[#allocation38_spill] sm:$0xff] %v16958_v25  ;;  %12937 = vmatprep.mubr.msk.bf16.mxu0 %vm1289_vm1, %v24260_v36  ;;  %v16990_v14 = vmax.f32 %v3734_v39, 0.0  ;;  %v3989_v53 = vrot.slane %v16958_v25, 7  ;;  %v12831_v60 = vpop.f32.mrb[12].mxu0  ;;  %24265 = vst [vmem:[#allocation67_spill] sm:$0xff] %v17006_v31  ;;  %v23379_v39 = vrot.slane %v16958_v25, 1  ;;  %12946 = vmatpush3.bf16.msra.mxu1 %v14518_v3 }
 0x173   :  { %24259 = vst [vmem:[#allocation41_spill] sm:$0xff] %v16975_v30  ;;  %v16998_v18 = vsel %vm894_vm2, %v4368_v29, %v24262_v61  ;;  %v3987_v5 = vrot.slane %v16975_v30, 7  ;;  %v17002_v19 = vmax.f32 %v3732_v1, 0.0  ;;  %v13751_v36 = vadd.f32 %v12831_v60, %v24266_v26  ;;  %v3125_v61 = vpop.f32.mrb[13].mxu0 }
 0x174   :  { %24261 = vst [vmem:[#allocation42_spill] sm:$0xff] %v16990_v14  ;;  %24263 = vst [vmem:[#allocation43_spill] sm:$0xff] %v16998_v18  ;;  %v3990_v40 = vrot.slane %v16990_v14, 7  ;;  %v4371_v1 = vrot.slane %v16975_v30, 1  ;;  %v13752_v45 = vadd.f32 %v3125_v61, %v16356_v56  ;;  %v12832_v58 = vpop.f32.mrb[14].mxu0  ;;  %v24269_v56 = vpack.c.bf16 %v16249_v44, %v16244_v54 }
 0x175   :  { %24264 = vst [vmem:[#allocation66_spill] sm:$0xff] %v17002_v19  ;;  %v3988_v57 = vrot.slane %v17002_v19, 7  ;;  %v17018_v6 = vsel %vm509_vm4, %v3986_v47, %v3987_v5  ;;  %v3737_v29 = vadd.f32 %v13751_v36, %v16754_v42  ;;  %v13753_v60 = vadd.f32 %v12832_v58, %v16358_v22  ;;  %v3128_v26 = vpop.f32.mrb[15].mxu0 }
 0x176   :  { %24267 = vst [vmem:[#allocation44_spill] sm:$0xff] %v17018_v6  ;;  %v17024_v3 = vsel %vm509_vm4, %v3989_v53, %v3990_v40  ;;  %v3735_v47 = vadd.f32 %v13752_v45, %v16754_v42  ;;  %v13754_v61 = vadd.f32 %v3128_v26, %v16361_v27  ;;  %v24272_v54 = vpack.c.bf16 %v16779_v35, %v16783_v52 }
 0x177   :  { %24268 = vst [vmem:[#allocation68_spill] sm:$0xff] %v17024_v3  ;;  %12804 = vmatmul.mubr.msk.bf16.gmra.mrb[116].mxu1 %vm1289_vm1, %v24269_v56  ;;  %v17036_v22 = vsel %vm509_vm4, %v3987_v5, %v3988_v57  ;;  %v17040_v58 = vsel %vm509_vm4, %v3988_v57, %v3989_v53  ;;  %v17042_v36 = vmax.f32 %v3737_v29, 0.0  ;;  %v3738_v46 = vadd.f32 %v13753_v60, %v16754_v42 }
 0x178   :  { %24270 = vst [vmem:[#allocation69_spill] sm:$0xff] %v17040_v58  ;;  %v24273_v44 = vpack.c.bf16 %v24217_v16, %v16256_v12  ;;  %v17057_v57 = vmax.f32 %v3735_v47, 0.0  ;;  %v3736_v53 = vadd.f32 %v13754_v61, %v16754_v42  ;;  %v24275_v35 = vpack.c.bf16 %v16822_v37, %v16826_v59 }
 0x179   :  { %24271 = vst [vmem:[#allocation70_spill] sm:$0xff] %v17042_v36  ;;  %12938 = vmatmul.mubr.msk.bf16.gmra.mrb[120].mxu0 %vm1289_vm1, %v24272_v54  ;;  %v17070_v16 = vsel %vm894_vm2, %v4370_v32, %v4371_v1  ;;  %v23380_v52 = vrot.slane %v16990_v14, 1  ;;  %v4372_v5 = vrot.slane %v17002_v19, 1  ;;  %v17074_v29 = vmax.f32 %v3738_v46, 0.0  ;;  %v24354_v19 = vld [vmem:[#allocation10_spill] sm:$0xff] }
 0x17a   :  { %12807 = vmatprep.mubr.msk.bf16.mxu1 %vm1289_vm1, %v24273_v44  ;;  %24274 = vst [vmem:[#allocation71_spill] sm:$0xff] %v17057_v57  ;;  %12941 = vmatprep.mubr.msk.bf16.mxu0 %vm1289_vm1, %v24275_v35  ;;  %24276 = vst [vmem:[#allocation72_spill] sm:$0xff] %v17070_v16  ;;  %v24278_v60 = vrot.slane %v16881_v63, 1  ;;  %v3993_v59 = vrot.slane %v17042_v36, 7  ;;  %v3991_v26 = vrot.slane %v17057_v57, 7  ;;  %v17084_v56 = vmax.f32 %v3736_v53, 0.0 }
 0x17b   :  { %24277 = vst [vmem:[#allocation73_spill] sm:$0xff] %v17074_v29  ;;  %v12835_v47 = vpop.f32.mrb[16].mxu0  ;;  %v3994_v46 = vrot.slane %v17074_v29, 7 }
 0x17c   :  { %v17080_v37 = vsel %vm894_vm2, %v24278_v60, %v4370_v32  ;;  %24280 = vst [vmem:[#allocation75_spill] sm:$0xff] %v17084_v56  ;;  %v13755_v44 = vadd.f32 %v12835_v47, %v16384_v8  ;;  %v3141_v35 = vpop.f32.mrb[17].mxu0  ;;  %v23378_v60 = vrot.slane %v17057_v57, 1  ;;  %v3992_v12 = vrot.slane %v17084_v56, 7 }
 0x17d   :  { %24279 = vst [vmem:[#allocation74_spill] sm:$0xff] %v17080_v37  ;;  %v13756_v53 = vadd.f32 %v3141_v35, %v16390_v48  ;;  %v12836_v45 = vpop.f32.mrb[18].mxu0  ;;  %v17098_v61 = vsel %vm509_vm4, %v3990_v40, %v3991_v26  ;;  %v17104_v47 = vsel %vm509_vm4, %v3993_v59, %v3994_v46  ;;  %v24283_v48 = vpack.c.bf16 %v16299_v62, %v16294_v20  ;;  %v24315_v37 = vld [vmem:[#allocation48_spill] sm:$0xff] }
 0x17e   :  { %24281 = vst [vmem:[#allocation76_spill] sm:$0xff] %v17098_v61  ;;  %v3741_v27 = vadd.f32 %v13755_v44, %v16754_v42  ;;  %v13757_v54 = vadd.f32 %v12836_v45, %v16392_v4  ;;  %v3144_v8 = vpop.f32.mrb[19].mxu0  ;;  %24282 = vst [vmem:[#allocation77_spill] sm:$0xff] %v17104_v47  ;;  %v17116_v4 = vsel %vm509_vm4, %v3991_v26, %v3992_v12 }
 0x17f   :  { %12808 = vmatmul.mubr.msk.bf16.gmra.mrb[120].mxu1 %vm1289_vm1, %v24283_v48  ;;  %v3739_v40 = vadd.f32 %v13756_v53, %v16754_v42  ;;  %v13758_v35 = vadd.f32 %v3144_v8, %v16396_v51  ;;  %24284 = vst [vmem:[#allocation78_spill] sm:$0xff] %v17116_v4  ;;  %v17120_v45 = vsel %vm509_vm4, %v3992_v12, %v3993_v59  ;;  %v24295_v12 = vld [vmem:[#allocation6_spill] sm:$0xff] }
 0x180   :  { %24285 = vst [vmem:[#allocation79_spill] sm:$0xff] %v17120_v45  ;;  %v17122_v44 = vmax.f32 %v3741_v27, 0.0  ;;  %v3742_v32 = vadd.f32 %v13757_v54, %v16754_v42  ;;  %v24287_v20 = vpack.c.bf16 %v16836_v17, %v16833_v41  ;;  %v24288_v62 = vpack.c.bf16 %v24225_v7, %v24218_v38 }
 0x181   :  { %v17137_v27 = vmax.f32 %v3739_v40, 0.0  ;;  %v3740_v59 = vadd.f32 %v13758_v35, %v16754_v42  ;;  %v17144_v41 = vsel %vm894_vm2, %v4372_v5, %v23379_v39  ;;  %v17150_v38 = vsel %vm894_vm2, %v4371_v1, %v4372_v5  ;;  %v24297_v39 = vld [vmem:[#allocation45_spill] sm:$0xff] }
 0x182   :  { %24286 = vst [vmem:[#allocation80_spill] sm:$0xff] %v17122_v44  ;;  %12942 = vmatmul.mubr.msk.bf16.gmra.mrb[124].mxu0 %vm1289_vm1, %v24287_v20  ;;  %12811 = vmatprep.mubr.msk.bf16.mxu1 %vm1289_vm1, %v24288_v62  ;;  %24290 = vst [vmem:[#allocation82_spill] sm:$0xff] %v17144_v41  ;;  %v4376_v17 = vrot.slane %v17084_v56, 1  ;;  %v17154_v26 = vmax.f32 %v3742_v32, 0.0  ;;  %v3997_v53 = vrot.slane %v17122_v44, 7  ;;  %v12839_v40 = vpop.f32.mrb[20].mxu0  ;;  %v17168_v1 = vsel %vm894_vm2, %v23380_v52, %v23378_v60 }
 0x183   :  { %24289 = vst [vmem:[#allocation81_spill] sm:$0xff] %v17137_v27  ;;  %24291 = vst [vmem:[#allocation83_spill] sm:$0xff] %v17150_v38  ;;  %v3995_v8 = vrot.slane %v17137_v27, 7  ;;  %v17160_v48 = vmax.f32 %v3740_v59, 0.0  ;;  %v13759_v35 = vadd.f32 %v12839_v40, %v16410_v49  ;;  %v3157_v20 = vpop.f32.mrb[21].mxu0  ;;  %v24312_v38 = vrot.slane %v17057_v57, 1 }
 0x184   :  { %24292 = vst [vmem:[#allocation84_spill] sm:$0xff] %v17154_v26  ;;  %24294 = vst [vmem:[#allocation86_spill] sm:$0xff] %v17168_v1  ;;  %v3998_v32 = vrot.slane %v17154_v26, 7  ;;  %v13760_v51 = vadd.f32 %v3157_v20, %v24295_v12  ;;  %v12840_v7 = vpop.f32.mrb[22].mxu0  ;;  %v24299_v12 = vpack.c.bf16 %v16769_v0, %v16346_v11  ;;  %v24300_v20 = vld [vmem:[#allocation46_spill] sm:$0xff] }
 0x185   :  { %24293 = vst [vmem:[#allocation85_spill] sm:$0xff] %v17160_v48  ;;  %v3996_v54 = vrot.slane %v17160_v48, 7  ;;  %v17180_v60 = vsel %vm509_vm4, %v3994_v46, %v3995_v8  ;;  %v3745_v5 = vadd.f32 %v13759_v35, %v16754_v42  ;;  %v13761_v52 = vadd.f32 %v12840_v7, %v24297_v39  ;;  %v3160_v49 = vpop.f32.mrb[23].mxu0 }
 0x186   :  { %24296 = vst [vmem:[#allocation6_spill] sm:$0xff] %v17180_v60  ;;  %v17186_v40 = vsel %vm509_vm4, %v3997_v53, %v3998_v32  ;;  %v3743_v46 = vadd.f32 %v13760_v51, %v16754_v42  ;;  %v13762_v59 = vadd.f32 %v3160_v49, %v24300_v20 }
 0x187   :  { %24298 = vst [vmem:[#allocation45_spill] sm:$0xff] %v17186_v40  ;;  %12812 = vmatmul.mubr.msk.bf16.gmra.mrb[124].mxu1 %vm1289_vm1, %v24299_v12  ;;  %v17198_v39 = vsel %vm509_vm4, %v3995_v8, %v3996_v54  ;;  %v17202_v7 = vsel %vm509_vm4, %v3996_v54, %v3997_v53  ;;  %v17204_v35 = vmax.f32 %v3745_v5, 0.0  ;;  %v3746_v62 = vadd.f32 %v13761_v52, %v16754_v42  ;;  %v24317_v5 = vld [vmem:[#allocation49_spill] sm:$0xff] }
 0x188   :  { %24301 = vst [vmem:[#allocation46_spill] sm:$0xff] %v17198_v39  ;;  %24302 = vst [vmem:[#allocation87_spill] sm:$0xff] %v17202_v7  ;;  %v17211_v51 = vmax.f32 %v3743_v46, 0.0  ;;  %v3744_v49 = vadd.f32 %v13762_v59, %v16754_v42  ;;  %v24305_v8 = vrot.slane %v16990_v14, 1  ;;  %v24306_v12 = vrot.slane %v16958_v25, 1  ;;  %v24314_v46 = vld [vmem:[#allocation47_spill] sm:$0xff] }
 0x189   :  { %24303 = vst [vmem:[#allocation88_spill] sm:$0xff] %v17204_v35  ;;  %v24308_v52 = vrot.slane %v17042_v36, 1  ;;  %v17230_v20 = vmax.f32 %v3746_v62, 0.0  ;;  %v4001_v0 = vrot.slane %v17204_v35, 7  ;;  %v24353_v25 = vld [vmem:[#allocation9_spill] sm:$0xff] }
 0x18a   :  { %24304 = vst [vmem:[#allocation89_spill] sm:$0xff] %v17211_v51  ;;  %v17220_v54 = vsel %vm894_vm2, %v24306_v12, %v24305_v8  ;;  %v3999_v8 = vrot.slane %v17211_v51, 7  ;;  %v17236_v12 = vmax.f32 %v3744_v49, 0.0  ;;  %v12843_v11 = vpop.f32.mrb[24].mxu0  ;;  %v24350_v14 = vrot.slane %v17211_v51, 1 }
 0x18b   :  { %24307 = vst [vmem:[#allocation90_spill] sm:$0xff] %v17220_v54  ;;  %v17226_v53 = vsel %vm894_vm2, %v4376_v17, %v24308_v52  ;;  %24310 = vst [vmem:[#allocation92_spill] sm:$0xff] %v17230_v20  ;;  %v17242_v52 = vsel %vm894_vm2, %v24312_v38, %v4376_v17  ;;  %v4002_v62 = vrot.slane %v17230_v20, 7  ;;  %v13763_v41 = vadd.f32 %v12843_v11, %v24314_v46  ;;  %v3173_v59 = vpop.f32.mrb[25].mxu0 }
 0x18c   :  { %24309 = vst [vmem:[#allocation91_spill] sm:$0xff] %v17226_v53  ;;  %24311 = vst [vmem:[#allocation93_spill] sm:$0xff] %v17236_v12  ;;  %v4000_v1 = vrot.slane %v17236_v12, 7  ;;  %v13764_v16 = vadd.f32 %v3173_v59, %v24315_v37  ;;  %v12844_v31 = vpop.f32.mrb[26].mxu0  ;;  %v17254_v38 = vsel %vm509_vm4, %v3998_v32, %v3999_v8  ;;  %v24319_v37 = vld [vmem:[#allocation50_spill] sm:$0xff]  ;;  %v24332_v53 = vld [vmem:[#allocation51_spill] sm:$0xff] }
 0x18d   :  { %24313 = vst [vmem:[#allocation94_spill] sm:$0xff] %v17242_v52  ;;  %24316 = vst [vmem:[#allocation47_spill] sm:$0xff] %v17254_v38  ;;  %v3749_v17 = vadd.f32 %v13763_v41, %v16754_v42  ;;  %v13765_v18 = vadd.f32 %v12844_v31, %v24317_v5  ;;  %v3176_v11 = vpop.f32.mrb[27].mxu0  ;;  %v17260_v46 = vsel %vm509_vm4, %v4001_v0, %v4002_v62  ;;  %v24452_v38 = vld [vmem:[#allocation17_spill] sm:$0xff] }
 0x18e   :  { %24318 = vst [vmem:[#allocation48_spill] sm:$0xff] %v17260_v46  ;;  %v3747_v49 = vadd.f32 %v13764_v16, %v16754_v42  ;;  %v13766_v59 = vadd.f32 %v3176_v11, %v24319_v37  ;;  %v17268_v32 = vsel %vm509_vm4, %v3999_v8, %v4000_v1  ;;  %v17272_v41 = vsel %vm509_vm4, %v4000_v1, %v4001_v0 }
 0x18f   :  { %24320 = vst [vmem:[#allocation49_spill] sm:$0xff] %v17268_v32  ;;  %24321 = vst [vmem:[#allocation50_spill] sm:$0xff] %v17272_v41  ;;  %v17274_v31 = vmax.f32 %v3749_v17, 0.0  ;;  %v3750_v5 = vadd.f32 %v13765_v18, %v16754_v42  ;;  %v24324_v1 = vrot.slane %v17137_v27, 1  ;;  %v24325_v0 = vrot.slane %v17074_v29, 1 }
 0x190   :  { %v17281_v54 = vmax.f32 %v3747_v49, 0.0  ;;  %v3748_v11 = vadd.f32 %v13766_v59, %v16754_v42  ;;  %v24329_v59 = vrot.slane %v17042_v36, 1 }
 0x191   :  { %24322 = vst [vmem:[#allocation95_spill] sm:$0xff] %v17274_v31  ;;  %v17292_v18 = vsel %vm894_vm2, %v24325_v0, %v24324_v1  ;;  %v17296_v16 = vmax.f32 %v3750_v5, 0.0  ;;  %v24328_v49 = vmov %v24325_v0  ;;  %v4005_v2 = vrot.slane %v17274_v31, 7 }
 0x192   :  { %24323 = vst [vmem:[#allocation96_spill] sm:$0xff] %v17281_v54  ;;  %24326 = vst [vmem:[#allocation97_spill] sm:$0xff] %v17292_v18  ;;  %v17304_v8 = vsel %vm894_vm2, %v24329_v59, %v24328_v49  ;;  %v4003_v52 = vrot.slane %v17281_v54, 7  ;;  %v17308_v1 = vmax.f32 %v3748_v11, 0.0  ;;  %v12847_v0 = vpop.f32.mrb[28].mxu0  ;;  %v24333_v11 = vld [vmem:[#allocation52_spill] sm:$0xff] }
 0x193   :  { %24327 = vst [vmem:[#allocation98_spill] sm:$0xff] %v17296_v16  ;;  %24330 = vst [vmem:[#allocation99_spill] sm:$0xff] %v17304_v8  ;;  %v4006_v37 = vrot.slane %v17296_v16, 7  ;;  %v13767_v28 = vadd.f32 %v12847_v0, %v24332_v53  ;;  %v3189_v36 = vpop.f32.mrb[29].mxu0  ;;  %v24335_v8 = vld [vmem:[#allocation53_spill] sm:$0xff] }
 0x194   :  { %24331 = vst [vmem:[#allocation100_spill] sm:$0xff] %v17308_v1  ;;  %v4004_v29 = vrot.slane %v17308_v1, 7  ;;  %v13768_v57 = vadd.f32 %v3189_v36, %v24333_v11  ;;  %v12848_v56 = vpop.f32.mrb[30].mxu0  ;;  %v17322_v17 = vsel %vm509_vm4, %v4002_v62, %v4003_v52  ;;  %v24337_v36 = vld [vmem:[#allocation54_spill] sm:$0xff] }
 0x195   :  { %24334 = vst [vmem:[#allocation51_spill] sm:$0xff] %v17322_v17  ;;  %v3753_v5 = vadd.f32 %v13767_v28, %v16754_v42  ;;  %v13769_v18 = vadd.f32 %v12848_v56, %v24335_v8  ;;  %v3192_v53 = vpop.f32.mrb[31].mxu0  ;;  %v17328_v0 = vsel %vm509_vm4, %v4005_v2, %v4006_v37 }
 0x196   :  { %24336 = vst [vmem:[#allocation52_spill] sm:$0xff] %v17328_v0  ;;  %v3751_v59 = vadd.f32 %v13768_v57, %v16754_v42  ;;  %v13770_v11 = vadd.f32 %v3192_v53, %v24337_v36  ;;  %v17336_v62 = vsel %vm509_vm4, %v4003_v52, %v4004_v29  ;;  %v17340_v28 = vsel %vm509_vm4, %v4004_v29, %v4005_v2  ;;  %v24380_v0 = vld [vmem:[#allocation57_spill] sm:$0xff] }
 0x197   :  { %24338 = vst [vmem:[#allocation53_spill] sm:$0xff] %v17336_v62  ;;  %24339 = vst [vmem:[#allocation54_spill] sm:$0xff] %v17340_v28  ;;  %v17342_v56 = vmax.f32 %v3753_v5, 0.0  ;;  %v3754_v8 = vadd.f32 %v13769_v18, %v16754_v42  ;;  %v24342_v52 = vrot.slane %v17122_v44, 1  ;;  %v24343_v36 = vrot.slane %v17160_v48, 1 }
 0x198   :  { %v17349_v49 = vmax.f32 %v3751_v59, 0.0  ;;  %v3752_v53 = vadd.f32 %v13770_v11, %v16754_v42  ;;  %v24346_v18 = vrot.slane %v17137_v27, 1  ;;  %v24408_v62 = vrot.slane %v17281_v54, 1 }
 0x199   :  { %24340 = vst [vmem:[#allocation101_spill] sm:$0xff] %v17342_v56  ;;  %v17358_v2 = vsel %vm894_vm2, %v24343_v36, %v24342_v52  ;;  %v24345_v29 = vmov %v24343_v36  ;;  %v17370_v57 = vmax.f32 %v3754_v8, 0.0  ;;  %v4009_v52 = vrot.slane %v17342_v56, 7  ;;  %v24356_v8 = vld [vmem:[#allocation55_spill] sm:$0xff] }
 0x19a   :  { %24341 = vst [vmem:[#allocation102_spill] sm:$0xff] %v17349_v49  ;;  %24344 = vst [vmem:[#allocation103_spill] sm:$0xff] %v17358_v2  ;;  %v17366_v5 = vsel %vm894_vm2, %v24346_v18, %v24345_v29  ;;  %v4007_v36 = vrot.slane %v17349_v49, 7  ;;  %v17376_v48 = vmax.f32 %v3752_v53, 0.0  ;;  %v12851_v27 = vpop.f32.mrb[32].mxu0  ;;  %v24351_v29 = vrot.slane %v17154_v26, 1 }
 0x19b   :  { %24347 = vst [vmem:[#allocation104_spill] sm:$0xff] %v17366_v5  ;;  %24348 = vst [vmem:[#allocation105_spill] sm:$0xff] %v17370_v57  ;;  %v4010_v59 = vrot.slane %v17370_v57, 7  ;;  %v13771_v11 = vadd.f32 %v12851_v27, %v24353_v25  ;;  %v3205_v5 = vpop.f32.mrb[33].mxu0 }
 0x19c   :  { %24349 = vst [vmem:[#allocation106_spill] sm:$0xff] %v17376_v48  ;;  %v17384_v18 = vsel %vm894_vm2, %v24351_v29, %v24350_v14  ;;  %v4008_v30 = vrot.slane %v17376_v48, 7  ;;  %v13772_v63 = vadd.f32 %v3205_v5, %v24354_v19  ;;  %v12852_v55 = vpop.f32.mrb[34].mxu0  ;;  %v17396_v14 = vsel %vm509_vm4, %v4006_v37, %v4007_v36  ;;  %v24358_v19 = vld [vmem:[#allocation56_spill] sm:$0xff] }
 0x19d   :  { %24352 = vst [vmem:[#allocation107_spill] sm:$0xff] %v17384_v18  ;;  %24355 = vst [vmem:[#allocation9_spill] sm:$0xff] %v17396_v14  ;;  %v3757_v29 = vadd.f32 %v13771_v11, %v16754_v42  ;;  %v13773_v9 = vadd.f32 %v12852_v55, %v24356_v8  ;;  %v3208_v25 = vpop.f32.mrb[35].mxu0  ;;  %v17402_v27 = vsel %vm509_vm4, %v4009_v52, %v4010_v59 }
 0x19e   :  { %24357 = vst [vmem:[#allocation10_spill] sm:$0xff] %v17402_v27  ;;  %v3755_v2 = vadd.f32 %v13772_v63, %v16754_v42  ;;  %v13774_v5 = vadd.f32 %v3208_v25, %v24358_v19  ;;  %v17410_v37 = vsel %vm509_vm4, %v4007_v36, %v4008_v30  ;;  %v17414_v11 = vsel %vm509_vm4, %v4008_v30, %v4009_v52  ;;  %v24375_v27 = vld [vmem:[#allocation12_spill] sm:$0xff] }
 0x19f   :  { %24359 = vst [vmem:[#allocation55_spill] sm:$0xff] %v17410_v37  ;;  %24360 = vst [vmem:[#allocation56_spill] sm:$0xff] %v17414_v11  ;;  %v17416_v55 = vmax.f32 %v3757_v29, 0.0  ;;  %v3758_v8 = vadd.f32 %v13773_v9, %v16754_v42  ;;  %v24363_v36 = vrot.slane %v17154_v26, 1  ;;  %v24364_v19 = vrot.slane %v17122_v44, 1 }
 0x1a0   :  { %v17423_v53 = vmax.f32 %v3755_v2, 0.0  ;;  %v3756_v25 = vadd.f32 %v13774_v5, %v16754_v42  ;;  %v24366_v9 = vrot.slane %v17204_v35, 1  ;;  %v24367_v52 = vrot.slane %v17236_v12, 1 }
 0x1a1   :  { %24361 = vst [vmem:[#allocation108_spill] sm:$0xff] %v17416_v55  ;;  %v17432_v30 = vsel %vm894_vm2, %v24364_v19, %v24363_v36  ;;  %v17444_v63 = vmax.f32 %v3758_v8, 0.0  ;;  %v4013_v36 = vrot.slane %v17416_v55, 7  ;;  %v24376_v8 = vld [vmem:[#allocation13_spill] sm:$0xff] }
 0x1a2   :  { %24362 = vst [vmem:[#allocation109_spill] sm:$0xff] %v17423_v53  ;;  %24365 = vst [vmem:[#allocation110_spill] sm:$0xff] %v17432_v30  ;;  %v17440_v29 = vsel %vm894_vm2, %v24367_v52, %v24366_v9  ;;  %v4011_v19 = vrot.slane %v17423_v53, 7  ;;  %v17450_v44 = vmax.f32 %v3756_v25, 0.0  ;;  %v12855_v26 = vpop.f32.mrb[36].mxu0  ;;  %v24371_v11 = vmov %v24367_v52 }
 0x1a3   :  { %24368 = vst [vmem:[#allocation111_spill] sm:$0xff] %v17440_v29  ;;  %24369 = vst [vmem:[#allocation112_spill] sm:$0xff] %v17444_v63  ;;  %v24372_v9 = vrot.slane %v17211_v51, 1  ;;  %v4014_v2 = vrot.slane %v17444_v63, 7  ;;  %v13775_v5 = vadd.f32 %v12855_v26, %v24374_v34  ;;  %v3221_v30 = vpop.f32.mrb[37].mxu0  ;;  %v24377_v34 = vld [vmem:[#allocation7_spill] sm:$0xff] }
 0x1a4   :  { %24370 = vst [vmem:[#allocation113_spill] sm:$0xff] %v17450_v44  ;;  %v4012_v12 = vrot.slane %v17450_v44, 7  ;;  %v13776_v51 = vadd.f32 %v3221_v30, %v24375_v27  ;;  %v12856_v14 = vpop.f32.mrb[38].mxu0 }
 0x1a5   :  { %v17458_v52 = vsel %vm894_vm2, %v24372_v9, %v24371_v11  ;;  %v4202_v11 = vsel %vm509_vm4, %v4010_v59, %v4011_v19  ;;  %v3761_v9 = vadd.f32 %v13775_v5, %v16754_v42  ;;  %v13777_v37 = vadd.f32 %v12856_v14, %v24376_v8  ;;  %v3224_v28 = vpop.f32.mrb[39].mxu0 }
 0x1a6   :  { %24373 = vst [vmem:[#allocation114_spill] sm:$0xff] %v17458_v52  ;;  %v17473_v26 = vmul.f32 %v24377_v34, %v4202_v11  ;;  %v17477_v25 = vsel %vm509_vm4, %v4013_v36, %v4014_v2  ;;  %v3759_v18 = vadd.f32 %v13776_v51, %v16754_v42  ;;  %v13778_v27 = vadd.f32 %v3224_v28, %v24380_v0  ;;  %v24396_v52 = vld [vmem:[#allocation58_spill] sm:$0xff] }
 0x1a7   :  { %24379 = vst [vmem:[#allocation12_spill] sm:$0xff] %v17477_v25  ;;  %v17483_v30 = vsel %vm509_vm4, %v4011_v19, %v4012_v12  ;;  %v17487_v59 = vsel %vm509_vm4, %v4012_v12, %v4013_v36  ;;  %v17489_v14 = vmax.f32 %v3761_v9, 0.0  ;;  %v3762_v5 = vadd.f32 %v13777_v37, %v16754_v42 }
 0x1a8   :  { %24378 = vst [vmem:[#allocation11_spill] sm:$0xff] %v17473_v26  ;;  %24381 = vst [vmem:[#allocation13_spill] sm:$0xff] %v17483_v30  ;;  %v17496_v11 = vmax.f32 %v3759_v18, 0.0  ;;  %v3760_v0 = vadd.f32 %v13778_v27, %v16754_v42  ;;  %v24386_v9 = vrot.slane %v17281_v54, 1  ;;  %v24387_v51 = vrot.slane %v17230_v20, 1  ;;  %v24394_v26 = vld [vmem:[#allocation31_spill] sm:$0xff] }
 0x1a9   :  { %24382 = vst [vmem:[#allocation57_spill] sm:$0xff] %v17487_v59  ;;  %24383 = vst [vmem:[#allocation115_spill] sm:$0xff] %v17489_v14  ;;  %v17505_v19 = vmax.f32 %v3762_v5, 0.0  ;;  %v4017_v27 = vrot.slane %v17489_v14, 7  ;;  %v24391_v5 = vrot.slane %v17204_v35, 1  ;;  %v24411_v54 = vld [vmem:[#allocation60_spill] sm:$0xff] }
 0x1aa   :  { %24384 = vst [vmem:[#allocation116_spill] sm:$0xff] %v17496_v11  ;;  %v17513_v18 = vsel %vm894_vm2, %v24387_v51, %v24386_v9  ;;  %v4015_v28 = vrot.slane %v17496_v11, 7  ;;  %v17517_v8 = vmax.f32 %v3760_v0, 0.0  ;;  %v12859_v12 = vpop.f32.mrb[40].mxu0  ;;  %v24390_v36 = vmov %v24387_v51  ;;  %v24393_v9 = vld [vmem:[#allocation14_spill] sm:$0xff] }
 0x1ab   :  { %24385 = vst [vmem:[#allocation117_spill] sm:$0xff] %v17505_v19  ;;  %24388 = vst [vmem:[#allocation118_spill] sm:$0xff] %v17513_v18  ;;  %v17525_v37 = vsel %vm894_vm2, %v24391_v5, %v24390_v36  ;;  %v4018_v51 = vrot.slane %v17505_v19, 7  ;;  %v13779_v29 = vadd.f32 %v12859_v12, %v24393_v9  ;;  %v3237_v59 = vpop.f32.mrb[41].mxu0 }
 0x1ac   :  { %24389 = vst [vmem:[#allocation119_spill] sm:$0xff] %v17517_v8  ;;  %24392 = vst [vmem:[#allocation120_spill] sm:$0xff] %v17525_v37  ;;  %v4016_v20 = vrot.slane %v17517_v8, 7  ;;  %v13780_v35 = vadd.f32 %v3237_v59, %v24394_v26  ;;  %v12860_v30 = vpop.f32.mrb[42].mxu0  ;;  %v17537_v36 = vsel %vm509_vm4, %v4014_v2, %v4015_v28  ;;  %v24398_v26 = vld [vmem:[#allocation59_spill] sm:$0xff] }
 0x1ad   :  { %24395 = vst [vmem:[#allocation14_spill] sm:$0xff] %v17537_v36  ;;  %v3765_v5 = vadd.f32 %v13779_v29, %v16754_v42  ;;  %v13781_v17 = vadd.f32 %v12860_v30, %v24396_v52  ;;  %v3240_v12 = vpop.f32.mrb[43].mxu0  ;;  %v17543_v9 = vsel %vm509_vm4, %v4017_v27, %v4018_v51 }
 0x1ae   :  { %24397 = vst [vmem:[#allocation31_spill] sm:$0xff] %v17543_v9  ;;  %v3763_v25 = vadd.f32 %v13780_v35, %v16754_v42  ;;  %v13782_v59 = vadd.f32 %v3240_v12, %v24398_v26  ;;  %v17551_v2 = vsel %vm509_vm4, %v4015_v28, %v4016_v20  ;;  %v17555_v29 = vsel %vm509_vm4, %v4016_v20, %v4017_v27  ;;  %v14519_v28 = vld [vmem:[%s23290_s3 + $0x8] sm:$0xff]   ;;  %v24412_v9 = vld [vmem:[#allocation61_spill] sm:$0xff] }
 0x1af   :  { %24399 = vst [vmem:[#allocation58_spill] sm:$0xff] %v17551_v2  ;;  %24400 = vst [vmem:[#allocation59_spill] sm:$0xff] %v17555_v29  ;;  %v17557_v52 = vmax.f32 %v3765_v5, 0.0  ;;  %v3766_v30 = vadd.f32 %v13781_v17, %v16754_v42  ;;  %v24403_v27 = vrot.slane %v17274_v31, 1  ;;  %v24404_v17 = vrot.slane %v17308_v1, 1  ;;  %12947 = vmatprep.subr.bf16.mxu1 %v14519_v28 }
 0x1b0   :  { %v17564_v0 = vmax.f32 %v3763_v25, 0.0  ;;  %v3764_v12 = vadd.f32 %v13782_v59, %v16754_v42  ;;  %12948 = vmatpush3.bf16.msra.mxu1 %v14519_v28 }
 0x1b1   :  { %24401 = vst [vmem:[#allocation121_spill] sm:$0xff] %v17557_v52  ;;  %v17578_v5 = vsel %vm894_vm2, %v24404_v17, %v24403_v27  ;;  %v17582_v59 = vmax.f32 %v3766_v30, 0.0  ;;  %v24407_v35 = vmov %v24404_v17  ;;  %v4021_v37 = vrot.slane %v17557_v52, 7 }
 0x1b2   :  { %24402 = vst [vmem:[#allocation122_spill] sm:$0xff] %v17564_v0  ;;  %24405 = vst [vmem:[#allocation123_spill] sm:$0xff] %v17578_v5  ;;  %v17590_v20 = vsel %vm894_vm2, %v24408_v62, %v24407_v35  ;;  %v4019_v18 = vrot.slane %v17564_v0, 7  ;;  %v17594_v27 = vmax.f32 %v3764_v12, 0.0  ;;  %v12863_v17 = vpop.f32.mrb[44].mxu0  ;;  %v24432_v5 = vld [vmem:[#allocation15_spill] sm:$0xff] }
 0x1b3   :  { %24406 = vst [vmem:[#allocation124_spill] sm:$0xff] %v17582_v59  ;;  %24409 = vst [vmem:[#allocation125_spill] sm:$0xff] %v17590_v20  ;;  %v4022_v26 = vrot.slane %v17582_v59, 7  ;;  %v13783_v1 = vadd.f32 %v12863_v17, %v24411_v54  ;;  %v3253_v29 = vpop.f32.mrb[45].mxu0  ;;  %v24414_v20 = vld [vmem:[#allocation62_spill] sm:$0xff] }
 0x1b4   :  { %24410 = vst [vmem:[#allocation126_spill] sm:$0xff] %v17594_v27  ;;  %v4020_v12 = vrot.slane %v17594_v27, 7  ;;  %v13784_v36 = vadd.f32 %v3253_v29, %v24412_v9  ;;  %v12864_v2 = vpop.f32.mrb[46].mxu0  ;;  %v17608_v30 = vsel %vm509_vm4, %v4018_v51, %v4019_v18  ;;  %v24416_v9 = vld [vmem:[#allocation63_spill] sm:$0xff] }
 0x1b5   :  { %24413 = vst [vmem:[#allocation60_spill] sm:$0xff] %v17608_v30  ;;  %v3769_v25 = vadd.f32 %v13783_v1, %v16754_v42  ;;  %v13785_v54 = vadd.f32 %v12864_v2, %v24414_v20  ;;  %v3256_v17 = vpop.f32.mrb[47].mxu0  ;;  %v17614_v28 = vsel %vm509_vm4, %v4021_v37, %v4022_v26  ;;  %v24433_v30 = vld [vmem:[#allocation16_spill] sm:$0xff] }
 0x1b6   :  { %24415 = vst [vmem:[#allocation61_spill] sm:$0xff] %v17614_v28  ;;  %v3767_v35 = vadd.f32 %v13784_v36, %v16754_v42  ;;  %v13786_v29 = vadd.f32 %v3256_v17, %v24416_v9  ;;  %v17622_v51 = vsel %vm509_vm4, %v4019_v18, %v4020_v12  ;;  %v17626_v1 = vsel %vm509_vm4, %v4020_v12, %v4021_v37 }
 0x1b7   :  { %24417 = vst [vmem:[#allocation62_spill] sm:$0xff] %v17622_v51  ;;  %24418 = vst [vmem:[#allocation63_spill] sm:$0xff] %v17626_v1  ;;  %v17628_v2 = vmax.f32 %v3769_v25, 0.0  ;;  %v3770_v20 = vadd.f32 %v13785_v54, %v16754_v42  ;;  %v24421_v18 = vrot.slane %v17349_v49, 1  ;;  %v24422_v9 = vrot.slane %v17296_v16, 1 }
 0x1b8   :  { %v17635_v62 = vmax.f32 %v3767_v35, 0.0  ;;  %v3768_v17 = vadd.f32 %v13786_v29, %v16754_v42  ;;  %v24425_v12 = vrot.slane %v17274_v31, 1  ;;  %v24429_v1 = vrot.slane %v17342_v56, 1 }
 0x1b9   :  { %24419 = vst [vmem:[#allocation127_spill] sm:$0xff] %v17628_v2  ;;  %v17644_v37 = vsel %vm894_vm2, %v24422_v9, %v24421_v18  ;;  %v24424_v25 = vmov %v24422_v9  ;;  %v17656_v36 = vmax.f32 %v3770_v20, 0.0  ;;  %v4025_v18 = vrot.slane %v17628_v2, 7  ;;  %v24435_v20 = vld [vmem:[#allocation64_spill] sm:$0xff] }
 0x1ba   :  { %24420 = vst [vmem:[#allocation128_spill] sm:$0xff] %v17635_v62  ;;  %24423 = vst [vmem:[#allocation129_spill] sm:$0xff] %v17644_v37  ;;  %v17652_v54 = vsel %vm894_vm2, %v24425_v12, %v24424_v25  ;;  %v4023_v9 = vrot.slane %v17635_v62, 7  ;;  %v17662_v16 = vmax.f32 %v3768_v17, 0.0  ;;  %v12867_v31 = vpop.f32.mrb[48].mxu0  ;;  %v24430_v25 = vrot.slane %v17376_v48, 1 }
 0x1bb   :  { %24426 = vst [vmem:[#allocation130_spill] sm:$0xff] %v17652_v54  ;;  %24427 = vst [vmem:[#allocation131_spill] sm:$0xff] %v17656_v36  ;;  %v4026_v35 = vrot.slane %v17656_v36, 7  ;;  %v13787_v29 = vadd.f32 %v12867_v31, %v24432_v5  ;;  %v3269_v54 = vpop.f32.mrb[49].mxu0 }
 0x1bc   :  { %24428 = vst [vmem:[#allocation132_spill] sm:$0xff] %v17662_v16  ;;  %v17670_v12 = vsel %vm894_vm2, %v24430_v25, %v24429_v1  ;;  %v4024_v28 = vrot.slane %v17662_v16, 7  ;;  %v13788_v51 = vadd.f32 %v3269_v54, %v24433_v30  ;;  %v12868_v41 = vpop.f32.mrb[50].mxu0  ;;  %v17682_v1 = vsel %vm509_vm4, %v4022_v26, %v4023_v9  ;;  %v24437_v30 = vld [vmem:[#allocation65_spill] sm:$0xff] }
 0x1bd   :  { %24431 = vst [vmem:[#allocation133_spill] sm:$0xff] %v17670_v12  ;;  %24434 = vst [vmem:[#allocation15_spill] sm:$0xff] %v17682_v1  ;;  %v3773_v25 = vadd.f32 %v13787_v29, %v16754_v42  ;;  %v13789_v46 = vadd.f32 %v12868_v41, %v24435_v20  ;;  %v3272_v31 = vpop.f32.mrb[51].mxu0  ;;  %v17688_v5 = vsel %vm509_vm4, %v4025_v18, %v4026_v35 }
 0x1be   :  { %24436 = vst [vmem:[#allocation16_spill] sm:$0xff] %v17688_v5  ;;  %v3771_v37 = vadd.f32 %v13788_v51, %v16754_v42  ;;  %v13790_v54 = vadd.f32 %v3272_v31, %v24437_v30  ;;  %v17696_v26 = vsel %vm509_vm4, %v4023_v9, %v4024_v28  ;;  %v17700_v29 = vsel %vm509_vm4, %v4024_v28, %v4025_v18  ;;  %v24453_v5 = vld [vmem:[#allocation18_spill] sm:$0xff] }
 0x1bf   :  { %24438 = vst [vmem:[#allocation64_spill] sm:$0xff] %v17696_v26  ;;  %24439 = vst [vmem:[#allocation65_spill] sm:$0xff] %v17700_v29  ;;  %v17702_v41 = vmax.f32 %v3773_v25, 0.0  ;;  %v3774_v20 = vadd.f32 %v13789_v46, %v16754_v42  ;;  %v24442_v9 = vrot.slane %v17376_v48, 1  ;;  %v24443_v30 = vrot.slane %v17349_v49, 1 }
 0x1c0   :  { %v17709_v17 = vmax.f32 %v3771_v37, 0.0  ;;  %v3772_v31 = vadd.f32 %v13790_v54, %v16754_v42  ;;  %v24445_v46 = vrot.slane %v17423_v53, 1  ;;  %v24446_v18 = vrot.slane %v17370_v57, 1 }
 0x1c1   :  { %24440 = vst [vmem:[#allocation134_spill] sm:$0xff] %v17702_v41  ;;  %v17718_v28 = vsel %vm894_vm2, %v24443_v30, %v24442_v9  ;;  %v17728_v54 = vmax.f32 %v3774_v20, 0.0  ;;  %v4029_v49 = vrot.slane %v17702_v41, 7  ;;  %v24455_v20 = vld [vmem:[#allocation19_spill] sm:$0xff] }
 0x1c2   :  { %24441 = vst [vmem:[#allocation135_spill] sm:$0xff] %v17709_v17  ;;  %24444 = vst [vmem:[#allocation136_spill] sm:$0xff] %v17718_v28  ;;  %v4586_v25 = vsel %vm894_vm2, %v24446_v18, %v24445_v46  ;;  %v4027_v9 = vrot.slane %v17709_v17, 7  ;;  %v17734_v30 = vmax.f32 %v3772_v31, 0.0  ;;  %v12871_v48 = vpop.f32.mrb[52].mxu0  ;;  %v24449_v29 = vmov %v24446_v18 }
 0x1c3   :  { %24447 = vst [vmem:[#allocation137_spill] sm:$0xff] %v17728_v54  ;;  %v24450_v46 = vrot.slane %v17342_v56, 1  ;;  %v4030_v37 = vrot.slane %v17728_v54, 7  ;;  %v13791_v51 = vadd.f32 %v12871_v48, %v24452_v38  ;;  %v3285_v28 = vpop.f32.mrb[53].mxu0 }
 0x1c4   :  { %24448 = vst [vmem:[#allocation138_spill] sm:$0xff] %v17734_v30  ;;  %v4028_v57 = vrot.slane %v17734_v30, 7  ;;  %v13792_v56 = vadd.f32 %v3285_v28, %v24453_v5  ;;  %v12872_v1 = vpop.f32.mrb[54].mxu0  ;;  %v17767_v5 = vld [vmem:[%s23289_s2] ss:$0 sm:$0xff]  ;;  %v24457_v28 = vld [vmem:[#allocation20_spill] sm:$0xff] }
 0x1c5   :  { %v17742_v18 = vsel %vm894_vm2, %v24450_v46, %v24449_v29  ;;  %v17754_v29 = vsel %vm509_vm4, %v4026_v35, %v4027_v9  ;;  %v3777_v46 = vadd.f32 %v13791_v51, %v16754_v42  ;;  %v13793_v26 = vadd.f32 %v12872_v1, %v24455_v20  ;;  %v3288_v48 = vpop.f32.mrb[55].mxu0 }
 0x1c6   :  { %24451 = vst [vmem:[#allocation139_spill] sm:$0xff] %v17742_v18  ;;  %24454 = vst [vmem:[#allocation17_spill] sm:$0xff] %v17754_v29  ;;  %v17760_v38 = vsel %vm509_vm4, %v4029_v49, %v4030_v37  ;;  %v3775_v35 = vadd.f32 %v17767_v5, %v13792_v56  ;;  %v13794_v12 = vadd.f32 %v3288_v48, %v24457_v28  ;;  %v24475_v18 = vld [vmem:[#allocation23_spill] sm:$0xff] }
 0x1c7   :  { %24456 = vst [vmem:[#allocation18_spill] sm:$0xff] %v17760_v38  ;;  %v17773_v42 = vsel %vm509_vm4, %v4027_v9, %v4028_v57  ;;  %v17777_v1 = vsel %vm509_vm4, %v4028_v57, %v4029_v49  ;;  %v17779_v51 = vmax.f32 %v3777_v46, 0.0  ;;  %v3778_v20 = vadd.f32 %v17767_v5, %v13793_v26  ;;  %v24462_v9 = vld [vmem:[#allocation8_spill] sm:$0xff] }
 0x1c8   :  { %24458 = vst [vmem:[#allocation19_spill] sm:$0xff] %v17773_v42  ;;  %24459 = vst [vmem:[#allocation20_spill] sm:$0xff] %v17777_v1  ;;  %v17786_v32 = vmax.f32 %v3775_v35, 0.0  ;;  %v3776_v48 = vadd.f32 %v17767_v5, %v13794_v12  ;;  %v17790_v28 = vmul.f32 %v24462_v9, %v4586_v25  ;;  %v24464_v49 = vrot.slane %v17416_v55, 1 }
 0x1c9   :  { %24460 = vst [vmem:[#allocation140_spill] sm:$0xff] %v17779_v51  ;;  %v24465_v57 = vrot.slane %v17450_v44, 1  ;;  %v17802_v56 = vmax.f32 %v3778_v20, 0.0  ;;  %v24469_v12 = vrot.slane %v17423_v53, 1  ;;  %v4033_v1 = vrot.slane %v17779_v51, 7  ;;  %v24472_v44 = vld [vmem:[#allocation21_spill] sm:$0xff] }
 0x1ca   :  { %24461 = vst [vmem:[#allocation141_spill] sm:$0xff] %v17786_v32  ;;  %24463 = vst [vmem:[#allocation142_spill] sm:$0xff] %v17790_v28  ;;  %v4031_v38 = vrot.slane %v17786_v32, 7 }
 0x1cb   :  { %v17798_v26 = vsel %vm894_vm2, %v24465_v57, %v24464_v49  ;;  %24467 = vst [vmem:[#allocation144_spill] sm:$0xff] %v17802_v56  ;;  %v24468_v35 = vmov %v24465_v57  ;;  %v17814_v49 = vmax.f32 %v3776_v48, 0.0  ;;  %v12875_v57 = vpop.f32.mrb[56].mxu0  ;;  %v4034_v31 = vrot.slane %v17802_v56, 7  ;;  %v24473_v48 = vld [vmem:[#allocation22_spill] sm:$0xff] }
 0x1cc   :  { %24466 = vst [vmem:[#allocation143_spill] sm:$0xff] %v17798_v26  ;;  %v17810_v25 = vsel %vm894_vm2, %v24469_v12, %v24468_v35  ;;  %v13795_v53 = vadd.f32 %v12875_v57, %v24472_v44  ;;  %v3301_v29 = vpop.f32.mrb[57].mxu0  ;;  %v17828_v46 = vsel %vm509_vm4, %v4030_v37, %v4031_v38  ;;  %v24490_v26 = vld [vmem:[#allocation25_spill] sm:$0xff] }
 0x1cd   :  { %24470 = vst [vmem:[#allocation145_spill] sm:$0xff] %v17810_v25  ;;  %24471 = vst [vmem:[#allocation146_spill] sm:$0xff] %v17814_v49  ;;  %v4032_v42 = vrot.slane %v17814_v49, 7  ;;  %v13796_v7 = vadd.f32 %v3301_v29, %v24473_v48  ;;  %v12876_v40 = vpop.f32.mrb[58].mxu0  ;;  %v17834_v57 = vsel %vm509_vm4, %v4033_v1, %v4034_v31  ;;  %v24477_v29 = vld [vmem:[#allocation24_spill] sm:$0xff] }
 0x1ce   :  { %24474 = vst [vmem:[#allocation21_spill] sm:$0xff] %v17828_v46  ;;  %v3781_v20 = vadd.f32 %v17767_v5, %v13795_v53  ;;  %v13797_v28 = vadd.f32 %v12876_v40, %v24475_v18  ;;  %v3304_v44 = vpop.f32.mrb[59].mxu0  ;;  %24476 = vst [vmem:[#allocation22_spill] sm:$0xff] %v17834_v57 }
 0x1cf   :  { %v3779_v12 = vadd.f32 %v17767_v5, %v13796_v7  ;;  %v13798_v48 = vadd.f32 %v3304_v44, %v24477_v29  ;;  %v17842_v37 = vsel %vm509_vm4, %v4031_v38, %v4032_v42  ;;  %v17846_v53 = vsel %vm509_vm4, %v4032_v42, %v4033_v1 }
 0x1d0   :  { %24478 = vst [vmem:[#allocation23_spill] sm:$0xff] %v17842_v37  ;;  %24479 = vst [vmem:[#allocation24_spill] sm:$0xff] %v17846_v53  ;;  %v17848_v40 = vmax.f32 %v3781_v20, 0.0  ;;  %v3782_v18 = vadd.f32 %v17767_v5, %v13797_v28  ;;  %v24482_v42 = vrot.slane %v17496_v11, 1  ;;  %v24483_v1 = vrot.slane %v17444_v63, 1 }
 0x1d1   :  { %v17855_v35 = vmax.f32 %v3779_v12, 0.0  ;;  %v3780_v44 = vadd.f32 %v17767_v5, %v13798_v48  ;;  %v24487_v48 = vrot.slane %v17416_v55, 1 }
 0x1d2   :  { %24480 = vst [vmem:[#allocation147_spill] sm:$0xff] %v17848_v40  ;;  %v17866_v28 = vsel %vm894_vm2, %v24483_v1, %v24482_v42  ;;  %v17870_v7 = vmax.f32 %v3782_v18, 0.0  ;;  %v24486_v12 = vmov %v24483_v1  ;;  %v4037_v60 = vrot.slane %v17848_v40, 7  ;;  %v12879_v1 = vpop.f32.mrb[60].mxu0 }
 0x1d3   :  { %24481 = vst [vmem:[#allocation148_spill] sm:$0xff] %v17855_v35  ;;  %24484 = vst [vmem:[#allocation149_spill] sm:$0xff] %v17866_v28  ;;  %v17878_v38 = vsel %vm894_vm2, %v24487_v48, %v24486_v12  ;;  %v4035_v25 = vrot.slane %v17855_v35, 7  ;;  %v17882_v42 = vmax.f32 %v3780_v44, 0.0  ;;  %v13799_v55 = vadd.f32 %v12879_v1, %v24490_v26  ;;  %v3317_v63 = vpop.f32.mrb[61].mxu0  ;;  %v24491_v44 = vld [vmem:[#allocation32_spill] sm:$0xff] }
 0x1d4   :  { %24485 = vst [vmem:[#allocation150_spill] sm:$0xff] %v17870_v7  ;;  %24488 = vst [vmem:[#allocation151_spill] sm:$0xff] %v17878_v38  ;;  %v4038_v29 = vrot.slane %v17870_v7, 7  ;;  %v13800_v57 = vadd.f32 %v3317_v63, %v24491_v44  ;;  %v12880_v46 = vpop.f32.mrb[62].mxu0  ;;  %v24493_v38 = vld [vmem:[#allocation33_spill] sm:$0xff]  ;;  %v24495_v63 = vld [vmem:[#allocation30_spill] sm:$0xff] }
 0x1d5   :  { %24489 = vst [vmem:[#allocation152_spill] sm:$0xff] %v17882_v42  ;;  %v4036_v53 = vrot.slane %v17882_v42, 7  ;;  %v17896_v20 = vsel %vm509_vm4, %v4034_v31, %v4035_v25  ;;  %v3785_v18 = vadd.f32 %v17767_v5, %v13799_v55  ;;  %v13801_v28 = vadd.f32 %v12880_v46, %v24493_v38  ;;  %v3320_v26 = vpop.f32.mrb[63].mxu0 }
 0x1d6   :  { %24492 = vst [vmem:[#allocation25_spill] sm:$0xff] %v17896_v20  ;;  %v17902_v1 = vsel %vm509_vm4, %v4037_v60, %v4038_v29  ;;  %v3783_v48 = vadd.f32 %v17767_v5, %v13800_v57  ;;  %v13802_v44 = vadd.f32 %v3320_v26, %v24495_v63  ;;  %v24501_v63 = vrot.slane %v17517_v8, 1 }
 0x1d7   :  { %24494 = vst [vmem:[#allocation32_spill] sm:$0xff] %v17902_v1  ;;  %v17910_v31 = vsel %vm509_vm4, %v4035_v25, %v4036_v53  ;;  %v17914_v55 = vsel %vm509_vm4, %v4036_v53, %v4037_v60  ;;  %v17916_v46 = vmax.f32 %v3785_v18, 0.0  ;;  %v3786_v38 = vadd.f32 %v17767_v5, %v13801_v28 }
 0x1d8   :  { %24496 = vst [vmem:[#allocation33_spill] sm:$0xff] %v17910_v31  ;;  %24497 = vst [vmem:[#allocation30_spill] sm:$0xff] %v17914_v55  ;;  %v17923_v12 = vmax.f32 %v3783_v48, 0.0  ;;  %v3784_v26 = vadd.f32 %v17767_v5, %v13802_v44  ;;  %v24500_v25 = vrot.slane %v17489_v14, 1  ;;  %v24503_v53 = vmov %v24501_v63 }
 0x1d9   :  { %24498 = vst [vmem:[#allocation153_spill] sm:$0xff] %v17916_v46  ;;  %v24504_v28 = vrot.slane %v17496_v11, 1  ;;  %v17944_v57 = vmax.f32 %v3786_v38, 0.0  ;;  %v24508_v55 = vrot.slane %v17564_v0, 1  ;;  %v24518_v1 = vrot.slane %v17594_v27, 1 }
 0x1da   :  { %24499 = vst [vmem:[#allocation154_spill] sm:$0xff] %v17923_v12  ;;  %v17932_v60 = vsel %vm894_vm2, %v24501_v63, %v24500_v25  ;;  %v4041_v25 = vrot.slane %v17916_v46, 7  ;;  %v4039_v63 = vrot.slane %v17923_v12, 7  ;;  %v17950_v8 = vmax.f32 %v3784_v26, 0.0  ;;  %v12883_v11 = vpop.f32.mrb[64].mxu0 }
 0x1db   :  { %24502 = vst [vmem:[#allocation155_spill] sm:$0xff] %v17932_v60  ;;  %v17940_v18 = vsel %vm894_vm2, %v24504_v28, %v24503_v53  ;;  %24506 = vst [vmem:[#allocation157_spill] sm:$0xff] %v17944_v57  ;;  %v24509_v53 = vrot.slane %v17505_v19, 1  ;;  %v3333_v37 = vpop.f32.mrb[65].mxu0  ;;  %v24515_v19 = vrot.slane %v17944_v57, 7  ;;  %v24520_v44 = vmov %v24518_v1 }
 0x1dc   :  { %24505 = vst [vmem:[#allocation156_spill] sm:$0xff] %v17940_v18  ;;  %24507 = vst [vmem:[#allocation158_spill] sm:$0xff] %v17950_v8  ;;  %v24512_v18 = vrot.slane %v17489_v14, 1  ;;  %v17976_v38 = vsel %vm509_vm4, %v4038_v29, %v4039_v63  ;;  %v24521_v20 = vrot.slane %v17564_v0, 1 }
 0x1dd   :  { %v17958_v28 = vsel %vm894_vm2, %v24509_v53, %v24508_v55  ;;  %v24511_v26 = vmov %v24509_v53  ;;  %v4040_v55 = vrot.slane %v17950_v8, 7  ;;  %v12884_v53 = vpop.f32.mrb[66].mxu0  ;;  %24514 = vst [vmem:[#allocation161_spill] sm:$0xff] %v17976_v38  ;;  %v17984_v14 = vsel %vm509_vm4, %v4041_v25, %v24515_v19 }
 0x1de   :  { %24510 = vst [vmem:[#allocation159_spill] sm:$0xff] %v17958_v28  ;;  %v17970_v60 = vsel %vm894_vm2, %v24512_v18, %v24511_v26  ;;  %v3336_v48 = vpop.f32.mrb[67].mxu0  ;;  %24516 = vst [vmem:[#allocation162_spill] sm:$0xff] %v17984_v14  ;;  %v24517_v26 = vrot.slane %v17557_v52, 1  ;;  %v18002_v31 = vsel %vm894_vm2, %v24521_v20, %v24520_v44 }
 0x1df   :  { %24513 = vst [vmem:[#allocation160_spill] sm:$0xff] %v17970_v60  ;;  %24522 = vst [vmem:[#allocation164_spill] sm:$0xff] %v18002_v31  ;;  %v18006_v19 = vsel %vm509_vm4, %v4039_v63, %v4040_v55  ;;  %v18010_v18 = vsel %vm509_vm4, %v4040_v55, %v4041_v25  ;;  %v24526_v60 = vrot.slane %v17582_v59, 1  ;;  %v24529_v63 = vrot.slane %v17557_v52, 1 }
 0x1e0   :  { %v17994_v29 = vsel %vm894_vm2, %v24518_v1, %v24517_v26  ;;  %24523 = vst [vmem:[#allocation165_spill] sm:$0xff] %v18006_v19  ;;  %24524 = vst [vmem:[#allocation166_spill] sm:$0xff] %v18010_v18  ;;  %v24525_v26 = vrot.slane %v17635_v62, 1  ;;  %v24531_v1 = vrot.slane %v17628_v2, 1  ;;  %v24532_v31 = vrot.slane %v17662_v16, 1 }
 0x1e1   :  { %24519 = vst [vmem:[#allocation163_spill] sm:$0xff] %v17994_v29  ;;  %v24528_v25 = vmov %v24526_v60 }
 0x1e2   :  { %v18020_v28 = vsel %vm894_vm2, %v24526_v60, %v24525_v26  ;;  %v18032_v55 = vsel %vm894_vm2, %v24529_v63, %v24528_v25  ;;  %v18040_v60 = vsel %vm894_vm2, %v24532_v31, %v24531_v1  ;;  %v24534_v44 = vmov %v24532_v31 }
 0x1e3   :  { %24527 = vst [vmem:[#allocation167_spill] sm:$0xff] %v18020_v28  ;;  %24530 = vst [vmem:[#allocation168_spill] sm:$0xff] %v18032_v55  ;;  %v24535_v20 = vmov %v24525_v26  ;;  %v24537_v25 = vrot.slane %v17709_v17, 1  ;;  %v24538_v63 = vrot.slane %v17656_v36, 1  ;;  %v12753_v55 = vpop.f32.mrb[64].mxu1  ;;  %v24542_v28 = vrot.slane %v17702_v41, 1 }
 0x1e4   :  { %24533 = vst [vmem:[#allocation169_spill] sm:$0xff] %v18040_v60  ;;  %v18050_v29 = vsel %vm894_vm2, %v24535_v20, %v24534_v44  ;;  %v13803_v20 = vadd.f32 %v12883_v11, %v12753_v55  ;;  %v12887_v60 = vpop.f32.mrb[68].mxu0 }
 0x1e5   :  { %24536 = vst [vmem:[#allocation170_spill] sm:$0xff] %v18050_v29  ;;  %v18058_v52 = vsel %vm894_vm2, %v24538_v63, %v24537_v25  ;;  %v24540_v31 = vmov %v24538_v63  ;;  %v24543_v25 = vrot.slane %v17734_v30, 1  ;;  %v2521_v29 = vpop.f32.mrb[65].mxu1 }
 0x1e6   :  { %24539 = vst [vmem:[#allocation171_spill] sm:$0xff] %v18058_v52  ;;  %v18066_v26 = vsel %vm894_vm2, %v24531_v1, %v24540_v31  ;;  %v24546_v31 = vrot.slane %v17709_v17, 1  ;;  %v24549_v52 = vrot.slane %v17728_v54, 1  ;;  %v24552_v17 = vrot.slane %v17702_v41, 1  ;;  %v12754_v55 = vpop.f32.mrb[66].mxu1 }
 0x1e7   :  { %24541 = vst [vmem:[#allocation172_spill] sm:$0xff] %v18066_v26  ;;  %v18078_v63 = vsel %vm894_vm2, %v24543_v25, %v24542_v28  ;;  %v24545_v2 = vmov %v24543_v25  ;;  %v24548_v26 = vrot.slane %v17786_v32, 1  ;;  %v24558_v41 = vrot.slane %v17786_v32, 1 }
 0x1e8   :  { %24544 = vst [vmem:[#allocation173_spill] sm:$0xff] %v18078_v63  ;;  %v18086_v1 = vsel %vm894_vm2, %v24546_v31, %v24545_v2  ;;  %v24551_v25 = vmov %v24549_v52  ;;  %v13804_v2 = vadd.f32 %v3333_v37, %v2521_v29  ;;  %v3349_v31 = vpop.f32.mrb[69].mxu0  ;;  %v24555_v63 = vrot.slane %v17814_v49, 1 }
 0x1e9   :  { %24547 = vst [vmem:[#allocation174_spill] sm:$0xff] %v18086_v1  ;;  %v18096_v28 = vsel %vm894_vm2, %v24549_v52, %v24548_v26  ;;  %v18104_v11 = vsel %vm894_vm2, %v24552_v17, %v24551_v25  ;;  %v24554_v1 = vrot.slane %v17779_v51, 1  ;;  %v3789_v37 = vadd.f32 %v17767_v5, %v13803_v20  ;;  %v2524_v25 = vpop.f32.mrb[67].mxu1  ;;  %v12888_v44 = vpop.f32.mrb[70].mxu0 }
 0x1ea   :  { %24550 = vst [vmem:[#allocation175_spill] sm:$0xff] %v18096_v28  ;;  %24553 = vst [vmem:[#allocation176_spill] sm:$0xff] %v18104_v11  ;;  %v24557_v26 = vmov %v24555_v63  ;;  %v13805_v29 = vadd.f32 %v12884_v53, %v12754_v55  ;;  %v24560_v28 = vrot.slane %v17855_v35, 1  ;;  %v3787_v32 = vadd.f32 %v17767_v5, %v13804_v2 }
 0x1eb   :  { %v18114_v52 = vsel %vm894_vm2, %v24555_v63, %v24554_v1  ;;  %v18122_v17 = vsel %vm894_vm2, %v24558_v41, %v24557_v26  ;;  %v24561_v63 = vrot.slane %v17802_v56, 1  ;;  %v13806_v41 = vadd.f32 %v3336_v48, %v2524_v25  ;;  %v3352_v26 = vpop.f32.mrb[71].mxu0 }
 0x1ec   :  { %24556 = vst [vmem:[#allocation177_spill] sm:$0xff] %v18114_v52  ;;  %24559 = vst [vmem:[#allocation178_spill] sm:$0xff] %v18122_v17  ;;  %v24564_v53 = vrot.slane %v17779_v51, 1  ;;  %v24566_v11 = vrot.slane %v17848_v40, 1  ;;  %v24567_v17 = vrot.slane %v17882_v42, 1  ;;  %v3790_v48 = vadd.f32 %v17767_v5, %v13805_v29 }
 0x1ed   :  { %v18133_v1 = vsel %vm894_vm2, %v24561_v63, %v24560_v28  ;;  %v24563_v20 = vmov %v24561_v63  ;;  %v18152_v63 = vmax.f32 %v3789_v37, 0.0  ;;  %v18166_v51 = vmax.f32 %v3787_v32, 0.0 }
 0x1ee   :  { %24562 = vst [vmem:[#allocation179_spill] sm:$0xff] %v18133_v1  ;;  %v18142_v55 = vsel %vm894_vm2, %v24564_v53, %v24563_v20  ;;  %v18150_v28 = vsel %vm894_vm2, %v24567_v17, %v24566_v11  ;;  %v24570_v25 = vmov %v24567_v17  ;;  %v24571_v20 = vrot.slane %v17855_v35, 1  ;;  %v12757_v17 = vpop.f32.mrb[68].mxu1 }
 0x1ef   :  { %24565 = vst [vmem:[#allocation180_spill] sm:$0xff] %v18142_v55  ;;  %24568 = vst [vmem:[#allocation181_spill] sm:$0xff] %v18150_v28  ;;  %v3788_v11 = vadd.f32 %v17767_v5, %v13806_v41  ;;  %v4424_v37 = vrot.slane %v17950_v8, 1  ;;  %v4045_v29 = vrot.slane %v18152_v63, 7  ;;  %v18173_v2 = vmax.f32 %v3790_v48, 0.0  ;;  %v14520_v48 = vld [vmem:[%s23290_s3 + $0x10] sm:$0xff]  }
 0x1f0   :  { %24569 = vst [vmem:[#allocation182_spill] sm:$0xff] %v18152_v63  ;;  %v18163_v53 = vsel %vm894_vm2, %v24571_v20, %v24570_v25  ;;  %24573 = vst [vmem:[#allocation184_spill] sm:$0xff] %v18166_v51  ;;  %v24575_v55 = vrot.slane %v17923_v12, 1  ;;  %v24576_v25 = vrot.slane %v17870_v7, 1  ;;  %v4043_v41 = vrot.slane %v18166_v51, 7  ;;  %v12891_v8 = vpop.f32.mrb[72].mxu0  ;;  %13077 = vmatprep.subr.bf16.mxu1 %v14520_v48 }
 0x1f1   :  { %24572 = vst [vmem:[#allocation183_spill] sm:$0xff] %v18163_v53  ;;  %24574 = vst [vmem:[#allocation185_spill] sm:$0xff] %v18173_v2  ;;  %v18185_v52 = vmax.f32 %v3788_v11, 0.0  ;;  %v24580_v28 = vrot.slane %v17848_v40, 1  ;;  %v13807_v32 = vadd.f32 %v12887_v60, %v12757_v17  ;;  %v2537_v11 = vpop.f32.mrb[69].mxu1  ;;  %v3365_v49 = vpop.f32.mrb[73].mxu0 }
 0x1f2   :  { %v18181_v20 = vsel %vm894_vm2, %v24576_v25, %v24575_v55  ;;  %v24579_v53 = vmov %v24576_v25  ;;  %v4046_v25 = vrot.slane %v18173_v2, 7  ;;  %v13808_v56 = vadd.f32 %v3349_v31, %v2537_v11  ;;  %v12758_v40 = vpop.f32.mrb[70].mxu1  ;;  %v12892_v54 = vpop.f32.mrb[74].mxu0 }
 0x1f3   :  { %24577 = vst [vmem:[#allocation186_spill] sm:$0xff] %v18181_v20  ;;  %24578 = vst [vmem:[#allocation187_spill] sm:$0xff] %v18185_v52  ;;  %v18196_v1 = vsel %vm894_vm2, %v24580_v28, %v24579_v53  ;;  %v4044_v7 = vrot.slane %v18185_v52, 7  ;;  %v24582_v28 = vrot.slane %v17944_v57, 7  ;;  %v3793_v60 = vadd.f32 %v17767_v5, %v13807_v32  ;;  %v2540_v55 = vpop.f32.mrb[71].mxu1  ;;  %v3368_v11 = vpop.f32.mrb[75].mxu0 }
 0x1f4   :  { %24581 = vst [vmem:[#allocation188_spill] sm:$0xff] %v18196_v1  ;;  %v13809_v17 = vadd.f32 %v12888_v44, %v12758_v40  ;;  %v18214_v42 = vsel %vm509_vm4, %v4045_v29, %v4046_v25  ;;  %v3791_v31 = vadd.f32 %v17767_v5, %v13808_v56  ;;  %v13810_v48 = vadd.f32 %v3352_v26, %v2540_v55  ;;  %v12895_v36 = vpop.f32.mrb[76].mxu0 }
 0x1f5   :  { %v4170_v53 = vsel %vm509_vm4, %v24582_v28, %v4043_v41  ;;  %24584 = vst [vmem:[#allocation190_spill] sm:$0xff] %v18214_v42  ;;  %v18219_v30 = vsel %vm509_vm4, %v4043_v41, %v4044_v7  ;;  %v18223_v40 = vsel %vm509_vm4, %v4044_v7, %v4045_v29  ;;  %v18225_v44 = vmax.f32 %v3793_v60, 0.0  ;;  %v12761_v28 = vpop.f32.mrb[72].mxu1  ;;  %v3381_v59 = vpop.f32.mrb[77].mxu0 }
 0x1f6   :  { %v18210_v35 = vmul.f32 %v24377_v34, %v4170_v53  ;;  %24585 = vst [vmem:[#allocation191_spill] sm:$0xff] %v18219_v30  ;;  %24586 = vst [vmem:[#allocation192_spill] sm:$0xff] %v18223_v40  ;;  %v3794_v32 = vadd.f32 %v17767_v5, %v13809_v17  ;;  %v18232_v26 = vmax.f32 %v3791_v31, 0.0  ;;  %v3792_v55 = vadd.f32 %v17767_v5, %v13810_v48 }
 0x1f7   :  { %24587 = vst [vmem:[#allocation193_spill] sm:$0xff] %v18225_v44  ;;  %v4049_v53 = vrot.slane %v18225_v44, 7  ;;  %v24590_v17 = vrot.slane %v17916_v46, 1  ;;  %v24593_v7 = vrot.slane %v17923_v12, 1  ;;  %v13811_v20 = vadd.f32 %v12891_v8, %v12761_v28  ;;  %v12896_v28 = vpop.f32.mrb[78].mxu0 }
 0x1f8   :  { %24583 = vst [vmem:[#allocation189_spill] sm:$0xff] %v18210_v35  ;;  %24588 = vst [vmem:[#allocation194_spill] sm:$0xff] %v18232_v26  ;;  %v18241_v60 = vmax.f32 %v3794_v32, 0.0  ;;  %v4047_v56 = vrot.slane %v18232_v26, 7  ;;  %v18251_v41 = vmax.f32 %v3792_v55, 0.0  ;;  %v3384_v55 = vpop.f32.mrb[79].mxu0 }
 0x1f9   :  { %v18247_v31 = vsel %vm894_vm2, %v4424_v37, %v24590_v17  ;;  %v18257_v29 = vsel %vm894_vm2, %v24593_v7, %v4424_v37  ;;  %v2553_v17 = vpop.f32.mrb[73].mxu1  ;;  %v3797_v7 = vadd.f32 %v17767_v5, %v13811_v20 }
 0x1fa   :  { %24589 = vst [vmem:[#allocation195_spill] sm:$0xff] %v18241_v60  ;;  %24591 = vst [vmem:[#allocation196_spill] sm:$0xff] %v18247_v31  ;;  %v4050_v1 = vrot.slane %v18241_v60, 7  ;;  %v4048_v62 = vrot.slane %v18251_v41, 7  ;;  %v13812_v16 = vadd.f32 %v3365_v49, %v2553_v17  ;;  %v12762_v12 = vpop.f32.mrb[74].mxu1  ;;  %v18267_v37 = vsel %vm509_vm4, %v4046_v25, %v4047_v56 }
 0x1fb   :  { %24592 = vst [vmem:[#allocation197_spill] sm:$0xff] %v18251_v41  ;;  %24594 = vst [vmem:[#allocation198_spill] sm:$0xff] %v18257_v29  ;;  %v13813_v32 = vadd.f32 %v12892_v54, %v12762_v12  ;;  %v2556_v8 = vpop.f32.mrb[75].mxu1  ;;  %v18285_v12 = vmax.f32 %v3797_v7, 0.0 }
 0x1fc   :  { %24595 = vst [vmem:[#allocation199_spill] sm:$0xff] %v18267_v37  ;;  %v18272_v0 = vsel %vm509_vm4, %v4049_v53, %v4050_v1  ;;  %v3795_v49 = vadd.f32 %v17767_v5, %v13812_v16  ;;  %v13814_v17 = vadd.f32 %v3368_v11, %v2556_v8  ;;  %v18279_v25 = vsel %vm509_vm4, %v4047_v56, %v4048_v62  ;;  %v12765_v7 = vpop.f32.mrb[76].mxu1 }
 0x1fd   :  { %24596 = vst [vmem:[#allocation200_spill] sm:$0xff] %v18272_v0  ;;  %24597 = vst [vmem:[#allocation201_spill] sm:$0xff] %v18279_v25  ;;  %v18283_v54 = vsel %vm509_vm4, %v4048_v62, %v4049_v53  ;;  %v3798_v20 = vadd.f32 %v17767_v5, %v13813_v32  ;;  %v24601_v62 = vrot.slane %v18166_v51, 1  ;;  %v24602_v53 = vrot.slane %v17944_v57, 1  ;;  %v12899_v57 = vpop.f32.mrb[80].mxu0 }
 0x1fe   :  { %24598 = vst [vmem:[#allocation202_spill] sm:$0xff] %v18283_v54  ;;  %24599 = vst [vmem:[#allocation203_spill] sm:$0xff] %v18285_v12  ;;  %v18292_v11 = vmax.f32 %v3795_v49, 0.0  ;;  %v3796_v8 = vadd.f32 %v17767_v5, %v13814_v17  ;;  %v4053_v48 = vrot.slane %v18285_v12, 7  ;;  %v24605_v17 = vrot.slane %v17916_v46, 1  ;;  %v2569_v54 = vpop.f32.mrb[77].mxu1 }
 0x1ff   :  { %v4554_v32 = vsel %vm894_vm2, %v24602_v53, %v24601_v62  ;;  %v18305_v27 = vmax.f32 %v3798_v20, 0.0  ;;  %v24604_v49 = vmov %v24602_v53  ;;  %v13815_v31 = vadd.f32 %v12895_v36, %v12765_v7  ;;  %v12766_v62 = vpop.f32.mrb[78].mxu1 }
 0x200   :  { %24600 = vst [vmem:[#allocation204_spill] sm:$0xff] %v18292_v11  ;;  %v18313_v56 = vsel %vm894_vm2, %v24605_v17, %v24604_v49  ;;  %v4051_v29 = vrot.slane %v18292_v11, 7  ;;  %v18318_v53 = vmax.f32 %v3796_v8, 0.0  ;;  %v18324_v49 = vmul.f32 %v24462_v9, %v4554_v32  ;;  %v3397_v8 = vpop.f32.mrb[81].mxu0  ;;  %v2572_v25 = vpop.f32.mrb[79].mxu1 }
 0x201   :  { %24603 = vst [vmem:[#allocation205_spill] sm:$0xff] %v18305_v27  ;;  %24606 = vst [vmem:[#allocation206_spill] sm:$0xff] %v18313_v56  ;;  %v4054_v20 = vrot.slane %v18305_v27, 7  ;;  %v13816_v0 = vadd.f32 %v3381_v59, %v2569_v54  ;;  %v3801_v36 = vadd.f32 %v17767_v5, %v13815_v31  ;;  %v13817_v7 = vadd.f32 %v12896_v28, %v12766_v62  ;;  %v12900_v40 = vpop.f32.mrb[82].mxu0 }
 0x202   :  { %24607 = vst [vmem:[#allocation207_spill] sm:$0xff] %v18318_v53  ;;  %24608 = vst [vmem:[#allocation208_spill] sm:$0xff] %v18324_v49  ;;  %v4052_v16 = vrot.slane %v18318_v53, 7  ;;  %v18330_v37 = vsel %vm509_vm4, %v4050_v1, %v4051_v29  ;;  %v13818_v54 = vadd.f32 %v3384_v55, %v2572_v25  ;;  %v3400_v17 = vpop.f32.mrb[83].mxu0 }
 0x203   :  { %24609 = vst [vmem:[#allocation209_spill] sm:$0xff] %v18330_v37  ;;  %v18335_v32 = vsel %vm509_vm4, %v4053_v48, %v4054_v20  ;;  %v3799_v59 = vadd.f32 %v17767_v5, %v13816_v0  ;;  %v18348_v28 = vmax.f32 %v3801_v36, 0.0  ;;  %v3802_v62 = vadd.f32 %v17767_v5, %v13817_v7 }
 0x204   :  { %24610 = vst [vmem:[#allocation210_spill] sm:$0xff] %v18335_v32  ;;  %v18342_v1 = vsel %vm509_vm4, %v4051_v29, %v4052_v16  ;;  %v18346_v31 = vsel %vm509_vm4, %v4052_v16, %v4053_v48  ;;  %v3800_v25 = vadd.f32 %v17767_v5, %v13818_v54  ;;  %v24615_v48 = vrot.slane %v18152_v63, 1 }
 0x205   :  { %24611 = vst [vmem:[#allocation211_spill] sm:$0xff] %v18342_v1  ;;  %24612 = vst [vmem:[#allocation212_spill] sm:$0xff] %v18346_v31  ;;  %v18355_v55 = vmax.f32 %v3799_v59, 0.0  ;;  %v24616_v16 = vrot.slane %v18185_v52, 1  ;;  %v4057_v46 = vrot.slane %v18348_v28, 7  ;;  %v18370_v0 = vmax.f32 %v3802_v62, 0.0 }
 0x206   :  { %24613 = vst [vmem:[#allocation213_spill] sm:$0xff] %v18348_v28  ;;  %v24620_v54 = vrot.slane %v18166_v51, 1  ;;  %v12903_v31 = vpop.f32.mrb[84].mxu0 }
 0x207   :  { %24614 = vst [vmem:[#allocation214_spill] sm:$0xff] %v18355_v55  ;;  %v18366_v36 = vsel %vm894_vm2, %v24616_v16, %v24615_v48  ;;  %24618 = vst [vmem:[#allocation216_spill] sm:$0xff] %v18370_v0  ;;  %v24619_v59 = vmov %v24616_v16  ;;  %v4055_v56 = vrot.slane %v18355_v55, 7  ;;  %v18382_v48 = vmax.f32 %v3800_v25, 0.0  ;;  %v12769_v16 = vpop.f32.mrb[80].mxu1  ;;  %v3413_v37 = vpop.f32.mrb[85].mxu0 }
 0x208   :  { %24617 = vst [vmem:[#allocation215_spill] sm:$0xff] %v18366_v36  ;;  %v18378_v29 = vsel %vm894_vm2, %v24620_v54, %v24619_v59  ;;  %v4058_v49 = vrot.slane %v18370_v0, 7  ;;  %v13819_v52 = vadd.f32 %v12899_v57, %v12769_v16  ;;  %v2585_v51 = vpop.f32.mrb[81].mxu1  ;;  %v12904_v16 = vpop.f32.mrb[86].mxu0  ;;  %v24630_v59 = vrot.slane %v18173_v2, 1 }
 0x209   :  { %24621 = vst [vmem:[#allocation217_spill] sm:$0xff] %v18378_v29  ;;  %24622 = vst [vmem:[#allocation218_spill] sm:$0xff] %v18382_v48  ;;  %v4056_v42 = vrot.slane %v18382_v48, 7  ;;  %v13820_v25 = vadd.f32 %v3397_v8, %v2585_v51  ;;  %v12770_v32 = vpop.f32.mrb[82].mxu1  ;;  %v18394_v7 = vsel %vm509_vm4, %v4054_v20, %v4055_v56  ;;  %v3416_v54 = vpop.f32.mrb[87].mxu0 }
 0x20a   :  { %24623 = vst [vmem:[#allocation219_spill] sm:$0xff] %v18394_v7  ;;  %v3805_v62 = vadd.f32 %v17767_v5, %v13819_v52  ;;  %v13821_v29 = vadd.f32 %v12900_v40, %v12770_v32  ;;  %v2588_v57 = vpop.f32.mrb[83].mxu1  ;;  %v18399_v36 = vsel %vm509_vm4, %v4057_v46, %v4058_v49 }
 0x20b   :  { %24624 = vst [vmem:[#allocation220_spill] sm:$0xff] %v18399_v36  ;;  %v3803_v51 = vadd.f32 %v17767_v5, %v13820_v25  ;;  %v13822_v8 = vadd.f32 %v3400_v17, %v2588_v57  ;;  %v18406_v20 = vsel %vm509_vm4, %v4055_v56, %v4056_v42  ;;  %v18410_v52 = vsel %vm509_vm4, %v4056_v42, %v4057_v46 }
 0x20c   :  { %24625 = vst [vmem:[#allocation221_spill] sm:$0xff] %v18406_v20  ;;  %24626 = vst [vmem:[#allocation222_spill] sm:$0xff] %v18410_v52  ;;  %v18412_v40 = vmax.f32 %v3805_v62, 0.0  ;;  %v3806_v32 = vadd.f32 %v17767_v5, %v13821_v29  ;;  %v24629_v56 = vrot.slane %v18232_v26, 1  ;;  %v24632_v46 = vmov %v24630_v59 }
 0x20d   :  { %v18419_v17 = vmax.f32 %v3803_v51, 0.0  ;;  %v3804_v57 = vadd.f32 %v17767_v5, %v13822_v8  ;;  %v24633_v29 = vrot.slane %v18152_v63, 1  ;;  %v12773_v63 = vpop.f32.mrb[84].mxu1  ;;  %v24637_v52 = vrot.slane %v18225_v44, 1 }
 0x20e   :  { %24627 = vst [vmem:[#allocation223_spill] sm:$0xff] %v18412_v40  ;;  %v18428_v42 = vsel %vm894_vm2, %v24630_v59, %v24629_v56  ;;  %v4061_v8 = vrot.slane %v18412_v40, 7  ;;  %v18440_v25 = vmax.f32 %v3806_v32, 0.0  ;;  %v13823_v1 = vadd.f32 %v12903_v31, %v12773_v63  ;;  %v12907_v59 = vpop.f32.mrb[88].mxu0 }
 0x20f   :  { %24628 = vst [vmem:[#allocation224_spill] sm:$0xff] %v18419_v17  ;;  %24631 = vst [vmem:[#allocation225_spill] sm:$0xff] %v18428_v42  ;;  %v18436_v62 = vsel %vm894_vm2, %v24633_v29, %v24632_v46  ;;  %v4059_v56 = vrot.slane %v18419_v17, 7  ;;  %v18446_v2 = vmax.f32 %v3804_v57, 0.0  ;;  %v24638_v46 = vrot.slane %v18251_v41, 1  ;;  %v3429_v35 = vpop.f32.mrb[89].mxu0 }
 0x210   :  { %24634 = vst [vmem:[#allocation226_spill] sm:$0xff] %v18436_v62  ;;  %24635 = vst [vmem:[#allocation227_spill] sm:$0xff] %v18440_v25  ;;  %v4062_v51 = vrot.slane %v18440_v25, 7  ;;  %v2601_v62 = vpop.f32.mrb[85].mxu1  ;;  %v12908_v31 = vpop.f32.mrb[90].mxu0  ;;  %v24647_v57 = vrot.slane %v18232_v26, 1 }
 0x211   :  { %24636 = vst [vmem:[#allocation228_spill] sm:$0xff] %v18446_v2  ;;  %v18454_v29 = vsel %vm894_vm2, %v24638_v46, %v24637_v52  ;;  %v4060_v36 = vrot.slane %v18446_v2, 7  ;;  %v13824_v7 = vadd.f32 %v3413_v37, %v2601_v62  ;;  %v12774_v20 = vpop.f32.mrb[86].mxu1  ;;  %v18464_v52 = vsel %vm509_vm4, %v4058_v49, %v4059_v56  ;;  %v3432_v42 = vpop.f32.mrb[91].mxu0 }
 0x212   :  { %24639 = vst [vmem:[#allocation229_spill] sm:$0xff] %v18454_v29  ;;  %24640 = vst [vmem:[#allocation230_spill] sm:$0xff] %v18464_v52  ;;  %v3809_v46 = vadd.f32 %v17767_v5, %v13823_v1  ;;  %v13825_v32 = vadd.f32 %v12904_v16, %v12774_v20  ;;  %v2604_v63 = vpop.f32.mrb[87].mxu1  ;;  %v18469_v30 = vsel %vm509_vm4, %v4061_v8, %v4062_v51 }
 0x213   :  { %24641 = vst [vmem:[#allocation231_spill] sm:$0xff] %v18469_v30  ;;  %v3807_v37 = vadd.f32 %v17767_v5, %v13824_v7  ;;  %v13826_v62 = vadd.f32 %v3416_v54, %v2604_v63  ;;  %v18476_v49 = vsel %vm509_vm4, %v4059_v56, %v4060_v36  ;;  %v18480_v1 = vsel %vm509_vm4, %v4060_v36, %v4061_v8 }
 0x214   :  { %24642 = vst [vmem:[#allocation232_spill] sm:$0xff] %v18476_v49  ;;  %24643 = vst [vmem:[#allocation233_spill] sm:$0xff] %v18480_v1  ;;  %v18482_v16 = vmax.f32 %v3809_v46, 0.0  ;;  %v3810_v20 = vadd.f32 %v17767_v5, %v13825_v32  ;;  %v24646_v56 = vrot.slane %v18251_v41, 1  ;;  %v24649_v8 = vrot.slane %v18292_v11, 1  ;;  %v12777_v41 = vpop.f32.mrb[88].mxu1 }
 0x215   :  { %v18489_v54 = vmax.f32 %v3807_v37, 0.0  ;;  %v3808_v63 = vadd.f32 %v17767_v5, %v13826_v62  ;;  %v24650_v32 = vrot.slane %v18241_v60, 1  ;;  %v13827_v18 = vadd.f32 %v12907_v59, %v12777_v41 }
 0x216   :  { %24644 = vst [vmem:[#allocation234_spill] sm:$0xff] %v18482_v16  ;;  %v18498_v36 = vsel %vm894_vm2, %v24647_v57, %v24646_v56  ;;  %v4065_v62 = vrot.slane %v18482_v16, 7  ;;  %v18510_v7 = vmax.f32 %v3810_v20, 0.0  ;;  %v12911_v57 = vpop.f32.mrb[92].mxu0 }
 0x217   :  { %24645 = vst [vmem:[#allocation235_spill] sm:$0xff] %v18489_v54  ;;  %24648 = vst [vmem:[#allocation236_spill] sm:$0xff] %v18498_v36  ;;  %v18506_v46 = vsel %vm894_vm2, %v24650_v32, %v24649_v8  ;;  %v4063_v56 = vrot.slane %v18489_v54, 7  ;;  %v18516_v26 = vmax.f32 %v3808_v63, 0.0  ;;  %v24654_v1 = vmov %v24650_v32  ;;  %v2617_v36 = vpop.f32.mrb[89].mxu1  ;;  %v3445_v52 = vpop.f32.mrb[93].mxu0 }
 0x218   :  { %24651 = vst [vmem:[#allocation237_spill] sm:$0xff] %v18506_v46  ;;  %24652 = vst [vmem:[#allocation238_spill] sm:$0xff] %v18510_v7  ;;  %v24655_v8 = vrot.slane %v18225_v44, 1  ;;  %v4066_v37 = vrot.slane %v18510_v7, 7  ;;  %v13828_v30 = vadd.f32 %v3429_v35, %v2617_v36  ;;  %v12778_v44 = vpop.f32.mrb[90].mxu1  ;;  %v12912_v59 = vpop.f32.mrb[94].mxu0 }
 0x219   :  { %24653 = vst [vmem:[#allocation239_spill] sm:$0xff] %v18516_v26  ;;  %v4064_v60 = vrot.slane %v18516_v26, 7  ;;  %v13829_v20 = vadd.f32 %v12908_v31, %v12778_v44  ;;  %v2620_v41 = vpop.f32.mrb[91].mxu1  ;;  %v3448_v29 = vpop.f32.mrb[95].mxu0 }
 0x21a   :  { %v18524_v32 = vsel %vm894_vm2, %v24655_v8, %v24654_v1  ;;  %v18534_v1 = vsel %vm509_vm4, %v4062_v51, %v4063_v56  ;;  %v3813_v8 = vadd.f32 %v17767_v5, %v13827_v18  ;;  %v18539_v49 = vsel %vm509_vm4, %v4065_v62, %v4066_v37 }
 0x21b   :  { %24656 = vst [vmem:[#allocation240_spill] sm:$0xff] %v18524_v32  ;;  %24657 = vst [vmem:[#allocation241_spill] sm:$0xff] %v18534_v1  ;;  %v3811_v35 = vadd.f32 %v17767_v5, %v13828_v30  ;;  %v13830_v36 = vadd.f32 %v3432_v42, %v2620_v41  ;;  %v18546_v51 = vsel %vm509_vm4, %v4063_v56, %v4064_v60 }
 0x21c   :  { %24658 = vst [vmem:[#allocation242_spill] sm:$0xff] %v18539_v49  ;;  %24659 = vst [vmem:[#allocation243_spill] sm:$0xff] %v18546_v51  ;;  %v18550_v18 = vsel %vm509_vm4, %v4064_v60, %v4065_v62  ;;  %v18552_v44 = vmax.f32 %v3813_v8, 0.0  ;;  %v3814_v31 = vadd.f32 %v17767_v5, %v13829_v20  ;;  %v24663_v60 = vrot.slane %v18285_v12, 1 }
 0x21d   :  { %24660 = vst [vmem:[#allocation244_spill] sm:$0xff] %v18550_v18  ;;  %v18559_v42 = vmax.f32 %v3811_v35, 0.0  ;;  %v3812_v41 = vadd.f32 %v17767_v5, %v13830_v36  ;;  %v24664_v62 = vrot.slane %v18318_v53, 1  ;;  %v24668_v36 = vrot.slane %v18292_v11, 1  ;;  %v12915_v18 = vpop.f32.mrb[96].mxu0 }
 0x21e   :  { %24661 = vst [vmem:[#allocation245_spill] sm:$0xff] %v18552_v44  ;;  %v4069_v63 = vrot.slane %v18552_v44, 7  ;;  %v18574_v30 = vmax.f32 %v3814_v31, 0.0  ;;  %v3461_v1 = vpop.f32.mrb[97].mxu0 }
 0x21f   :  { %24662 = vst [vmem:[#allocation246_spill] sm:$0xff] %v18559_v42  ;;  %v18570_v20 = vsel %vm894_vm2, %v24664_v62, %v24663_v60  ;;  %v24667_v35 = vmov %v24664_v62  ;;  %v4067_v32 = vrot.slane %v18559_v42, 7  ;;  %v18586_v60 = vmax.f32 %v3812_v41, 0.0  ;;  %v12781_v62 = vpop.f32.mrb[92].mxu1 }
 0x220   :  { %24665 = vst [vmem:[#allocation247_spill] sm:$0xff] %v18570_v20  ;;  %24666 = vst [vmem:[#allocation248_spill] sm:$0xff] %v18574_v30  ;;  %v18582_v56 = vsel %vm894_vm2, %v24668_v36, %v24667_v35  ;;  %v4070_v46 = vrot.slane %v18574_v30, 7  ;;  %v13831_v53 = vadd.f32 %v12911_v57, %v12781_v62  ;;  %v2633_v11 = vpop.f32.mrb[93].mxu1  ;;  %v12916_v62 = vpop.f32.mrb[98].mxu0  ;;  %v24678_v35 = vrot.slane %v18305_v27, 1 }
 0x221   :  { %24669 = vst [vmem:[#allocation249_spill] sm:$0xff] %v18582_v56  ;;  %24670 = vst [vmem:[#allocation250_spill] sm:$0xff] %v18586_v60  ;;  %v4068_v14 = vrot.slane %v18586_v60, 7  ;;  %v13832_v41 = vadd.f32 %v3445_v52, %v2633_v11  ;;  %v12782_v49 = vpop.f32.mrb[94].mxu1  ;;  %v18598_v8 = vsel %vm509_vm4, %v4066_v37, %v4067_v32  ;;  %v3464_v36 = vpop.f32.mrb[99].mxu0 }
 0x222   :  { %24671 = vst [vmem:[#allocation251_spill] sm:$0xff] %v18598_v8  ;;  %v3817_v31 = vadd.f32 %v17767_v5, %v13831_v53  ;;  %v13833_v56 = vadd.f32 %v12912_v59, %v12782_v49  ;;  %v2636_v57 = vpop.f32.mrb[95].mxu1  ;;  %v18603_v20 = vsel %vm509_vm4, %v4069_v63, %v4070_v46 }
 0x223   :  { %24672 = vst [vmem:[#allocation252_spill] sm:$0xff] %v18603_v20  ;;  %v3815_v11 = vadd.f32 %v17767_v5, %v13832_v41  ;;  %v13834_v52 = vadd.f32 %v3448_v29, %v2636_v57  ;;  %v18610_v37 = vsel %vm509_vm4, %v4067_v32, %v4068_v14  ;;  %v18614_v53 = vsel %vm509_vm4, %v4068_v14, %v4069_v63 }
 0x224   :  { %24673 = vst [vmem:[#allocation253_spill] sm:$0xff] %v18610_v37  ;;  %24674 = vst [vmem:[#allocation254_spill] sm:$0xff] %v18614_v53  ;;  %v18616_v49 = vmax.f32 %v3817_v31, 0.0  ;;  %v3818_v59 = vadd.f32 %v17767_v5, %v13833_v56  ;;  %v24677_v32 = vrot.slane %v18355_v55, 1  ;;  %v24680_v63 = vmov %v24678_v35 }
 0x225   :  { %v18623_v29 = vmax.f32 %v3815_v11, 0.0  ;;  %v3816_v57 = vadd.f32 %v17767_v5, %v13834_v52  ;;  %v24681_v56 = vrot.slane %v18285_v12, 1  ;;  %v12785_v12 = vpop.f32.mrb[96].mxu1  ;;  %v24684_v53 = vrot.slane %v18348_v28, 1 }
 0x226   :  { %24675 = vst [vmem:[#allocation255_spill] sm:$0xff] %v18616_v49  ;;  %v18632_v14 = vsel %vm894_vm2, %v24678_v35, %v24677_v32  ;;  %v4073_v52 = vrot.slane %v18616_v49, 7  ;;  %v18644_v41 = vmax.f32 %v3818_v59, 0.0  ;;  %v13835_v51 = vadd.f32 %v12915_v18, %v12785_v12  ;;  %v12919_v35 = vpop.f32.mrb[100].mxu0 }
 0x227   :  { %24676 = vst [vmem:[#allocation256_spill] sm:$0xff] %v18623_v29  ;;  %24679 = vst [vmem:[#allocation257_spill] sm:$0xff] %v18632_v14  ;;  %v18640_v31 = vsel %vm894_vm2, %v24681_v56, %v24680_v63  ;;  %v4071_v32 = vrot.slane %v18623_v29, 7  ;;  %v18650_v27 = vmax.f32 %v3816_v57, 0.0  ;;  %v24685_v63 = vrot.slane %v18382_v48, 1  ;;  %v3477_v38 = vpop.f32.mrb[101].mxu0 }
 0x228   :  { %24682 = vst [vmem:[#allocation258_spill] sm:$0xff] %v18640_v31  ;;  %v4074_v11 = vrot.slane %v18644_v41, 7  ;;  %v2649_v31 = vpop.f32.mrb[97].mxu1  ;;  %v12920_v18 = vpop.f32.mrb[102].mxu0  ;;  %v24692_v57 = vrot.slane %v18355_v55, 1 }
 0x229   :  { %24683 = vst [vmem:[#allocation259_spill] sm:$0xff] %v18650_v27  ;;  %v18658_v56 = vsel %vm894_vm2, %v24685_v63, %v24684_v53  ;;  %v4072_v20 = vrot.slane %v18650_v27, 7  ;;  %v13836_v8 = vadd.f32 %v3461_v1, %v2649_v31  ;;  %v12786_v37 = vpop.f32.mrb[98].mxu1  ;;  %v18668_v53 = vsel %vm509_vm4, %v4070_v46, %v4071_v32  ;;  %v3480_v14 = vpop.f32.mrb[103].mxu0 }
 0x22a   :  { %24686 = vst [vmem:[#allocation260_spill] sm:$0xff] %v18658_v56  ;;  %24687 = vst [vmem:[#allocation261_spill] sm:$0xff] %v18668_v53  ;;  %v3821_v63 = vadd.f32 %v17767_v5, %v13835_v51  ;;  %v13837_v59 = vadd.f32 %v12916_v62, %v12786_v37  ;;  %v2652_v12 = vpop.f32.mrb[99].mxu1  ;;  %v18673_v19 = vsel %vm509_vm4, %v4073_v52, %v4074_v11 }
 0x22b   :  { %24688 = vst [vmem:[#allocation262_spill] sm:$0xff] %v18673_v19  ;;  %v3819_v1 = vadd.f32 %v17767_v5, %v13836_v8  ;;  %v13838_v31 = vadd.f32 %v3464_v36, %v2652_v12  ;;  %v18680_v46 = vsel %vm509_vm4, %v4071_v32, %v4072_v20  ;;  %v18684_v51 = vsel %vm509_vm4, %v4072_v20, %v4073_v52 }
 0x22c   :  { %24689 = vst [vmem:[#allocation263_spill] sm:$0xff] %v18680_v46  ;;  %24690 = vst [vmem:[#allocation264_spill] sm:$0xff] %v18684_v51  ;;  %v18686_v62 = vmax.f32 %v3821_v63, 0.0  ;;  %v3822_v37 = vadd.f32 %v17767_v5, %v13837_v59  ;;  %v24691_v32 = vrot.slane %v18382_v48, 1  ;;  %v24694_v52 = vrot.slane %v18419_v17, 1  ;;  %v12789_v48 = vpop.f32.mrb[100].mxu1 }
 0x22d   :  { %v18693_v36 = vmax.f32 %v3819_v1, 0.0  ;;  %v3820_v12 = vadd.f32 %v17767_v5, %v13838_v31  ;;  %v24695_v59 = vrot.slane %v18370_v0, 1  ;;  %v13839_v39 = vadd.f32 %v12919_v35, %v12789_v48 }
 0x22e   :  { %v18702_v20 = vsel %vm894_vm2, %v24692_v57, %v24691_v32  ;;  %v4077_v31 = vrot.slane %v18686_v62, 7  ;;  %v18714_v8 = vmax.f32 %v3822_v37, 0.0  ;;  %v12923_v57 = vpop.f32.mrb[104].mxu0 }
 0x22f   :  { %24693 = vst [vmem:[#allocation265_spill] sm:$0xff] %v18702_v20  ;;  %v18710_v63 = vsel %vm894_vm2, %v24695_v59, %v24694_v52  ;;  %v4075_v32 = vrot.slane %v18693_v36, 7  ;;  %v18720_v55 = vmax.f32 %v3820_v12, 0.0  ;;  %v24697_v51 = vmov %v24695_v59  ;;  %v2665_v20 = vpop.f32.mrb[101].mxu1  ;;  %v3493_v53 = vpop.f32.mrb[105].mxu0 }
 0x230   :  { %24696 = vst [vmem:[#allocation266_spill] sm:$0xff] %v18710_v63  ;;  %v24698_v52 = vrot.slane %v18348_v28, 1  ;;  %v4078_v1 = vrot.slane %v18714_v8, 7  ;;  %v13840_v19 = vadd.f32 %v3477_v38, %v2665_v20  ;;  %v12790_v28 = vpop.f32.mrb[102].mxu1  ;;  %v12924_v48 = vpop.f32.mrb[106].mxu0 }
 0x231   :  { %v4076_v0 = vrot.slane %v18720_v55, 7  ;;  %v13841_v37 = vadd.f32 %v12920_v18, %v12790_v28  ;;  %v2668_v46 = vpop.f32.mrb[103].mxu1  ;;  %v3496_v20 = vpop.f32.mrb[107].mxu0 }
 0x232   :  { %v18728_v59 = vsel %vm894_vm2, %v24698_v52, %v24697_v51  ;;  %v4138_v51 = vsel %vm509_vm4, %v4074_v11, %v4075_v32  ;;  %v3825_v52 = vadd.f32 %v17767_v5, %v13839_v39  ;;  %v18744_v12 = vsel %vm509_vm4, %v4077_v31, %v4078_v1 }
 0x233   :  { %24699 = vst [vmem:[#allocation267_spill] sm:$0xff] %v18728_v59  ;;  %v18740_v35 = vmul.f32 %v24377_v34, %v4138_v51  ;;  %24701 = vst [vmem:[#allocation269_spill] sm:$0xff] %v18744_v12  ;;  %v3823_v56 = vadd.f32 %v17767_v5, %v13840_v19  ;;  %v13842_v38 = vadd.f32 %v3480_v14, %v2668_v46  ;;  %v18767_v46 = vld [vmem:[%s23289_s2] ss:$0 sm:$0xff] }
 0x234   :  { %v18749_v45 = vsel %vm509_vm4, %v4075_v32, %v4076_v0  ;;  %v18753_v39 = vsel %vm509_vm4, %v4076_v0, %v4077_v31  ;;  %v18755_v28 = vmax.f32 %v3825_v52, 0.0  ;;  %v3826_v11 = vadd.f32 %v17767_v5, %v13841_v37  ;;  %v12793_v5 = vpop.f32.mrb[104].mxu1 }
 0x235   :  { %24700 = vst [vmem:[#allocation268_spill] sm:$0xff] %v18740_v35  ;;  %24702 = vst [vmem:[#allocation270_spill] sm:$0xff] %v18749_v45  ;;  %v18762_v14 = vmax.f32 %v3823_v56, 0.0  ;;  %v3824_v0 = vadd.f32 %v18767_v46, %v13842_v38  ;;  %v24705_v56 = vrot.slane %v18412_v40, 1  ;;  %v24706_v52 = vrot.slane %v18446_v2, 1  ;;  %v12927_v38 = vpop.f32.mrb[108].mxu0 }
 0x236   :  { %24703 = vst [vmem:[#allocation271_spill] sm:$0xff] %v18753_v39  ;;  %24704 = vst [vmem:[#allocation272_spill] sm:$0xff] %v18755_v28  ;;  %v4081_v37 = vrot.slane %v18755_v28, 7  ;;  %v18776_v51 = vmax.f32 %v3826_v11, 0.0  ;;  %v24709_v11 = vrot.slane %v18419_v17, 1  ;;  %v2681_v39 = vpop.f32.mrb[105].mxu1 }
 0x237   :  { %v18784_v19 = vsel %vm894_vm2, %v24706_v52, %v24705_v56  ;;  %v4079_v31 = vrot.slane %v18762_v14, 7  ;;  %v18788_v18 = vmax.f32 %v3824_v0, 0.0  ;;  %v24708_v32 = vmov %v24706_v52  ;;  %v12794_v17 = vpop.f32.mrb[106].mxu1  ;;  %v3509_v45 = vpop.f32.mrb[109].mxu0 }
 0x238   :  { %24707 = vst [vmem:[#allocation273_spill] sm:$0xff] %v18784_v19  ;;  %v18796_v59 = vsel %vm894_vm2, %v24709_v11, %v24708_v32  ;;  %v4082_v56 = vrot.slane %v18776_v51, 7  ;;  %v13843_v52 = vadd.f32 %v12923_v57, %v12793_v5  ;;  %v13844_v35 = vadd.f32 %v3493_v53, %v2681_v39  ;;  %v2684_v57 = vpop.f32.mrb[107].mxu1  ;;  %v12928_v5 = vpop.f32.mrb[110].mxu0 }
 0x239   :  { %24710 = vst [vmem:[#allocation274_spill] sm:$0xff] %v18796_v59  ;;  %v4080_v2 = vrot.slane %v18788_v18, 7  ;;  %v18806_v32 = vsel %vm509_vm4, %v4078_v1, %v4079_v31  ;;  %v13845_v63 = vadd.f32 %v12924_v48, %v12794_v17  ;;  %v13846_v39 = vadd.f32 %v3496_v20, %v2684_v57  ;;  %v3512_v12 = vpop.f32.mrb[111].mxu0 }
 0x23a   :  { %24711 = vst [vmem:[#allocation275_spill] sm:$0xff] %v18806_v32  ;;  %v3829_v11 = vadd.f32 %v18767_v46, %v13843_v52  ;;  %v18811_v47 = vsel %vm509_vm4, %v4081_v37, %v4082_v56  ;;  %v3827_v53 = vadd.f32 %v18767_v46, %v13844_v35 }
 0x23b   :  { %24712 = vst [vmem:[#allocation276_spill] sm:$0xff] %v18811_v47  ;;  %v18818_v1 = vsel %vm509_vm4, %v4079_v31, %v4080_v2  ;;  %v18822_v17 = vsel %vm509_vm4, %v4080_v2, %v4081_v37  ;;  %v3830_v52 = vadd.f32 %v18767_v46, %v13845_v63  ;;  %v3828_v57 = vadd.f32 %v18767_v46, %v13846_v39 }
 0x23c   :  { %24713 = vst [vmem:[#allocation277_spill] sm:$0xff] %v18818_v1  ;;  %24714 = vst [vmem:[#allocation278_spill] sm:$0xff] %v18822_v17  ;;  %v18824_v48 = vmax.f32 %v3829_v11, 0.0  ;;  %v18831_v20 = vmax.f32 %v3827_v53, 0.0  ;;  %v24715_v2 = vrot.slane %v18489_v54, 1  ;;  %v24716_v37 = vrot.slane %v18440_v25, 1 }
 0x23d   :  { %v18846_v35 = vmax.f32 %v3830_v52, 0.0  ;;  %v24719_v39 = vrot.slane %v18412_v40, 1  ;;  %v12931_v17 = vpop.f32.mrb[112].mxu0 }
 0x23e   :  { %v18842_v63 = vsel %vm894_vm2, %v24716_v37, %v24715_v2  ;;  %v4085_v0 = vrot.slane %v18824_v48, 7  ;;  %v24718_v53 = vmov %v24716_v37  ;;  %v4083_v59 = vrot.slane %v18831_v20, 7  ;;  %v12797_v37 = vpop.f32.mrb[108].mxu1  ;;  %v3525_v32 = vpop.f32.mrb[113].mxu0 }
 0x23f   :  { %24717 = vst [vmem:[#allocation279_spill] sm:$0xff] %v18842_v63  ;;  %v18854_v31 = vsel %vm894_vm2, %v24719_v39, %v24718_v53  ;;  %v18858_v2 = vmax.f32 %v3828_v57, 0.0  ;;  %v4086_v19 = vrot.slane %v18846_v35, 7  ;;  %v13847_v25 = vadd.f32 %v12927_v38, %v12797_v37  ;;  %v2697_v40 = vpop.f32.mrb[109].mxu1  ;;  %v12932_v37 = vpop.f32.mrb[114].mxu0 }
 0x240   :  { %24720 = vst [vmem:[#allocation280_spill] sm:$0xff] %v18854_v31  ;;  %v13848_v57 = vadd.f32 %v3509_v45, %v2697_v40  ;;  %v12798_v47 = vpop.f32.mrb[110].mxu1  ;;  %v18870_v11 = vsel %vm509_vm4, %v4082_v56, %v4083_v59  ;;  %v3528_v39 = vpop.f32.mrb[115].mxu0  ;;  %v24726_v53 = vrot.slane %v18516_v26, 1 }
 0x241   :  { %v4084_v61 = vrot.slane %v18858_v2, 7  ;;  %24721 = vst [vmem:[#allocation281_spill] sm:$0xff] %v18870_v11  ;;  %v3833_v52 = vadd.f32 %v18767_v46, %v13847_v25  ;;  %v13849_v31 = vadd.f32 %v12928_v5, %v12798_v47  ;;  %v2700_v38 = vpop.f32.mrb[111].mxu1  ;;  %v18875_v63 = vsel %vm509_vm4, %v4085_v0, %v4086_v19 }
 0x242   :  { %24722 = vst [vmem:[#allocation282_spill] sm:$0xff] %v18875_v63  ;;  %v3831_v45 = vadd.f32 %v18767_v46, %v13848_v57  ;;  %v13850_v40 = vadd.f32 %v3512_v12, %v2700_v38 }
 0x243   :  { %v18882_v56 = vsel %vm509_vm4, %v4083_v59, %v4084_v61  ;;  %v18886_v47 = vsel %vm509_vm4, %v4084_v61, %v4085_v0  ;;  %v18888_v25 = vmax.f32 %v3833_v52, 0.0  ;;  %v3834_v5 = vadd.f32 %v18767_v46, %v13849_v31 }
 0x244   :  { %24723 = vst [vmem:[#allocation283_spill] sm:$0xff] %v18882_v56  ;;  %24724 = vst [vmem:[#allocation284_spill] sm:$0xff] %v18886_v47  ;;  %v18895_v12 = vmax.f32 %v3831_v45, 0.0  ;;  %v3832_v38 = vadd.f32 %v18767_v46, %v13850_v40  ;;  %v24725_v59 = vrot.slane %v18482_v16, 1  ;;  %v24728_v0 = vmov %v24726_v53 }
 0x245   :  { %v24729_v31 = vrot.slane %v18489_v54, 1  ;;  %v4089_v40 = vrot.slane %v18888_v25, 7  ;;  %v18916_v57 = vmax.f32 %v3834_v5, 0.0  ;;  %v12801_v54 = vpop.f32.mrb[112].mxu1  ;;  %v24731_v47 = vrot.slane %v18559_v42, 1 }
 0x246   :  { %v18904_v61 = vsel %vm894_vm2, %v24726_v53, %v24725_v59  ;;  %v4087_v59 = vrot.slane %v18895_v12, 7  ;;  %v18922_v26 = vmax.f32 %v3832_v38, 0.0  ;;  %v13851_v1 = vadd.f32 %v12931_v17, %v12801_v54  ;;  %v12935_v53 = vpop.f32.mrb[116].mxu0 }
 0x247   :  { %24727 = vst [vmem:[#allocation285_spill] sm:$0xff] %v18904_v61  ;;  %v18912_v52 = vsel %vm894_vm2, %v24729_v31, %v24728_v0  ;;  %v24732_v0 = vrot.slane %v18510_v7, 1  ;;  %v4090_v45 = vrot.slane %v18916_v57, 7  ;;  %v3541_v4 = vpop.f32.mrb[117].mxu0  ;;  %v24739_v38 = vrot.slane %v18482_v16, 1 }
 0x248   :  { %24730 = vst [vmem:[#allocation286_spill] sm:$0xff] %v18912_v52  ;;  %v2713_v52 = vpop.f32.mrb[113].mxu1  ;;  %v4088_v63 = vrot.slane %v18922_v26, 7  ;;  %v12936_v17 = vpop.f32.mrb[118].mxu0 }
 0x249   :  { %v18930_v31 = vsel %vm894_vm2, %v24732_v0, %v24731_v47  ;;  %v13852_v11 = vadd.f32 %v3525_v32, %v2713_v52  ;;  %v12802_v56 = vpop.f32.mrb[114].mxu1  ;;  %v18940_v47 = vsel %vm509_vm4, %v4086_v19, %v4087_v59  ;;  %v3837_v0 = vadd.f32 %v18767_v46, %v13851_v1  ;;  %v3544_v61 = vpop.f32.mrb[119].mxu0 }
 0x24a   :  { %24733 = vst [vmem:[#allocation287_spill] sm:$0xff] %v18930_v31  ;;  %24734 = vst [vmem:[#allocation288_spill] sm:$0xff] %v18940_v47  ;;  %v13853_v5 = vadd.f32 %v12932_v37, %v12802_v56  ;;  %v2716_v54 = vpop.f32.mrb[115].mxu1  ;;  %v18945_v58 = vsel %vm509_vm4, %v4089_v40, %v4090_v45  ;;  %v18952_v19 = vsel %vm509_vm4, %v4087_v59, %v4088_v63  ;;  %v24738_v59 = vrot.slane %v18510_v7, 1 }
 0x24b   :  { %24735 = vst [vmem:[#allocation289_spill] sm:$0xff] %v18945_v58  ;;  %v3835_v32 = vadd.f32 %v18767_v46, %v13852_v11  ;;  %v13854_v52 = vadd.f32 %v3528_v39, %v2716_v54  ;;  %24736 = vst [vmem:[#allocation290_spill] sm:$0xff] %v18952_v19  ;;  %v18956_v1 = vsel %vm509_vm4, %v4088_v63, %v4089_v40  ;;  %v18958_v37 = vmax.f32 %v3837_v0, 0.0  ;;  %v12805_v7 = vpop.f32.mrb[116].mxu1 }
 0x24c   :  { %24737 = vst [vmem:[#allocation291_spill] sm:$0xff] %v18956_v1  ;;  %v3838_v56 = vadd.f32 %v18767_v46, %v13853_v5  ;;  %v18974_v63 = vsel %vm894_vm2, %v24739_v38, %v24738_v59  ;;  %v24741_v40 = vrot.slane %v18552_v44, 1  ;;  %v24742_v5 = vrot.slane %v18586_v60, 1  ;;  %v12939_v38 = vpop.f32.mrb[120].mxu0 }
 0x24d   :  { %v18965_v39 = vmax.f32 %v3835_v32, 0.0  ;;  %v3836_v54 = vadd.f32 %v18767_v46, %v13854_v52  ;;  %24740 = vst [vmem:[#allocation292_spill] sm:$0xff] %v18974_v63  ;;  %v4093_v52 = vrot.slane %v18958_v37, 7  ;;  %v13855_v3 = vadd.f32 %v12935_v53, %v12805_v7  ;;  %v2729_v63 = vpop.f32.mrb[117].mxu1  ;;  %v3557_v47 = vpop.f32.mrb[121].mxu0 }
 0x24e   :  { %v18982_v0 = vsel %vm894_vm2, %v24742_v5, %v24741_v40  ;;  %v18986_v11 = vmax.f32 %v3838_v56, 0.0  ;;  %v24744_v1 = vmov %v24742_v5  ;;  %v24745_v40 = vrot.slane %v18559_v42, 1  ;;  %v12806_v42 = vpop.f32.mrb[118].mxu1  ;;  %v12940_v53 = vpop.f32.mrb[122].mxu0 }
 0x24f   :  { %24743 = vst [vmem:[#allocation293_spill] sm:$0xff] %v18982_v0  ;;  %v4091_v59 = vrot.slane %v18965_v39, 7  ;;  %v18992_v16 = vmax.f32 %v3836_v54, 0.0  ;;  %v13856_v58 = vadd.f32 %v3541_v4, %v2729_v63  ;;  %v13857_v56 = vadd.f32 %v12936_v17, %v12806_v42  ;;  %v2732_v7 = vpop.f32.mrb[119].mxu1  ;;  %v3560_v31 = vpop.f32.mrb[123].mxu0 }
 0x250   :  { %v19000_v5 = vsel %vm894_vm2, %v24745_v40, %v24744_v1  ;;  %v4094_v32 = vrot.slane %v18986_v11, 7  ;;  %v3841_v40 = vadd.f32 %v18767_v46, %v13855_v3  ;;  %v13858_v63 = vadd.f32 %v3544_v61, %v2732_v7 }
 0x251   :  { %24746 = vst [vmem:[#allocation294_spill] sm:$0xff] %v19000_v5  ;;  %v4092_v60 = vrot.slane %v18992_v16, 7  ;;  %v19010_v1 = vsel %vm509_vm4, %v4090_v45, %v4091_v59  ;;  %v3839_v4 = vadd.f32 %v18767_v46, %v13856_v58  ;;  %v3842_v17 = vadd.f32 %v18767_v46, %v13857_v56 }
 0x252   :  { %24747 = vst [vmem:[#allocation295_spill] sm:$0xff] %v19010_v1  ;;  %v19015_v19 = vsel %vm509_vm4, %v4093_v52, %v4094_v32  ;;  %v19028_v42 = vmax.f32 %v3841_v40, 0.0  ;;  %v3840_v7 = vadd.f32 %v18767_v46, %v13858_v63  ;;  %v24755_v63 = vrot.slane %v18552_v44, 1 }
 0x253   :  { %24748 = vst [vmem:[#allocation296_spill] sm:$0xff] %v19015_v19  ;;  %v19022_v45 = vsel %vm509_vm4, %v4091_v59, %v4092_v60  ;;  %v19026_v3 = vsel %vm509_vm4, %v4092_v60, %v4093_v52  ;;  %v19035_v61 = vmax.f32 %v3839_v4, 0.0  ;;  %v24751_v60 = vrot.slane %v18623_v29, 1 }
 0x254   :  { %24749 = vst [vmem:[#allocation297_spill] sm:$0xff] %v19022_v45  ;;  %24750 = vst [vmem:[#allocation298_spill] sm:$0xff] %v19026_v3  ;;  %v24752_v52 = vrot.slane %v18574_v30, 1  ;;  %v4097_v54 = vrot.slane %v19028_v42, 7  ;;  %v19050_v58 = vmax.f32 %v3842_v17, 0.0 }
 0x255   :  { %v4095_v5 = vrot.slane %v19035_v61, 7  ;;  %v12943_v3 = vpop.f32.mrb[124].mxu0 }
 0x256   :  { %v19046_v56 = vsel %vm894_vm2, %v24752_v52, %v24751_v60  ;;  %v24754_v4 = vmov %v24752_v52  ;;  %v19062_v60 = vmax.f32 %v3840_v7, 0.0  ;;  %v12809_v52 = vpop.f32.mrb[120].mxu1  ;;  %v4098_v0 = vrot.slane %v19050_v58, 7  ;;  %v3573_v1 = vpop.f32.mrb[125].mxu0 }
 0x257   :  { %24753 = vst [vmem:[#allocation299_spill] sm:$0xff] %v19046_v56  ;;  %v19058_v59 = vsel %vm894_vm2, %v24755_v63, %v24754_v4  ;;  %v13859_v30 = vadd.f32 %v12939_v38, %v12809_v52  ;;  %v2745_v44 = vpop.f32.mrb[121].mxu1  ;;  %v19074_v40 = vsel %vm509_vm4, %v4094_v32, %v4095_v5  ;;  %v12944_v52 = vpop.f32.mrb[126].mxu0  ;;  %v24762_v4 = vrot.slane %v18650_v27, 1 }
 0x258   :  { %24756 = vst [vmem:[#allocation300_spill] sm:$0xff] %v19058_v59  ;;  %v4096_v6 = vrot.slane %v19062_v60, 7  ;;  %v13860_v7 = vadd.f32 %v3557_v47, %v2745_v44  ;;  %v12810_v19 = vpop.f32.mrb[122].mxu1  ;;  %24757 = vst [vmem:[#allocation301_spill] sm:$0xff] %v19074_v40  ;;  %v19079_v56 = vsel %vm509_vm4, %v4097_v54, %v4098_v0  ;;  %v3576_v63 = vpop.f32.mrb[127].mxu0 }
 0x259   :  { %v3845_v17 = vadd.f32 %v18767_v46, %v13859_v30  ;;  %v13861_v59 = vadd.f32 %v12940_v53, %v12810_v19  ;;  %v2748_v38 = vpop.f32.mrb[123].mxu1  ;;  %24758 = vst [vmem:[#allocation302_spill] sm:$0xff] %v19079_v56 }
 0x25a   :  { %v3843_v44 = vadd.f32 %v18767_v46, %v13860_v7  ;;  %v13862_v47 = vadd.f32 %v3560_v31, %v2748_v38  ;;  %v19086_v32 = vsel %vm509_vm4, %v4095_v5, %v4096_v6  ;;  %v19090_v30 = vsel %vm509_vm4, %v4096_v6, %v4097_v54 }
 0x25b   :  { %24759 = vst [vmem:[#allocation303_spill] sm:$0xff] %v19086_v32  ;;  %24760 = vst [vmem:[#allocation304_spill] sm:$0xff] %v19090_v30  ;;  %v19092_v19 = vmax.f32 %v3845_v17, 0.0  ;;  %v3846_v53 = vadd.f32 %v18767_v46, %v13861_v59  ;;  %v24761_v5 = vrot.slane %v18616_v49, 1  ;;  %v24764_v54 = vmov %v24762_v4 }
 0x25c   :  { %v19099_v31 = vmax.f32 %v3843_v44, 0.0  ;;  %v3844_v38 = vadd.f32 %v18767_v46, %v13862_v47  ;;  %v24765_v59 = vrot.slane %v18623_v29, 1  ;;  %v12813_v29 = vpop.f32.mrb[124].mxu1  ;;  %v24767_v30 = vrot.slane %v18693_v36, 1 }
 0x25d   :  { %v19108_v6 = vsel %vm894_vm2, %v24762_v4, %v24761_v5  ;;  %v4101_v47 = vrot.slane %v19092_v19, 7  ;;  %v19120_v7 = vmax.f32 %v3846_v53, 0.0  ;;  %v13863_v56 = vadd.f32 %v12943_v3, %v12813_v29  ;;  %v2761_v45 = vpop.f32.mrb[125].mxu1 }
 0x25e   :  { %24763 = vst [vmem:[#allocation305_spill] sm:$0xff] %v19108_v6  ;;  %v19116_v17 = vsel %vm894_vm2, %v24765_v59, %v24764_v54  ;;  %v4099_v5 = vrot.slane %v19099_v31, 7  ;;  %v19126_v27 = vmax.f32 %v3844_v38, 0.0  ;;  %v24768_v54 = vrot.slane %v18644_v41, 1  ;;  %v12814_v40 = vpop.f32.mrb[126].mxu1 }
 0x25f   :  { %24766 = vst [vmem:[#allocation306_spill] sm:$0xff] %v19116_v17  ;;  %v4102_v44 = vrot.slane %v19120_v7, 7  ;;  %v13864_v6 = vadd.f32 %v3573_v1, %v2761_v45  ;;  %v2764_v53 = vpop.f32.mrb[127].mxu1 }
 0x260   :  { %v4522_v59 = vsel %vm894_vm2, %v24768_v54, %v24767_v30  ;;  %v4100_v17 = vrot.slane %v19126_v27, 7  ;;  %v19142_v32 = vsel %vm509_vm4, %v4098_v0, %v4099_v5  ;;  %v3849_v30 = vadd.f32 %v18767_v46, %v13863_v56 }
 0x261   :  { %v13865_v54 = vadd.f32 %v12944_v52, %v12814_v40  ;;  %v19147_v29 = vsel %vm509_vm4, %v4101_v47, %v4102_v44  ;;  %v3847_v4 = vadd.f32 %v18767_v46, %v13864_v6  ;;  %v13866_v38 = vadd.f32 %v3576_v63, %v2764_v53 }
 0x262   :  { %v19154_v1 = vsel %vm509_vm4, %v4099_v5, %v4100_v17  ;;  %v19158_v0 = vsel %vm509_vm4, %v4100_v17, %v4101_v47  ;;  %v19160_v45 = vmax.f32 %v3849_v30, 0.0  ;;  %v24769_v5 = vrot.slane %v18644_v41, 1 }
 0x263   :  { %v3850_v56 = vadd.f32 %v18767_v46, %v13865_v54  ;;  %v19167_v63 = vmax.f32 %v3847_v4, 0.0  ;;  %v3848_v6 = vadd.f32 %v18767_v46, %v13866_v38  ;;  %v24770_v17 = vrot.slane %v18616_v49, 1 }
 0x264   :  { %v19179_v53 = vmul.f32 %v24462_v9, %v4522_v59  ;;  %v4105_v54 = vrot.slane %v19160_v45, 7  ;;  %v24773_v4 = vrot.slane %v18686_v62, 1  ;;  %v24774_v46 = vrot.slane %v18720_v55, 1 }
 0x265   :  { %v19176_v47 = vsel %vm894_vm2, %v24770_v17, %v24769_v5  ;;  %v19183_v3 = vmax.f32 %v3850_v56, 0.0  ;;  %v4103_v17 = vrot.slane %v19167_v63, 7  ;;  %v19195_v59 = vmax.f32 %v3848_v6, 0.0 }
 0x266   :  { %24771 = vst [vmem:[#allocation307_spill] sm:$0xff] %v19176_v47  ;;  %24772 = vst [vmem:[#allocation308_spill] sm:$0xff] %v19179_v53  ;;  %v19191_v38 = vsel %vm894_vm2, %v24774_v46, %v24773_v4  ;;  %v24776_v49 = vmov %v24774_v46  ;;  %v24777_v4 = vrot.slane %v18693_v36, 1  ;;  %v24779_v30 = vrot.slane %v16816_v50, 7 }
 0x267   :  { %24775 = vst [vmem:[#allocation309_spill] sm:$0xff] %v19191_v38  ;;  %v4106_v40 = vrot.slane %v19183_v3, 7  ;;  %v4104_v5 = vrot.slane %v19195_v59, 7  ;;  %v19215_v52 = vsel %vm509_vm4, %v4102_v44, %v4103_v17  ;;  %v24780_v6 = vrot.slane %v18762_v14, 1 }
 0x268   :  { %v19209_v46 = vsel %vm894_vm2, %v24777_v4, %v24776_v49  ;;  %v24781_v44 = vrot.slane %v18714_v8, 1 }
 0x269   :  { %24778 = vst [vmem:[#allocation310_spill] sm:$0xff] %v19209_v46  ;;  %v4234_v47 = vsel %vm509_vm4, %v4106_v40, %v24779_v30  ;;  %v19225_v49 = vsel %vm509_vm4, %v4105_v54, %v4106_v40  ;;  %v19240_v30 = vsel %vm509_vm4, %v4103_v17, %v4104_v5  ;;  %v19244_v40 = vsel %vm509_vm4, %v4104_v5, %v4105_v54 }
 0x26a   :  { %v19235_v53 = vsel %vm894_vm2, %v24781_v44, %v24780_v6  ;;  %v4235_v56 = vmul.f32 %v24377_v34, %v4234_v47  ;;  %v24783_v4 = vmov %v24781_v44  ;;  %v24784_v46 = vrot.slane %v18686_v62, 1 }
 0x26b   :  { %24782 = vst [vmem:[#allocation311_spill] sm:$0xff] %v19235_v53  ;;  %v24786_v54 = vrot.slane %v18755_v28, 1  ;;  %v24787_v5 = vrot.slane %v18788_v18, 1  ;;  %v24789_v17 = vrot.slane %v18831_v20, 1  ;;  %v24790_v34 = vrot.slane %v18776_v51, 1 }
 0x26c   :  { %v19252_v38 = vsel %vm894_vm2, %v24784_v46, %v24783_v4  ;;  %v4816_v46 = vpack.c.bf16 %v16877_v23, %v4235_v56  ;;  %v24793_v23 = vrot.slane %v18755_v28, 1 }
 0x26d   :  { %24785 = vst [vmem:[#allocation312_spill] sm:$0xff] %v19252_v38  ;;  %v19266_v44 = vsel %vm894_vm2, %v24787_v5, %v24786_v54  ;;  %v24788_v4 = vmov %v24787_v5  ;;  %v19283_v38 = vsel %vm894_vm2, %v24790_v34, %v24789_v17  ;;  %v24792_v54 = vmov %v24790_v34 }
 0x26e   :  { %v19275_v47 = vsel %vm894_vm2, %v24780_v6, %v24788_v4  ;;  %24791 = vst [vmem:[#allocation313_spill] sm:$0xff] %v19283_v38  ;;  %v19291_v56 = vsel %vm894_vm2, %v24793_v23, %v24792_v54  ;;  %v14521_v6 = vld [vmem:[%s23290_s3 + $0x18] sm:$0xff]   ;;  %v24795_v34 = vrot.slane %v18824_v48, 1  ;;  %v24796_v17 = vrot.slane %v18858_v2, 1  ;;  %12949 = vmatprep.mubr.msk.bf16.mxu1 %vm4896_vm6, %v4816_v46 }
 0x26f   :  { %24794 = vst [vmem:[#allocation314_spill] sm:$0xff] %v19291_v56  ;;  %v24799_v23 = vrot.slane %v18831_v20, 1  ;;  %v24801_v5 = vrot.slane %v18895_v12, 1  ;;  %v24802_v56 = vrot.slane %v18846_v35, 1  ;;  %v24805_v38 = vrot.slane %v18824_v48, 1 }
 0x270   :  { %v19306_v53 = vsel %vm894_vm2, %v24796_v17, %v24795_v34  ;;  %v24798_v54 = vmov %v24796_v17  ;;  %v24807_v46 = vrot.slane %v18888_v25, 1 }
 0x271   :  { %24797 = vst [vmem:[#allocation315_spill] sm:$0xff] %v19306_v53  ;;  %v19314_v28 = vsel %vm894_vm2, %v24799_v23, %v24798_v54  ;;  %v19325_v34 = vsel %vm894_vm2, %v24802_v56, %v24801_v5  ;;  %v24804_v17 = vmov %v24802_v56  ;;  %v24808_v23 = vrot.slane %v18922_v26, 1 }
 0x272   :  { %24800 = vst [vmem:[#allocation316_spill] sm:$0xff] %v19314_v28  ;;  %24803 = vst [vmem:[#allocation317_spill] sm:$0xff] %v19325_v34  ;;  %v19333_v54 = vsel %vm894_vm2, %v24805_v38, %v24804_v17  ;;  %v24810_v56 = vpack.c.bf16 %v16855_v24, %v16865_v10  ;;  %v24812_v38 = vmov %v24801_v5  ;;  %v24814_v53 = vrot.slane %v18965_v39, 1 }
 0x273   :  { %24806 = vst [vmem:[#allocation318_spill] sm:$0xff] %v19333_v54  ;;  %v19341_v4 = vsel %vm894_vm2, %v24808_v23, %v24807_v46  ;;  %v24811_v28 = vmov %v24808_v23  ;;  %v24815_v46 = vrot.slane %v18916_v57, 1  ;;  %v24818_v23 = vrot.slane %v18888_v25, 1 }
 0x274   :  { %24809 = vst [vmem:[#allocation319_spill] sm:$0xff] %v19341_v4  ;;  %12950 = vmatmul.mubr.msk.bf16.vlgmr.msra.gmra.mrb[128].mxu1 %vm4896_vm6, %v24810_v56  ;;  %v19355_v17 = vsel %vm894_vm2, %v24812_v38, %v24811_v28  ;;  %v4488_v5 = vrot.slane %v19195_v59, 1  ;;  %v14533_v28 = vld [vmem:[%s23290_s3 + $0x10] sm:$0xff]   ;;  %v24820_v38 = vpack.c.bf16 %v16952_v43, %v16942_v21  ;;  %v24824_v43 = vmov %v24814_v53 }
 0x275   :  { %24813 = vst [vmem:[#allocation320_spill] sm:$0xff] %v19355_v17  ;;  %v19363_v24 = vsel %vm894_vm2, %v24815_v46, %v24814_v53  ;;  %v24817_v10 = vmov %v24815_v46  ;;  %13078 = vmatpush3.bf16.msra.mxu1 %v14533_v28  ;;  %v24826_v46 = vrot.slane %v18986_v11, 1  ;;  %v24838_v34 = vrot.slane %v19050_v58, 1 }
 0x276   :  { %24816 = vst [vmem:[#allocation321_spill] sm:$0xff] %v19363_v24  ;;  %v19371_v56 = vsel %vm894_vm2, %v24818_v23, %v24817_v10  ;;  %12953 = vmatprep.mubr.msk.bf16.mxu1 %vm4896_vm6, %v24820_v38  ;;  %v24821_v10 = vrot.slane %v18958_v37, 1  ;;  %v24822_v23 = vrot.slane %v18992_v16, 1  ;;  %13079 = vmatprep.subr.bf16.mxu1 %v14521_v6  ;;  %v24825_v38 = vrot.slane %v19035_v61, 1 }
 0x277   :  { %24819 = vst [vmem:[#allocation322_spill] sm:$0xff] %v19371_v56  ;;  %v24831_v24 = vrot.slane %v19028_v42, 1 }
 0x278   :  { %v19391_v54 = vsel %vm894_vm2, %v24822_v23, %v24821_v10  ;;  %v24823_v28 = vmov %v24822_v23  ;;  %v19407_v53 = vsel %vm894_vm2, %v24826_v46, %v24825_v38  ;;  %v24828_v10 = vmov %v24826_v46 }
 0x279   :  { %v19399_v21 = vsel %vm894_vm2, %v24824_v43, %v24823_v28  ;;  %24827 = vst [vmem:[#allocation323_spill] sm:$0xff] %v19407_v53  ;;  %v24829_v23 = vrot.slane %v18958_v37, 1  ;;  %v24832_v28 = vrot.slane %v19062_v60, 1  ;;  %v24835_v4 = vmov %v24825_v38  ;;  %13080 = vmatpush3.bf16.msra.mxu1 %v14521_v6 }
 0x27a   :  { %v24839_v38 = vmov %v24838_v34  ;;  %v24840_v46 = vrot.slane %v19028_v42, 1 }
 0x27b   :  { %v19415_v56 = vsel %vm894_vm2, %v24829_v23, %v24828_v10  ;;  %v19423_v43 = vsel %vm894_vm2, %v24832_v28, %v24831_v24  ;;  %v24834_v17 = vmov %v24832_v28  ;;  %v24837_v23 = vrot.slane %v19099_v31, 1 }
 0x27c   :  { %24830 = vst [vmem:[#allocation324_spill] sm:$0xff] %v19415_v56  ;;  %24833 = vst [vmem:[#allocation325_spill] sm:$0xff] %v19423_v43  ;;  %v19435_v10 = vsel %vm894_vm2, %v24835_v4, %v24834_v17  ;;  %v19453_v56 = vsel %vm894_vm2, %v24840_v46, %v24839_v38  ;;  %v24841_v4 = vrot.slane %v19092_v19, 1  ;;  %v24842_v17 = vrot.slane %v19126_v27, 1 }
 0x27d   :  { %24836 = vst [vmem:[#allocation326_spill] sm:$0xff] %v19435_v10  ;;  %v19443_v24 = vsel %vm894_vm2, %v24838_v34, %v24837_v23  ;;  %v24846_v10 = vrot.slane %v19167_v63, 1  ;;  %v24852_v38 = vrot.slane %v19160_v45, 1 }
 0x27e   :  { %v19461_v53 = vsel %vm894_vm2, %v24842_v17, %v24841_v4  ;;  %v24844_v34 = vmov %v24842_v17  ;;  %v24847_v4 = vrot.slane %v19120_v7, 1 }
 0x27f   :  { %24843 = vst [vmem:[#allocation327_spill] sm:$0xff] %v19461_v53  ;;  %v19469_v28 = vsel %vm894_vm2, %v24837_v23, %v24844_v34  ;;  %v24850_v34 = vrot.slane %v19092_v19, 1  ;;  %v19497_v46 = vsel %vm894_vm2, %v4488_v5, %v24852_v38  ;;  %v24875_v23 = vld [vmem:[#allocation45_spill] sm:$0xff] }
 0x280   :  { %24845 = vst [vmem:[#allocation328_spill] sm:$0xff] %v19469_v28  ;;  %v19481_v17 = vsel %vm894_vm2, %v24847_v4, %v24846_v10  ;;  %v24849_v43 = vmov %v24847_v4  ;;  %24853 = vst [vmem:[#allocation331_spill] sm:$0xff] %v19497_v46  ;;  %v19503_v4 = vsel %vm894_vm2, %v24846_v10, %v4488_v5  ;;  %v24855_v28 = vrot.slane %v19183_v3, 1  ;;  %v24864_v46 = vld [vmem:[#allocation69_spill] sm:$0xff] }
 0x281   :  { %24848 = vst [vmem:[#allocation329_spill] sm:$0xff] %v19481_v17  ;;  %v19489_v6 = vsel %vm894_vm2, %v24850_v34, %v24849_v43  ;;  %24854 = vst [vmem:[#allocation332_spill] sm:$0xff] %v19503_v4  ;;  %v24856_v43 = vmov %v24852_v38  ;;  %v24858_v38 = vrot.slane %v16816_v50, 1  ;;  %v24860_v5 = vpack.c.bf16 %v16956_v15, %v16973_v33  ;;  %v24863_v4 = vld [vmem:[#allocation68_spill] sm:$0xff] }
 0x282   :  { %24851 = vst [vmem:[#allocation330_spill] sm:$0xff] %v19489_v6  ;;  %v19511_v34 = vsel %vm894_vm2, %v24856_v43, %v24855_v28  ;;  %v24859_v6 = vmov %v24855_v28  ;;  %v24861_v28 = vld [vmem:[#allocation44_spill] sm:$0xff]  ;;  %v24865_v53 = vpack.c.bf16 %v24863_v4, %v24864_v46  ;;  %v24879_v4 = vld [vmem:[#allocation47_spill] sm:$0xff] }
 0x283   :  { %24857 = vst [vmem:[#allocation333_spill] sm:$0xff] %v19511_v34  ;;  %v4618_v17 = vsel %vm894_vm2, %v24859_v6, %v24858_v38  ;;  %12954 = vmatmul.mubr.msk.bf16.gmra.mrb[132].mxu1 %vm4896_vm6, %v24860_v5  ;;  %v24862_v43 = vpack.c.bf16 %v17036_v22, %v24861_v28  ;;  %v24866_v6 = vld [vmem:[#allocation78_spill] sm:$0xff]  ;;  %v24867_v15 = vld [vmem:[#allocation76_spill] sm:$0xff]  ;;  %v24870_v38 = vld [vmem:[#allocation79_spill] sm:$0xff] }
 0x284   :  { %v19526_v10 = vmul.f32 %v24462_v9, %v4618_v17  ;;  %v24868_v33 = vpack.c.bf16 %v24866_v6, %v24867_v15  ;;  %v24869_v17 = vld [vmem:[#allocation77_spill] sm:$0xff]  ;;  %v24872_v22 = vld [vmem:[#allocation46_spill] sm:$0xff]  ;;  %v24876_v9 = vld [vmem:[#allocation87_spill] sm:$0xff] }
 0x285   :  { %12957 = vmatprep.mubr.msk.bf16.mxu1 %vm4896_vm6, %v24862_v43  ;;  %v24871_v5 = vpack.c.bf16 %v24869_v17, %v24870_v38  ;;  %v24873_v28 = vld [vmem:[#allocation6_spill] sm:$0xff]  ;;  %v24877_v46 = vpack.c.bf16 %v24875_v23, %v24876_v9  ;;  %v24881_v15 = vld [vmem:[#allocation48_spill] sm:$0xff]  ;;  %v24884_v38 = vld [vmem:[#allocation53_spill] sm:$0xff] }
 0x286   :  { %v24874_v43 = vpack.c.bf16 %v24872_v22, %v24873_v28  ;;  %v24887_v28 = vld [vmem:[#allocation52_spill] sm:$0xff]  ;;  %v24890_v23 = vld [vmem:[#allocation55_spill] sm:$0xff] }
 0x287   :  { %v24960_v34 = vld [vmem:[#allocation212_spill] sm:$0xff] }
 0x28b   :  { %12958 = vmatmul.mubr.msk.bf16.gmra.mrb[136].mxu1 %vm4896_vm6, %v24865_v53  ;;  %v24878_v53 = vld [vmem:[#allocation49_spill] sm:$0xff] }
 0x28c   :  { %12961 = vmatprep.mubr.msk.bf16.mxu1 %vm4896_vm6, %v24868_v33  ;;  %v24880_v6 = vpack.c.bf16 %v24878_v53, %v24879_v4  ;;  %v24882_v33 = vld [vmem:[#allocation50_spill] sm:$0xff] }
 0x28d   :  { %v24883_v17 = vpack.c.bf16 %v24881_v15, %v24882_v33  ;;  %v24893_v4 = vld [vmem:[#allocation10_spill] sm:$0xff]  ;;  %v24896_v33 = vld [vmem:[#allocation13_spill] sm:$0xff] }
 0x293   :  { %12962 = vmatmul.mubr.msk.bf16.gmra.mrb[140].mxu1 %vm4896_vm6, %v24871_v5  ;;  %v24885_v5 = vld [vmem:[#allocation51_spill] sm:$0xff] }
 0x294   :  { %12965 = vmatprep.mubr.msk.bf16.mxu1 %vm4896_vm6, %v24874_v43  ;;  %v24886_v22 = vpack.c.bf16 %v24884_v38, %v24885_v5  ;;  %v24888_v43 = vld [vmem:[#allocation54_spill] sm:$0xff]  ;;  %v24899_v5 = vld [vmem:[#allocation12_spill] sm:$0xff] }
 0x295   :  { %v24889_v9 = vpack.c.bf16 %v24887_v28, %v24888_v43  ;;  %v24902_v43 = vld [vmem:[#allocation58_spill] sm:$0xff] }
 0x29b   :  { %12966 = vmatmul.mubr.msk.bf16.gmra.mrb[144].mxu1 %vm4896_vm6, %v24877_v46  ;;  %v24891_v46 = vld [vmem:[#allocation9_spill] sm:$0xff] }
 0x29c   :  { %12969 = vmatprep.mubr.msk.bf16.mxu1 %vm4896_vm6, %v24880_v6  ;;  %v24892_v53 = vpack.c.bf16 %v24890_v23, %v24891_v46  ;;  %v24894_v6 = vld [vmem:[#allocation56_spill] sm:$0xff]  ;;  %v24905_v46 = vld [vmem:[#allocation31_spill] sm:$0xff] }
 0x29d   :  { %v24895_v15 = vpack.c.bf16 %v24893_v4, %v24894_v6  ;;  %v24908_v6 = vld [vmem:[#allocation62_spill] sm:$0xff] }
 0x2a3   :  { %12970 = vmatmul.mubr.msk.bf16.gmra.mrb[148].mxu1 %vm4896_vm6, %v24883_v17  ;;  %v24897_v17 = vld [vmem:[#allocation11_spill] sm:$0xff] }
 0x2a4   :  { %12973 = vmatprep.mubr.msk.bf16.mxu1 %vm4896_vm6, %v24886_v22  ;;  %v24898_v38 = vpack.c.bf16 %v24896_v33, %v24897_v17  ;;  %v24900_v22 = vld [vmem:[#allocation57_spill] sm:$0xff] }
 0x2a5   :  { %v24901_v28 = vpack.c.bf16 %v24899_v5, %v24900_v22  ;;  %v24911_v17 = vld [vmem:[#allocation61_spill] sm:$0xff]  ;;  %v24914_v22 = vld [vmem:[#allocation64_spill] sm:$0xff] }
 0x2ab   :  { %12974 = vmatmul.mubr.msk.bf16.gmra.mrb[152].mxu1 %vm4896_vm6, %v24889_v9  ;;  %v24903_v9 = vld [vmem:[#allocation14_spill] sm:$0xff] }
 0x2ac   :  { %12977 = vmatprep.mubr.msk.bf16.mxu1 %vm4896_vm6, %v24892_v53  ;;  %v24904_v23 = vpack.c.bf16 %v24902_v43, %v24903_v9  ;;  %v24906_v53 = vld [vmem:[#allocation59_spill] sm:$0xff]  ;;  %v24917_v9 = vld [vmem:[#allocation16_spill] sm:$0xff] }
 0x2ad   :  { %v24907_v4 = vpack.c.bf16 %v24905_v46, %v24906_v53  ;;  %v24920_v53 = vld [vmem:[#allocation19_spill] sm:$0xff] }
 0x2b3   :  { %12978 = vmatmul.mubr.msk.bf16.gmra.mrb[156].mxu1 %vm4896_vm6, %v24895_v15  ;;  %v24909_v15 = vld [vmem:[#allocation60_spill] sm:$0xff] }
 0x2b4   :  { %12981 = vmatprep.mubr.msk.bf16.mxu1 %vm4896_vm6, %v24898_v38  ;;  %v24910_v33 = vpack.c.bf16 %v24908_v6, %v24909_v15  ;;  %v24912_v38 = vld [vmem:[#allocation63_spill] sm:$0xff]  ;;  %v24923_v15 = vld [vmem:[#allocation18_spill] sm:$0xff] }
 0x2b5   :  { %v24913_v5 = vpack.c.bf16 %v24911_v17, %v24912_v38  ;;  %v24926_v38 = vld [vmem:[#allocation23_spill] sm:$0xff] }
 0x2bb   :  { %12982 = vmatmul.mubr.msk.bf16.gmra.mrb[160].mxu1 %vm4896_vm6, %v24901_v28  ;;  %v24915_v28 = vld [vmem:[#allocation15_spill] sm:$0xff] }
 0x2bc   :  { %12985 = vmatprep.mubr.msk.bf16.mxu1 %vm4896_vm6, %v24904_v23  ;;  %v24916_v43 = vpack.c.bf16 %v24914_v22, %v24915_v28  ;;  %v24918_v23 = vld [vmem:[#allocation65_spill] sm:$0xff]  ;;  %v24929_v28 = vld [vmem:[#allocation22_spill] sm:$0xff] }
 0x2bd   :  { %v24919_v46 = vpack.c.bf16 %v24917_v9, %v24918_v23  ;;  %v24932_v23 = vld [vmem:[#allocation33_spill] sm:$0xff] }
 0x2c3   :  { %12986 = vmatmul.mubr.msk.bf16.gmra.mrb[164].mxu1 %vm4896_vm6, %v24907_v4  ;;  %v24921_v4 = vld [vmem:[#allocation17_spill] sm:$0xff] }
 0x2c4   :  { %12989 = vmatprep.mubr.msk.bf16.mxu1 %vm4896_vm6, %v24910_v33  ;;  %v24922_v6 = vpack.c.bf16 %v24920_v53, %v24921_v4  ;;  %v24924_v33 = vld [vmem:[#allocation20_spill] sm:$0xff] }
 0x2c5   :  { %v24925_v17 = vpack.c.bf16 %v24923_v15, %v24924_v33  ;;  %v24935_v4 = vld [vmem:[#allocation32_spill] sm:$0xff]  ;;  %v24938_v33 = vld [vmem:[#allocation165_spill] sm:$0xff] }
 0x2cb   :  { %12990 = vmatmul.mubr.msk.bf16.gmra.mrb[168].mxu1 %vm4896_vm6, %v24913_v5  ;;  %v24927_v5 = vld [vmem:[#allocation21_spill] sm:$0xff] }
 0x2cc   :  { %12993 = vmatprep.mubr.msk.bf16.mxu1 %vm4896_vm6, %v24916_v43  ;;  %v24928_v22 = vpack.c.bf16 %v24926_v38, %v24927_v5  ;;  %v24930_v43 = vld [vmem:[#allocation24_spill] sm:$0xff]  ;;  %v24941_v5 = vld [vmem:[#allocation162_spill] sm:$0xff] }
 0x2cd   :  { %v24931_v9 = vpack.c.bf16 %v24929_v28, %v24930_v43  ;;  %v24944_v43 = vld [vmem:[#allocation191_spill] sm:$0xff] }
 0x2d3   :  { %12994 = vmatmul.mubr.msk.bf16.gmra.mrb[172].mxu1 %vm4896_vm6, %v24919_v46  ;;  %v24933_v46 = vld [vmem:[#allocation25_spill] sm:$0xff] }
 0x2d4   :  { %12997 = vmatprep.mubr.msk.bf16.mxu1 %vm4896_vm6, %v24922_v6  ;;  %v24934_v53 = vpack.c.bf16 %v24932_v23, %v24933_v46  ;;  %v24936_v6 = vld [vmem:[#allocation30_spill] sm:$0xff]  ;;  %v14522_v46 = vld [vmem:[%s23290_s3 + $0x20] sm:$0xff]  }
 0x2d5   :  { %v24937_v15 = vpack.c.bf16 %v24935_v4, %v24936_v6  ;;  %13209 = vmatprep.subr.bf16.mxu1 %v14522_v46  ;;  %v24948_v4 = vld [vmem:[#allocation192_spill] sm:$0xff] }
 0x2db   :  { %12998 = vmatmul.mubr.msk.bf16.gmra.mrb[176].mxu1 %vm4896_vm6, %v24925_v17  ;;  %v24939_v17 = vld [vmem:[#allocation161_spill] sm:$0xff] }
 0x2dc   :  { %13001 = vmatprep.mubr.msk.bf16.mxu1 %vm4896_vm6, %v24928_v22  ;;  %v24940_v38 = vpack.c.bf16 %v24938_v33, %v24939_v17  ;;  %v24942_v22 = vld [vmem:[#allocation166_spill] sm:$0xff]  ;;  %v24951_v33 = vld [vmem:[#allocation199_spill] sm:$0xff] }
 0x2dd   :  { %v24943_v28 = vpack.c.bf16 %v24941_v5, %v24942_v22  ;;  %v24954_v5 = vld [vmem:[#allocation202_spill] sm:$0xff] }
 0x2e3   :  { %13002 = vmatmul.mubr.msk.bf16.gmra.mrb[180].mxu1 %vm4896_vm6, %v24931_v9  ;;  %v24945_v9 = vld [vmem:[#allocation189_spill] sm:$0xff] }
 0x2e4   :  { %13005 = vmatprep.mubr.msk.bf16.mxu1 %vm4896_vm6, %v24934_v53  ;;  %v24946_v23 = vpack.c.bf16 %v24944_v43, %v24945_v9  ;;  %v24947_v53 = vld [vmem:[#allocation190_spill] sm:$0xff]  ;;  %v24957_v43 = vld [vmem:[#allocation209_spill] sm:$0xff] }
 0x2e5   :  { %v24949_v6 = vpack.c.bf16 %v24947_v53, %v24948_v4  ;;  %v24962_v4 = vld [vmem:[#allocation221_spill] sm:$0xff] }
 0x2eb   :  { %13006 = vmatmul.mubr.msk.bf16.gmra.mrb[184].mxu1 %vm4896_vm6, %v24937_v15  ;;  %v24950_v15 = vld [vmem:[#allocation201_spill] sm:$0xff] }
 0x2ec   :  { %13009 = vmatprep.mubr.msk.bf16.mxu1 %vm4896_vm6, %v24940_v38  ;;  %v24952_v17 = vpack.c.bf16 %v24950_v15, %v24951_v33  ;;  %v24953_v38 = vld [vmem:[#allocation200_spill] sm:$0xff] }
 0x2ed   :  { %v24955_v22 = vpack.c.bf16 %v24953_v38, %v24954_v5  ;;  %v24965_v33 = vld [vmem:[#allocation220_spill] sm:$0xff] }
 0x2ee   :  { %v24968_v5 = vld [vmem:[#allocation232_spill] sm:$0xff] }
 0x2f3   :  { %13010 = vmatmul.mubr.msk.bf16.gmra.mrb[188].mxu1 %vm4896_vm6, %v24943_v28  ;;  %v24956_v28 = vld [vmem:[#allocation211_spill] sm:$0xff] }
 0x2f4   :  { %13013 = vmatprep.mubr.msk.bf16.mxu1 %vm4896_vm6, %v24946_v23  ;;  %v24958_v9 = vpack.c.bf16 %v24956_v28, %v24957_v43  ;;  %v24959_v23 = vld [vmem:[#allocation210_spill] sm:$0xff]  ;;  %v24971_v43 = vld [vmem:[#allocation231_spill] sm:$0xff] }
 0x2f5   :  { %v24961_v53 = vpack.c.bf16 %v24959_v23, %v24960_v34  ;;  %v24974_v23 = vld [vmem:[#allocation243_spill] sm:$0xff] }
 0x2fb   :  { %13014 = vmatmul.mubr.msk.bf16.gmra.mrb[192].mxu1 %vm4896_vm6, %v24949_v6  ;;  %v24963_v6 = vld [vmem:[#allocation219_spill] sm:$0xff] }
 0x2fc   :  { %13017 = vmatprep.mubr.msk.bf16.mxu1 %vm4896_vm6, %v24952_v17  ;;  %v24964_v15 = vpack.c.bf16 %v24962_v4, %v24963_v6  ;;  %v24966_v17 = vld [vmem:[#allocation222_spill] sm:$0xff] }
 0x2fd   :  { %v24967_v38 = vpack.c.bf16 %v24965_v33, %v24966_v17  ;;  %v24977_v6 = vld [vmem:[#allocation242_spill] sm:$0xff]  ;;  %v24980_v17 = vld [vmem:[#allocation253_spill] sm:$0xff] }
 0x303   :  { %13018 = vmatmul.mubr.msk.bf16.gmra.mrb[196].mxu1 %vm4896_vm6, %v24955_v22  ;;  %v24969_v22 = vld [vmem:[#allocation230_spill] sm:$0xff] }
 0x304   :  { %13021 = vmatprep.mubr.msk.bf16.mxu1 %vm4896_vm6, %v24958_v9  ;;  %v24970_v28 = vpack.c.bf16 %v24968_v5, %v24969_v22  ;;  %v24972_v9 = vld [vmem:[#allocation233_spill] sm:$0xff]  ;;  %v24983_v22 = vld [vmem:[#allocation252_spill] sm:$0xff] }
 0x305   :  { %v24973_v34 = vpack.c.bf16 %v24971_v43, %v24972_v9  ;;  %v24986_v9 = vld [vmem:[#allocation263_spill] sm:$0xff] }
 0x30b   :  { %13022 = vmatmul.mubr.msk.bf16.gmra.mrb[200].mxu1 %vm4896_vm6, %v24961_v53  ;;  %v24975_v53 = vld [vmem:[#allocation241_spill] sm:$0xff] }
 0x30c   :  { %13025 = vmatprep.mubr.msk.bf16.mxu1 %vm4896_vm6, %v24964_v15  ;;  %v24976_v4 = vpack.c.bf16 %v24974_v23, %v24975_v53  ;;  %v24978_v15 = vld [vmem:[#allocation244_spill] sm:$0xff]  ;;  %v24989_v53 = vld [vmem:[#allocation262_spill] sm:$0xff] }
 0x30d   :  { %v24979_v33 = vpack.c.bf16 %v24977_v6, %v24978_v15  ;;  %v24992_v15 = vld [vmem:[#allocation270_spill] sm:$0xff] }
 0x313   :  { %13026 = vmatmul.mubr.msk.bf16.gmra.mrb[204].mxu1 %vm4896_vm6, %v24967_v38  ;;  %v24981_v38 = vld [vmem:[#allocation251_spill] sm:$0xff] }
 0x314   :  { %13029 = vmatprep.mubr.msk.bf16.mxu1 %vm4896_vm6, %v24970_v28  ;;  %v24982_v5 = vpack.c.bf16 %v24980_v17, %v24981_v38  ;;  %v24984_v28 = vld [vmem:[#allocation254_spill] sm:$0xff]  ;;  %v24995_v38 = vld [vmem:[#allocation269_spill] sm:$0xff] }
 0x315   :  { %v24985_v43 = vpack.c.bf16 %v24983_v22, %v24984_v28  ;;  %v24998_v28 = vld [vmem:[#allocation277_spill] sm:$0xff] }
 0x31b   :  { %13030 = vmatmul.mubr.msk.bf16.gmra.mrb[208].mxu1 %vm4896_vm6, %v24973_v34  ;;  %v24987_v34 = vld [vmem:[#allocation261_spill] sm:$0xff] }
 0x31c   :  { %13033 = vmatprep.mubr.msk.bf16.mxu1 %vm4896_vm6, %v24976_v4  ;;  %v24988_v23 = vpack.c.bf16 %v24986_v9, %v24987_v34  ;;  %v24990_v4 = vld [vmem:[#allocation264_spill] sm:$0xff] }
 0x31d   :  { %v24991_v6 = vpack.c.bf16 %v24989_v53, %v24990_v4  ;;  %v25001_v34 = vld [vmem:[#allocation276_spill] sm:$0xff]  ;;  %v25004_v4 = vld [vmem:[#allocation283_spill] sm:$0xff] }
 0x323   :  { %13034 = vmatmul.mubr.msk.bf16.gmra.mrb[212].mxu1 %vm4896_vm6, %v24979_v33  ;;  %v24993_v33 = vld [vmem:[#allocation268_spill] sm:$0xff] }
 0x324   :  { %13037 = vmatprep.mubr.msk.bf16.mxu1 %vm4896_vm6, %v24982_v5  ;;  %v24994_v17 = vpack.c.bf16 %v24992_v15, %v24993_v33  ;;  %v24996_v5 = vld [vmem:[#allocation271_spill] sm:$0xff]  ;;  %v25007_v33 = vld [vmem:[#allocation282_spill] sm:$0xff] }
 0x325   :  { %v24997_v22 = vpack.c.bf16 %v24995_v38, %v24996_v5  ;;  %v25010_v5 = vld [vmem:[#allocation290_spill] sm:$0xff] }
 0x32b   :  { %13038 = vmatmul.mubr.msk.bf16.gmra.mrb[216].mxu1 %vm4896_vm6, %v24985_v43  ;;  %v24999_v43 = vld [vmem:[#allocation275_spill] sm:$0xff] }
 0x32c   :  { %13041 = vmatprep.mubr.msk.bf16.mxu1 %vm4896_vm6, %v24988_v23  ;;  %v25000_v9 = vpack.c.bf16 %v24998_v28, %v24999_v43  ;;  %v25002_v23 = vld [vmem:[#allocation278_spill] sm:$0xff]  ;;  %v25013_v43 = vld [vmem:[#allocation289_spill] sm:$0xff] }
 0x32d   :  { %v25003_v53 = vpack.c.bf16 %v25001_v34, %v25002_v23  ;;  %v25016_v23 = vld [vmem:[#allocation297_spill] sm:$0xff] }
 0x333   :  { %13042 = vmatmul.mubr.msk.bf16.gmra.mrb[220].mxu1 %vm4896_vm6, %v24991_v6  ;;  %v25005_v6 = vld [vmem:[#allocation281_spill] sm:$0xff] }
 0x334   :  { %13045 = vmatprep.mubr.msk.bf16.mxu1 %vm4896_vm6, %v24994_v17  ;;  %v25006_v15 = vpack.c.bf16 %v25004_v4, %v25005_v6  ;;  %v25008_v17 = vld [vmem:[#allocation284_spill] sm:$0xff] }
 0x335   :  { %v25009_v38 = vpack.c.bf16 %v25007_v33, %v25008_v17  ;;  %v25019_v6 = vld [vmem:[#allocation296_spill] sm:$0xff]  ;;  %v25022_v17 = vld [vmem:[#allocation303_spill] sm:$0xff] }
 0x33b   :  { %13046 = vmatmul.mubr.msk.bf16.gmra.mrb[224].mxu1 %vm4896_vm6, %v24997_v22  ;;  %v25011_v22 = vld [vmem:[#allocation288_spill] sm:$0xff] }
 0x33c   :  { %13049 = vmatprep.mubr.msk.bf16.mxu1 %vm4896_vm6, %v25000_v9  ;;  %v25012_v28 = vpack.c.bf16 %v25010_v5, %v25011_v22  ;;  %v25014_v9 = vld [vmem:[#allocation291_spill] sm:$0xff]  ;;  %v25025_v22 = vld [vmem:[#allocation302_spill] sm:$0xff] }
 0x33d   :  { %v25015_v34 = vpack.c.bf16 %v25013_v43, %v25014_v9  ;;  %v25028_v9 = vpack.c.bf16 %v19154_v1, %v19142_v32  ;;  %v25034_v1 = vld [vmem:[#allocation26_spill] sm:$0xff] }
 0x343   :  { %13050 = vmatmul.mubr.msk.bf16.gmra.mrb[228].mxu1 %vm4896_vm6, %v25003_v53  ;;  %v25017_v53 = vld [vmem:[#allocation295_spill] sm:$0xff] }
 0x344   :  { %13053 = vmatprep.mubr.msk.bf16.mxu1 %vm4896_vm6, %v25006_v15  ;;  %v25018_v4 = vpack.c.bf16 %v25016_v23, %v25017_v53  ;;  %v25020_v15 = vld [vmem:[#allocation298_spill] sm:$0xff]  ;;  %v25030_v23 = vpack.c.bf16 %v19240_v30, %v19215_v52  ;;  %v25031_v53 = vpack.c.bf16 %v19225_v49, %v19244_v40  ;;  %v25037_v52 = vld [vmem:[#allocation36_spill] sm:$0xff]  ;;  %v25038_v30 = vld [vmem:[#allocation5_spill] sm:$0xff] }
 0x345   :  { %v25021_v33 = vpack.c.bf16 %v25019_v6, %v25020_v15  ;;  %v25039_v49 = vpack.c.bf16 %v25037_v52, %v25038_v30  ;;  %v25041_v40 = vld [vmem:[#allocation28_spill] sm:$0xff]  ;;  %v25061_v52 = vld [vmem:[#allocation93_spill] sm:$0xff] }
 0x346   :  { %v25062_v30 = vld [vmem:[#allocation89_spill] sm:$0xff] }
 0x34b   :  { %13054 = vmatmul.mubr.msk.bf16.gmra.mrb[232].mxu1 %vm4896_vm6, %v25009_v38  ;;  %v25023_v38 = vld [vmem:[#allocation301_spill] sm:$0xff] }
 0x34c   :  { %13057 = vmatprep.mubr.msk.bf16.mxu1 %vm4896_vm6, %v25012_v28  ;;  %v25024_v5 = vpack.c.bf16 %v25022_v17, %v25023_v38  ;;  %v25026_v28 = vld [vmem:[#allocation304_spill] sm:$0xff]  ;;  %v25044_v17 = vld [vmem:[#allocation41_spill] sm:$0xff] }
 0x34d   :  { %v25027_v43 = vpack.c.bf16 %v25025_v22, %v25026_v28  ;;  %v25047_v22 = vld [vmem:[#allocation38_spill] sm:$0xff]  ;;  %v25049_v28 = vld [vmem:[#allocation75_spill] sm:$0xff] }
 0x353   :  { %13058 = vmatmul.mubr.msk.bf16.gmra.mrb[236].mxu1 %vm4896_vm6, %v25015_v34  ;;  %v25029_v34 = vpack.c.bf16 %v19147_v29, %v19158_v0  ;;  %v14523_v29 = vld [vmem:[%s23290_s3 + $0x28] sm:$0xff]   ;;  %v25035_v0 = vld [vmem:[#allocation39_spill] sm:$0xff] }
 0x354   :  { %13061 = vmatprep.mubr.msk.bf16.mxu1 %vm4896_vm6, %v25018_v4  ;;  %v25032_v4 = vld [vmem:[#allocation27_spill] sm:$0xff]  ;;  %v25036_v6 = vpack.c.bf16 %v25034_v1, %v25035_v0  ;;  %v25058_v1 = vld [vmem:[#allocation84_spill] sm:$0xff] }
 0x355   :  { %v25033_v32 = vpack.c.bf16 %v25032_v4, %v16816_v50  ;;  %v25040_v50 = vld [vmem:[#allocation35_spill] sm:$0xff]  ;;  %v25055_v4 = vld [vmem:[#allocation85_spill] sm:$0xff]  ;;  %v25059_v0 = vld [vmem:[#allocation80_spill] sm:$0xff] }
 0x356   :  { %v25042_v15 = vpack.c.bf16 %v25040_v50, %v25041_v40  ;;  %v25064_v50 = vld [vmem:[#allocation92_spill] sm:$0xff] }
 0x357   :  { %v25065_v40 = vld [vmem:[#allocation88_spill] sm:$0xff] }
 0x35b   :  { %13062 = vmatmul.mubr.msk.bf16.gmra.mrb[240].mxu1 %vm4896_vm6, %v25021_v33  ;;  %v25043_v33 = vld [vmem:[#allocation66_spill] sm:$0xff] }
 0x35c   :  { %13065 = vmatprep.mubr.msk.bf16.mxu1 %vm4896_vm6, %v25024_v5  ;;  %v25045_v38 = vpack.c.bf16 %v25043_v33, %v25044_v17  ;;  %v25046_v5 = vld [vmem:[#allocation42_spill] sm:$0xff]  ;;  %v25067_v33 = vld [vmem:[#allocation100_spill] sm:$0xff] }
 0x35d   :  { %v25068_v17 = vld [vmem:[#allocation96_spill] sm:$0xff] }
 0x363   :  { %13066 = vmatmul.mubr.msk.bf16.gmra.mrb[244].mxu1 %vm4896_vm6, %v25027_v43  ;;  %v25050_v43 = vld [vmem:[#allocation71_spill] sm:$0xff] }
 0x364   :  { %13069 = vmatprep.mubr.msk.bf16.mxu1 %vm4896_vm6, %v25028_v9  ;;  %v25051_v9 = vpack.c.bf16 %v25049_v28, %v25050_v43  ;;  %v25073_v28 = vld [vmem:[#allocation106_spill] sm:$0xff] }
 0x365   :  { %v25074_v43 = vld [vmem:[#allocation102_spill] sm:$0xff] }
 0x36b   :  { %13070 = vmatmul.mubr.msk.bf16.gmra.mrb[248].mxu1 %vm4896_vm6, %v25029_v34  ;;  %v25052_v34 = vld [vmem:[#allocation73_spill] sm:$0xff] }
 0x36c   :  { %13073 = vmatprep.mubr.msk.bf16.mxu1 %vm4896_vm6, %v25030_v23  ;;  %v25053_v23 = vld [vmem:[#allocation70_spill] sm:$0xff] }
 0x373   :  { %13074 = vmatmul.mubr.msk.bf16.gmra.mrb[252].mxu1 %vm4896_vm6, %v25031_v53  ;;  %v25054_v53 = vpack.c.bf16 %v25052_v34, %v25053_v23  ;;  %v25076_v34 = vld [vmem:[#allocation105_spill] sm:$0xff] }
 0x374   :  { %13081 = vmatprep.mubr.msk.bf16.mxu1 %vm4896_vm6, %v25033_v32  ;;  %v25056_v32 = vld [vmem:[#allocation81_spill] sm:$0xff] }
 0x375   :  { %v25077_v23 = vld [vmem:[#allocation101_spill] sm:$0xff] }
 0x37b   :  { %13082 = vmatmul.mubr.msk.bf16.vlgmr.msra.gmra.mrb[128].mxu1 %vm4896_vm6, %v25036_v6  ;;  %v25060_v6 = vpack.c.bf16 %v25058_v1, %v25059_v0  ;;  %v25082_v1 = vld [vmem:[#allocation112_spill] sm:$0xff] }
 0x37c   :  { %13210 = vmatpush3.bf16.msra.mxu1 %v14522_v46  ;;  %13085 = vmatprep.mubr.msk.bf16.mxu1 %vm4896_vm6, %v25039_v49  ;;  %v25048_v46 = vpack.c.bf16 %v25046_v5, %v25047_v22  ;;  %v25063_v49 = vpack.c.bf16 %v25061_v52, %v25062_v30  ;;  %v25070_v5 = vld [vmem:[#allocation98_spill] sm:$0xff]  ;;  %v25071_v22 = vld [vmem:[#allocation95_spill] sm:$0xff]  ;;  %v25083_v0 = vld [vmem:[#allocation108_spill] sm:$0xff] }
 0x37d   :  { %13211 = vmatprep.subr.bf16.mxu1 %v14523_v29  ;;  %v25085_v52 = vld [vmem:[#allocation119_spill] sm:$0xff]  ;;  %v25086_v30 = vld [vmem:[#allocation116_spill] sm:$0xff] }
 0x380   :  { %13212 = vmatpush3.bf16.msra.mxu1 %v14523_v29  ;;  %v25057_v29 = vpack.c.bf16 %v25055_v4, %v25056_v32  ;;  %v25079_v4 = vld [vmem:[#allocation113_spill] sm:$0xff] }
 0x381   :  { %v25080_v32 = vld [vmem:[#allocation109_spill] sm:$0xff] }
 0x383   :  { %13086 = vmatmul.mubr.msk.bf16.gmra.mrb[132].mxu1 %vm4896_vm6, %v25042_v15  ;;  %v25066_v15 = vpack.c.bf16 %v25064_v50, %v25065_v40  ;;  %v25088_v50 = vld [vmem:[#allocation117_spill] sm:$0xff]  ;;  %v25089_v40 = vld [vmem:[#allocation115_spill] sm:$0xff] }
 0x384   :  { %13089 = vmatprep.mubr.msk.bf16.mxu1 %vm4896_vm6, %v25045_v38  ;;  %v25069_v38 = vpack.c.bf16 %v25067_v33, %v25068_v17  ;;  %v25091_v33 = vld [vmem:[#allocation126_spill] sm:$0xff] }
 0x385   :  { %v25092_v17 = vld [vmem:[#allocation122_spill] sm:$0xff] }
 0x38b   :  { %13090 = vmatmul.mubr.msk.bf16.gmra.mrb[136].mxu1 %vm4896_vm6, %v25048_v46  ;;  %v25072_v46 = vpack.c.bf16 %v25070_v5, %v25071_v22  ;;  %v25094_v5 = vld [vmem:[#allocation124_spill] sm:$0xff]  ;;  %v25095_v22 = vld [vmem:[#allocation121_spill] sm:$0xff] }
 0x38c   :  { %13093 = vmatprep.mubr.msk.bf16.mxu1 %vm4896_vm6, %v25051_v9  ;;  %v25075_v9 = vpack.c.bf16 %v25073_v28, %v25074_v43  ;;  %v25097_v28 = vld [vmem:[#allocation132_spill] sm:$0xff] }
 0x38d   :  { %v25098_v43 = vld [vmem:[#allocation128_spill] sm:$0xff] }
 0x393   :  { %13094 = vmatmul.mubr.msk.bf16.gmra.mrb[140].mxu1 %vm4896_vm6, %v25054_v53  ;;  %v25078_v53 = vpack.c.bf16 %v25076_v34, %v25077_v23  ;;  %v25100_v34 = vld [vmem:[#allocation131_spill] sm:$0xff] }
 0x394   :  { %13097 = vmatprep.mubr.msk.bf16.mxu1 %vm4896_vm6, %v25057_v29  ;;  %v25081_v29 = vpack.c.bf16 %v25079_v4, %v25080_v32  ;;  %v25101_v23 = vld [vmem:[#allocation127_spill] sm:$0xff]  ;;  %v25103_v4 = vld [vmem:[#allocation138_spill] sm:$0xff] }
 0x395   :  { %v25104_v32 = vld [vmem:[#allocation135_spill] sm:$0xff] }
 0x39b   :  { %13098 = vmatmul.mubr.msk.bf16.gmra.mrb[144].mxu1 %vm4896_vm6, %v25060_v6  ;;  %v25084_v6 = vpack.c.bf16 %v25082_v1, %v25083_v0  ;;  %v25106_v1 = vld [vmem:[#allocation137_spill] sm:$0xff]  ;;  %v25107_v0 = vld [vmem:[#allocation134_spill] sm:$0xff] }
 0x39c   :  { %13101 = vmatprep.mubr.msk.bf16.mxu1 %vm4896_vm6, %v25063_v49  ;;  %v25087_v49 = vpack.c.bf16 %v25085_v52, %v25086_v30  ;;  %v25109_v52 = vld [vmem:[#allocation146_spill] sm:$0xff]  ;;  %v25110_v30 = vld [vmem:[#allocation141_spill] sm:$0xff] }
 0x3a3   :  { %13102 = vmatmul.mubr.msk.bf16.gmra.mrb[148].mxu1 %vm4896_vm6, %v25066_v15  ;;  %v25090_v15 = vpack.c.bf16 %v25088_v50, %v25089_v40  ;;  %v25112_v50 = vld [vmem:[#allocation144_spill] sm:$0xff] }
 0x3a4   :  { %13105 = vmatprep.mubr.msk.bf16.mxu1 %vm4896_vm6, %v25069_v38  ;;  %v25093_v38 = vpack.c.bf16 %v25091_v33, %v25092_v17  ;;  %v25113_v40 = vld [vmem:[#allocation140_spill] sm:$0xff] }
 0x3a5   :  { %v25115_v33 = vld [vmem:[#allocation152_spill] sm:$0xff] }
 0x3a6   :  { %v25116_v17 = vld [vmem:[#allocation148_spill] sm:$0xff] }
 0x3ab   :  { %13106 = vmatmul.mubr.msk.bf16.gmra.mrb[152].mxu1 %vm4896_vm6, %v25072_v46  ;;  %v25096_v46 = vpack.c.bf16 %v25094_v5, %v25095_v22  ;;  %v25118_v5 = vld [vmem:[#allocation150_spill] sm:$0xff]  ;;  %v25119_v22 = vld [vmem:[#allocation147_spill] sm:$0xff] }
 0x3ac   :  { %13109 = vmatprep.mubr.msk.bf16.mxu1 %vm4896_vm6, %v25075_v9  ;;  %v25099_v9 = vpack.c.bf16 %v25097_v28, %v25098_v43  ;;  %v25121_v28 = vld [vmem:[#allocation158_spill] sm:$0xff] }
 0x3ad   :  { %v25122_v43 = vld [vmem:[#allocation154_spill] sm:$0xff] }
 0x3b3   :  { %13110 = vmatmul.mubr.msk.bf16.gmra.mrb[156].mxu1 %vm4896_vm6, %v25078_v53  ;;  %v25102_v53 = vpack.c.bf16 %v25100_v34, %v25101_v23  ;;  %v25124_v34 = vld [vmem:[#allocation157_spill] sm:$0xff] }
 0x3b4   :  { %13113 = vmatprep.mubr.msk.bf16.mxu1 %vm4896_vm6, %v25081_v29  ;;  %v25105_v29 = vpack.c.bf16 %v25103_v4, %v25104_v32  ;;  %v25125_v23 = vld [vmem:[#allocation153_spill] sm:$0xff]  ;;  %v25127_v4 = vld [vmem:[#allocation187_spill] sm:$0xff]  ;;  %v25128_v32 = vld [vmem:[#allocation184_spill] sm:$0xff] }
 0x3bb   :  { %13114 = vmatmul.mubr.msk.bf16.gmra.mrb[160].mxu1 %vm4896_vm6, %v25084_v6  ;;  %v25108_v6 = vpack.c.bf16 %v25106_v1, %v25107_v0  ;;  %v25130_v1 = vld [vmem:[#allocation185_spill] sm:$0xff]  ;;  %v25131_v0 = vld [vmem:[#allocation182_spill] sm:$0xff] }
 0x3bc   :  { %13117 = vmatprep.mubr.msk.bf16.mxu1 %vm4896_vm6, %v25087_v49  ;;  %v25111_v49 = vpack.c.bf16 %v25109_v52, %v25110_v30  ;;  %v25133_v52 = vld [vmem:[#allocation197_spill] sm:$0xff]  ;;  %v25134_v30 = vld [vmem:[#allocation194_spill] sm:$0xff] }
 0x3c3   :  { %13118 = vmatmul.mubr.msk.bf16.gmra.mrb[164].mxu1 %vm4896_vm6, %v25090_v15  ;;  %v25114_v15 = vpack.c.bf16 %v25112_v50, %v25113_v40  ;;  %v25136_v50 = vld [vmem:[#allocation195_spill] sm:$0xff]  ;;  %v25137_v40 = vld [vmem:[#allocation193_spill] sm:$0xff] }
 0x3c4   :  { %13121 = vmatprep.mubr.msk.bf16.mxu1 %vm4896_vm6, %v25093_v38  ;;  %v25117_v38 = vpack.c.bf16 %v25115_v33, %v25116_v17  ;;  %v25139_v33 = vld [vmem:[#allocation207_spill] sm:$0xff]  ;;  %v25140_v17 = vld [vmem:[#allocation204_spill] sm:$0xff] }
 0x3cb   :  { %13122 = vmatmul.mubr.msk.bf16.gmra.mrb[168].mxu1 %vm4896_vm6, %v25096_v46  ;;  %v25120_v46 = vpack.c.bf16 %v25118_v5, %v25119_v22  ;;  %v25142_v5 = vld [vmem:[#allocation205_spill] sm:$0xff]  ;;  %v25143_v22 = vld [vmem:[#allocation203_spill] sm:$0xff] }
 0x3cc   :  { %13125 = vmatprep.mubr.msk.bf16.mxu1 %vm4896_vm6, %v25099_v9  ;;  %v25123_v9 = vpack.c.bf16 %v25121_v28, %v25122_v43  ;;  %v25145_v28 = vld [vmem:[#allocation218_spill] sm:$0xff] }
 0x3cd   :  { %v25146_v43 = vld [vmem:[#allocation214_spill] sm:$0xff] }
 0x3d3   :  { %13126 = vmatmul.mubr.msk.bf16.gmra.mrb[172].mxu1 %vm4896_vm6, %v25102_v53  ;;  %v25126_v53 = vpack.c.bf16 %v25124_v34, %v25125_v23  ;;  %v25148_v34 = vld [vmem:[#allocation216_spill] sm:$0xff]  ;;  %v25149_v23 = vld [vmem:[#allocation213_spill] sm:$0xff] }
 0x3d4   :  { %13129 = vmatprep.mubr.msk.bf16.mxu1 %vm4896_vm6, %v25105_v29  ;;  %v25129_v29 = vpack.c.bf16 %v25127_v4, %v25128_v32  ;;  %v25151_v4 = vld [vmem:[#allocation228_spill] sm:$0xff] }
 0x3d5   :  { %v25152_v32 = vld [vmem:[#allocation224_spill] sm:$0xff] }
 0x3db   :  { %13130 = vmatmul.mubr.msk.bf16.gmra.mrb[176].mxu1 %vm4896_vm6, %v25108_v6  ;;  %v25132_v6 = vpack.c.bf16 %v25130_v1, %v25131_v0  ;;  %v25154_v1 = vld [vmem:[#allocation227_spill] sm:$0xff] }
 0x3dc   :  { %13133 = vmatprep.mubr.msk.bf16.mxu1 %vm4896_vm6, %v25111_v49  ;;  %v25135_v49 = vpack.c.bf16 %v25133_v52, %v25134_v30  ;;  %v25155_v0 = vld [vmem:[#allocation223_spill] sm:$0xff] }
 0x3dd   :  { %v25157_v52 = vld [vmem:[#allocation239_spill] sm:$0xff] }
 0x3de   :  { %v25158_v30 = vld [vmem:[#allocation235_spill] sm:$0xff] }
 0x3e3   :  { %13134 = vmatmul.mubr.msk.bf16.gmra.mrb[180].mxu1 %vm4896_vm6, %v25114_v15  ;;  %v25138_v15 = vpack.c.bf16 %v25136_v50, %v25137_v40  ;;  %v25160_v50 = vld [vmem:[#allocation238_spill] sm:$0xff] }
 0x3e4   :  { %13137 = vmatprep.mubr.msk.bf16.mxu1 %vm4896_vm6, %v25117_v38  ;;  %v25141_v38 = vpack.c.bf16 %v25139_v33, %v25140_v17  ;;  %v25161_v40 = vld [vmem:[#allocation234_spill] sm:$0xff] }
 0x3e5   :  { %v25163_v33 = vld [vmem:[#allocation250_spill] sm:$0xff] }
 0x3e6   :  { %v25164_v17 = vld [vmem:[#allocation246_spill] sm:$0xff] }
 0x3eb   :  { %13138 = vmatmul.mubr.msk.bf16.gmra.mrb[184].mxu1 %vm4896_vm6, %v25120_v46  ;;  %v25144_v46 = vpack.c.bf16 %v25142_v5, %v25143_v22  ;;  %v25166_v5 = vld [vmem:[#allocation248_spill] sm:$0xff]  ;;  %v25167_v22 = vld [vmem:[#allocation245_spill] sm:$0xff] }
 0x3ec   :  { %13141 = vmatprep.mubr.msk.bf16.mxu1 %vm4896_vm6, %v25123_v9  ;;  %v25147_v9 = vpack.c.bf16 %v25145_v28, %v25146_v43  ;;  %v25169_v28 = vld [vmem:[#allocation259_spill] sm:$0xff]  ;;  %v25170_v43 = vld [vmem:[#allocation256_spill] sm:$0xff] }
 0x3f3   :  { %13142 = vmatmul.mubr.msk.bf16.gmra.mrb[188].mxu1 %vm4896_vm6, %v25126_v53  ;;  %v25150_v53 = vpack.c.bf16 %v25148_v34, %v25149_v23  ;;  %v25172_v34 = vld [vmem:[#allocation255_spill] sm:$0xff] }
 0x3f4   :  { %13145 = vmatprep.mubr.msk.bf16.mxu1 %vm4896_vm6, %v25129_v29  ;;  %v25153_v29 = vpack.c.bf16 %v25151_v4, %v25152_v32  ;;  %v25173_v23 = vpack.c.bf16 %v18644_v41, %v25172_v34  ;;  %v25175_v4 = vpack.c.bf16 %v18714_v8, %v18686_v62  ;;  %v25176_v32 = vpack.c.bf16 %v18788_v18, %v18762_v14  ;;  %v25228_v34 = vld [vmem:[#allocation125_spill] sm:$0xff] }
 0x3f5   :  { %v25180_v62 = vpack.c.bf16 %v18846_v35, %v18824_v48  ;;  %v25181_v8 = vpack.c.bf16 %v18922_v26, %v18895_v12  ;;  %v25183_v18 = vpack.c.bf16 %v18992_v16, %v18965_v39  ;;  %v25184_v14 = vpack.c.bf16 %v18986_v11, %v18958_v37  ;;  %v25195_v12 = vld [vmem:[#allocation40_spill] sm:$0xff]  ;;  %v25197_v11 = vld [vmem:[#allocation43_spill] sm:$0xff] }
 0x3f6   :  { %v25185_v26 = vpack.c.bf16 %v19062_v60, %v19035_v61  ;;  %v25187_v16 = vpack.c.bf16 %v19126_v27, %v19099_v31  ;;  %v25188_v48 = vpack.c.bf16 %v19120_v7, %v19092_v19  ;;  %v25189_v35 = vpack.c.bf16 %v19195_v59, %v19167_v63  ;;  %v25198_v39 = vld [vmem:[#allocation67_spill] sm:$0xff]  ;;  %v25201_v61 = vld [vmem:[#allocation74_spill] sm:$0xff] }
 0x3f7   :  { %v25203_v19 = vld [vmem:[#allocation82_spill] sm:$0xff]  ;;  %v25204_v7 = vld [vmem:[#allocation83_spill] sm:$0xff] }
 0x3f8   :  { %v25205_v31 = vpack.c.bf16 %v25203_v19, %v25204_v7  ;;  %v25209_v59 = vld [vmem:[#allocation91_spill] sm:$0xff] }
 0x3f9   :  { %v25260_v7 = vld [vmem:[#allocation171_spill] sm:$0xff] }
 0x3fb   :  { %13146 = vmatmul.mubr.msk.bf16.gmra.mrb[192].mxu1 %vm4896_vm6, %v25132_v6  ;;  %v25156_v6 = vpack.c.bf16 %v25154_v1, %v25155_v0  ;;  %v25210_v1 = vld [vmem:[#allocation94_spill] sm:$0xff] }
 0x3fc   :  { %13149 = vmatprep.mubr.msk.bf16.mxu1 %vm4896_vm6, %v25135_v49  ;;  %v25159_v49 = vpack.c.bf16 %v25157_v52, %v25158_v30  ;;  %v25211_v0 = vpack.c.bf16 %v25209_v59, %v25210_v1  ;;  %v25213_v52 = vld [vmem:[#allocation99_spill] sm:$0xff]  ;;  %v14524_v1 = vld [vmem:[%s23292_s5] sm:$0xff]  }
 0x3fd   :  { %13341 = vmatprep.subr.bf16.mxu0 %v14524_v1 }
 0x3fe   :  { %13342 = vmatpush3.bf16.msra.mxu0 %v14524_v1  ;;  %v25321_v1 = vld [vmem:[#allocation292_spill] sm:$0xff] }
 0x403   :  { %13150 = vmatmul.mubr.msk.bf16.gmra.mrb[196].mxu1 %vm4896_vm6, %v25138_v15  ;;  %v25162_v15 = vpack.c.bf16 %v25160_v50, %v25161_v40  ;;  %v25216_v50 = vld [vmem:[#allocation104_spill] sm:$0xff] }
 0x404   :  { %13153 = vmatprep.mubr.msk.bf16.mxu1 %vm4896_vm6, %v25141_v38  ;;  %v25165_v38 = vpack.c.bf16 %v25163_v33, %v25164_v17  ;;  %v25219_v33 = vld [vmem:[#allocation110_spill] sm:$0xff] }
 0x40b   :  { %13154 = vmatmul.mubr.msk.bf16.gmra.mrb[200].mxu1 %vm4896_vm6, %v25144_v46  ;;  %v25168_v46 = vpack.c.bf16 %v25166_v5, %v25167_v22  ;;  %v25222_v5 = vld [vmem:[#allocation114_spill] sm:$0xff] }
 0x40c   :  { %13157 = vmatprep.mubr.msk.bf16.mxu1 %vm4896_vm6, %v25147_v9  ;;  %v25171_v9 = vpack.c.bf16 %v25169_v28, %v25170_v43  ;;  %v25225_v28 = vld [vmem:[#allocation120_spill] sm:$0xff] }
 0x413   :  { %13158 = vmatmul.mubr.msk.bf16.gmra.mrb[204].mxu1 %vm4896_vm6, %v25150_v53  ;;  %v25174_v53 = vpack.c.bf16 %v18720_v55, %v18693_v36  ;;  %v25179_v55 = vpack.c.bf16 %v18858_v2, %v18831_v20  ;;  %v25182_v36 = vpack.c.bf16 %v18916_v57, %v18888_v25  ;;  %v25190_v20 = vpack.c.bf16 %v19183_v3, %v19160_v45  ;;  %v25191_v2 = vld [vmem:[#allocation34_spill] sm:$0xff]  ;;  %v25192_v25 = vld [vmem:[#allocation29_spill] sm:$0xff] }
 0x414   :  { %13161 = vmatprep.mubr.msk.bf16.mxu1 %vm4896_vm6, %v25153_v29  ;;  %v25177_v29 = vld [vmem:[#allocation272_spill] sm:$0xff]  ;;  %v25193_v27 = vpack.c.bf16 %v25191_v2, %v25192_v25  ;;  %v25194_v57 = vld [vmem:[#allocation37_spill] sm:$0xff]  ;;  %v25206_v3 = vld [vmem:[#allocation86_spill] sm:$0xff] }
 0x415   :  { %v25178_v41 = vpack.c.bf16 %v18776_v51, %v25177_v29  ;;  %v25186_v51 = vpack.c.bf16 %v19050_v58, %v19028_v42  ;;  %v25196_v37 = vpack.c.bf16 %v25194_v57, %v25195_v12  ;;  %v25199_v42 = vpack.c.bf16 %v25197_v11, %v25198_v39  ;;  %v25200_v58 = vld [vmem:[#allocation72_spill] sm:$0xff]  ;;  %v25207_v45 = vld [vmem:[#allocation90_spill] sm:$0xff]  ;;  %v25233_v29 = vld [vmem:[#allocation133_spill] sm:$0xff] }
 0x416   :  { %v25202_v60 = vpack.c.bf16 %v25200_v58, %v25201_v61  ;;  %v25208_v63 = vpack.c.bf16 %v25206_v3, %v25207_v45  ;;  %v25248_v25 = vld [vmem:[#allocation159_spill] sm:$0xff]  ;;  %v25257_v61 = vld [vmem:[#allocation169_spill] sm:$0xff] }
 0x417   :  { %v25251_v12 = vld [vmem:[#allocation163_spill] sm:$0xff]  ;;  %v25263_v45 = vld [vmem:[#allocation173_spill] sm:$0xff] }
 0x418   :  { %v25254_v39 = vld [vmem:[#allocation167_spill] sm:$0xff] }
 0x41b   :  { %13162 = vmatmul.mubr.msk.bf16.gmra.mrb[208].mxu1 %vm4896_vm6, %v25156_v6  ;;  %v25212_v6 = vld [vmem:[#allocation97_spill] sm:$0xff] }
 0x41c   :  { %13165 = vmatprep.mubr.msk.bf16.mxu1 %vm4896_vm6, %v25159_v49  ;;  %v25214_v30 = vpack.c.bf16 %v25212_v6, %v25213_v52  ;;  %v25215_v49 = vld [vmem:[#allocation103_spill] sm:$0xff]  ;;  %v25267_v6 = vld [vmem:[#allocation176_spill] sm:$0xff] }
 0x41d   :  { %v25217_v40 = vpack.c.bf16 %v25215_v49, %v25216_v50  ;;  %v25270_v49 = vld [vmem:[#allocation178_spill] sm:$0xff] }
 0x423   :  { %13166 = vmatmul.mubr.msk.bf16.gmra.mrb[212].mxu1 %vm4896_vm6, %v25162_v15  ;;  %v25218_v15 = vld [vmem:[#allocation107_spill] sm:$0xff] }
 0x424   :  { %13169 = vmatprep.mubr.msk.bf16.mxu1 %vm4896_vm6, %v25165_v38  ;;  %v25220_v17 = vpack.c.bf16 %v25218_v15, %v25219_v33  ;;  %v25221_v38 = vld [vmem:[#allocation111_spill] sm:$0xff]  ;;  %v25273_v15 = vld [vmem:[#allocation180_spill] sm:$0xff] }
 0x425   :  { %v25223_v22 = vpack.c.bf16 %v25221_v38, %v25222_v5  ;;  %v25276_v38 = vld [vmem:[#allocation183_spill] sm:$0xff] }
 0x42b   :  { %13170 = vmatmul.mubr.msk.bf16.gmra.mrb[216].mxu1 %vm4896_vm6, %v25168_v46  ;;  %v25224_v46 = vld [vmem:[#allocation118_spill] sm:$0xff] }
 0x42c   :  { %13173 = vmatprep.mubr.msk.bf16.mxu1 %vm4896_vm6, %v25171_v9  ;;  %v25226_v43 = vpack.c.bf16 %v25224_v46, %v25225_v28  ;;  %v25227_v9 = vld [vmem:[#allocation123_spill] sm:$0xff]  ;;  %v25279_v46 = vld [vmem:[#allocation188_spill] sm:$0xff] }
 0x433   :  { %13174 = vmatmul.mubr.msk.bf16.gmra.mrb[220].mxu1 %vm4896_vm6, %v25173_v23  ;;  %v25229_v23 = vpack.c.bf16 %v25227_v9, %v25228_v34  ;;  %v25282_v9 = vld [vmem:[#allocation198_spill] sm:$0xff] }
 0x434   :  { %13177 = vmatprep.mubr.msk.bf16.mxu1 %vm4896_vm6, %v25174_v53  ;;  %v25230_v53 = vld [vmem:[#allocation129_spill] sm:$0xff] }
 0x43b   :  { %13178 = vmatmul.mubr.msk.bf16.gmra.mrb[224].mxu1 %vm4896_vm6, %v25175_v4  ;;  %v25231_v4 = vld [vmem:[#allocation130_spill] sm:$0xff] }
 0x43c   :  { %13181 = vmatprep.mubr.msk.bf16.mxu1 %vm4896_vm6, %v25176_v32  ;;  %v25232_v32 = vpack.c.bf16 %v25230_v53, %v25231_v4  ;;  %v25285_v53 = vld [vmem:[#allocation206_spill] sm:$0xff] }
 0x443   :  { %13182 = vmatmul.mubr.msk.bf16.gmra.mrb[228].mxu1 %vm4896_vm6, %v25178_v41  ;;  %v25234_v41 = vld [vmem:[#allocation136_spill] sm:$0xff] }
 0x444   :  { %13185 = vmatprep.mubr.msk.bf16.mxu1 %vm4896_vm6, %v25179_v55  ;;  %v25235_v55 = vpack.c.bf16 %v25233_v29, %v25234_v41  ;;  %v25288_v29 = vld [vmem:[#allocation217_spill] sm:$0xff] }
 0x44b   :  { %13186 = vmatmul.mubr.msk.bf16.gmra.mrb[232].mxu1 %vm4896_vm6, %v25180_v62  ;;  %v25236_v62 = vld [vmem:[#allocation142_spill] sm:$0xff] }
 0x44c   :  { %13189 = vmatprep.mubr.msk.bf16.mxu1 %vm4896_vm6, %v25181_v8  ;;  %v25237_v8 = vld [vmem:[#allocation139_spill] sm:$0xff] }
 0x453   :  { %13190 = vmatmul.mubr.msk.bf16.gmra.mrb[236].mxu1 %vm4896_vm6, %v25182_v36  ;;  %v25238_v36 = vpack.c.bf16 %v25236_v62, %v25237_v8  ;;  %v25291_v62 = vld [vmem:[#allocation226_spill] sm:$0xff] }
 0x454   :  { %13193 = vmatprep.mubr.msk.bf16.mxu1 %vm4896_vm6, %v25183_v18  ;;  %v25239_v18 = vld [vmem:[#allocation143_spill] sm:$0xff] }
 0x45b   :  { %13194 = vmatmul.mubr.msk.bf16.gmra.mrb[240].mxu1 %vm4896_vm6, %v25184_v14  ;;  %v25240_v14 = vld [vmem:[#allocation145_spill] sm:$0xff] }
 0x45c   :  { %13197 = vmatprep.mubr.msk.bf16.mxu1 %vm4896_vm6, %v25185_v26  ;;  %v25241_v26 = vpack.c.bf16 %v25239_v18, %v25240_v14  ;;  %v25294_v18 = vld [vmem:[#allocation236_spill] sm:$0xff] }
 0x463   :  { %13198 = vmatmul.mubr.msk.bf16.gmra.mrb[244].mxu1 %vm4896_vm6, %v25186_v51  ;;  %v25242_v51 = vld [vmem:[#allocation149_spill] sm:$0xff] }
 0x464   :  { %13201 = vmatprep.mubr.msk.bf16.mxu1 %vm4896_vm6, %v25187_v16  ;;  %v25243_v16 = vld [vmem:[#allocation151_spill] sm:$0xff] }
 0x46b   :  { %13202 = vmatmul.mubr.msk.bf16.gmra.mrb[248].mxu1 %vm4896_vm6, %v25188_v48  ;;  %v25244_v48 = vpack.c.bf16 %v25242_v51, %v25243_v16  ;;  %v25297_v51 = vld [vmem:[#allocation240_spill] sm:$0xff] }
 0x46c   :  { %13205 = vmatprep.mubr.msk.bf16.mxu1 %vm4896_vm6, %v25189_v35  ;;  %v25245_v35 = vld [vmem:[#allocation155_spill] sm:$0xff] }
 0x473   :  { %13206 = vmatmul.mubr.msk.bf16.gmra.mrb[252].mxu1 %vm4896_vm6, %v25190_v20  ;;  %v25246_v20 = vld [vmem:[#allocation156_spill] sm:$0xff] }
 0x474   :  { %13213 = vmatprep.mubr.msk.bf16.mxu1 %vm4896_vm6, %v25193_v27  ;;  %v25247_v2 = vpack.c.bf16 %v25245_v35, %v25246_v20  ;;  %v25249_v27 = vld [vmem:[#allocation160_spill] sm:$0xff]  ;;  %v25300_v35 = vld [vmem:[#allocation249_spill] sm:$0xff] }
 0x475   :  { %v25250_v57 = vpack.c.bf16 %v25248_v25, %v25249_v27  ;;  %v25303_v25 = vld [vmem:[#allocation258_spill] sm:$0xff] }
 0x47b   :  { %13214 = vmatmul.mubr.msk.bf16.vlgmr.msra.gmra.mrb[128].mxu1 %vm4896_vm6, %v25196_v37  ;;  %v25252_v37 = vld [vmem:[#allocation164_spill] sm:$0xff] }
 0x47c   :  { %13217 = vmatprep.mubr.msk.bf16.mxu1 %vm4896_vm6, %v25199_v42  ;;  %v25253_v11 = vpack.c.bf16 %v25251_v12, %v25252_v37  ;;  %v25255_v42 = vld [vmem:[#allocation168_spill] sm:$0xff]  ;;  %v25306_v12 = vld [vmem:[#allocation265_spill] sm:$0xff] }
 0x47d   :  { %v25256_v58 = vpack.c.bf16 %v25254_v39, %v25255_v42  ;;  %v25309_v39 = vld [vmem:[#allocation267_spill] sm:$0xff] }
 0x483   :  { %13218 = vmatmul.mubr.msk.bf16.gmra.mrb[132].mxu1 %vm4896_vm6, %v25202_v60  ;;  %v25258_v60 = vld [vmem:[#allocation170_spill] sm:$0xff] }
 0x484   :  { %13221 = vmatprep.mubr.msk.bf16.mxu1 %vm4896_vm6, %v25205_v31  ;;  %v25259_v19 = vpack.c.bf16 %v25257_v61, %v25258_v60  ;;  %v25261_v31 = vld [vmem:[#allocation172_spill] sm:$0xff]  ;;  %v25312_v61 = vld [vmem:[#allocation274_spill] sm:$0xff] }
 0x485   :  { %v25262_v3 = vpack.c.bf16 %v25260_v7, %v25261_v31  ;;  %v25315_v7 = vld [vmem:[#allocation280_spill] sm:$0xff] }
 0x48b   :  { %13222 = vmatmul.mubr.msk.bf16.gmra.mrb[136].mxu1 %vm4896_vm6, %v25208_v63  ;;  %v25264_v63 = vld [vmem:[#allocation174_spill] sm:$0xff] }
 0x48c   :  { %13225 = vmatprep.mubr.msk.bf16.mxu1 %vm4896_vm6, %v25211_v0  ;;  %v25265_v59 = vpack.c.bf16 %v25263_v45, %v25264_v63  ;;  %v25266_v0 = vld [vmem:[#allocation175_spill] sm:$0xff]  ;;  %v25318_v45 = vld [vmem:[#allocation286_spill] sm:$0xff] }
 0x48d   :  { %v25268_v52 = vpack.c.bf16 %v25266_v0, %v25267_v6  ;;  %v25323_v6 = vld [vmem:[#allocation293_spill] sm:$0xff] }
 0x493   :  { %13226 = vmatmul.mubr.msk.bf16.gmra.mrb[140].mxu1 %vm4896_vm6, %v25214_v30  ;;  %v25269_v30 = vld [vmem:[#allocation177_spill] sm:$0xff] }
 0x494   :  { %13229 = vmatprep.mubr.msk.bf16.mxu1 %vm4896_vm6, %v25217_v40  ;;  %v25271_v50 = vpack.c.bf16 %v25269_v30, %v25270_v49  ;;  %v25272_v40 = vld [vmem:[#allocation179_spill] sm:$0xff] }
 0x495   :  { %v25274_v33 = vpack.c.bf16 %v25272_v40, %v25273_v15  ;;  %v25326_v49 = vld [vmem:[#allocation299_spill] sm:$0xff]  ;;  %v25329_v15 = vld [vmem:[#allocation305_spill] sm:$0xff] }
 0x49b   :  { %13230 = vmatmul.mubr.msk.bf16.gmra.mrb[144].mxu1 %vm4896_vm6, %v25220_v17  ;;  %v25275_v17 = vld [vmem:[#allocation181_spill] sm:$0xff] }
 0x49c   :  { %13233 = vmatprep.mubr.msk.bf16.mxu1 %vm4896_vm6, %v25223_v22  ;;  %v25277_v5 = vpack.c.bf16 %v25275_v17, %v25276_v38  ;;  %v25278_v22 = vld [vmem:[#allocation186_spill] sm:$0xff]  ;;  %v25332_v38 = vld [vmem:[#allocation308_spill] sm:$0xff] }
 0x49d   :  { %v25280_v28 = vpack.c.bf16 %v25278_v22, %v25279_v46  ;;  %v25335_v46 = vld [vmem:[#allocation309_spill] sm:$0xff] }
 0x4a3   :  { %13234 = vmatmul.mubr.msk.bf16.gmra.mrb[148].mxu1 %vm4896_vm6, %v25226_v43  ;;  %v25281_v43 = vld [vmem:[#allocation196_spill] sm:$0xff] }
 0x4a4   :  { %13237 = vmatprep.mubr.msk.bf16.mxu1 %vm4896_vm6, %v25229_v23  ;;  %v25283_v34 = vpack.c.bf16 %v25281_v43, %v25282_v9  ;;  %v25284_v23 = vld [vmem:[#allocation208_spill] sm:$0xff]  ;;  %v25338_v9 = vld [vmem:[#allocation311_spill] sm:$0xff] }
 0x4a5   :  { %v25286_v4 = vpack.c.bf16 %v25284_v23, %v25285_v53  ;;  %v25341_v53 = vpack.c.bf16 %v19266_v44, %v19275_v47  ;;  %v20258_v44 = vld [vmem:[%s23291_s4] ss:$0 sm:$0xff] }
 0x4ab   :  { %13238 = vmatmul.mubr.msk.bf16.gmra.mrb[152].mxu1 %vm4896_vm6, %v25232_v32  ;;  %v25287_v32 = vld [vmem:[#allocation215_spill] sm:$0xff] }
 0x4ac   :  { %13241 = vmatprep.mubr.msk.bf16.mxu1 %vm4896_vm6, %v25235_v55  ;;  %v25289_v41 = vpack.c.bf16 %v25287_v32, %v25288_v29  ;;  %v25290_v55 = vld [vmem:[#allocation225_spill] sm:$0xff]  ;;  %v25343_v32 = vld [vmem:[#allocation314_spill] sm:$0xff] }
 0x4ad   :  { %v25292_v8 = vpack.c.bf16 %v25290_v55, %v25291_v62  ;;  %v25346_v55 = vld [vmem:[#allocation316_spill] sm:$0xff] }
 0x4b3   :  { %13242 = vmatmul.mubr.msk.bf16.gmra.mrb[156].mxu1 %vm4896_vm6, %v25238_v36  ;;  %v25293_v36 = vld [vmem:[#allocation229_spill] sm:$0xff] }
 0x4b4   :  { %13245 = vmatprep.mubr.msk.bf16.mxu1 %vm4896_vm6, %v25241_v26  ;;  %v25295_v14 = vpack.c.bf16 %v25293_v36, %v25294_v18  ;;  %v25296_v26 = vld [vmem:[#allocation237_spill] sm:$0xff]  ;;  %v25349_v36 = vld [vmem:[#allocation318_spill] sm:$0xff] }
 0x4b5   :  { %v25298_v16 = vpack.c.bf16 %v25296_v26, %v25297_v51  ;;  %v25352_v26 = vld [vmem:[#allocation320_spill] sm:$0xff] }
 0x4bb   :  { %13246 = vmatmul.mubr.msk.bf16.gmra.mrb[160].mxu1 %vm4896_vm6, %v25244_v48  ;;  %v25299_v48 = vld [vmem:[#allocation247_spill] sm:$0xff] }
 0x4bc   :  { %13249 = vmatprep.mubr.msk.bf16.mxu1 %vm4896_vm6, %v25247_v2  ;;  %v25301_v20 = vpack.c.bf16 %v25299_v48, %v25300_v35  ;;  %v25302_v2 = vld [vmem:[#allocation257_spill] sm:$0xff] }
 0x4bd   :  { %v25304_v27 = vpack.c.bf16 %v25302_v2, %v25303_v25 }
 0x4c3   :  { %13250 = vmatmul.mubr.msk.bf16.gmra.mrb[164].mxu1 %vm4896_vm6, %v25250_v57  ;;  %v25305_v57 = vld [vmem:[#allocation260_spill] sm:$0xff] }
 0x4c4   :  { %13253 = vmatprep.mubr.msk.bf16.mxu1 %vm4896_vm6, %v25253_v11  ;;  %v25307_v37 = vpack.c.bf16 %v25305_v57, %v25306_v12  ;;  %v25308_v11 = vld [vmem:[#allocation266_spill] sm:$0xff] }
 0x4c5   :  { %v25310_v42 = vpack.c.bf16 %v25308_v11, %v25309_v39  ;;  %v25356_v11 = vld [vmem:[#allocation321_spill] sm:$0xff]  ;;  %v25357_v39 = vld [vmem:[#allocation322_spill] sm:$0xff] }
 0x4cb   :  { %13254 = vmatmul.mubr.msk.bf16.gmra.mrb[168].mxu1 %vm4896_vm6, %v25256_v58  ;;  %v25311_v58 = vld [vmem:[#allocation273_spill] sm:$0xff] }
 0x4cc   :  { %13257 = vmatprep.mubr.msk.bf16.mxu1 %vm4896_vm6, %v25259_v19  ;;  %v25313_v60 = vpack.c.bf16 %v25311_v58, %v25312_v61  ;;  %v25314_v19 = vld [vmem:[#allocation279_spill] sm:$0xff] }
 0x4cd   :  { %v25316_v31 = vpack.c.bf16 %v25314_v19, %v25315_v7 }
 0x4d3   :  { %13258 = vmatmul.mubr.msk.bf16.gmra.mrb[172].mxu1 %vm4896_vm6, %v25262_v3  ;;  %v25317_v3 = vld [vmem:[#allocation285_spill] sm:$0xff] }
 0x4d4   :  { %13261 = vmatprep.mubr.msk.bf16.mxu1 %vm4896_vm6, %v25265_v59  ;;  %v25319_v63 = vpack.c.bf16 %v25317_v3, %v25318_v45  ;;  %v25320_v59 = vld [vmem:[#allocation287_spill] sm:$0xff] }
 0x4d5   :  { %v25322_v0 = vpack.c.bf16 %v25320_v59, %v25321_v1 }
 0x4db   :  { %13262 = vmatmul.mubr.msk.bf16.gmra.mrb[176].mxu1 %vm4896_vm6, %v25268_v52  ;;  %v25324_v52 = vld [vmem:[#allocation294_spill] sm:$0xff] }
 0x4dc   :  { %13265 = vmatprep.mubr.msk.bf16.mxu1 %vm4896_vm6, %v25271_v50  ;;  %v25325_v30 = vpack.c.bf16 %v25323_v6, %v25324_v52  ;;  %v25327_v50 = vld [vmem:[#allocation300_spill] sm:$0xff] }
 0x4dd   :  { %v25328_v40 = vpack.c.bf16 %v25326_v49, %v25327_v50  ;;  %v14525_v49 = vld [vmem:[%s23292_s5 + $0x8] sm:$0xff]  }
 0x4de   :  { %13343 = vmatprep.subr.bf16.mxu0 %v14525_v49 }
 0x4df   :  { %13344 = vmatpush3.bf16.msra.mxu0 %v14525_v49 }
 0x4e3   :  { %13266 = vmatmul.mubr.msk.bf16.gmra.mrb[180].mxu1 %vm4896_vm6, %v25274_v33  ;;  %v25330_v33 = vld [vmem:[#allocation306_spill] sm:$0xff] }
 0x4e4   :  { %13269 = vmatprep.mubr.msk.bf16.mxu1 %vm4896_vm6, %v25277_v5  ;;  %v25331_v17 = vpack.c.bf16 %v25329_v15, %v25330_v33  ;;  %v25333_v5 = vld [vmem:[#allocation307_spill] sm:$0xff] }
 0x4e5   :  { %v25334_v22 = vpack.c.bf16 %v25332_v38, %v25333_v5 }
 0x4eb   :  { %13270 = vmatmul.mubr.msk.bf16.gmra.mrb[184].mxu1 %vm4896_vm6, %v25280_v28  ;;  %v25336_v28 = vld [vmem:[#allocation310_spill] sm:$0xff] }
 0x4ec   :  { %13273 = vmatprep.mubr.msk.bf16.mxu1 %vm4896_vm6, %v25283_v34  ;;  %v25337_v43 = vpack.c.bf16 %v25335_v46, %v25336_v28  ;;  %v25339_v34 = vld [vmem:[#allocation312_spill] sm:$0xff] }
 0x4ed   :  { %v25340_v23 = vpack.c.bf16 %v25338_v9, %v25339_v34 }
 0x4f3   :  { %13274 = vmatmul.mubr.msk.bf16.gmra.mrb[188].mxu1 %vm4896_vm6, %v25286_v4  ;;  %v25342_v4 = vld [vmem:[#allocation313_spill] sm:$0xff] }
 0x4f4   :  { %13277 = vmatprep.mubr.msk.bf16.mxu1 %vm4896_vm6, %v25289_v41  ;;  %v25344_v29 = vpack.c.bf16 %v25342_v4, %v25343_v32  ;;  %v25345_v41 = vld [vmem:[#allocation315_spill] sm:$0xff]  ;;  %v25368_v4 = vld [vmem:[#allocation324_spill] sm:$0xff] }
 0x4f5   :  { %v25347_v62 = vpack.c.bf16 %v25345_v41, %v25346_v55 }
 0x4fb   :  { %13278 = vmatmul.mubr.msk.bf16.gmra.mrb[192].mxu1 %vm4896_vm6, %v25292_v8  ;;  %v25348_v8 = vld [vmem:[#allocation317_spill] sm:$0xff] }
 0x4fc   :  { %13281 = vmatprep.mubr.msk.bf16.mxu1 %vm4896_vm6, %v25295_v14  ;;  %v25350_v18 = vpack.c.bf16 %v25348_v8, %v25349_v36  ;;  %v25351_v14 = vld [vmem:[#allocation319_spill] sm:$0xff]  ;;  %v25371_v8 = vld [vmem:[#allocation325_spill] sm:$0xff]  ;;  %v25372_v36 = vld [vmem:[#allocation326_spill] sm:$0xff] }
 0x4fd   :  { %v25353_v47 = vpack.c.bf16 %v25351_v14, %v25352_v26 }
 0x503   :  { %13282 = vmatmul.mubr.msk.bf16.gmra.mrb[196].mxu1 %vm4896_vm6, %v25298_v16 }
 0x504   :  { %13285 = vmatprep.mubr.msk.bf16.mxu1 %vm4896_vm6, %v25301_v20 }
 0x50b   :  { %13286 = vmatmul.mubr.msk.bf16.gmra.mrb[200].mxu1 %vm4896_vm6, %v25304_v27 }
 0x50c   :  { %13289 = vmatprep.mubr.msk.bf16.mxu1 %vm4896_vm6, %v25307_v37 }
 0x513   :  { %13290 = vmatmul.mubr.msk.bf16.gmra.mrb[204].mxu1 %vm4896_vm6, %v25310_v42  ;;  %v25358_v42 = vpack.c.bf16 %v25356_v11, %v25357_v39 }
 0x514   :  { %13293 = vmatprep.mubr.msk.bf16.mxu1 %vm4896_vm6, %v25313_v60  ;;  %v25360_v60 = vpack.c.bf16 %v19391_v54, %v19399_v21 }
 0x51b   :  { %13294 = vmatmul.mubr.msk.bf16.gmra.mrb[208].mxu1 %vm4896_vm6, %v25316_v31 }
 0x51c   :  { %13297 = vmatprep.mubr.msk.bf16.mxu1 %vm4896_vm6, %v25319_v63 }
 0x523   :  { %13298 = vmatmul.mubr.msk.bf16.gmra.mrb[212].mxu1 %vm4896_vm6, %v25322_v0 }
 0x524   :  { %13301 = vmatprep.mubr.msk.bf16.mxu1 %vm4896_vm6, %v25325_v30 }
 0x52b   :  { %13302 = vmatmul.mubr.msk.bf16.gmra.mrb[216].mxu1 %vm4896_vm6, %v25328_v40 }
 0x52c   :  { %13305 = vmatprep.mubr.msk.bf16.mxu1 %vm4896_vm6, %v25331_v17 }
 0x533   :  { %13306 = vmatmul.mubr.msk.bf16.gmra.mrb[220].mxu1 %vm4896_vm6, %v25334_v22 }
 0x534   :  { %13309 = vmatprep.mubr.msk.bf16.mxu1 %vm4896_vm6, %v25337_v43 }
 0x53b   :  { %13310 = vmatmul.mubr.msk.bf16.gmra.mrb[224].mxu1 %vm4896_vm6, %v25340_v23 }
 0x53c   :  { %13313 = vmatprep.mubr.msk.bf16.mxu1 %vm4896_vm6, %v25341_v53  ;;  %v25367_v53 = vld [vmem:[#allocation323_spill] sm:$0xff] }
 0x53d   :  { %v25369_v32 = vpack.c.bf16 %v25367_v53, %v25368_v4 }
 0x543   :  { %13314 = vmatmul.mubr.msk.bf16.gmra.mrb[228].mxu1 %vm4896_vm6, %v25344_v29 }
 0x544   :  { %13317 = vmatprep.mubr.msk.bf16.mxu1 %vm4896_vm6, %v25347_v62 }
 0x54b   :  { %13318 = vmatmul.mubr.msk.bf16.gmra.mrb[232].mxu1 %vm4896_vm6, %v25350_v18  ;;  %v25373_v18 = vpack.c.bf16 %v25371_v8, %v25372_v36  ;;  %v25384_v8 = vld [vmem:[#allocation328_spill] sm:$0xff] }
 0x54c   :  { %13321 = vmatprep.mubr.msk.bf16.mxu1 %vm4896_vm6, %v25353_v47 }
 0x54e   :  { %v13215_v51 = vpop.f32.mrb[128].mxu1 }
 0x54f   :  { %v7338_v16 = vadd.f32 %v13215_v51, %v20258_v44  ;;  %v6690_v48 = vpop.f32.mrb[129].mxu1 }
 0x550   :  { %v7336_v35 = vadd.f32 %v20258_v44, %v6690_v48  ;;  %v13216_v20 = vpop.f32.mrb[130].mxu1 }
 0x551   :  { %v20262_v2 = vmax.f32 %v7338_v16, 0.0  ;;  %v7339_v25 = vadd.f32 %v13216_v20, %v20258_v44  ;;  %v6693_v27 = vpop.f32.mrb[131].mxu1 }
 0x552   :  { %v20265_v57 = vmax.f32 %v7336_v35, 0.0  ;;  %v7337_v12 = vadd.f32 %v20258_v44, %v6693_v27 }
 0x553   :  { %25354 = vst [vmem:[#allocation44_spill] sm:$0xff] %v20262_v2  ;;  %v20268_v37 = vmax.f32 %v7339_v25, 0.0  ;;  %13322 = vmatmul.mubr.msk.bf16.gmra.mrb[236].mxu1 %vm4896_vm6, %v25358_v42  ;;  %v7594_v58 = vrot.slane %v20262_v2, 7  ;;  %v7978_v19 = vrot.slane %v20262_v2, 1 }
 0x554   :  { %v20275_v61 = vmax.f32 %v7337_v12, 0.0  ;;  %13325 = vmatprep.mubr.msk.bf16.mxu1 %vm4896_vm6, %v25360_v60  ;;  %v23706_v45 = vrot.slane %v20265_v57, 7  ;;  %v23705_v1 = vrot.slane %v20265_v57, 1 }
 0x555   :  { %25355 = vst [vmem:[#allocation68_spill] sm:$0xff] %v20268_v37  ;;  %v7595_v7 = vrot.slane %v20268_v37, 7  ;;  %v7979_v31 = vrot.slane %v20268_v37, 1 }
 0x556   :  { %25359 = vst [vmem:[#allocation69_spill] sm:$0xff] %v20275_v61  ;;  %v7593_v63 = vrot.slane %v20275_v61, 7  ;;  %v7977_v59 = vrot.slane %v20275_v61, 1  ;;  %v13219_v21 = vpop.f32.mrb[132].mxu1 }
 0x557   :  { %v20294_v0 = vsel %vm509_vm4, %v7594_v58, %v7595_v7  ;;  %v20298_v6 = vsel %vm894_vm2, %v7978_v19, %v7979_v31  ;;  %v7342_v52 = vadd.f32 %v13219_v21, %v20258_v44  ;;  %v6706_v30 = vpop.f32.mrb[133].mxu1 }
 0x558   :  { %25361 = vst [vmem:[#allocation78_spill] sm:$0xff] %v20298_v6  ;;  %v20306_v50 = vsel %vm509_vm4, %v7593_v63, %v7594_v58  ;;  %v7340_v40 = vadd.f32 %v20258_v44, %v6706_v30  ;;  %v13220_v15 = vpop.f32.mrb[134].mxu1  ;;  %v20313_v33 = vsel %vm509_vm4, %v23706_v45, %v7593_v63  ;;  %v20317_v17 = vsel %vm894_vm2, %v7977_v59, %v7978_v19 }
 0x559   :  { %25362 = vst [vmem:[#allocation76_spill] sm:$0xff] %v20317_v17  ;;  %v20321_v5 = vmax.f32 %v7342_v52, 0.0  ;;  %v7343_v22 = vadd.f32 %v13220_v15, %v20258_v44  ;;  %v6709_v46 = vpop.f32.mrb[135].mxu1  ;;  %v20328_v28 = vsel %vm894_vm2, %v23705_v1, %v7977_v59 }
 0x55a   :  { %25364 = vst [vmem:[#allocation79_spill] sm:$0xff] %v20328_v28  ;;  %v20330_v43 = vmax.f32 %v7340_v40, 0.0  ;;  %v7341_v9 = vadd.f32 %v20258_v44, %v6709_v46 }
 0x55b   :  { %25363 = vst [vmem:[#allocation77_spill] sm:$0xff] %v20321_v5  ;;  %v20335_v23 = vmax.f32 %v7343_v22, 0.0  ;;  %13326 = vmatmul.mubr.msk.bf16.gmra.mrb[240].mxu1 %vm4896_vm6, %v25369_v32  ;;  %v7598_v29 = vrot.slane %v20321_v5, 7  ;;  %v7982_v14 = vrot.slane %v20321_v5, 1 }
 0x55c   :  { %25365 = vst [vmem:[#allocation46_spill] sm:$0xff] %v20330_v43  ;;  %v7596_v41 = vrot.slane %v20330_v43, 7  ;;  %v7980_v55 = vrot.slane %v20330_v43, 1  ;;  %v20344_v62 = vmax.f32 %v7341_v9, 0.0  ;;  %13329 = vmatprep.mubr.msk.bf16.mxu1 %vm4896_vm6, %v25373_v18  ;;  %v25381_v9 = vpack.c.bf16 %v19443_v24, %v19453_v56 }
 0x55d   :  { %25366 = vst [vmem:[#allocation6_spill] sm:$0xff] %v20335_v23  ;;  %v7599_v26 = vrot.slane %v20335_v23, 7  ;;  %v7983_v47 = vrot.slane %v20335_v23, 1 }
 0x55e   :  { %25370 = vst [vmem:[#allocation45_spill] sm:$0xff] %v20344_v62  ;;  %v20357_v16 = vsel %vm894_vm2, %v7979_v31, %v7980_v55  ;;  %v7597_v48 = vrot.slane %v20344_v62, 7  ;;  %v7981_v35 = vrot.slane %v20344_v62, 1  ;;  %v13223_v25 = vpop.f32.mrb[136].mxu1  ;;  %v20368_v39 = vsel %vm509_vm4, %v7595_v7, %v7596_v41 }
 0x55f   :  { %25374 = vst [vmem:[#allocation87_spill] sm:$0xff] %v20357_v16  ;;  %v7346_v12 = vadd.f32 %v13223_v25, %v20258_v44  ;;  %v6722_v11 = vpop.f32.mrb[137].mxu1  ;;  %v20372_v42 = vsel %vm509_vm4, %v7598_v29, %v7599_v26  ;;  %v20403_v22 = vsel %vm894_vm2, %v7982_v14, %v7983_v47 }
 0x560   :  { %v7344_v58 = vadd.f32 %v20258_v44, %v6722_v11  ;;  %v13224_v60 = vpop.f32.mrb[138].mxu1  ;;  %v20377_v19 = vsel %vm509_vm4, %v7596_v41, %v7597_v48  ;;  %v20381_v31 = vsel %vm509_vm4, %v7597_v48, %v7598_v29  ;;  %v20385_v63 = vsel %vm894_vm2, %v7981_v35, %v7982_v14  ;;  %25379 = vst [vmem:[#allocation53_spill] sm:$0xff] %v20403_v22 }
 0x561   :  { %25375 = vst [vmem:[#allocation49_spill] sm:$0xff] %v20385_v63  ;;  %v20387_v7 = vmax.f32 %v7346_v12, 0.0  ;;  %v7347_v59 = vadd.f32 %v13224_v60, %v20258_v44  ;;  %v6725_v21 = vpop.f32.mrb[139].mxu1  ;;  %v20399_v15 = vsel %vm894_vm2, %v7980_v55, %v7981_v35  ;;  %v25383_v55 = vld [vmem:[#allocation327_spill] sm:$0xff] }
 0x562   :  { %v20394_v49 = vmax.f32 %v7344_v58, 0.0  ;;  %v7345_v40 = vadd.f32 %v20258_v44, %v6725_v21  ;;  %25378 = vst [vmem:[#allocation50_spill] sm:$0xff] %v20399_v15  ;;  %v25385_v36 = vpack.c.bf16 %v25383_v55, %v25384_v8 }
 0x563   :  { %25376 = vst [vmem:[#allocation47_spill] sm:$0xff] %v20387_v7  ;;  %v20405_v46 = vmax.f32 %v7347_v59, 0.0  ;;  %13330 = vmatmul.mubr.msk.bf16.gmra.mrb[244].mxu1 %vm4896_vm6, %v25381_v9  ;;  %v7602_v4 = vrot.slane %v20387_v7, 7  ;;  %v7986_v56 = vrot.slane %v20387_v7, 1 }
 0x564   :  { %25377 = vst [vmem:[#allocation48_spill] sm:$0xff] %v20394_v49  ;;  %v7600_v32 = vrot.slane %v20394_v49, 7  ;;  %v7984_v29 = vrot.slane %v20394_v49, 1  ;;  %v20416_v41 = vmax.f32 %v7345_v40, 0.0  ;;  %13333 = vmatprep.mubr.msk.bf16.mxu1 %vm4896_vm6, %v25385_v36  ;;  %v25394_v36 = vld [vmem:[#allocation330_spill] sm:$0xff] }
 0x565   :  { %25380 = vst [vmem:[#allocation51_spill] sm:$0xff] %v20405_v46  ;;  %v7603_v24 = vrot.slane %v20405_v46, 7  ;;  %v7987_v18 = vrot.slane %v20405_v46, 1 }
 0x566   :  { %25382 = vst [vmem:[#allocation52_spill] sm:$0xff] %v20416_v41  ;;  %v7601_v48 = vrot.slane %v20416_v41, 7  ;;  %v7985_v35 = vrot.slane %v20416_v41, 1  ;;  %v13227_v12 = vpop.f32.mrb[140].mxu1  ;;  %v20433_v11 = vsel %vm509_vm4, %v7599_v26, %v7600_v32  ;;  %v20442_v21 = vsel %vm894_vm2, %v7983_v47, %v7984_v29  ;;  %v25442_v41 = vld [vmem:[#allocation7_spill] sm:$0xff] }
 0x567   :  { %v7350_v58 = vadd.f32 %v13227_v12, %v20258_v44  ;;  %v6738_v60 = vpop.f32.mrb[141].mxu1  ;;  %v20438_v59 = vsel %vm509_vm4, %v7602_v4, %v7603_v24  ;;  %25386 = vst [vmem:[#allocation54_spill] sm:$0xff] %v20442_v21  ;;  %v20446_v40 = vsel %vm894_vm2, %v7986_v56, %v7987_v18 }
 0x568   :  { %25387 = vst [vmem:[#allocation55_spill] sm:$0xff] %v20446_v40  ;;  %v7348_v9 = vadd.f32 %v20258_v44, %v6738_v60  ;;  %v13228_v55 = vpop.f32.mrb[142].mxu1  ;;  %v20451_v26 = vsel %vm509_vm4, %v7600_v32, %v7601_v48  ;;  %v20455_v8 = vsel %vm509_vm4, %v7601_v48, %v7602_v4  ;;  %v20471_v4 = vsel %vm894_vm2, %v7985_v35, %v7986_v56 }
 0x569   :  { %v20459_v47 = vmax.f32 %v7350_v58, 0.0  ;;  %v7351_v12 = vadd.f32 %v13228_v55, %v20258_v44  ;;  %v6741_v53 = vpop.f32.mrb[143].mxu1  ;;  %25390 = vst [vmem:[#allocation56_spill] sm:$0xff] %v20471_v4  ;;  %v20475_v48 = vsel %vm894_vm2, %v7984_v29, %v7985_v35  ;;  %v25393_v55 = vld [vmem:[#allocation329_spill] sm:$0xff]  ;;  %v25397_v29 = vld [vmem:[#allocation331_spill] sm:$0xff]  ;;  %v25398_v35 = vld [vmem:[#allocation332_spill] sm:$0xff] }
 0x56a   :  { %v20466_v32 = vmax.f32 %v7348_v9, 0.0  ;;  %v7349_v34 = vadd.f32 %v20258_v44, %v6741_v53  ;;  %25391 = vst [vmem:[#allocation13_spill] sm:$0xff] %v20475_v48  ;;  %v25395_v14 = vpack.c.bf16 %v25393_v55, %v25394_v36 }
 0x56b   :  { %25388 = vst [vmem:[#allocation9_spill] sm:$0xff] %v20459_v47  ;;  %v20477_v58 = vmax.f32 %v7351_v12, 0.0  ;;  %v7606_v53 = vrot.slane %v20459_v47, 7  ;;  %v25399_v12 = vpack.c.bf16 %v25397_v29, %v25398_v35  ;;  %v7990_v36 = vrot.slane %v20459_v47, 1 }
 0x56c   :  { %25389 = vst [vmem:[#allocation10_spill] sm:$0xff] %v20466_v32  ;;  %13334 = vmatmul.mubr.msk.bf16.gmra.mrb[248].mxu1 %vm4896_vm6, %v25395_v14  ;;  %v7604_v25 = vrot.slane %v20466_v32, 7  ;;  %v7988_v56 = vrot.slane %v20466_v32, 1  ;;  %v20488_v51 = vmax.f32 %v7349_v34, 0.0 }
 0x56d   :  { %25392 = vst [vmem:[#allocation11_spill] sm:$0xff] %v20477_v58  ;;  %13337 = vmatprep.mubr.msk.bf16.mxu1 %vm4896_vm6, %v25399_v12  ;;  %v7607_v14 = vrot.slane %v20477_v58, 7  ;;  %v7991_v55 = vrot.slane %v20477_v58, 1 }
 0x56e   :  { %25396 = vst [vmem:[#allocation12_spill] sm:$0xff] %v20488_v51  ;;  %v7605_v20 = vrot.slane %v20488_v51, 7  ;;  %v7989_v3 = vrot.slane %v20488_v51, 1  ;;  %v13231_v54 = vpop.f32.mrb[144].mxu1  ;;  %v20505_v29 = vsel %vm509_vm4, %v7603_v24, %v7604_v25  ;;  %v20514_v9 = vsel %vm894_vm2, %v7987_v18, %v7988_v56 }
 0x56f   :  { %v7354_v35 = vadd.f32 %v13231_v54, %v20258_v44  ;;  %v6754_v12 = vpop.f32.mrb[145].mxu1  ;;  %v20510_v27 = vsel %vm509_vm4, %v7606_v53, %v7607_v14  ;;  %25400 = vst [vmem:[#allocation57_spill] sm:$0xff] %v20514_v9  ;;  %v20518_v60 = vsel %vm894_vm2, %v7990_v36, %v7991_v55 }
 0x570   :  { %25401 = vst [vmem:[#allocation58_spill] sm:$0xff] %v20518_v60  ;;  %v7352_v34 = vadd.f32 %v20258_v44, %v6754_v12  ;;  %v13232_v30 = vpop.f32.mrb[146].mxu1  ;;  %v20523_v24 = vsel %vm509_vm4, %v7604_v25, %v7605_v20  ;;  %v20527_v54 = vsel %vm509_vm4, %v7605_v20, %v7606_v53  ;;  %v20543_v20 = vsel %vm894_vm2, %v7989_v3, %v7990_v36 }
 0x571   :  { %v20531_v18 = vmax.f32 %v7354_v35, 0.0  ;;  %v7355_v38 = vadd.f32 %v13232_v30, %v20258_v44  ;;  %v6757_v1 = vpop.f32.mrb[147].mxu1  ;;  %25404 = vst [vmem:[#allocation59_spill] sm:$0xff] %v20543_v20  ;;  %v20547_v53 = vsel %vm894_vm2, %v7988_v56, %v7989_v3  ;;  %v25407_v35 = vld [vmem:[#allocation333_spill] sm:$0xff] }
 0x572   :  { %v20538_v25 = vmax.f32 %v7352_v34, 0.0  ;;  %v7353_v48 = vadd.f32 %v20258_v44, %v6757_v1  ;;  %25405 = vst [vmem:[#allocation62_spill] sm:$0xff] %v20547_v53  ;;  %v25408_v52 = vpack.c.bf16 %v19526_v10, %v25407_v35 }
 0x573   :  { %25402 = vst [vmem:[#allocation14_spill] sm:$0xff] %v20531_v18  ;;  %v20549_v30 = vmax.f32 %v7355_v38, 0.0  ;;  %v7610_v1 = vrot.slane %v20531_v18, 7  ;;  %v7994_v3 = vrot.slane %v20531_v18, 1 }
 0x574   :  { %25403 = vst [vmem:[#allocation31_spill] sm:$0xff] %v20538_v25  ;;  %13338 = vmatmul.mubr.msk.bf16.gmra.mrb[252].mxu1 %vm4896_vm6, %v25408_v52  ;;  %v7608_v45 = vrot.slane %v20538_v25, 7  ;;  %v7992_v36 = vrot.slane %v20538_v25, 1  ;;  %v20560_v12 = vmax.f32 %v7353_v48, 0.0 }
 0x575   :  { %25406 = vst [vmem:[#allocation60_spill] sm:$0xff] %v20549_v30  ;;  %v7611_v38 = vrot.slane %v20549_v30, 7  ;;  %v7995_v56 = vrot.slane %v20549_v30, 1 }
 0x576   :  { %25409 = vst [vmem:[#allocation61_spill] sm:$0xff] %v20560_v12  ;;  %v7609_v52 = vrot.slane %v20560_v12, 7  ;;  %v7993_v35 = vrot.slane %v20560_v12, 1  ;;  %v13235_v53 = vpop.f32.mrb[148].mxu1  ;;  %v20573_v48 = vsel %vm509_vm4, %v7607_v14, %v7608_v45  ;;  %v20582_v10 = vsel %vm894_vm2, %v7991_v55, %v7992_v36 }
 0x577   :  { %v7358_v20 = vadd.f32 %v13235_v53, %v20258_v44  ;;  %v6770_v40 = vpop.f32.mrb[149].mxu1  ;;  %v20578_v9 = vsel %vm509_vm4, %v7610_v1, %v7611_v38  ;;  %25410 = vst [vmem:[#allocation63_spill] sm:$0xff] %v20582_v10  ;;  %v20586_v4 = vsel %vm894_vm2, %v7994_v3, %v7995_v56 }
 0x578   :  { %25411 = vst [vmem:[#allocation64_spill] sm:$0xff] %v20586_v4  ;;  %v7356_v34 = vadd.f32 %v20258_v44, %v6770_v40  ;;  %v13236_v22 = vpop.f32.mrb[150].mxu1  ;;  %v20591_v14 = vsel %vm509_vm4, %v7608_v45, %v7609_v52  ;;  %v20595_v53 = vsel %vm509_vm4, %v7609_v52, %v7610_v1  ;;  %v20611_v1 = vsel %vm894_vm2, %v7993_v35, %v7994_v3 }
 0x579   :  { %v20599_v55 = vmax.f32 %v7358_v20, 0.0  ;;  %v7359_v15 = vadd.f32 %v13236_v22, %v20258_v44  ;;  %v6773_v63 = vpop.f32.mrb[151].mxu1  ;;  %25414 = vst [vmem:[#allocation65_spill] sm:$0xff] %v20611_v1  ;;  %v20615_v20 = vsel %vm894_vm2, %v7992_v36, %v7993_v35 }
 0x57a   :  { %v20606_v45 = vmax.f32 %v7356_v34, 0.0  ;;  %v7357_v16 = vadd.f32 %v20258_v44, %v6773_v63  ;;  %25415 = vst [vmem:[#allocation19_spill] sm:$0xff] %v20615_v20 }
 0x57b   :  { %25412 = vst [vmem:[#allocation15_spill] sm:$0xff] %v20599_v55  ;;  %v20617_v22 = vmax.f32 %v7359_v15, 0.0  ;;  %v7614_v21 = vrot.slane %v20599_v55, 7  ;;  %v7998_v3 = vrot.slane %v20599_v55, 1 }
 0x57c   :  { %25413 = vst [vmem:[#allocation16_spill] sm:$0xff] %v20606_v45  ;;  %v7612_v34 = vrot.slane %v20606_v45, 7  ;;  %v7996_v6 = vrot.slane %v20606_v45, 1  ;;  %v20624_v63 = vmax.f32 %v7357_v16, 0.0 }
 0x57d   :  { %25416 = vst [vmem:[#allocation17_spill] sm:$0xff] %v20617_v22  ;;  %v7615_v40 = vrot.slane %v20617_v22, 7  ;;  %v7999_v36 = vrot.slane %v20617_v22, 1 }
 0x57e   :  { %25417 = vst [vmem:[#allocation18_spill] sm:$0xff] %v20624_v63  ;;  %v7613_v35 = vrot.slane %v20624_v63, 7  ;;  %v7997_v52 = vrot.slane %v20624_v63, 1  ;;  %v13239_v1 = vpop.f32.mrb[152].mxu1  ;;  %v20637_v16 = vsel %vm509_vm4, %v7611_v38, %v7612_v34  ;;  %v20646_v15 = vsel %vm894_vm2, %v7995_v56, %v7996_v6 }
 0x57f   :  { %v7362_v60 = vadd.f32 %v13239_v1, %v20258_v44  ;;  %v6786_v10 = vpop.f32.mrb[153].mxu1  ;;  %v20642_v28 = vsel %vm509_vm4, %v7614_v21, %v7615_v40  ;;  %25418 = vst [vmem:[#allocation20_spill] sm:$0xff] %v20646_v15  ;;  %v20650_v17 = vsel %vm894_vm2, %v7998_v3, %v7999_v36 }
 0x580   :  { %25419 = vst [vmem:[#allocation23_spill] sm:$0xff] %v20650_v17  ;;  %v7360_v20 = vadd.f32 %v20258_v44, %v6786_v10  ;;  %v13240_v55 = vpop.f32.mrb[154].mxu1  ;;  %v20655_v38 = vsel %vm509_vm4, %v7612_v34, %v7613_v35  ;;  %v20659_v1 = vsel %vm509_vm4, %v7613_v35, %v7614_v21  ;;  %v20675_v21 = vsel %vm894_vm2, %v7997_v52, %v7998_v3 }
 0x581   :  { %v20663_v56 = vmax.f32 %v7362_v60, 0.0  ;;  %v7363_v45 = vadd.f32 %v13240_v55, %v20258_v44  ;;  %v6789_v63 = vpop.f32.mrb[155].mxu1  ;;  %25422 = vst [vmem:[#allocation24_spill] sm:$0xff] %v20675_v21  ;;  %v20679_v60 = vsel %vm894_vm2, %v7996_v6, %v7997_v52 }
 0x582   :  { %v20670_v34 = vmax.f32 %v7360_v20, 0.0  ;;  %v7361_v30 = vadd.f32 %v20258_v44, %v6789_v63  ;;  %25423 = vst [vmem:[#allocation33_spill] sm:$0xff] %v20679_v60 }
 0x583   :  { %25420 = vst [vmem:[#allocation21_spill] sm:$0xff] %v20663_v56  ;;  %v20681_v55 = vmax.f32 %v7363_v45, 0.0  ;;  %v7618_v22 = vrot.slane %v20663_v56, 7  ;;  %v8002_v3 = vrot.slane %v20663_v56, 1 }
 0x584   :  { %25421 = vst [vmem:[#allocation22_spill] sm:$0xff] %v20670_v34  ;;  %v7616_v20 = vrot.slane %v20670_v34, 7  ;;  %v8000_v18 = vrot.slane %v20670_v34, 1  ;;  %v20688_v63 = vmax.f32 %v7361_v30, 0.0 }
 0x585   :  { %25424 = vst [vmem:[#allocation25_spill] sm:$0xff] %v20681_v55  ;;  %v7619_v10 = vrot.slane %v20681_v55, 7  ;;  %v8003_v6 = vrot.slane %v20681_v55, 1 }
 0x586   :  { %25425 = vst [vmem:[#allocation32_spill] sm:$0xff] %v20688_v63  ;;  %v7617_v52 = vrot.slane %v20688_v63, 7  ;;  %v8001_v35 = vrot.slane %v20688_v63, 1  ;;  %v13243_v21 = vpop.f32.mrb[156].mxu1  ;;  %v20701_v30 = vsel %vm509_vm4, %v7615_v40, %v7616_v20  ;;  %v20710_v45 = vsel %vm894_vm2, %v7999_v36, %v8000_v18 }
 0x587   :  { %v7366_v4 = vadd.f32 %v13243_v21, %v20258_v44  ;;  %v6802_v15 = vpop.f32.mrb[157].mxu1  ;;  %v20706_v25 = vsel %vm509_vm4, %v7618_v22, %v7619_v10  ;;  %25426 = vst [vmem:[#allocation30_spill] sm:$0xff] %v20710_v45  ;;  %v20714_v56 = vsel %vm894_vm2, %v8002_v3, %v8003_v6 }
 0x588   :  { %25427 = vst [vmem:[#allocation165_spill] sm:$0xff] %v20714_v56  ;;  %v7364_v60 = vadd.f32 %v20258_v44, %v6802_v15  ;;  %v13244_v55 = vpop.f32.mrb[158].mxu1  ;;  %v20719_v40 = vsel %vm509_vm4, %v7616_v20, %v7617_v52  ;;  %v20723_v21 = vsel %vm509_vm4, %v7617_v52, %v7618_v22  ;;  %v20739_v22 = vsel %vm894_vm2, %v8001_v35, %v8002_v3 }
 0x589   :  { %v20727_v36 = vmax.f32 %v7366_v4, 0.0  ;;  %v7367_v63 = vadd.f32 %v13244_v55, %v20258_v44  ;;  %v6805_v12 = vpop.f32.mrb[159].mxu1  ;;  %25430 = vst [vmem:[#allocation166_spill] sm:$0xff] %v20739_v22  ;;  %v20743_v4 = vsel %vm894_vm2, %v8000_v18, %v8001_v35 }
 0x58a   :  { %v20734_v20 = vmax.f32 %v7364_v60, 0.0  ;;  %v7365_v58 = vadd.f32 %v20258_v44, %v6805_v12  ;;  %25431 = vst [vmem:[#allocation191_spill] sm:$0xff] %v20743_v4 }
 0x58b   :  { %25428 = vst [vmem:[#allocation161_spill] sm:$0xff] %v20727_v36  ;;  %v20745_v55 = vmax.f32 %v7367_v63, 0.0  ;;  %v7622_v34 = vrot.slane %v20727_v36, 7  ;;  %v8006_v3 = vrot.slane %v20727_v36, 1 }
 0x58c   :  { %25429 = vst [vmem:[#allocation162_spill] sm:$0xff] %v20734_v20  ;;  %v7620_v60 = vrot.slane %v20734_v20, 7  ;;  %v8004_v47 = vrot.slane %v20734_v20, 1  ;;  %v20752_v12 = vmax.f32 %v7365_v58, 0.0 }
 0x58d   :  { %25432 = vst [vmem:[#allocation189_spill] sm:$0xff] %v20745_v55  ;;  %v7623_v15 = vrot.slane %v20745_v55, 7  ;;  %v8007_v18 = vrot.slane %v20745_v55, 1 }
 0x58e   :  { %25433 = vst [vmem:[#allocation190_spill] sm:$0xff] %v20752_v12  ;;  %v7621_v63 = vrot.slane %v20752_v12, 7  ;;  %v8005_v52 = vrot.slane %v20752_v12, 1  ;;  %v13247_v22 = vpop.f32.mrb[160].mxu1  ;;  %v20765_v58 = vsel %vm509_vm4, %v7619_v10, %v7620_v60  ;;  %v20774_v35 = vsel %vm894_vm2, %v8003_v6, %v8004_v47 }
 0x58f   :  { %v7370_v17 = vadd.f32 %v13247_v22, %v20258_v44  ;;  %v6818_v45 = vpop.f32.mrb[161].mxu1  ;;  %v20770_v32 = vsel %vm509_vm4, %v7622_v34, %v7623_v15  ;;  %25434 = vst [vmem:[#allocation192_spill] sm:$0xff] %v20774_v35  ;;  %v20778_v36 = vsel %vm894_vm2, %v8006_v3, %v8007_v18 }
 0x590   :  { %25435 = vst [vmem:[#allocation201_spill] sm:$0xff] %v20778_v36  ;;  %v7368_v4 = vadd.f32 %v20258_v44, %v6818_v45  ;;  %v13248_v55 = vpop.f32.mrb[162].mxu1  ;;  %v20783_v10 = vsel %vm509_vm4, %v7620_v60, %v7621_v63  ;;  %v20787_v22 = vsel %vm509_vm4, %v7621_v63, %v7622_v34  ;;  %v20803_v34 = vsel %vm894_vm2, %v8005_v52, %v8006_v3 }
 0x591   :  { %v20791_v6 = vmax.f32 %v7370_v17, 0.0  ;;  %v7371_v12 = vadd.f32 %v13248_v55, %v20258_v44  ;;  %v6821_v51 = vpop.f32.mrb[163].mxu1  ;;  %25438 = vst [vmem:[#allocation202_spill] sm:$0xff] %v20803_v34  ;;  %v20807_v17 = vsel %vm894_vm2, %v8004_v47, %v8005_v52 }
 0x592   :  { %v20798_v60 = vmax.f32 %v7368_v4, 0.0  ;;  %v7369_v46 = vadd.f32 %v20258_v44, %v6821_v51  ;;  %25439 = vst [vmem:[#allocation211_spill] sm:$0xff] %v20807_v17 }
 0x593   :  { %25436 = vst [vmem:[#allocation199_spill] sm:$0xff] %v20791_v6  ;;  %v20809_v55 = vmax.f32 %v7371_v12, 0.0  ;;  %v7626_v20 = vrot.slane %v20791_v6, 7  ;;  %v8010_v3 = vrot.slane %v20791_v6, 1 }
 0x594   :  { %25437 = vst [vmem:[#allocation200_spill] sm:$0xff] %v20798_v60  ;;  %v7624_v4 = vrot.slane %v20798_v60, 7  ;;  %v8008_v7 = vrot.slane %v20798_v60, 1  ;;  %v20816_v51 = vmax.f32 %v7369_v46, 0.0 }
 0x595   :  { %25440 = vst [vmem:[#allocation209_spill] sm:$0xff] %v20809_v55  ;;  %v7627_v45 = vrot.slane %v20809_v55, 7  ;;  %v8011_v47 = vrot.slane %v20809_v55, 1 }
 0x596   :  { %25441 = vst [vmem:[#allocation210_spill] sm:$0xff] %v20816_v51  ;;  %v7815_v12 = vsel %vm509_vm4, %v7623_v15, %v7624_v4  ;;  %v8199_v63 = vsel %vm894_vm2, %v8007_v18, %v8008_v7  ;;  %v7625_v17 = vrot.slane %v20816_v51, 7  ;;  %v8009_v46 = vrot.slane %v20816_v51, 1  ;;  %v13251_v34 = vpop.f32.mrb[164].mxu1 }
 0x597   :  { %v7374_v35 = vadd.f32 %v13251_v34, %v20258_v44  ;;  %v6834_v49 = vpop.f32.mrb[165].mxu1  ;;  %v20833_v5 = vmul.f32 %v25442_v41, %v7815_v12  ;;  %v20837_v15 = vsel %vm509_vm4, %v7626_v20, %v7627_v45  ;;  %v25444_v34 = vld [vmem:[#allocation8_spill] sm:$0xff] }
 0x598   :  { %v7372_v18 = vadd.f32 %v20258_v44, %v6834_v49  ;;  %v13252_v52 = vpop.f32.mrb[166].mxu1  ;;  %v20842_v6 = vsel %vm509_vm4, %v7624_v4, %v7625_v17  ;;  %v20846_v56 = vsel %vm509_vm4, %v7625_v17, %v7626_v20  ;;  %v20849_v55 = vmul.f32 %v25444_v34, %v8199_v63 }
 0x599   :  { %25443 = vst [vmem:[#allocation212_spill] sm:$0xff] %v20846_v56  ;;  %v20851_v12 = vmax.f32 %v7374_v35, 0.0  ;;  %v7375_v60 = vadd.f32 %v13252_v52, %v20258_v44  ;;  %v6837_v51 = vpop.f32.mrb[167].mxu1  ;;  %v20865_v35 = vsel %vm894_vm2, %v8009_v46, %v8010_v3  ;;  %v20873_v23 = vsel %vm894_vm2, %v8008_v7, %v8009_v46 }
 0x59a   :  { %25445 = vst [vmem:[#allocation221_spill] sm:$0xff] %v20849_v55  ;;  %v20858_v4 = vmax.f32 %v7372_v18, 0.0  ;;  %v7373_v43 = vadd.f32 %v20258_v44, %v6837_v51  ;;  %25448 = vst [vmem:[#allocation222_spill] sm:$0xff] %v20865_v35  ;;  %v20887_v7 = vsel %vm894_vm2, %v8010_v3, %v8011_v47 }
 0x59b   :  { %25446 = vst [vmem:[#allocation219_spill] sm:$0xff] %v20851_v12  ;;  %v7630_v17 = vrot.slane %v20851_v12, 7  ;;  %v8014_v63 = vrot.slane %v20851_v12, 1  ;;  %v20869_v52 = vmax.f32 %v7375_v60, 0.0  ;;  %25450 = vst [vmem:[#allocation230_spill] sm:$0xff] %v20873_v23 }
 0x59c   :  { %25447 = vst [vmem:[#allocation220_spill] sm:$0xff] %v20858_v4  ;;  %v7628_v18 = vrot.slane %v20858_v4, 7  ;;  %v8012_v51 = vrot.slane %v20858_v4, 1  ;;  %v20877_v49 = vmax.f32 %v7373_v43, 0.0  ;;  %25452 = vst [vmem:[#allocation233_spill] sm:$0xff] %v20887_v7 }
 0x59d   :  { %25449 = vst [vmem:[#allocation232_spill] sm:$0xff] %v20869_v52  ;;  %v7631_v36 = vrot.slane %v20869_v52, 7  ;;  %v8015_v55 = vrot.slane %v20869_v52, 1 }
 0x59e   :  { %25451 = vst [vmem:[#allocation231_spill] sm:$0xff] %v20877_v49  ;;  %v7629_v46 = vrot.slane %v20877_v49, 7  ;;  %v8013_v62 = vrot.slane %v20877_v49, 1  ;;  %v13255_v2 = vpop.f32.mrb[168].mxu1  ;;  %v20895_v20 = vsel %vm509_vm4, %v7627_v45, %v7628_v18  ;;  %v20904_v3 = vsel %vm894_vm2, %v8011_v47, %v8012_v51 }
 0x59f   :  { %25453 = vst [vmem:[#allocation243_spill] sm:$0xff] %v20895_v20  ;;  %v7378_v23 = vadd.f32 %v13255_v2, %v20258_v44  ;;  %v6850_v35 = vpop.f32.mrb[169].mxu1  ;;  %v20900_v60 = vsel %vm509_vm4, %v7630_v17, %v7631_v36  ;;  %25455 = vst [vmem:[#allocation242_spill] sm:$0xff] %v20904_v3  ;;  %v20908_v12 = vsel %vm894_vm2, %v8014_v63, %v8015_v55 }
 0x5a0   :  { %25454 = vst [vmem:[#allocation241_spill] sm:$0xff] %v20900_v60  ;;  %25456 = vst [vmem:[#allocation244_spill] sm:$0xff] %v20908_v12  ;;  %v7376_v43 = vadd.f32 %v20258_v44, %v6850_v35  ;;  %v13256_v52 = vpop.f32.mrb[170].mxu1  ;;  %v20913_v45 = vsel %vm509_vm4, %v7628_v18, %v7629_v46  ;;  %v20917_v2 = vsel %vm509_vm4, %v7629_v46, %v7630_v17 }
 0x5a1   :  { %25457 = vst [vmem:[#allocation253_spill] sm:$0xff] %v20913_v45  ;;  %25458 = vst [vmem:[#allocation251_spill] sm:$0xff] %v20917_v2  ;;  %v20921_v47 = vmax.f32 %v7378_v23, 0.0  ;;  %v7379_v49 = vadd.f32 %v13256_v52, %v20258_v44  ;;  %v6853_v37 = vpop.f32.mrb[171].mxu1  ;;  %v20933_v17 = vsel %vm894_vm2, %v8013_v62, %v8014_v63  ;;  %v20937_v23 = vsel %vm894_vm2, %v8012_v51, %v8013_v62 }
 0x5a2   :  { %v20928_v18 = vmax.f32 %v7376_v43, 0.0  ;;  %v7377_v56 = vadd.f32 %v20258_v44, %v6853_v37  ;;  %25461 = vst [vmem:[#allocation263_spill] sm:$0xff] %v20933_v17  ;;  %25462 = vst [vmem:[#allocation261_spill] sm:$0xff] %v20937_v23 }
 0x5a3   :  { %25459 = vst [vmem:[#allocation252_spill] sm:$0xff] %v20921_v47  ;;  %v20939_v52 = vmax.f32 %v7379_v49, 0.0  ;;  %v7634_v4 = vrot.slane %v20921_v47, 7  ;;  %v8018_v63 = vrot.slane %v20921_v47, 1 }
 0x5a4   :  { %25460 = vst [vmem:[#allocation254_spill] sm:$0xff] %v20928_v18  ;;  %v7632_v43 = vrot.slane %v20928_v18, 7  ;;  %v8016_v61 = vrot.slane %v20928_v18, 1  ;;  %v20946_v37 = vmax.f32 %v7377_v56, 0.0 }
 0x5a5   :  { %25463 = vst [vmem:[#allocation262_spill] sm:$0xff] %v20939_v52  ;;  %v7635_v35 = vrot.slane %v20939_v52, 7  ;;  %v8019_v62 = vrot.slane %v20939_v52, 1 }
 0x5a6   :  { %25464 = vst [vmem:[#allocation264_spill] sm:$0xff] %v20946_v37  ;;  %v7633_v51 = vrot.slane %v20946_v37, 7  ;;  %v8017_v46 = vrot.slane %v20946_v37, 1  ;;  %v13259_v17 = vpop.f32.mrb[172].mxu1  ;;  %v20959_v56 = vsel %vm509_vm4, %v7631_v36, %v7632_v43  ;;  %v20968_v49 = vsel %vm894_vm2, %v8015_v55, %v8016_v61 }
 0x5a7   :  { %25465 = vst [vmem:[#allocation270_spill] sm:$0xff] %v20959_v56  ;;  %v7382_v7 = vadd.f32 %v13259_v17, %v20258_v44  ;;  %v6866_v3 = vpop.f32.mrb[173].mxu1  ;;  %v20964_v2 = vsel %vm509_vm4, %v7634_v4, %v7635_v35  ;;  %25467 = vst [vmem:[#allocation269_spill] sm:$0xff] %v20968_v49  ;;  %v20972_v47 = vsel %vm894_vm2, %v8018_v63, %v8019_v62 }
 0x5a8   :  { %25466 = vst [vmem:[#allocation268_spill] sm:$0xff] %v20964_v2  ;;  %25468 = vst [vmem:[#allocation271_spill] sm:$0xff] %v20972_v47  ;;  %v7380_v23 = vadd.f32 %v20258_v44, %v6866_v3  ;;  %v13260_v52 = vpop.f32.mrb[174].mxu1  ;;  %v20977_v36 = vsel %vm509_vm4, %v7632_v43, %v7633_v51  ;;  %v20981_v17 = vsel %vm509_vm4, %v7633_v51, %v7634_v4 }
 0x5a9   :  { %25469 = vst [vmem:[#allocation277_spill] sm:$0xff] %v20977_v36  ;;  %25470 = vst [vmem:[#allocation275_spill] sm:$0xff] %v20981_v17  ;;  %v20985_v55 = vmax.f32 %v7382_v7, 0.0  ;;  %v7383_v37 = vadd.f32 %v13260_v52, %v20258_v44  ;;  %v6869_v60 = vpop.f32.mrb[175].mxu1  ;;  %v20997_v4 = vsel %vm894_vm2, %v8017_v46, %v8018_v63  ;;  %v21001_v7 = vsel %vm894_vm2, %v8016_v61, %v8017_v46 }
 0x5aa   :  { %v20992_v43 = vmax.f32 %v7380_v23, 0.0  ;;  %v7381_v45 = vadd.f32 %v20258_v44, %v6869_v60  ;;  %25473 = vst [vmem:[#allocation283_spill] sm:$0xff] %v20997_v4  ;;  %25474 = vst [vmem:[#allocation281_spill] sm:$0xff] %v21001_v7 }
 0x5ab   :  { %25471 = vst [vmem:[#allocation276_spill] sm:$0xff] %v20985_v55  ;;  %v21003_v52 = vmax.f32 %v7383_v37, 0.0  ;;  %v7638_v18 = vrot.slane %v20985_v55, 7  ;;  %v8022_v63 = vrot.slane %v20985_v55, 1 }
 0x5ac   :  { %25472 = vst [vmem:[#allocation278_spill] sm:$0xff] %v20992_v43  ;;  %v7636_v23 = vrot.slane %v20992_v43, 7  ;;  %v8020_v20 = vrot.slane %v20992_v43, 1  ;;  %v21010_v60 = vmax.f32 %v7381_v45, 0.0 }
 0x5ad   :  { %25475 = vst [vmem:[#allocation282_spill] sm:$0xff] %v21003_v52  ;;  %v7639_v3 = vrot.slane %v21003_v52, 7  ;;  %v8023_v61 = vrot.slane %v21003_v52, 1 }
 0x5ae   :  { %25476 = vst [vmem:[#allocation284_spill] sm:$0xff] %v21010_v60  ;;  %v7637_v37 = vrot.slane %v21010_v60, 7  ;;  %v8021_v51 = vrot.slane %v21010_v60, 1  ;;  %v13263_v4 = vpop.f32.mrb[176].mxu1  ;;  %v21023_v45 = vsel %vm509_vm4, %v7635_v35, %v7636_v23  ;;  %v21032_v46 = vsel %vm894_vm2, %v8019_v62, %v8020_v20 }
 0x5af   :  { %25477 = vst [vmem:[#allocation290_spill] sm:$0xff] %v21023_v45  ;;  %v7386_v12 = vadd.f32 %v13263_v4, %v20258_v44  ;;  %v6882_v49 = vpop.f32.mrb[177].mxu1  ;;  %v21028_v17 = vsel %vm509_vm4, %v7638_v18, %v7639_v3  ;;  %25479 = vst [vmem:[#allocation289_spill] sm:$0xff] %v21032_v46  ;;  %v21036_v55 = vsel %vm894_vm2, %v8022_v63, %v8023_v61 }
 0x5b0   :  { %25478 = vst [vmem:[#allocation288_spill] sm:$0xff] %v21028_v17  ;;  %25480 = vst [vmem:[#allocation291_spill] sm:$0xff] %v21036_v55  ;;  %v7384_v7 = vadd.f32 %v20258_v44, %v6882_v49  ;;  %v13264_v52 = vpop.f32.mrb[178].mxu1  ;;  %v21041_v35 = vsel %vm509_vm4, %v7636_v23, %v7637_v37  ;;  %v21045_v4 = vsel %vm509_vm4, %v7637_v37, %v7638_v18 }
 0x5b1   :  { %25481 = vst [vmem:[#allocation297_spill] sm:$0xff] %v21041_v35  ;;  %25482 = vst [vmem:[#allocation295_spill] sm:$0xff] %v21045_v4  ;;  %v21049_v62 = vmax.f32 %v7386_v12, 0.0  ;;  %v7387_v60 = vadd.f32 %v13264_v52, %v20258_v44  ;;  %v6885_v2 = vpop.f32.mrb[179].mxu1  ;;  %v21061_v18 = vsel %vm894_vm2, %v8021_v51, %v8022_v63  ;;  %v21065_v12 = vsel %vm894_vm2, %v8020_v20, %v8021_v51 }
 0x5b2   :  { %v21056_v23 = vmax.f32 %v7384_v7, 0.0  ;;  %v7385_v36 = vadd.f32 %v20258_v44, %v6885_v2  ;;  %25485 = vst [vmem:[#allocation303_spill] sm:$0xff] %v21061_v18  ;;  %25486 = vst [vmem:[#allocation301_spill] sm:$0xff] %v21065_v12 }
 0x5b3   :  { %25483 = vst [vmem:[#allocation296_spill] sm:$0xff] %v21049_v62  ;;  %v21067_v52 = vmax.f32 %v7387_v60, 0.0  ;;  %v7642_v43 = vrot.slane %v21049_v62, 7  ;;  %v8026_v63 = vrot.slane %v21049_v62, 1 }
 0x5b4   :  { %25484 = vst [vmem:[#allocation298_spill] sm:$0xff] %v21056_v23  ;;  %v7640_v7 = vrot.slane %v21056_v23, 7  ;;  %v8024_v56 = vrot.slane %v21056_v23, 1  ;;  %v21074_v2 = vmax.f32 %v7385_v36, 0.0 }
 0x5b5   :  { %25487 = vst [vmem:[#allocation302_spill] sm:$0xff] %v21067_v52  ;;  %v7643_v49 = vrot.slane %v21067_v52, 7  ;;  %v8027_v20 = vrot.slane %v21067_v52, 1 }
 0x5b6   :  { %25488 = vst [vmem:[#allocation304_spill] sm:$0xff] %v21074_v2  ;;  %v7641_v60 = vrot.slane %v21074_v2, 7  ;;  %v8025_v37 = vrot.slane %v21074_v2, 1  ;;  %v13267_v18 = vpop.f32.mrb[180].mxu1  ;;  %v21087_v36 = vsel %vm509_vm4, %v7639_v3, %v7640_v7  ;;  %v21096_v51 = vsel %vm894_vm2, %v8023_v61, %v8024_v56 }
 0x5b7   :  { %25489 = vst [vmem:[#allocation27_spill] sm:$0xff] %v21087_v36  ;;  %v7390_v47 = vadd.f32 %v13267_v18, %v20258_v44  ;;  %v6898_v46 = vpop.f32.mrb[181].mxu1  ;;  %v21092_v4 = vsel %vm509_vm4, %v7642_v43, %v7643_v49  ;;  %25491 = vst [vmem:[#allocation39_spill] sm:$0xff] %v21096_v51  ;;  %v21100_v62 = vsel %vm894_vm2, %v8026_v63, %v8027_v20 }
 0x5b8   :  { %25490 = vst [vmem:[#allocation26_spill] sm:$0xff] %v21092_v4  ;;  %25492 = vst [vmem:[#allocation36_spill] sm:$0xff] %v21100_v62  ;;  %v7388_v12 = vadd.f32 %v20258_v44, %v6898_v46  ;;  %v13268_v52 = vpop.f32.mrb[182].mxu1  ;;  %v21105_v3 = vsel %vm509_vm4, %v7640_v7, %v7641_v60  ;;  %v21109_v18 = vsel %vm509_vm4, %v7641_v60, %v7642_v43 }
 0x5b9   :  { %25493 = vst [vmem:[#allocation5_spill] sm:$0xff] %v21105_v3  ;;  %25494 = vst [vmem:[#allocation35_spill] sm:$0xff] %v21109_v18  ;;  %v21113_v61 = vmax.f32 %v7390_v47, 0.0  ;;  %v7391_v2 = vadd.f32 %v13268_v52, %v20258_v44  ;;  %v6901_v17 = vpop.f32.mrb[183].mxu1  ;;  %v21125_v43 = vsel %vm894_vm2, %v8025_v37, %v8026_v63  ;;  %v21129_v47 = vsel %vm894_vm2, %v8024_v56, %v8025_v37 }
 0x5ba   :  { %v21120_v7 = vmax.f32 %v7388_v12, 0.0  ;;  %v7389_v35 = vadd.f32 %v20258_v44, %v6901_v17  ;;  %25497 = vst [vmem:[#allocation41_spill] sm:$0xff] %v21125_v43  ;;  %25498 = vst [vmem:[#allocation42_spill] sm:$0xff] %v21129_v47 }
 0x5bb   :  { %25495 = vst [vmem:[#allocation28_spill] sm:$0xff] %v21113_v61  ;;  %v21131_v52 = vmax.f32 %v7391_v2, 0.0  ;;  %v7646_v23 = vrot.slane %v21113_v61, 7  ;;  %v8030_v63 = vrot.slane %v21113_v61, 1 }
 0x5bc   :  { %25496 = vst [vmem:[#allocation66_spill] sm:$0xff] %v21120_v7  ;;  %v7644_v12 = vrot.slane %v21120_v7, 7  ;;  %v8028_v45 = vrot.slane %v21120_v7, 1  ;;  %v21138_v17 = vmax.f32 %v7389_v35, 0.0 }
 0x5bd   :  { %25499 = vst [vmem:[#allocation38_spill] sm:$0xff] %v21131_v52  ;;  %v7647_v46 = vrot.slane %v21131_v52, 7  ;;  %v8031_v56 = vrot.slane %v21131_v52, 1 }
 0x5be   :  { %25500 = vst [vmem:[#allocation75_spill] sm:$0xff] %v21138_v17  ;;  %v7645_v2 = vrot.slane %v21138_v17, 7  ;;  %v8029_v60 = vrot.slane %v21138_v17, 1  ;;  %v13271_v43 = vpop.f32.mrb[184].mxu1  ;;  %v21151_v35 = vsel %vm509_vm4, %v7643_v49, %v7644_v12  ;;  %v21160_v37 = vsel %vm894_vm2, %v8027_v20, %v8028_v45 }
 0x5bf   :  { %25501 = vst [vmem:[#allocation71_spill] sm:$0xff] %v21151_v35  ;;  %v7394_v55 = vadd.f32 %v13271_v43, %v20258_v44  ;;  %v6914_v51 = vpop.f32.mrb[185].mxu1  ;;  %v21156_v18 = vsel %vm509_vm4, %v7646_v23, %v7647_v46  ;;  %25503 = vst [vmem:[#allocation70_spill] sm:$0xff] %v21160_v37  ;;  %v21164_v61 = vsel %vm894_vm2, %v8030_v63, %v8031_v56 }
 0x5c0   :  { %25502 = vst [vmem:[#allocation73_spill] sm:$0xff] %v21156_v18  ;;  %25504 = vst [vmem:[#allocation85_spill] sm:$0xff] %v21164_v61  ;;  %v7392_v47 = vadd.f32 %v20258_v44, %v6914_v51  ;;  %v13272_v52 = vpop.f32.mrb[186].mxu1  ;;  %v21169_v49 = vsel %vm509_vm4, %v7644_v12, %v7645_v2  ;;  %v21173_v43 = vsel %vm509_vm4, %v7645_v2, %v7646_v23 }
 0x5c1   :  { %25505 = vst [vmem:[#allocation81_spill] sm:$0xff] %v21169_v49  ;;  %25506 = vst [vmem:[#allocation84_spill] sm:$0xff] %v21173_v43  ;;  %v21177_v20 = vmax.f32 %v7394_v55, 0.0  ;;  %v7395_v17 = vadd.f32 %v13272_v52, %v20258_v44  ;;  %v6917_v4 = vpop.f32.mrb[187].mxu1  ;;  %v21189_v23 = vsel %vm894_vm2, %v8029_v60, %v8030_v63  ;;  %v21193_v55 = vsel %vm894_vm2, %v8028_v45, %v8029_v60 }
 0x5c2   :  { %v21184_v12 = vmax.f32 %v7392_v47, 0.0  ;;  %v7393_v3 = vadd.f32 %v20258_v44, %v6917_v4  ;;  %25509 = vst [vmem:[#allocation89_spill] sm:$0xff] %v21189_v23  ;;  %25510 = vst [vmem:[#allocation92_spill] sm:$0xff] %v21193_v55 }
 0x5c3   :  { %25507 = vst [vmem:[#allocation80_spill] sm:$0xff] %v21177_v20  ;;  %v21195_v52 = vmax.f32 %v7395_v17, 0.0  ;;  %v7650_v7 = vrot.slane %v21177_v20, 7  ;;  %v8034_v63 = vrot.slane %v21177_v20, 1 }
 0x5c4   :  { %25508 = vst [vmem:[#allocation93_spill] sm:$0xff] %v21184_v12  ;;  %v7648_v47 = vrot.slane %v21184_v12, 7  ;;  %v8032_v36 = vrot.slane %v21184_v12, 1  ;;  %v21202_v4 = vmax.f32 %v7393_v3, 0.0 }
 0x5c5   :  { %25511 = vst [vmem:[#allocation88_spill] sm:$0xff] %v21195_v52  ;;  %v7651_v51 = vrot.slane %v21195_v52, 7  ;;  %v8035_v45 = vrot.slane %v21195_v52, 1 }
 0x5c6   :  { %25512 = vst [vmem:[#allocation100_spill] sm:$0xff] %v21202_v4  ;;  %v7649_v17 = vrot.slane %v21202_v4, 7  ;;  %v8033_v2 = vrot.slane %v21202_v4, 1  ;;  %v13275_v23 = vpop.f32.mrb[188].mxu1  ;;  %v21215_v3 = vsel %vm509_vm4, %v7647_v46, %v7648_v47  ;;  %v21224_v60 = vsel %vm894_vm2, %v8031_v56, %v8032_v36  ;;  %v21233_v46 = vld [vmem:[%s23291_s4] ss:$0 sm:$0xff] }
 0x5c7   :  { %25513 = vst [vmem:[#allocation96_spill] sm:$0xff] %v21215_v3  ;;  %v7398_v62 = vadd.f32 %v13275_v23, %v20258_v44  ;;  %v6930_v37 = vpop.f32.mrb[189].mxu1  ;;  %v21220_v43 = vsel %vm509_vm4, %v7650_v7, %v7651_v51  ;;  %25515 = vst [vmem:[#allocation95_spill] sm:$0xff] %v21224_v60  ;;  %v21228_v20 = vsel %vm894_vm2, %v8034_v63, %v8035_v45 }
 0x5c8   :  { %25514 = vst [vmem:[#allocation98_spill] sm:$0xff] %v21220_v43  ;;  %25516 = vst [vmem:[#allocation106_spill] sm:$0xff] %v21228_v20  ;;  %v7396_v44 = vadd.f32 %v21233_v46, %v6930_v37  ;;  %v13276_v23 = vpop.f32.mrb[190].mxu1  ;;  %v21238_v55 = vsel %vm509_vm4, %v7648_v47, %v7649_v17  ;;  %v21242_v56 = vsel %vm509_vm4, %v7649_v17, %v7650_v7 }
 0x5c9   :  { %25517 = vst [vmem:[#allocation102_spill] sm:$0xff] %v21238_v55  ;;  %25518 = vst [vmem:[#allocation105_spill] sm:$0xff] %v21242_v56  ;;  %v21246_v12 = vmax.f32 %v7398_v62, 0.0  ;;  %v7399_v4 = vadd.f32 %v21233_v46, %v13276_v23  ;;  %v6933_v18 = vpop.f32.mrb[191].mxu1  ;;  %v21258_v7 = vsel %vm894_vm2, %v8033_v2, %v8034_v63  ;;  %v21262_v62 = vsel %vm894_vm2, %v8032_v36, %v8033_v2 }
 0x5ca   :  { %v21253_v47 = vmax.f32 %v7396_v44, 0.0  ;;  %v7397_v49 = vadd.f32 %v21233_v46, %v6933_v18  ;;  %25521 = vst [vmem:[#allocation109_spill] sm:$0xff] %v21258_v7  ;;  %25522 = vst [vmem:[#allocation112_spill] sm:$0xff] %v21262_v62 }
 0x5cb   :  { %25519 = vst [vmem:[#allocation101_spill] sm:$0xff] %v21246_v12  ;;  %v21264_v17 = vmax.f32 %v7399_v4, 0.0  ;;  %v7654_v52 = vrot.slane %v21246_v12, 7  ;;  %v8038_v63 = vrot.slane %v21246_v12, 1 }
 0x5cc   :  { %25520 = vst [vmem:[#allocation113_spill] sm:$0xff] %v21253_v47  ;;  %v7652_v44 = vrot.slane %v21253_v47, 7  ;;  %v8036_v35 = vrot.slane %v21253_v47, 1  ;;  %v21271_v18 = vmax.f32 %v7397_v49, 0.0 }
 0x5cd   :  { %25523 = vst [vmem:[#allocation108_spill] sm:$0xff] %v21264_v17  ;;  %v7655_v37 = vrot.slane %v21264_v17, 7  ;;  %v8039_v36 = vrot.slane %v21264_v17, 1 }
 0x5ce   :  { %25524 = vst [vmem:[#allocation119_spill] sm:$0xff] %v21271_v18  ;;  %v7653_v4 = vrot.slane %v21271_v18, 7  ;;  %v8037_v23 = vrot.slane %v21271_v18, 1  ;;  %v13279_v7 = vpop.f32.mrb[192].mxu1  ;;  %v21284_v49 = vsel %vm509_vm4, %v7651_v51, %v7652_v44  ;;  %v21293_v2 = vsel %vm894_vm2, %v8035_v45, %v8036_v35 }
 0x5cf   :  { %25525 = vst [vmem:[#allocation116_spill] sm:$0xff] %v21284_v49  ;;  %v7402_v61 = vadd.f32 %v21233_v46, %v13279_v7  ;;  %v6946_v60 = vpop.f32.mrb[193].mxu1  ;;  %v21289_v56 = vsel %vm509_vm4, %v7654_v52, %v7655_v37  ;;  %25527 = vst [vmem:[#allocation115_spill] sm:$0xff] %v21293_v2  ;;  %v21297_v12 = vsel %vm894_vm2, %v8038_v63, %v8039_v36 }
 0x5d0   :  { %25526 = vst [vmem:[#allocation117_spill] sm:$0xff] %v21289_v56  ;;  %25528 = vst [vmem:[#allocation126_spill] sm:$0xff] %v21297_v12  ;;  %v7400_v62 = vadd.f32 %v21233_v46, %v6946_v60  ;;  %v13280_v17 = vpop.f32.mrb[194].mxu1  ;;  %v21302_v51 = vsel %vm509_vm4, %v7652_v44, %v7653_v4  ;;  %v21306_v7 = vsel %vm509_vm4, %v7653_v4, %v7654_v52 }
 0x5d1   :  { %25529 = vst [vmem:[#allocation122_spill] sm:$0xff] %v21302_v51  ;;  %25530 = vst [vmem:[#allocation124_spill] sm:$0xff] %v21306_v7  ;;  %v21310_v45 = vmax.f32 %v7402_v61, 0.0  ;;  %v7403_v18 = vadd.f32 %v21233_v46, %v13280_v17  ;;  %v6949_v43 = vpop.f32.mrb[195].mxu1  ;;  %v21322_v52 = vsel %vm894_vm2, %v8037_v23, %v8038_v63  ;;  %v21326_v61 = vsel %vm894_vm2, %v8036_v35, %v8037_v23  ;;  %v14526_v63 = vld [vmem:[%s23292_s5 + $0x10] sm:$0xff]  }
 0x5d2   :  { %v21317_v44 = vmax.f32 %v7400_v62, 0.0  ;;  %v7401_v55 = vadd.f32 %v21233_v46, %v6949_v43  ;;  %25533 = vst [vmem:[#allocation128_spill] sm:$0xff] %v21322_v52  ;;  %25534 = vst [vmem:[#allocation131_spill] sm:$0xff] %v21326_v61  ;;  %13473 = vmatprep.subr.bf16.mxu0 %v14526_v63 }
 0x5d3   :  { %25531 = vst [vmem:[#allocation121_spill] sm:$0xff] %v21310_v45  ;;  %v21328_v17 = vmax.f32 %v7403_v18, 0.0  ;;  %v7658_v47 = vrot.slane %v21310_v45, 7  ;;  %v8042_v35 = vrot.slane %v21310_v45, 1 }
 0x5d4   :  { %25532 = vst [vmem:[#allocation132_spill] sm:$0xff] %v21317_v44  ;;  %v7656_v62 = vrot.slane %v21317_v44, 7  ;;  %v8040_v3 = vrot.slane %v21317_v44, 1  ;;  %v21335_v43 = vmax.f32 %v7401_v55, 0.0 }
 0x5d5   :  { %25535 = vst [vmem:[#allocation127_spill] sm:$0xff] %v21328_v17  ;;  %v7659_v23 = vrot.slane %v21328_v17, 7  ;;  %v8043_v18 = vrot.slane %v21328_v17, 1 }
 0x5d6   :  { %25536 = vst [vmem:[#allocation138_spill] sm:$0xff] %v21335_v43  ;;  %v7783_v60 = vsel %vm509_vm4, %v7655_v37, %v7656_v62  ;;  %v8167_v55 = vsel %vm894_vm2, %v8039_v36, %v8040_v3  ;;  %v7657_v61 = vrot.slane %v21335_v43, 7  ;;  %v8041_v52 = vrot.slane %v21335_v43, 1  ;;  %v13283_v20 = vpop.f32.mrb[196].mxu1 }
 0x5d7   :  { %v7406_v7 = vadd.f32 %v21233_v46, %v13283_v20  ;;  %v6962_v56 = vpop.f32.mrb[197].mxu1  ;;  %v21355_v4 = vmul.f32 %v25442_v41, %v7783_v60  ;;  %v21359_v37 = vsel %vm509_vm4, %v7658_v47, %v7659_v23  ;;  %v21371_v20 = vmul.f32 %v25444_v34, %v8167_v55 }
 0x5d8   :  { %25538 = vst [vmem:[#allocation137_spill] sm:$0xff] %v21359_v37  ;;  %v7404_v36 = vadd.f32 %v21233_v46, %v6962_v56  ;;  %v13284_v45 = vpop.f32.mrb[198].mxu1  ;;  %v21364_v17 = vsel %vm509_vm4, %v7656_v62, %v7657_v61  ;;  %v21368_v63 = vsel %vm509_vm4, %v7657_v61, %v7658_v47  ;;  %v21395_v43 = vsel %vm894_vm2, %v8040_v3, %v8041_v52 }
 0x5d9   :  { %25537 = vst [vmem:[#allocation135_spill] sm:$0xff] %v21355_v4  ;;  %25539 = vst [vmem:[#allocation134_spill] sm:$0xff] %v21364_v17  ;;  %v21373_v60 = vmax.f32 %v7406_v7, 0.0  ;;  %v7407_v2 = vadd.f32 %v21233_v46, %v13284_v45  ;;  %v6965_v44 = vpop.f32.mrb[199].mxu1  ;;  %v21387_v7 = vsel %vm894_vm2, %v8041_v52, %v8042_v35  ;;  %v21409_v3 = vsel %vm894_vm2, %v8042_v35, %v8043_v18 }
 0x5da   :  { %25540 = vst [vmem:[#allocation146_spill] sm:$0xff] %v21368_v63  ;;  %25541 = vst [vmem:[#allocation141_spill] sm:$0xff] %v21371_v20  ;;  %v21380_v62 = vmax.f32 %v7404_v36, 0.0  ;;  %v7405_v49 = vadd.f32 %v21233_v46, %v6965_v44 }
 0x5db   :  { %25542 = vst [vmem:[#allocation144_spill] sm:$0xff] %v21373_v60  ;;  %25544 = vst [vmem:[#allocation152_spill] sm:$0xff] %v21387_v7  ;;  %v7662_v45 = vrot.slane %v21373_v60, 7  ;;  %v8046_v61 = vrot.slane %v21373_v60, 1  ;;  %v21391_v55 = vmax.f32 %v7407_v2, 0.0 }
 0x5dc   :  { %25543 = vst [vmem:[#allocation140_spill] sm:$0xff] %v21380_v62  ;;  %25546 = vst [vmem:[#allocation150_spill] sm:$0xff] %v21395_v43  ;;  %v7660_v36 = vrot.slane %v21380_v62, 7  ;;  %v8044_v44 = vrot.slane %v21380_v62, 1  ;;  %v21399_v56 = vmax.f32 %v7405_v49, 0.0 }
 0x5dd   :  { %25545 = vst [vmem:[#allocation148_spill] sm:$0xff] %v21391_v55  ;;  %v7663_v12 = vrot.slane %v21391_v55, 7  ;;  %v8047_v20 = vrot.slane %v21391_v55, 1  ;;  %25548 = vst [vmem:[#allocation158_spill] sm:$0xff] %v21409_v3 }
 0x5de   :  { %25547 = vst [vmem:[#allocation147_spill] sm:$0xff] %v21399_v56  ;;  %v7661_v52 = vrot.slane %v21399_v56, 7  ;;  %v8045_v63 = vrot.slane %v21399_v56, 1  ;;  %v13287_v37 = vpop.f32.mrb[200].mxu1  ;;  %v21417_v47 = vsel %vm509_vm4, %v7659_v23, %v7660_v36  ;;  %v21426_v35 = vsel %vm894_vm2, %v8043_v18, %v8044_v44 }
 0x5df   :  { %25549 = vst [vmem:[#allocation154_spill] sm:$0xff] %v21417_v47  ;;  %v7410_v43 = vadd.f32 %v21233_v46, %v13287_v37  ;;  %v6978_v7 = vpop.f32.mrb[201].mxu1  ;;  %v21422_v2 = vsel %vm509_vm4, %v7662_v45, %v7663_v12  ;;  %25551 = vst [vmem:[#allocation153_spill] sm:$0xff] %v21426_v35  ;;  %v21430_v60 = vsel %vm894_vm2, %v8046_v61, %v8047_v20 }
 0x5e0   :  { %25550 = vst [vmem:[#allocation157_spill] sm:$0xff] %v21422_v2  ;;  %25552 = vst [vmem:[#allocation187_spill] sm:$0xff] %v21430_v60  ;;  %v7408_v49 = vadd.f32 %v21233_v46, %v6978_v7  ;;  %v13288_v55 = vpop.f32.mrb[202].mxu1  ;;  %v21435_v23 = vsel %vm509_vm4, %v7660_v36, %v7661_v52  ;;  %v21439_v37 = vsel %vm509_vm4, %v7661_v52, %v7662_v45 }
 0x5e1   :  { %25553 = vst [vmem:[#allocation184_spill] sm:$0xff] %v21435_v23  ;;  %25554 = vst [vmem:[#allocation185_spill] sm:$0xff] %v21439_v37  ;;  %v21443_v18 = vmax.f32 %v7410_v43, 0.0  ;;  %v7411_v56 = vadd.f32 %v21233_v46, %v13288_v55  ;;  %v6981_v4 = vpop.f32.mrb[203].mxu1  ;;  %v21455_v45 = vsel %vm894_vm2, %v8045_v63, %v8046_v61  ;;  %v21459_v43 = vsel %vm894_vm2, %v8044_v44, %v8045_v63 }
 0x5e2   :  { %v21450_v36 = vmax.f32 %v7408_v49, 0.0  ;;  %v7409_v51 = vadd.f32 %v21233_v46, %v6981_v4  ;;  %25557 = vst [vmem:[#allocation194_spill] sm:$0xff] %v21455_v45  ;;  %25558 = vst [vmem:[#allocation195_spill] sm:$0xff] %v21459_v43 }
 0x5e3   :  { %25555 = vst [vmem:[#allocation182_spill] sm:$0xff] %v21443_v18  ;;  %v21461_v55 = vmax.f32 %v7411_v56, 0.0  ;;  %v7666_v62 = vrot.slane %v21443_v18, 7  ;;  %v8050_v61 = vrot.slane %v21443_v18, 1 }
 0x5e4   :  { %25556 = vst [vmem:[#allocation197_spill] sm:$0xff] %v21450_v36  ;;  %v7664_v49 = vrot.slane %v21450_v36, 7  ;;  %v8048_v17 = vrot.slane %v21450_v36, 1  ;;  %v21468_v4 = vmax.f32 %v7409_v51, 0.0 }
 0x5e5   :  { %25559 = vst [vmem:[#allocation193_spill] sm:$0xff] %v21461_v55  ;;  %v7667_v7 = vrot.slane %v21461_v55, 7  ;;  %v8051_v63 = vrot.slane %v21461_v55, 1 }
 0x5e6   :  { %25560 = vst [vmem:[#allocation207_spill] sm:$0xff] %v21468_v4  ;;  %v7665_v44 = vrot.slane %v21468_v4, 7  ;;  %v8049_v52 = vrot.slane %v21468_v4, 1  ;;  %v13291_v45 = vpop.f32.mrb[204].mxu1  ;;  %v21481_v51 = vsel %vm509_vm4, %v7663_v12, %v7664_v49  ;;  %v21490_v56 = vsel %vm894_vm2, %v8047_v20, %v8048_v17 }
 0x5e7   :  { %25561 = vst [vmem:[#allocation204_spill] sm:$0xff] %v21481_v51  ;;  %v7414_v3 = vadd.f32 %v21233_v46, %v13291_v45  ;;  %v6994_v35 = vpop.f32.mrb[205].mxu1  ;;  %v21486_v37 = vsel %vm509_vm4, %v7666_v62, %v7667_v7  ;;  %25563 = vst [vmem:[#allocation203_spill] sm:$0xff] %v21490_v56  ;;  %v21494_v18 = vsel %vm894_vm2, %v8050_v61, %v8051_v63 }
 0x5e8   :  { %25562 = vst [vmem:[#allocation205_spill] sm:$0xff] %v21486_v37  ;;  %25564 = vst [vmem:[#allocation218_spill] sm:$0xff] %v21494_v18  ;;  %v7412_v43 = vadd.f32 %v21233_v46, %v6994_v35  ;;  %v13292_v55 = vpop.f32.mrb[206].mxu1  ;;  %v21499_v12 = vsel %vm509_vm4, %v7664_v49, %v7665_v44  ;;  %v21503_v45 = vsel %vm509_vm4, %v7665_v44, %v7666_v62 }
 0x5e9   :  { %25565 = vst [vmem:[#allocation214_spill] sm:$0xff] %v21499_v12  ;;  %25566 = vst [vmem:[#allocation216_spill] sm:$0xff] %v21503_v45  ;;  %v21507_v20 = vmax.f32 %v7414_v3, 0.0  ;;  %v7415_v4 = vadd.f32 %v21233_v46, %v13292_v55  ;;  %v6997_v2 = vpop.f32.mrb[207].mxu1  ;;  %v21519_v62 = vsel %vm894_vm2, %v8049_v52, %v8050_v61  ;;  %v21523_v3 = vsel %vm894_vm2, %v8048_v17, %v8049_v52 }
 0x5ea   :  { %v21514_v49 = vmax.f32 %v7412_v43, 0.0  ;;  %v7413_v23 = vadd.f32 %v21233_v46, %v6997_v2  ;;  %25569 = vst [vmem:[#allocation224_spill] sm:$0xff] %v21519_v62  ;;  %25570 = vst [vmem:[#allocation227_spill] sm:$0xff] %v21523_v3 }
 0x5eb   :  { %25567 = vst [vmem:[#allocation213_spill] sm:$0xff] %v21507_v20  ;;  %v21525_v55 = vmax.f32 %v7415_v4, 0.0  ;;  %v7670_v36 = vrot.slane %v21507_v20, 7  ;;  %v8054_v61 = vrot.slane %v21507_v20, 1 }
 0x5ec   :  { %25568 = vst [vmem:[#allocation228_spill] sm:$0xff] %v21514_v49  ;;  %v7668_v43 = vrot.slane %v21514_v49, 7  ;;  %v8052_v47 = vrot.slane %v21514_v49, 1  ;;  %v21532_v2 = vmax.f32 %v7413_v23, 0.0 }
 0x5ed   :  { %25571 = vst [vmem:[#allocation223_spill] sm:$0xff] %v21525_v55  ;;  %v7671_v35 = vrot.slane %v21525_v55, 7  ;;  %v8055_v17 = vrot.slane %v21525_v55, 1 }
 0x5ee   :  { %25572 = vst [vmem:[#allocation239_spill] sm:$0xff] %v21532_v2  ;;  %v7669_v4 = vrot.slane %v21532_v2, 7  ;;  %v8053_v44 = vrot.slane %v21532_v2, 1  ;;  %v13295_v62 = vpop.f32.mrb[208].mxu1  ;;  %v21545_v23 = vsel %vm509_vm4, %v7667_v7, %v7668_v43  ;;  %v21554_v52 = vsel %vm894_vm2, %v8051_v63, %v8052_v47 }
 0x5ef   :  { %25573 = vst [vmem:[#allocation235_spill] sm:$0xff] %v21545_v23  ;;  %v7418_v60 = vadd.f32 %v21233_v46, %v13295_v62  ;;  %v7010_v56 = vpop.f32.mrb[209].mxu1  ;;  %v21550_v45 = vsel %vm509_vm4, %v7670_v36, %v7671_v35  ;;  %25575 = vst [vmem:[#allocation234_spill] sm:$0xff] %v21554_v52  ;;  %v21558_v20 = vsel %vm894_vm2, %v8054_v61, %v8055_v17 }
 0x5f0   :  { %25574 = vst [vmem:[#allocation238_spill] sm:$0xff] %v21550_v45  ;;  %25576 = vst [vmem:[#allocation250_spill] sm:$0xff] %v21558_v20  ;;  %v7416_v3 = vadd.f32 %v21233_v46, %v7010_v56  ;;  %v13296_v55 = vpop.f32.mrb[210].mxu1  ;;  %v21563_v7 = vsel %vm509_vm4, %v7668_v43, %v7669_v4  ;;  %v21567_v62 = vsel %vm509_vm4, %v7669_v4, %v7670_v36 }
 0x5f1   :  { %25577 = vst [vmem:[#allocation246_spill] sm:$0xff] %v21563_v7  ;;  %25578 = vst [vmem:[#allocation248_spill] sm:$0xff] %v21567_v62  ;;  %v21571_v63 = vmax.f32 %v7418_v60, 0.0  ;;  %v7419_v2 = vadd.f32 %v21233_v46, %v13296_v55  ;;  %v7013_v37 = vpop.f32.mrb[211].mxu1  ;;  %v21583_v36 = vsel %vm894_vm2, %v8053_v44, %v8054_v61  ;;  %v21587_v60 = vsel %vm894_vm2, %v8052_v47, %v8053_v44 }
 0x5f2   :  { %v21578_v43 = vmax.f32 %v7416_v3, 0.0  ;;  %v7417_v12 = vadd.f32 %v21233_v46, %v7013_v37  ;;  %25581 = vst [vmem:[#allocation256_spill] sm:$0xff] %v21583_v36  ;;  %25582 = vst [vmem:[#allocation255_spill] sm:$0xff] %v21587_v60 }
 0x5f3   :  { %25579 = vst [vmem:[#allocation245_spill] sm:$0xff] %v21571_v63  ;;  %v21589_v55 = vmax.f32 %v7419_v2, 0.0  ;;  %v7674_v49 = vrot.slane %v21571_v63, 7  ;;  %v8058_v61 = vrot.slane %v21571_v63, 1 }
 0x5f4   :  { %25580 = vst [vmem:[#allocation259_spill] sm:$0xff] %v21578_v43  ;;  %v7672_v3 = vrot.slane %v21578_v43, 7  ;;  %v8056_v51 = vrot.slane %v21578_v43, 1  ;;  %v21596_v37 = vmax.f32 %v7417_v12, 0.0 }
 0x5f5   :  { %25583 = vst [vmem:[#allocation272_spill] sm:$0xff] %v21589_v55  ;;  %v7675_v56 = vrot.slane %v21589_v55, 7  ;;  %v8059_v47 = vrot.slane %v21589_v55, 1 }
 0x5f6   :  { %25584 = vst [vmem:[#allocation34_spill] sm:$0xff] %v21596_v37  ;;  %v7673_v2 = vrot.slane %v21596_v37, 7  ;;  %v8057_v4 = vrot.slane %v21596_v37, 1  ;;  %v13299_v36 = vpop.f32.mrb[212].mxu1  ;;  %v21609_v12 = vsel %vm509_vm4, %v7671_v35, %v7672_v3  ;;  %v21618_v44 = vsel %vm894_vm2, %v8055_v17, %v8056_v51 }
 0x5f7   :  { %25585 = vst [vmem:[#allocation29_spill] sm:$0xff] %v21609_v12  ;;  %v7422_v18 = vadd.f32 %v21233_v46, %v13299_v36  ;;  %v7026_v52 = vpop.f32.mrb[213].mxu1  ;;  %v21614_v62 = vsel %vm509_vm4, %v7674_v49, %v7675_v56  ;;  %25587 = vst [vmem:[#allocation40_spill] sm:$0xff] %v21618_v44  ;;  %v21622_v63 = vsel %vm894_vm2, %v8058_v61, %v8059_v47 }
 0x5f8   :  { %25586 = vst [vmem:[#allocation37_spill] sm:$0xff] %v21614_v62  ;;  %25588 = vst [vmem:[#allocation43_spill] sm:$0xff] %v21622_v63  ;;  %v7420_v60 = vadd.f32 %v21233_v46, %v7026_v52  ;;  %v13300_v55 = vpop.f32.mrb[214].mxu1  ;;  %v21627_v35 = vsel %vm509_vm4, %v7672_v3, %v7673_v2  ;;  %v21631_v36 = vsel %vm509_vm4, %v7673_v2, %v7674_v49 }
 0x5f9   :  { %25589 = vst [vmem:[#allocation67_spill] sm:$0xff] %v21627_v35  ;;  %25590 = vst [vmem:[#allocation72_spill] sm:$0xff] %v21631_v36  ;;  %v21635_v17 = vmax.f32 %v7422_v18, 0.0  ;;  %v7423_v37 = vadd.f32 %v21233_v46, %v13300_v55  ;;  %v7029_v45 = vpop.f32.mrb[215].mxu1  ;;  %v21647_v49 = vsel %vm894_vm2, %v8057_v4, %v8058_v61  ;;  %v21651_v18 = vsel %vm894_vm2, %v8056_v51, %v8057_v4 }
 0x5fa   :  { %v21642_v3 = vmax.f32 %v7420_v60, 0.0  ;;  %v7421_v7 = vadd.f32 %v21233_v46, %v7029_v45  ;;  %25593 = vst [vmem:[#allocation83_spill] sm:$0xff] %v21647_v49  ;;  %25594 = vst [vmem:[#allocation86_spill] sm:$0xff] %v21651_v18 }
 0x5fb   :  { %25591 = vst [vmem:[#allocation74_spill] sm:$0xff] %v21635_v17  ;;  %v21653_v55 = vmax.f32 %v7423_v37, 0.0  ;;  %v7678_v43 = vrot.slane %v21635_v17, 7  ;;  %v8062_v61 = vrot.slane %v21635_v17, 1 }
 0x5fc   :  { %25592 = vst [vmem:[#allocation82_spill] sm:$0xff] %v21642_v3  ;;  %v7676_v60 = vrot.slane %v21642_v3, 7  ;;  %v8060_v23 = vrot.slane %v21642_v3, 1  ;;  %v21660_v45 = vmax.f32 %v7421_v7, 0.0 }
 0x5fd   :  { %25595 = vst [vmem:[#allocation90_spill] sm:$0xff] %v21653_v55  ;;  %v7679_v52 = vrot.slane %v21653_v55, 7  ;;  %v8063_v51 = vrot.slane %v21653_v55, 1 }
 0x5fe   :  { %25596 = vst [vmem:[#allocation91_spill] sm:$0xff] %v21660_v45  ;;  %v7677_v37 = vrot.slane %v21660_v45, 7  ;;  %v8061_v2 = vrot.slane %v21660_v45, 1  ;;  %v13303_v49 = vpop.f32.mrb[216].mxu1  ;;  %v21673_v7 = vsel %vm509_vm4, %v7675_v56, %v7676_v60  ;;  %v21682_v4 = vsel %vm894_vm2, %v8059_v47, %v8060_v23 }
 0x5ff   :  { %25597 = vst [vmem:[#allocation94_spill] sm:$0xff] %v21673_v7  ;;  %v7426_v20 = vadd.f32 %v21233_v46, %v13303_v49  ;;  %v7042_v44 = vpop.f32.mrb[217].mxu1  ;;  %v21678_v36 = vsel %vm509_vm4, %v7678_v43, %v7679_v52  ;;  %25599 = vst [vmem:[#allocation99_spill] sm:$0xff] %v21682_v4  ;;  %v21686_v17 = vsel %vm894_vm2, %v8062_v61, %v8063_v51 }
 0x600   :  { %25598 = vst [vmem:[#allocation97_spill] sm:$0xff] %v21678_v36  ;;  %25600 = vst [vmem:[#allocation103_spill] sm:$0xff] %v21686_v17  ;;  %v7424_v18 = vadd.f32 %v21233_v46, %v7042_v44  ;;  %v13304_v55 = vpop.f32.mrb[218].mxu1  ;;  %v21691_v56 = vsel %vm509_vm4, %v7676_v60, %v7677_v37  ;;  %v21695_v49 = vsel %vm509_vm4, %v7677_v37, %v7678_v43 }
 0x601   :  { %25601 = vst [vmem:[#allocation104_spill] sm:$0xff] %v21691_v56  ;;  %25602 = vst [vmem:[#allocation107_spill] sm:$0xff] %v21695_v49  ;;  %v21699_v47 = vmax.f32 %v7426_v20, 0.0  ;;  %v7427_v45 = vadd.f32 %v21233_v46, %v13304_v55  ;;  %v7045_v62 = vpop.f32.mrb[219].mxu1  ;;  %v21711_v43 = vsel %vm894_vm2, %v8061_v2, %v8062_v61  ;;  %v21715_v20 = vsel %vm894_vm2, %v8060_v23, %v8061_v2 }
 0x602   :  { %v21706_v60 = vmax.f32 %v7424_v18, 0.0  ;;  %v7425_v35 = vadd.f32 %v21233_v46, %v7045_v62  ;;  %25605 = vst [vmem:[#allocation114_spill] sm:$0xff] %v21711_v43  ;;  %25606 = vst [vmem:[#allocation118_spill] sm:$0xff] %v21715_v20 }
 0x603   :  { %25603 = vst [vmem:[#allocation110_spill] sm:$0xff] %v21699_v47  ;;  %v21717_v55 = vmax.f32 %v7427_v45, 0.0  ;;  %v7682_v3 = vrot.slane %v21699_v47, 7  ;;  %v8066_v61 = vrot.slane %v21699_v47, 1 }
 0x604   :  { %25604 = vst [vmem:[#allocation111_spill] sm:$0xff] %v21706_v60  ;;  %v7680_v18 = vrot.slane %v21706_v60, 7  ;;  %v8064_v12 = vrot.slane %v21706_v60, 1  ;;  %v21724_v62 = vmax.f32 %v7425_v35, 0.0 }
 0x605   :  { %25607 = vst [vmem:[#allocation120_spill] sm:$0xff] %v21717_v55  ;;  %v7683_v44 = vrot.slane %v21717_v55, 7  ;;  %v8067_v23 = vrot.slane %v21717_v55, 1 }
 0x606   :  { %25608 = vst [vmem:[#allocation123_spill] sm:$0xff] %v21724_v62  ;;  %v7681_v45 = vrot.slane %v21724_v62, 7  ;;  %v8065_v37 = vrot.slane %v21724_v62, 1  ;;  %v13307_v43 = vpop.f32.mrb[220].mxu1  ;;  %v21737_v35 = vsel %vm509_vm4, %v7679_v52, %v7680_v18  ;;  %v21746_v2 = vsel %vm894_vm2, %v8063_v51, %v8064_v12 }
 0x607   :  { %25609 = vst [vmem:[#allocation125_spill] sm:$0xff] %v21737_v35  ;;  %v7430_v63 = vadd.f32 %v21233_v46, %v13307_v43  ;;  %v7058_v4 = vpop.f32.mrb[221].mxu1  ;;  %v21742_v49 = vsel %vm509_vm4, %v7682_v3, %v7683_v44  ;;  %25611 = vst [vmem:[#allocation130_spill] sm:$0xff] %v21746_v2  ;;  %v21750_v47 = vsel %vm894_vm2, %v8066_v61, %v8067_v23 }
 0x608   :  { %25610 = vst [vmem:[#allocation129_spill] sm:$0xff] %v21742_v49  ;;  %25612 = vst [vmem:[#allocation133_spill] sm:$0xff] %v21750_v47  ;;  %v7428_v20 = vadd.f32 %v21233_v46, %v7058_v4  ;;  %v13308_v55 = vpop.f32.mrb[222].mxu1  ;;  %v21755_v52 = vsel %vm509_vm4, %v7680_v18, %v7681_v45  ;;  %v21759_v43 = vsel %vm509_vm4, %v7681_v45, %v7682_v3 }
 0x609   :  { %25613 = vst [vmem:[#allocation136_spill] sm:$0xff] %v21755_v52  ;;  %25614 = vst [vmem:[#allocation142_spill] sm:$0xff] %v21759_v43  ;;  %v21763_v51 = vmax.f32 %v7430_v63, 0.0  ;;  %v7431_v62 = vadd.f32 %v21233_v46, %v13308_v55  ;;  %v7061_v36 = vpop.f32.mrb[223].mxu1  ;;  %v21775_v3 = vsel %vm894_vm2, %v8065_v37, %v8066_v61  ;;  %v21779_v63 = vsel %vm894_vm2, %v8064_v12, %v8065_v37 }
 0x60a   :  { %v21770_v18 = vmax.f32 %v7428_v20, 0.0  ;;  %v7429_v56 = vadd.f32 %v21233_v46, %v7061_v36  ;;  %25617 = vst [vmem:[#allocation145_spill] sm:$0xff] %v21775_v3  ;;  %25618 = vst [vmem:[#allocation149_spill] sm:$0xff] %v21779_v63 }
 0x60b   :  { %25615 = vst [vmem:[#allocation139_spill] sm:$0xff] %v21763_v51  ;;  %v21781_v55 = vmax.f32 %v7431_v62, 0.0  ;;  %v7686_v60 = vrot.slane %v21763_v51, 7  ;;  %v8070_v61 = vrot.slane %v21763_v51, 1 }
 0x60c   :  { %25616 = vst [vmem:[#allocation143_spill] sm:$0xff] %v21770_v18  ;;  %v7684_v20 = vrot.slane %v21770_v18, 7  ;;  %v8068_v7 = vrot.slane %v21770_v18, 1  ;;  %v21788_v36 = vmax.f32 %v7429_v56, 0.0 }
 0x60d   :  { %25619 = vst [vmem:[#allocation151_spill] sm:$0xff] %v21781_v55  ;;  %v7687_v4 = vrot.slane %v21781_v55, 7  ;;  %v8071_v12 = vrot.slane %v21781_v55, 1 }
 0x60e   :  { %25620 = vst [vmem:[#allocation155_spill] sm:$0xff] %v21788_v36  ;;  %v7685_v62 = vrot.slane %v21788_v36, 7  ;;  %v8069_v45 = vrot.slane %v21788_v36, 1  ;;  %v13311_v3 = vpop.f32.mrb[224].mxu1  ;;  %v21801_v56 = vsel %vm509_vm4, %v7683_v44, %v7684_v20  ;;  %v21810_v37 = vsel %vm894_vm2, %v8067_v23, %v8068_v7 }
 0x60f   :  { %25621 = vst [vmem:[#allocation156_spill] sm:$0xff] %v21801_v56  ;;  %v7434_v17 = vadd.f32 %v21233_v46, %v13311_v3  ;;  %v7074_v2 = vpop.f32.mrb[225].mxu1  ;;  %v21806_v43 = vsel %vm509_vm4, %v7686_v60, %v7687_v4  ;;  %25623 = vst [vmem:[#allocation160_spill] sm:$0xff] %v21810_v37  ;;  %v21814_v51 = vsel %vm894_vm2, %v8070_v61, %v8071_v12 }
 0x610   :  { %25622 = vst [vmem:[#allocation159_spill] sm:$0xff] %v21806_v43  ;;  %25624 = vst [vmem:[#allocation163_spill] sm:$0xff] %v21814_v51  ;;  %v7432_v63 = vadd.f32 %v21233_v46, %v7074_v2  ;;  %v13312_v55 = vpop.f32.mrb[226].mxu1  ;;  %v21819_v44 = vsel %vm509_vm4, %v7684_v20, %v7685_v62  ;;  %v21823_v3 = vsel %vm509_vm4, %v7685_v62, %v7686_v60 }
 0x611   :  { %25625 = vst [vmem:[#allocation164_spill] sm:$0xff] %v21819_v44  ;;  %25626 = vst [vmem:[#allocation167_spill] sm:$0xff] %v21823_v3  ;;  %v21827_v23 = vmax.f32 %v7434_v17, 0.0  ;;  %v7435_v36 = vadd.f32 %v21233_v46, %v13312_v55  ;;  %v7077_v49 = vpop.f32.mrb[227].mxu1  ;;  %v21839_v60 = vsel %vm894_vm2, %v8069_v45, %v8070_v61  ;;  %v21843_v17 = vsel %vm894_vm2, %v8068_v7, %v8069_v45 }
 0x612   :  { %v21834_v20 = vmax.f32 %v7432_v63, 0.0  ;;  %v7433_v52 = vadd.f32 %v21233_v46, %v7077_v49  ;;  %25629 = vst [vmem:[#allocation170_spill] sm:$0xff] %v21839_v60  ;;  %25630 = vst [vmem:[#allocation171_spill] sm:$0xff] %v21843_v17 }
 0x613   :  { %25627 = vst [vmem:[#allocation168_spill] sm:$0xff] %v21827_v23  ;;  %v21845_v55 = vmax.f32 %v7435_v36, 0.0  ;;  %v7690_v18 = vrot.slane %v21827_v23, 7  ;;  %v8074_v61 = vrot.slane %v21827_v23, 1 }
 0x614   :  { %25628 = vst [vmem:[#allocation169_spill] sm:$0xff] %v21834_v20  ;;  %v7688_v63 = vrot.slane %v21834_v20, 7  ;;  %v8072_v35 = vrot.slane %v21834_v20, 1  ;;  %v21852_v49 = vmax.f32 %v7433_v52, 0.0 }
 0x615   :  { %25631 = vst [vmem:[#allocation172_spill] sm:$0xff] %v21845_v55  ;;  %v7691_v2 = vrot.slane %v21845_v55, 7  ;;  %v8075_v7 = vrot.slane %v21845_v55, 1 }
 0x616   :  { %25632 = vst [vmem:[#allocation173_spill] sm:$0xff] %v21852_v49  ;;  %v7751_v36 = vsel %vm509_vm4, %v7687_v4, %v7688_v63  ;;  %v8135_v62 = vsel %vm894_vm2, %v8071_v12, %v8072_v35  ;;  %v7689_v17 = vrot.slane %v21852_v49, 7  ;;  %v8073_v52 = vrot.slane %v21852_v49, 1  ;;  %v13315_v60 = vpop.f32.mrb[228].mxu1 }
 0x617   :  { %v7438_v37 = vadd.f32 %v21233_v46, %v13315_v60  ;;  %v7090_v3 = vpop.f32.mrb[229].mxu1  ;;  %v21869_v43 = vmul.f32 %v25442_v41, %v7751_v36  ;;  %v21873_v4 = vsel %vm509_vm4, %v7690_v18, %v7691_v2  ;;  %v21885_v60 = vmul.f32 %v25444_v34, %v8135_v62 }
 0x618   :  { %25634 = vst [vmem:[#allocation175_spill] sm:$0xff] %v21873_v4  ;;  %v7436_v12 = vadd.f32 %v21233_v46, %v7090_v3  ;;  %v13316_v45 = vpop.f32.mrb[230].mxu1  ;;  %v21878_v23 = vsel %vm509_vm4, %v7688_v63, %v7689_v17  ;;  %v21882_v47 = vsel %vm509_vm4, %v7689_v17, %v7690_v18  ;;  %v21909_v49 = vsel %vm894_vm2, %v8072_v35, %v8073_v52 }
 0x619   :  { %25633 = vst [vmem:[#allocation174_spill] sm:$0xff] %v21869_v43  ;;  %25635 = vst [vmem:[#allocation176_spill] sm:$0xff] %v21878_v23  ;;  %v21887_v36 = vmax.f32 %v7438_v37, 0.0  ;;  %v7439_v55 = vadd.f32 %v21233_v46, %v13316_v45  ;;  %v7093_v20 = vpop.f32.mrb[231].mxu1  ;;  %v21901_v37 = vsel %vm894_vm2, %v8073_v52, %v8074_v61  ;;  %v21923_v35 = vsel %vm894_vm2, %v8074_v61, %v8075_v7 }
 0x61a   :  { %25636 = vst [vmem:[#allocation177_spill] sm:$0xff] %v21882_v47  ;;  %25637 = vst [vmem:[#allocation178_spill] sm:$0xff] %v21885_v60  ;;  %v21894_v63 = vmax.f32 %v7436_v12, 0.0  ;;  %v7437_v56 = vadd.f32 %v21233_v46, %v7093_v20 }
 0x61b   :  { %25638 = vst [vmem:[#allocation179_spill] sm:$0xff] %v21887_v36  ;;  %25640 = vst [vmem:[#allocation181_spill] sm:$0xff] %v21901_v37  ;;  %v7694_v17 = vrot.slane %v21887_v36, 7  ;;  %v8078_v62 = vrot.slane %v21887_v36, 1  ;;  %v21905_v45 = vmax.f32 %v7439_v55, 0.0 }
 0x61c   :  { %25639 = vst [vmem:[#allocation180_spill] sm:$0xff] %v21894_v63  ;;  %25642 = vst [vmem:[#allocation186_spill] sm:$0xff] %v21909_v49  ;;  %v7692_v12 = vrot.slane %v21894_v63, 7  ;;  %v8076_v20 = vrot.slane %v21894_v63, 1  ;;  %v21913_v3 = vmax.f32 %v7437_v56, 0.0 }
 0x61d   :  { %25641 = vst [vmem:[#allocation183_spill] sm:$0xff] %v21905_v45  ;;  %v7695_v51 = vrot.slane %v21905_v45, 7  ;;  %v8079_v60 = vrot.slane %v21905_v45, 1  ;;  %25644 = vst [vmem:[#allocation196_spill] sm:$0xff] %v21923_v35 }
 0x61e   :  { %25643 = vst [vmem:[#allocation188_spill] sm:$0xff] %v21913_v3  ;;  %v7693_v52 = vrot.slane %v21913_v3, 7  ;;  %v8077_v47 = vrot.slane %v21913_v3, 1  ;;  %v13319_v4 = vpop.f32.mrb[232].mxu1  ;;  %v21931_v18 = vsel %vm509_vm4, %v7691_v2, %v7692_v12  ;;  %v21940_v61 = vsel %vm894_vm2, %v8075_v7, %v8076_v20 }
 0x61f   :  { %25645 = vst [vmem:[#allocation198_spill] sm:$0xff] %v21931_v18  ;;  %v7442_v49 = vadd.f32 %v21233_v46, %v13319_v4  ;;  %v7106_v37 = vpop.f32.mrb[233].mxu1  ;;  %v21936_v55 = vsel %vm509_vm4, %v7694_v17, %v7695_v51  ;;  %25647 = vst [vmem:[#allocation206_spill] sm:$0xff] %v21940_v61  ;;  %v21944_v36 = vsel %vm894_vm2, %v8078_v62, %v8079_v60 }
 0x620   :  { %25646 = vst [vmem:[#allocation208_spill] sm:$0xff] %v21936_v55  ;;  %25648 = vst [vmem:[#allocation215_spill] sm:$0xff] %v21944_v36  ;;  %v7440_v56 = vadd.f32 %v21233_v46, %v7106_v37  ;;  %v13320_v45 = vpop.f32.mrb[234].mxu1  ;;  %v21949_v2 = vsel %vm509_vm4, %v7692_v12, %v7693_v52  ;;  %v21953_v4 = vsel %vm509_vm4, %v7693_v52, %v7694_v17 }
 0x621   :  { %25649 = vst [vmem:[#allocation217_spill] sm:$0xff] %v21949_v2  ;;  %25650 = vst [vmem:[#allocation225_spill] sm:$0xff] %v21953_v4  ;;  %v21957_v7 = vmax.f32 %v7442_v49, 0.0  ;;  %v7443_v3 = vadd.f32 %v21233_v46, %v13320_v45  ;;  %v7109_v43 = vpop.f32.mrb[235].mxu1  ;;  %v21969_v17 = vsel %vm894_vm2, %v8077_v47, %v8078_v62  ;;  %v21973_v49 = vsel %vm894_vm2, %v8076_v20, %v8077_v47 }
 0x622   :  { %v21964_v12 = vmax.f32 %v7440_v56, 0.0  ;;  %v7441_v44 = vadd.f32 %v21233_v46, %v7109_v43  ;;  %25653 = vst [vmem:[#allocation236_spill] sm:$0xff] %v21969_v17  ;;  %25654 = vst [vmem:[#allocation237_spill] sm:$0xff] %v21973_v49 }
 0x623   :  { %25651 = vst [vmem:[#allocation226_spill] sm:$0xff] %v21957_v7  ;;  %v21975_v45 = vmax.f32 %v7443_v3, 0.0  ;;  %v7698_v63 = vrot.slane %v21957_v7, 7  ;;  %v8082_v62 = vrot.slane %v21957_v7, 1 }
 0x624   :  { %25652 = vst [vmem:[#allocation229_spill] sm:$0xff] %v21964_v12  ;;  %v7696_v56 = vrot.slane %v21964_v12, 7  ;;  %v8080_v23 = vrot.slane %v21964_v12, 1  ;;  %v21982_v43 = vmax.f32 %v7441_v44, 0.0 }
 0x625   :  { %25655 = vst [vmem:[#allocation240_spill] sm:$0xff] %v21975_v45  ;;  %v7699_v37 = vrot.slane %v21975_v45, 7  ;;  %v8083_v47 = vrot.slane %v21975_v45, 1 }
 0x626   :  { %25656 = vst [vmem:[#allocation247_spill] sm:$0xff] %v21982_v43  ;;  %v7697_v20 = vrot.slane %v21982_v43, 7  ;;  %v8081_v52 = vrot.slane %v21982_v43, 1  ;;  %v13323_v17 = vpop.f32.mrb[236].mxu1  ;;  %v21995_v44 = vsel %vm509_vm4, %v7695_v51, %v7696_v56  ;;  %v22004_v3 = vsel %vm894_vm2, %v8079_v60, %v8080_v23 }
 0x627   :  { %25657 = vst [vmem:[#allocation249_spill] sm:$0xff] %v21995_v44  ;;  %v7446_v35 = vadd.f32 %v21233_v46, %v13323_v17  ;;  %v7122_v61 = vpop.f32.mrb[237].mxu1  ;;  %v22000_v4 = vsel %vm509_vm4, %v7698_v63, %v7699_v37  ;;  %25659 = vst [vmem:[#allocation258_spill] sm:$0xff] %v22004_v3  ;;  %v22008_v7 = vsel %vm894_vm2, %v8082_v62, %v8083_v47 }
 0x628   :  { %25658 = vst [vmem:[#allocation257_spill] sm:$0xff] %v22000_v4  ;;  %25660 = vst [vmem:[#allocation260_spill] sm:$0xff] %v22008_v7  ;;  %v7444_v49 = vadd.f32 %v21233_v46, %v7122_v61  ;;  %v13324_v45 = vpop.f32.mrb[238].mxu1  ;;  %v22013_v51 = vsel %vm509_vm4, %v7696_v56, %v7697_v20  ;;  %v22017_v17 = vsel %vm509_vm4, %v7697_v20, %v7698_v63 }
 0x629   :  { %25661 = vst [vmem:[#allocation265_spill] sm:$0xff] %v22013_v51  ;;  %25662 = vst [vmem:[#allocation266_spill] sm:$0xff] %v22017_v17  ;;  %v22021_v60 = vmax.f32 %v7446_v35, 0.0  ;;  %v7447_v43 = vadd.f32 %v21233_v46, %v13324_v45  ;;  %v7125_v55 = vpop.f32.mrb[239].mxu1  ;;  %v22033_v63 = vsel %vm894_vm2, %v8081_v52, %v8082_v62  ;;  %v22037_v35 = vsel %vm894_vm2, %v8080_v23, %v8081_v52 }
 0x62a   :  { %v22028_v56 = vmax.f32 %v7444_v49, 0.0  ;;  %v7445_v2 = vadd.f32 %v21233_v46, %v7125_v55  ;;  %25665 = vst [vmem:[#allocation274_spill] sm:$0xff] %v22033_v63  ;;  %25666 = vst [vmem:[#allocation279_spill] sm:$0xff] %v22037_v35 }
 0x62b   :  { %25663 = vst [vmem:[#allocation267_spill] sm:$0xff] %v22021_v60  ;;  %v22039_v45 = vmax.f32 %v7447_v43, 0.0  ;;  %v7702_v12 = vrot.slane %v22021_v60, 7  ;;  %v8086_v62 = vrot.slane %v22021_v60, 1 }
 0x62c   :  { %25664 = vst [vmem:[#allocation273_spill] sm:$0xff] %v22028_v56  ;;  %v7700_v49 = vrot.slane %v22028_v56, 7  ;;  %v8084_v18 = vrot.slane %v22028_v56, 1  ;;  %v22046_v55 = vmax.f32 %v7445_v2, 0.0 }
 0x62d   :  { %25667 = vst [vmem:[#allocation280_spill] sm:$0xff] %v22039_v45  ;;  %v7703_v61 = vrot.slane %v22039_v45, 7  ;;  %v8087_v23 = vrot.slane %v22039_v45, 1 }
 0x62e   :  { %25668 = vst [vmem:[#allocation285_spill] sm:$0xff] %v22046_v55  ;;  %v7701_v43 = vrot.slane %v22046_v55, 7  ;;  %v8085_v20 = vrot.slane %v22046_v55, 1  ;;  %v13327_v63 = vpop.f32.mrb[240].mxu1  ;;  %v22059_v2 = vsel %vm509_vm4, %v7699_v37, %v7700_v49  ;;  %v22068_v52 = vsel %vm894_vm2, %v8083_v47, %v8084_v18 }
 0x62f   :  { %25669 = vst [vmem:[#allocation286_spill] sm:$0xff] %v22059_v2  ;;  %v7450_v36 = vadd.f32 %v21233_v46, %v13327_v63  ;;  %v7138_v3 = vpop.f32.mrb[241].mxu1  ;;  %v22064_v17 = vsel %vm509_vm4, %v7702_v12, %v7703_v61  ;;  %25671 = vst [vmem:[#allocation292_spill] sm:$0xff] %v22068_v52  ;;  %v22072_v60 = vsel %vm894_vm2, %v8086_v62, %v8087_v23 }
 0x630   :  { %25670 = vst [vmem:[#allocation287_spill] sm:$0xff] %v22064_v17  ;;  %25672 = vst [vmem:[#allocation293_spill] sm:$0xff] %v22072_v60  ;;  %v7448_v35 = vadd.f32 %v21233_v46, %v7138_v3  ;;  %v13328_v45 = vpop.f32.mrb[242].mxu1  ;;  %v22077_v37 = vsel %vm509_vm4, %v7700_v49, %v7701_v43  ;;  %v22081_v63 = vsel %vm509_vm4, %v7701_v43, %v7702_v12 }
 0x631   :  { %25673 = vst [vmem:[#allocation294_spill] sm:$0xff] %v22077_v37  ;;  %25674 = vst [vmem:[#allocation299_spill] sm:$0xff] %v22081_v63  ;;  %v22085_v47 = vmax.f32 %v7450_v36, 0.0  ;;  %v7451_v55 = vadd.f32 %v21233_v46, %v13328_v45  ;;  %v7141_v4 = vpop.f32.mrb[243].mxu1  ;;  %v22097_v12 = vsel %vm894_vm2, %v8085_v20, %v8086_v62  ;;  %v22101_v36 = vsel %vm894_vm2, %v8084_v18, %v8085_v20 }
 0x632   :  { %v22092_v49 = vmax.f32 %v7448_v35, 0.0  ;;  %v7449_v51 = vadd.f32 %v21233_v46, %v7141_v4  ;;  %25677 = vst [vmem:[#allocation306_spill] sm:$0xff] %v22097_v12  ;;  %25678 = vst [vmem:[#allocation308_spill] sm:$0xff] %v22101_v36 }
 0x633   :  { %25675 = vst [vmem:[#allocation300_spill] sm:$0xff] %v22085_v47  ;;  %v22103_v45 = vmax.f32 %v7451_v55, 0.0  ;;  %v7706_v56 = vrot.slane %v22085_v47, 7  ;;  %v8090_v62 = vrot.slane %v22085_v47, 1 }
 0x634   :  { %25676 = vst [vmem:[#allocation305_spill] sm:$0xff] %v22092_v49  ;;  %v7704_v35 = vrot.slane %v22092_v49, 7  ;;  %v8088_v44 = vrot.slane %v22092_v49, 1  ;;  %v22110_v4 = vmax.f32 %v7449_v51, 0.0 }
 0x635   :  { %25679 = vst [vmem:[#allocation307_spill] sm:$0xff] %v22103_v45  ;;  %v7707_v3 = vrot.slane %v22103_v45, 7  ;;  %v8091_v18 = vrot.slane %v22103_v45, 1 }
 0x636   :  { %25680 = vst [vmem:[#allocation309_spill] sm:$0xff] %v22110_v4  ;;  %v7705_v55 = vrot.slane %v22110_v4, 7  ;;  %v8089_v43 = vrot.slane %v22110_v4, 1  ;;  %v13331_v12 = vpop.f32.mrb[244].mxu1  ;;  %v22123_v51 = vsel %vm509_vm4, %v7703_v61, %v7704_v35  ;;  %v22132_v20 = vsel %vm894_vm2, %v8087_v23, %v8088_v44 }
 0x637   :  { %25681 = vst [vmem:[#allocation310_spill] sm:$0xff] %v22123_v51  ;;  %v7454_v7 = vadd.f32 %v21233_v46, %v13331_v12  ;;  %v7154_v52 = vpop.f32.mrb[245].mxu1  ;;  %v22128_v63 = vsel %vm509_vm4, %v7706_v56, %v7707_v3  ;;  %25683 = vst [vmem:[#allocation312_spill] sm:$0xff] %v22132_v20  ;;  %v22136_v47 = vsel %vm894_vm2, %v8090_v62, %v8091_v18 }
 0x638   :  { %25682 = vst [vmem:[#allocation311_spill] sm:$0xff] %v22128_v63  ;;  %25684 = vst [vmem:[#allocation313_spill] sm:$0xff] %v22136_v47  ;;  %v7452_v36 = vadd.f32 %v21233_v46, %v7154_v52  ;;  %v13332_v45 = vpop.f32.mrb[246].mxu1  ;;  %v22141_v61 = vsel %vm509_vm4, %v7704_v35, %v7705_v55  ;;  %v22145_v12 = vsel %vm509_vm4, %v7705_v55, %v7706_v56 }
 0x639   :  { %25685 = vst [vmem:[#allocation314_spill] sm:$0xff] %v22141_v61  ;;  %25686 = vst [vmem:[#allocation315_spill] sm:$0xff] %v22145_v12  ;;  %v22149_v23 = vmax.f32 %v7454_v7, 0.0  ;;  %v7455_v4 = vadd.f32 %v21233_v46, %v13332_v45  ;;  %v7157_v17 = vpop.f32.mrb[247].mxu1  ;;  %v22161_v56 = vsel %vm894_vm2, %v8089_v43, %v8090_v62  ;;  %v22165_v7 = vsel %vm894_vm2, %v8088_v44, %v8089_v43 }
 0x63a   :  { %v22156_v35 = vmax.f32 %v7452_v36, 0.0  ;;  %v7453_v37 = vadd.f32 %v21233_v46, %v7157_v17  ;;  %25689 = vst [vmem:[#allocation318_spill] sm:$0xff] %v22161_v56  ;;  %25690 = vst [vmem:[#allocation319_spill] sm:$0xff] %v22165_v7 }
 0x63b   :  { %25687 = vst [vmem:[#allocation316_spill] sm:$0xff] %v22149_v23  ;;  %v22167_v45 = vmax.f32 %v7455_v4, 0.0  ;;  %v7710_v49 = vrot.slane %v22149_v23, 7  ;;  %v8094_v62 = vrot.slane %v22149_v23, 1 }
 0x63c   :  { %25688 = vst [vmem:[#allocation317_spill] sm:$0xff] %v22156_v35  ;;  %v7708_v36 = vrot.slane %v22156_v35, 7  ;;  %v8092_v2 = vrot.slane %v22156_v35, 1  ;;  %v22174_v17 = vmax.f32 %v7453_v37, 0.0 }
 0x63d   :  { %25691 = vst [vmem:[#allocation320_spill] sm:$0xff] %v22167_v45  ;;  %v7711_v52 = vrot.slane %v22167_v45, 7  ;;  %v8095_v44 = vrot.slane %v22167_v45, 1 }
 0x63e   :  { %25692 = vst [vmem:[#allocation321_spill] sm:$0xff] %v22174_v17  ;;  %v7709_v4 = vrot.slane %v22174_v17, 7  ;;  %v8093_v55 = vrot.slane %v22174_v17, 1  ;;  %v22187_v37 = vsel %vm509_vm4, %v7707_v3, %v7708_v36  ;;  %v22196_v43 = vsel %vm894_vm2, %v8091_v18, %v8092_v2  ;;  %v14535_v3 = vld [vmem:[%s23291_s4] ss:$0 sm:$0xff] }
 0x63f   :  { %v13335_v56 = vpop.f32.mrb[248].mxu1  ;;  %25693 = vst [vmem:[#allocation322_spill] sm:$0xff] %v22187_v37  ;;  %v22192_v12 = vsel %vm509_vm4, %v7710_v49, %v7711_v52  ;;  %25695 = vst [vmem:[#allocation324_spill] sm:$0xff] %v22196_v43  ;;  %v22200_v23 = vsel %vm894_vm2, %v8094_v62, %v8095_v44 }
 0x640   :  { %v7458_v60 = vadd.f32 %v21233_v46, %v13335_v56  ;;  %v7170_v20 = vpop.f32.mrb[249].mxu1  ;;  %25694 = vst [vmem:[#allocation323_spill] sm:$0xff] %v22192_v12  ;;  %25696 = vst [vmem:[#allocation325_spill] sm:$0xff] %v22200_v23  ;;  %v22207_v46 = vsel %vm509_vm4, %v7708_v36, %v7709_v4  ;;  %v22211_v56 = vsel %vm509_vm4, %v7709_v4, %v7710_v49  ;;  %v25710_v23 = vrot.slane %v20265_v57, 1 }
 0x641   :  { %v7456_v7 = vadd.f32 %v14535_v3, %v7170_v20  ;;  %v13336_v45 = vpop.f32.mrb[250].mxu1  ;;  %25697 = vst [vmem:[#allocation326_spill] sm:$0xff] %v22207_v46  ;;  %25698 = vst [vmem:[#allocation327_spill] sm:$0xff] %v22211_v56  ;;  %v22225_v49 = vsel %vm894_vm2, %v8093_v55, %v8094_v62  ;;  %v22229_v4 = vsel %vm894_vm2, %v8092_v2, %v8093_v55 }
 0x642   :  { %v22215_v35 = vmax.f32 %v7458_v60, 0.0  ;;  %v7459_v17 = vadd.f32 %v14535_v3, %v13336_v45  ;;  %v7173_v63 = vpop.f32.mrb[251].mxu1  ;;  %25701 = vst [vmem:[#allocation330_spill] sm:$0xff] %v22225_v49  ;;  %25702 = vst [vmem:[#allocation331_spill] sm:$0xff] %v22229_v4 }
 0x643   :  { %v22221_v61 = vmax.f32 %v7456_v7, 0.0  ;;  %v7457_v36 = vadd.f32 %v14535_v3, %v7173_v63 }
 0x644   :  { %25699 = vst [vmem:[#allocation328_spill] sm:$0xff] %v22215_v35  ;;  %v22231_v60 = vmax.f32 %v7459_v17, 0.0  ;;  %v7714_v18 = vrot.slane %v22215_v35, 7  ;;  %v8098_v62 = vrot.slane %v22215_v35, 1 }
 0x645   :  { %25700 = vst [vmem:[#allocation329_spill] sm:$0xff] %v22221_v61  ;;  %v7712_v20 = vrot.slane %v22221_v61, 7  ;;  %v8096_v7 = vrot.slane %v22221_v61, 1  ;;  %v22238_v63 = vmax.f32 %v7457_v36, 0.0 }
 0x646   :  { %25703 = vst [vmem:[#allocation332_spill] sm:$0xff] %v22231_v60  ;;  %v7715_v51 = vrot.slane %v22231_v60, 7  ;;  %v8099_v2 = vrot.slane %v22231_v60, 1 }
 0x647   :  { %25704 = vst [vmem:[#allocation333_spill] sm:$0xff] %v22238_v63  ;;  %v7713_v17 = vrot.slane %v22238_v63, 7  ;;  %v8097_v45 = vrot.slane %v22238_v63, 1  ;;  %v13339_v49 = vpop.f32.mrb[252].mxu1  ;;  %v22251_v36 = vsel %vm509_vm4, %v7711_v52, %v7712_v20  ;;  %v22259_v55 = vsel %vm894_vm2, %v8095_v44, %v8096_v7 }
 0x648   :  { %v7462_v47 = vadd.f32 %v14535_v3, %v13339_v49  ;;  %v7186_v43 = vpop.f32.mrb[253].mxu1  ;;  %v22255_v56 = vsel %vm509_vm4, %v7714_v18, %v7715_v51  ;;  %25705 = vst [vmem:[#allocation7_spill] sm:$0xff] %v22259_v55  ;;  %v22263_v35 = vsel %vm894_vm2, %v8098_v62, %v8099_v2 }
 0x649   :  { %v7460_v4 = vadd.f32 %v14535_v3, %v7186_v43  ;;  %v13340_v60 = vpop.f32.mrb[254].mxu1  ;;  %v22267_v52 = vsel %vm509_vm4, %v7712_v20, %v7713_v17  ;;  %v22271_v49 = vsel %vm509_vm4, %v7713_v17, %v7714_v18  ;;  %v22285_v18 = vsel %vm894_vm2, %v8097_v45, %v8098_v62 }
 0x64a   :  { %v22275_v63 = vmax.f32 %v7462_v47, 0.0  ;;  %v7463_v44 = vadd.f32 %v14535_v3, %v13340_v60  ;;  %v7189_v12 = vpop.f32.mrb[255].mxu1  ;;  %25707 = vst [vmem:[#allocation334_spill] sm:$0xff] %v22285_v18  ;;  %v22289_v17 = vsel %vm894_vm2, %v8096_v7, %v8097_v45 }
 0x64b   :  { %v22281_v46 = vmax.f32 %v7460_v4, 0.0  ;;  %v7461_v20 = vadd.f32 %v14535_v3, %v7189_v12  ;;  %25708 = vst [vmem:[#allocation335_spill] sm:$0xff] %v22289_v17  ;;  %v25709_v17 = vrot.slane %v20265_v57, 7 }
 0x64c   :  { %25706 = vst [vmem:[#allocation8_spill] sm:$0xff] %v22275_v63  ;;  %v22291_v47 = vmax.f32 %v7463_v44, 0.0  ;;  %v7718_v61 = vrot.slane %v22275_v63, 7  ;;  %v8102_v3 = vrot.slane %v22275_v63, 1 }
 0x64d   :  { %v7716_v43 = vrot.slane %v22281_v46, 7  ;;  %v8100_v4 = vrot.slane %v22281_v46, 1  ;;  %v22298_v12 = vmax.f32 %v7461_v20, 0.0 }
 0x64e   :  { %v7719_v62 = vrot.slane %v22291_v47, 7  ;;  %v8103_v45 = vrot.slane %v22291_v47, 1 }
 0x64f   :  { %v7717_v44 = vrot.slane %v22298_v12, 7  ;;  %v8101_v60 = vrot.slane %v22298_v12, 1  ;;  %v22311_v20 = vsel %vm509_vm4, %v7715_v51, %v7716_v43  ;;  %v22327_v37 = vsel %vm894_vm2, %v8099_v2, %v8100_v4  ;;  %v14527_v2 = vld [vmem:[%s23292_s5 + $0x18] sm:$0xff]  }
 0x650   :  { %v7847_v18 = vsel %vm509_vm4, %v7719_v62, %v25709_v17  ;;  %v8231_v7 = vsel %vm894_vm2, %v8103_v45, %v25710_v23  ;;  %v22323_v55 = vsel %vm509_vm4, %v7718_v61, %v7719_v62 }
 0x651   :  { %v7848_v51 = vmul.f32 %v25442_v41, %v7847_v18  ;;  %v22332_v63 = vsel %vm509_vm4, %v7716_v43, %v7717_v44  ;;  %v22336_v17 = vsel %vm509_vm4, %v7717_v44, %v7718_v61  ;;  %v22346_v41 = vsel %vm894_vm2, %v8101_v60, %v8102_v3 }
 0x652   :  { %v8491_v62 = vpack.c.bf16 %v22332_v63, %v22311_v20  ;;  %v22350_v43 = vsel %vm894_vm2, %v8100_v4, %v8101_v60  ;;  %v22357_v44 = vsel %vm894_vm2, %v8102_v3, %v8103_v45  ;;  %v22360_v23 = vmul.f32 %v25444_v34, %v8231_v7  ;;  %v25747_v3 = vld [vmem:[#allocation5_spill] sm:$0xff]  ;;  %v25748_v45 = vld [vmem:[#allocation27_spill] sm:$0xff]  ;;  %v25864_v20 = vld [vmem:[#allocation46_spill] sm:$0xff] }
 0x653   :  { %v8429_v61 = vpack.c.bf16 %v20313_v33, %v7848_v51  ;;  %v10057_v18 = vpack.c.bf16 %v22346_v41, %v22350_v43  ;;  %v25711_v33 = vpack.c.bf16 %v20294_v0, %v20306_v50  ;;  %v25712_v34 = vpack.c.bf16 %v20377_v19, %v20368_v39  ;;  %v25750_v51 = vld [vmem:[#allocation26_spill] sm:$0xff]  ;;  %v25863_v63 = vld [vmem:[#allocation45_spill] sm:$0xff] }
 0x654   :  { %v10058_v60 = vpack.c.bf16 %v22360_v23, %v22357_v44  ;;  %v25713_v4 = vpack.c.bf16 %v20372_v42, %v20381_v31  ;;  %v25714_v0 = vpack.c.bf16 %v20451_v26, %v20433_v11  ;;  %v25715_v50 = vpack.c.bf16 %v20438_v59, %v20455_v8 }
 0x655   :  { %13345 = vmatprep.mubr.msk.bf16.mxu0 %vm4896_vm6, %v8429_v61  ;;  %v25716_v39 = vpack.c.bf16 %v20523_v24, %v20505_v29  ;;  %v25717_v42 = vpack.c.bf16 %v20510_v27, %v20527_v54  ;;  %v25718_v19 = vpack.c.bf16 %v20591_v14, %v20573_v48  ;;  %v25719_v31 = vpack.c.bf16 %v20578_v9, %v20595_v53  ;;  %v25727_v29 = vld [vmem:[#allocation212_spill] sm:$0xff]  ;;  %v25729_v54 = vld [vmem:[#allocation253_spill] sm:$0xff]  ;;  %v25733_v53 = vld [vmem:[#allocation251_spill] sm:$0xff] }
 0x656   :  { %13346 = vmatmul.mubr.msk.bf16.vlgmr.msra.gmra.mrb[128].mxu0 %vm4896_vm6, %v25711_v33  ;;  %v25720_v11 = vpack.c.bf16 %v20655_v38, %v20637_v16  ;;  %v25721_v27 = vpack.c.bf16 %v20642_v28, %v20659_v1  ;;  %v25722_v59 = vpack.c.bf16 %v20719_v40, %v20701_v30  ;;  %v25723_v26 = vpack.c.bf16 %v20706_v25, %v20723_v21  ;;  %v25730_v25 = vld [vmem:[#allocation243_spill] sm:$0xff]  ;;  %v25732_v14 = vld [vmem:[#allocation241_spill] sm:$0xff]  ;;  %v25736_v38 = vld [vmem:[#allocation270_spill] sm:$0xff] }
 0x657   :  { %13474 = vmatpush3.bf16.msra.mxu0 %v14536_v13  ;;  %13349 = vmatprep.mubr.msk.bf16.mxu0 %vm4896_vm6, %v25712_v34  ;;  %v25724_v8 = vpack.c.bf16 %v20783_v10, %v20765_v58  ;;  %v25725_v28 = vpack.c.bf16 %v20770_v32, %v20787_v22  ;;  %v25726_v9 = vpack.c.bf16 %v20842_v6, %v20833_v5  ;;  %v25735_v16 = vld [vmem:[#allocation277_spill] sm:$0xff]  ;;  %v25738_v1 = vld [vmem:[#allocation268_spill] sm:$0xff]  ;;  %v25739_v30 = vld [vmem:[#allocation275_spill] sm:$0xff] }
 0x658   :  { %13475 = vmatprep.subr.bf16.mxu0 %v14527_v2  ;;  %v25728_v24 = vpack.c.bf16 %v20837_v15, %v25727_v29  ;;  %v25731_v48 = vpack.c.bf16 %v25729_v54, %v25730_v25  ;;  %v25734_v32 = vpack.c.bf16 %v25732_v14, %v25733_v53  ;;  %v25737_v5 = vpack.c.bf16 %v25735_v16, %v25736_v38  ;;  %v25741_v21 = vld [vmem:[#allocation297_spill] sm:$0xff]  ;;  %v25742_v58 = vld [vmem:[#allocation290_spill] sm:$0xff]  ;;  %v25744_v22 = vld [vmem:[#allocation288_spill] sm:$0xff] }
 0x659   :  { %v25740_v40 = vpack.c.bf16 %v25738_v1, %v25739_v30  ;;  %v25743_v10 = vpack.c.bf16 %v25741_v21, %v25742_v58  ;;  %v25745_v6 = vld [vmem:[#allocation295_spill] sm:$0xff]  ;;  %v25749_v7 = vpack.c.bf16 %v25747_v3, %v25748_v45  ;;  %v25753_v33 = vld [vmem:[#allocation81_spill] sm:$0xff]  ;;  %v25775_v53 = vld [vmem:[#allocation146_spill] sm:$0xff] }
 0x65a   :  { %v25746_v15 = vpack.c.bf16 %v25744_v22, %v25745_v6  ;;  %v25754_v13 = vld [vmem:[#allocation71_spill] sm:$0xff]  ;;  %v25774_v14 = vld [vmem:[#allocation137_spill] sm:$0xff]  ;;  %v25777_v16 = vld [vmem:[#allocation184_spill] sm:$0xff] }
 0x65b   :  { %13476 = vmatpush3.bf16.msra.mxu0 %v14527_v2  ;;  %v25751_v2 = vld [vmem:[#allocation35_spill] sm:$0xff]  ;;  %v25755_v34 = vpack.c.bf16 %v25753_v33, %v25754_v13  ;;  %v25778_v38 = vld [vmem:[#allocation154_spill] sm:$0xff]  ;;  %v25780_v1 = vld [vmem:[#allocation157_spill] sm:$0xff] }
 0x65c   :  { %v25752_v61 = vpack.c.bf16 %v25750_v51, %v25751_v2  ;;  %v25772_v54 = vld [vmem:[#allocation135_spill] sm:$0xff]  ;;  %v25781_v30 = vld [vmem:[#allocation185_spill] sm:$0xff]  ;;  %v25783_v21 = vld [vmem:[#allocation214_spill] sm:$0xff] }
 0x65d   :  { %v25784_v58 = vld [vmem:[#allocation204_spill] sm:$0xff]  ;;  %v25786_v22 = vld [vmem:[#allocation205_spill] sm:$0xff]  ;;  %v25789_v3 = vld [vmem:[#allocation246_spill] sm:$0xff] }
 0x65e   :  { %13350 = vmatmul.mubr.msk.bf16.gmra.mrb[132].mxu0 %vm4896_vm6, %v25713_v4  ;;  %v25756_v4 = vld [vmem:[#allocation73_spill] sm:$0xff]  ;;  %v25787_v6 = vld [vmem:[#allocation216_spill] sm:$0xff]  ;;  %v25790_v45 = vld [vmem:[#allocation235_spill] sm:$0xff] }
 0x65f   :  { %13353 = vmatprep.mubr.msk.bf16.mxu0 %vm4896_vm6, %v25714_v0  ;;  %v25757_v0 = vld [vmem:[#allocation84_spill] sm:$0xff]  ;;  %v25792_v51 = vld [vmem:[#allocation238_spill] sm:$0xff]  ;;  %v25795_v33 = vld [vmem:[#allocation67_spill] sm:$0xff] }
 0x660   :  { %v25793_v2 = vld [vmem:[#allocation248_spill] sm:$0xff]  ;;  %v25796_v13 = vld [vmem:[#allocation29_spill] sm:$0xff] }
 0x666   :  { %13354 = vmatmul.mubr.msk.bf16.gmra.mrb[136].mxu0 %vm4896_vm6, %v25715_v50  ;;  %v25758_v50 = vpack.c.bf16 %v25756_v4, %v25757_v0  ;;  %v25798_v4 = vld [vmem:[#allocation37_spill] sm:$0xff]  ;;  %v25799_v0 = vld [vmem:[#allocation72_spill] sm:$0xff] }
 0x667   :  { %13357 = vmatprep.mubr.msk.bf16.mxu0 %vm4896_vm6, %v25716_v39  ;;  %v25759_v39 = vld [vmem:[#allocation102_spill] sm:$0xff] }
 0x66e   :  { %13358 = vmatmul.mubr.msk.bf16.gmra.mrb[140].mxu0 %vm4896_vm6, %v25717_v42  ;;  %v25760_v42 = vld [vmem:[#allocation96_spill] sm:$0xff] }
 0x66f   :  { %13361 = vmatprep.mubr.msk.bf16.mxu0 %vm4896_vm6, %v25718_v19  ;;  %v25761_v19 = vpack.c.bf16 %v25759_v39, %v25760_v42  ;;  %v25801_v39 = vld [vmem:[#allocation104_spill] sm:$0xff]  ;;  %v25802_v42 = vld [vmem:[#allocation94_spill] sm:$0xff] }
 0x676   :  { %13362 = vmatmul.mubr.msk.bf16.gmra.mrb[144].mxu0 %vm4896_vm6, %v25719_v31  ;;  %v25762_v31 = vld [vmem:[#allocation98_spill] sm:$0xff] }
 0x677   :  { %13365 = vmatprep.mubr.msk.bf16.mxu0 %vm4896_vm6, %v25720_v11  ;;  %v25763_v11 = vld [vmem:[#allocation105_spill] sm:$0xff] }
 0x67e   :  { %13366 = vmatmul.mubr.msk.bf16.gmra.mrb[148].mxu0 %vm4896_vm6, %v25721_v27  ;;  %v25764_v27 = vpack.c.bf16 %v25762_v31, %v25763_v11  ;;  %v25804_v31 = vld [vmem:[#allocation97_spill] sm:$0xff]  ;;  %v25805_v11 = vld [vmem:[#allocation107_spill] sm:$0xff] }
 0x67f   :  { %13369 = vmatprep.mubr.msk.bf16.mxu0 %vm4896_vm6, %v25722_v59  ;;  %v25765_v59 = vld [vmem:[#allocation122_spill] sm:$0xff] }
 0x686   :  { %13370 = vmatmul.mubr.msk.bf16.gmra.mrb[152].mxu0 %vm4896_vm6, %v25723_v26  ;;  %v25766_v26 = vld [vmem:[#allocation116_spill] sm:$0xff] }
 0x687   :  { %13373 = vmatprep.mubr.msk.bf16.mxu0 %vm4896_vm6, %v25724_v8  ;;  %v25767_v8 = vpack.c.bf16 %v25765_v59, %v25766_v26  ;;  %v25807_v59 = vld [vmem:[#allocation136_spill] sm:$0xff]  ;;  %v25808_v26 = vld [vmem:[#allocation125_spill] sm:$0xff] }
 0x68e   :  { %13374 = vmatmul.mubr.msk.bf16.gmra.mrb[156].mxu0 %vm4896_vm6, %v25725_v28  ;;  %v25768_v28 = vld [vmem:[#allocation117_spill] sm:$0xff] }
 0x68f   :  { %13377 = vmatprep.mubr.msk.bf16.mxu0 %vm4896_vm6, %v25726_v9  ;;  %v25769_v9 = vld [vmem:[#allocation124_spill] sm:$0xff] }
 0x690   :  { %v25770_v29 = vpack.c.bf16 %v25768_v28, %v25769_v9  ;;  %v25810_v28 = vld [vmem:[#allocation129_spill] sm:$0xff]  ;;  %v25811_v9 = vld [vmem:[#allocation142_spill] sm:$0xff] }
 0x696   :  { %13378 = vmatmul.mubr.msk.bf16.gmra.mrb[160].mxu0 %vm4896_vm6, %v25728_v24  ;;  %v25771_v24 = vld [vmem:[#allocation134_spill] sm:$0xff] }
 0x697   :  { %13381 = vmatprep.mubr.msk.bf16.mxu0 %vm4896_vm6, %v25731_v48  ;;  %v25773_v25 = vpack.c.bf16 %v25771_v24, %v25772_v54  ;;  %v14528_v48 = vld [vmem:[%s23292_s5 + $0x20] sm:$0xff]   ;;  %v25813_v24 = vld [vmem:[#allocation164_spill] sm:$0xff] }
 0x698   :  { %13605 = vmatprep.subr.bf16.mxu0 %v14528_v48  ;;  %v25814_v54 = vld [vmem:[#allocation156_spill] sm:$0xff] }
 0x69e   :  { %13382 = vmatmul.mubr.msk.bf16.gmra.mrb[164].mxu0 %vm4896_vm6, %v25734_v32  ;;  %v25776_v32 = vpack.c.bf16 %v25774_v14, %v25775_v53  ;;  %v25816_v14 = vld [vmem:[#allocation159_spill] sm:$0xff] }
 0x69f   :  { %13385 = vmatprep.mubr.msk.bf16.mxu0 %vm4896_vm6, %v25737_v5  ;;  %v25779_v5 = vpack.c.bf16 %v25777_v16, %v25778_v38  ;;  %v25817_v53 = vld [vmem:[#allocation167_spill] sm:$0xff]  ;;  %v25819_v16 = vld [vmem:[#allocation176_spill] sm:$0xff]  ;;  %v25820_v38 = vld [vmem:[#allocation174_spill] sm:$0xff] }
 0x6a6   :  { %13386 = vmatmul.mubr.msk.bf16.gmra.mrb[168].mxu0 %vm4896_vm6, %v25740_v40  ;;  %v25782_v40 = vpack.c.bf16 %v25780_v1, %v25781_v30  ;;  %v25822_v1 = vld [vmem:[#allocation175_spill] sm:$0xff]  ;;  %v25823_v30 = vld [vmem:[#allocation177_spill] sm:$0xff] }
 0x6a7   :  { %13389 = vmatprep.mubr.msk.bf16.mxu0 %vm4896_vm6, %v25743_v10  ;;  %v25785_v10 = vpack.c.bf16 %v25783_v21, %v25784_v58  ;;  %v25825_v21 = vld [vmem:[#allocation217_spill] sm:$0xff]  ;;  %v25826_v58 = vld [vmem:[#allocation198_spill] sm:$0xff] }
 0x6ae   :  { %13390 = vmatmul.mubr.msk.bf16.gmra.mrb[172].mxu0 %vm4896_vm6, %v25746_v15  ;;  %v25788_v15 = vpack.c.bf16 %v25786_v22, %v25787_v6  ;;  %v25828_v22 = vld [vmem:[#allocation208_spill] sm:$0xff]  ;;  %v25829_v6 = vld [vmem:[#allocation225_spill] sm:$0xff] }
 0x6af   :  { %13393 = vmatprep.mubr.msk.bf16.mxu0 %vm4896_vm6, %v25749_v7  ;;  %v25791_v7 = vpack.c.bf16 %v25789_v3, %v25790_v45  ;;  %v25831_v3 = vld [vmem:[#allocation265_spill] sm:$0xff] }
 0x6b0   :  { %v25832_v45 = vld [vmem:[#allocation249_spill] sm:$0xff] }
 0x6b6   :  { %13394 = vmatmul.mubr.msk.bf16.gmra.mrb[176].mxu0 %vm4896_vm6, %v25752_v61  ;;  %v25794_v61 = vpack.c.bf16 %v25792_v51, %v25793_v2  ;;  %v25834_v51 = vld [vmem:[#allocation257_spill] sm:$0xff]  ;;  %v25835_v2 = vld [vmem:[#allocation266_spill] sm:$0xff] }
 0x6b7   :  { %13397 = vmatprep.mubr.msk.bf16.mxu0 %vm4896_vm6, %v25755_v34  ;;  %v25797_v34 = vpack.c.bf16 %v25795_v33, %v25796_v13  ;;  %v25837_v33 = vld [vmem:[#allocation294_spill] sm:$0xff] }
 0x6b8   :  { %v25838_v13 = vld [vmem:[#allocation286_spill] sm:$0xff] }
 0x6be   :  { %13398 = vmatmul.mubr.msk.bf16.gmra.mrb[180].mxu0 %vm4896_vm6, %v25758_v50  ;;  %v25800_v50 = vpack.c.bf16 %v25798_v4, %v25799_v0  ;;  %v25840_v4 = vld [vmem:[#allocation287_spill] sm:$0xff] }
 0x6bf   :  { %13401 = vmatprep.mubr.msk.bf16.mxu0 %vm4896_vm6, %v25761_v19  ;;  %v25803_v19 = vpack.c.bf16 %v25801_v39, %v25802_v42  ;;  %v25841_v0 = vld [vmem:[#allocation299_spill] sm:$0xff]  ;;  %v25843_v39 = vld [vmem:[#allocation314_spill] sm:$0xff] }
 0x6c0   :  { %v25844_v42 = vld [vmem:[#allocation310_spill] sm:$0xff] }
 0x6c6   :  { %13402 = vmatmul.mubr.msk.bf16.gmra.mrb[184].mxu0 %vm4896_vm6, %v25764_v27  ;;  %v25806_v27 = vpack.c.bf16 %v25804_v31, %v25805_v11  ;;  %v25846_v31 = vld [vmem:[#allocation311_spill] sm:$0xff] }
 0x6c7   :  { %13405 = vmatprep.mubr.msk.bf16.mxu0 %vm4896_vm6, %v25767_v8  ;;  %v25809_v8 = vpack.c.bf16 %v25807_v59, %v25808_v26  ;;  %v25847_v11 = vld [vmem:[#allocation315_spill] sm:$0xff]  ;;  %v25849_v59 = vld [vmem:[#allocation326_spill] sm:$0xff] }
 0x6c8   :  { %v25850_v26 = vld [vmem:[#allocation322_spill] sm:$0xff] }
 0x6ce   :  { %13406 = vmatmul.mubr.msk.bf16.gmra.mrb[188].mxu0 %vm4896_vm6, %v25770_v29  ;;  %v25812_v29 = vpack.c.bf16 %v25810_v28, %v25811_v9  ;;  %v25852_v28 = vld [vmem:[#allocation323_spill] sm:$0xff] }
 0x6cf   :  { %13409 = vmatprep.mubr.msk.bf16.mxu0 %vm4896_vm6, %v25773_v25  ;;  %v25815_v25 = vpack.c.bf16 %v25813_v24, %v25814_v54  ;;  %v25853_v9 = vld [vmem:[#allocation327_spill] sm:$0xff]  ;;  %v25855_v24 = vpack.c.bf16 %v22267_v52, %v22251_v36  ;;  %v25856_v54 = vpack.c.bf16 %v22255_v56, %v22271_v49  ;;  %v14529_v56 = vld [vmem:[%s23292_s5 + $0x28] sm:$0xff]   ;;  %v25860_v52 = vld [vmem:[#allocation68_spill] sm:$0xff] }
 0x6d0   :  { %v25861_v49 = vld [vmem:[#allocation44_spill] sm:$0xff] }
 0x6d6   :  { %13410 = vmatmul.mubr.msk.bf16.gmra.mrb[192].mxu0 %vm4896_vm6, %v25776_v32  ;;  %v25818_v32 = vpack.c.bf16 %v25816_v14, %v25817_v53  ;;  %v25858_v14 = vld [vmem:[#allocation69_spill] sm:$0xff]  ;;  %v25862_v53 = vpack.c.bf16 %v25860_v52, %v25861_v49  ;;  %v25914_v49 = vld [vmem:[#allocation232_spill] sm:$0xff] }
 0x6d7   :  { %13413 = vmatprep.mubr.msk.bf16.mxu0 %vm4896_vm6, %v25779_v5  ;;  %v25821_v5 = vpack.c.bf16 %v25819_v16, %v25820_v38  ;;  %v25859_v36 = vpack.c.bf16 %v25858_v14, %v20265_v57  ;;  %v25866_v57 = vld [vmem:[#allocation6_spill] sm:$0xff]  ;;  %v25870_v16 = vld [vmem:[#allocation48_spill] sm:$0xff] }
 0x6de   :  { %13414 = vmatmul.mubr.msk.bf16.gmra.mrb[196].mxu0 %vm4896_vm6, %v25782_v40  ;;  %v25824_v40 = vpack.c.bf16 %v25822_v1, %v25823_v30  ;;  %v25873_v1 = vld [vmem:[#allocation47_spill] sm:$0xff]  ;;  %v25875_v30 = vld [vmem:[#allocation12_spill] sm:$0xff] }
 0x6df   :  { %13417 = vmatprep.mubr.msk.bf16.mxu0 %vm4896_vm6, %v25785_v10  ;;  %v25827_v10 = vpack.c.bf16 %v25825_v21, %v25826_v58  ;;  %v25878_v58 = vld [vmem:[#allocation11_spill] sm:$0xff] }
 0x6e6   :  { %13418 = vmatmul.mubr.msk.bf16.gmra.mrb[200].mxu0 %vm4896_vm6, %v25788_v15  ;;  %v25830_v15 = vpack.c.bf16 %v25828_v22, %v25829_v6  ;;  %v25881_v6 = vld [vmem:[#allocation61_spill] sm:$0xff] }
 0x6e7   :  { %13421 = vmatprep.mubr.msk.bf16.mxu0 %vm4896_vm6, %v25791_v7  ;;  %v25833_v7 = vpack.c.bf16 %v25831_v3, %v25832_v45  ;;  %v25884_v45 = vld [vmem:[#allocation60_spill] sm:$0xff] }
 0x6ee   :  { %13422 = vmatmul.mubr.msk.bf16.gmra.mrb[204].mxu0 %vm4896_vm6, %v25794_v61  ;;  %v25836_v61 = vpack.c.bf16 %v25834_v51, %v25835_v2  ;;  %v25887_v2 = vld [vmem:[#allocation18_spill] sm:$0xff] }
 0x6ef   :  { %13425 = vmatprep.mubr.msk.bf16.mxu0 %vm4896_vm6, %v25797_v34  ;;  %v25839_v34 = vpack.c.bf16 %v25837_v33, %v25838_v13  ;;  %v25890_v13 = vld [vmem:[#allocation17_spill] sm:$0xff] }
 0x6f6   :  { %13426 = vmatmul.mubr.msk.bf16.gmra.mrb[208].mxu0 %vm4896_vm6, %v25800_v50  ;;  %v25842_v50 = vpack.c.bf16 %v25840_v4, %v25841_v0  ;;  %v25893_v0 = vld [vmem:[#allocation32_spill] sm:$0xff] }
 0x6f7   :  { %13429 = vmatprep.mubr.msk.bf16.mxu0 %vm4896_vm6, %v25803_v19  ;;  %v25845_v19 = vpack.c.bf16 %v25843_v39, %v25844_v42  ;;  %v25896_v42 = vld [vmem:[#allocation25_spill] sm:$0xff] }
 0x6fe   :  { %13430 = vmatmul.mubr.msk.bf16.gmra.mrb[212].mxu0 %vm4896_vm6, %v25806_v27  ;;  %v25848_v27 = vpack.c.bf16 %v25846_v31, %v25847_v11  ;;  %v25899_v11 = vld [vmem:[#allocation190_spill] sm:$0xff] }
 0x6ff   :  { %13433 = vmatprep.mubr.msk.bf16.mxu0 %vm4896_vm6, %v25809_v8  ;;  %v25851_v8 = vpack.c.bf16 %v25849_v59, %v25850_v26  ;;  %v25902_v26 = vld [vmem:[#allocation189_spill] sm:$0xff] }
 0x706   :  { %13434 = vmatmul.mubr.msk.bf16.gmra.mrb[216].mxu0 %vm4896_vm6, %v25812_v29  ;;  %v25854_v29 = vpack.c.bf16 %v25852_v28, %v25853_v9  ;;  %v25905_v9 = vld [vmem:[#allocation210_spill] sm:$0xff] }
 0x707   :  { %13437 = vmatprep.mubr.msk.bf16.mxu0 %vm4896_vm6, %v25815_v25  ;;  %v25857_v25 = vpack.c.bf16 %v22323_v55, %v22336_v17  ;;  %v25865_v55 = vpack.c.bf16 %v25863_v63, %v25864_v20  ;;  %v25867_v17 = vld [vmem:[#allocation77_spill] sm:$0xff]  ;;  %v25917_v20 = vld [vmem:[#allocation264_spill] sm:$0xff] }
 0x70e   :  { %13438 = vmatmul.mubr.msk.bf16.gmra.mrb[220].mxu0 %vm4896_vm6, %v25818_v32  ;;  %v25869_v32 = vld [vmem:[#allocation52_spill] sm:$0xff] }
 0x70f   :  { %13441 = vmatprep.mubr.msk.bf16.mxu0 %vm4896_vm6, %v25821_v5  ;;  %v25871_v38 = vpack.c.bf16 %v25869_v32, %v25870_v16  ;;  %v25872_v5 = vld [vmem:[#allocation51_spill] sm:$0xff]  ;;  %v25923_v16 = vld [vmem:[#allocation284_spill] sm:$0xff] }
 0x716   :  { %13442 = vmatmul.mubr.msk.bf16.gmra.mrb[224].mxu0 %vm4896_vm6, %v25824_v40  ;;  %v25876_v40 = vld [vmem:[#allocation10_spill] sm:$0xff] }
 0x717   :  { %13445 = vmatprep.mubr.msk.bf16.mxu0 %vm4896_vm6, %v25827_v10  ;;  %v25877_v21 = vpack.c.bf16 %v25875_v30, %v25876_v40  ;;  %v25879_v10 = vld [vmem:[#allocation9_spill] sm:$0xff]  ;;  %v25929_v40 = vld [vmem:[#allocation304_spill] sm:$0xff] }
 0x718   :  { %v25880_v22 = vpack.c.bf16 %v25878_v58, %v25879_v10  ;;  %v25932_v10 = vld [vmem:[#allocation302_spill] sm:$0xff] }
 0x71e   :  { %13446 = vmatmul.mubr.msk.bf16.gmra.mrb[228].mxu0 %vm4896_vm6, %v25830_v15  ;;  %v25882_v15 = vld [vmem:[#allocation31_spill] sm:$0xff] }
 0x71f   :  { %13449 = vmatprep.mubr.msk.bf16.mxu0 %vm4896_vm6, %v25833_v7  ;;  %v25883_v3 = vpack.c.bf16 %v25881_v6, %v25882_v15  ;;  %v25885_v7 = vld [vmem:[#allocation14_spill] sm:$0xff]  ;;  %v25935_v15 = vld [vmem:[#allocation75_spill] sm:$0xff] }
 0x720   :  { %v25886_v51 = vpack.c.bf16 %v25884_v45, %v25885_v7  ;;  %v25938_v7 = vld [vmem:[#allocation38_spill] sm:$0xff] }
 0x726   :  { %13450 = vmatmul.mubr.msk.bf16.gmra.mrb[232].mxu0 %vm4896_vm6, %v25836_v61  ;;  %v25888_v61 = vld [vmem:[#allocation16_spill] sm:$0xff] }
 0x727   :  { %13453 = vmatprep.mubr.msk.bf16.mxu0 %vm4896_vm6, %v25839_v34  ;;  %v25889_v33 = vpack.c.bf16 %v25887_v2, %v25888_v61  ;;  %v25891_v34 = vld [vmem:[#allocation15_spill] sm:$0xff]  ;;  %v25941_v61 = vld [vmem:[#allocation100_spill] sm:$0xff] }
 0x728   :  { %v25892_v4 = vpack.c.bf16 %v25890_v13, %v25891_v34  ;;  %v25944_v34 = vld [vmem:[#allocation88_spill] sm:$0xff] }
 0x72e   :  { %13454 = vmatmul.mubr.msk.bf16.gmra.mrb[236].mxu0 %vm4896_vm6, %v25842_v50  ;;  %v25894_v50 = vld [vmem:[#allocation22_spill] sm:$0xff] }
 0x72f   :  { %13457 = vmatprep.mubr.msk.bf16.mxu0 %vm4896_vm6, %v25845_v19  ;;  %v25895_v39 = vpack.c.bf16 %v25893_v0, %v25894_v50  ;;  %v25897_v19 = vld [vmem:[#allocation21_spill] sm:$0xff]  ;;  %v25947_v50 = vld [vmem:[#allocation119_spill] sm:$0xff] }
 0x730   :  { %v25898_v31 = vpack.c.bf16 %v25896_v42, %v25897_v19  ;;  %v25950_v19 = vld [vmem:[#allocation108_spill] sm:$0xff] }
 0x736   :  { %13458 = vmatmul.mubr.msk.bf16.gmra.mrb[240].mxu0 %vm4896_vm6, %v25848_v27  ;;  %v25900_v27 = vld [vmem:[#allocation162_spill] sm:$0xff] }
 0x737   :  { %13461 = vmatprep.mubr.msk.bf16.mxu0 %vm4896_vm6, %v25851_v8  ;;  %v25901_v59 = vpack.c.bf16 %v25899_v11, %v25900_v27  ;;  %v25903_v8 = vld [vmem:[#allocation161_spill] sm:$0xff]  ;;  %v25953_v27 = vld [vmem:[#allocation138_spill] sm:$0xff] }
 0x738   :  { %v25904_v28 = vpack.c.bf16 %v25902_v26, %v25903_v8  ;;  %v25956_v8 = vld [vmem:[#allocation127_spill] sm:$0xff] }
 0x73e   :  { %13462 = vmatmul.mubr.msk.bf16.gmra.mrb[244].mxu0 %vm4896_vm6, %v25854_v29  ;;  %v25906_v29 = vld [vmem:[#allocation200_spill] sm:$0xff] }
 0x73f   :  { %13465 = vmatprep.mubr.msk.bf16.mxu0 %vm4896_vm6, %v25855_v24  ;;  %v25907_v24 = vpack.c.bf16 %v25905_v9, %v25906_v29  ;;  %v25959_v29 = vld [vmem:[#allocation147_spill] sm:$0xff] }
 0x746   :  { %13466 = vmatmul.mubr.msk.bf16.gmra.mrb[248].mxu0 %vm4896_vm6, %v25856_v54  ;;  %v25908_v54 = vld [vmem:[#allocation209_spill] sm:$0xff] }
 0x747   :  { %13469 = vmatprep.mubr.msk.bf16.mxu0 %vm4896_vm6, %v8491_v62  ;;  %v25868_v62 = vpack.c.bf16 %v25866_v57, %v25867_v17  ;;  %v25920_v17 = vld [vmem:[#allocation262_spill] sm:$0xff] }
 0x74e   :  { %13470 = vmatmul.mubr.msk.bf16.gmra.mrb[252].mxu0 %vm4896_vm6, %v25857_v25  ;;  %v25909_v25 = vld [vmem:[#allocation199_spill] sm:$0xff] }
 0x74f   :  { %13477 = vmatprep.mubr.msk.bf16.mxu0 %vm4896_vm6, %v25859_v36  ;;  %v25910_v14 = vpack.c.bf16 %v25908_v54, %v25909_v25  ;;  %v25911_v36 = vld [vmem:[#allocation231_spill] sm:$0xff]  ;;  %v25962_v25 = vld [vmem:[#allocation148_spill] sm:$0xff] }
 0x756   :  { %13478 = vmatmul.mubr.msk.bf16.vlgmr.msra.gmra.mrb[128].mxu0 %vm4896_vm6, %v25862_v53  ;;  %v25915_v53 = vld [vmem:[#allocation219_spill] sm:$0xff] }
 0x757   :  { %13606 = vmatpush3.bf16.msra.mxu0 %v14528_v48  ;;  %13481 = vmatprep.mubr.msk.bf16.mxu0 %vm4896_vm6, %v25865_v55  ;;  %v25874_v48 = vpack.c.bf16 %v25872_v5, %v25873_v1  ;;  %v25916_v63 = vpack.c.bf16 %v25914_v49, %v25915_v53  ;;  %v25918_v55 = vld [vmem:[#allocation254_spill] sm:$0xff]  ;;  %v25968_v53 = vld [vmem:[#allocation193_spill] sm:$0xff] }
 0x758   :  { %13607 = vmatprep.subr.bf16.mxu0 %v14529_v56  ;;  %v25919_v57 = vpack.c.bf16 %v25917_v20, %v25918_v55  ;;  %v25926_v1 = vld [vmem:[#allocation282_spill] sm:$0xff]  ;;  %v25971_v55 = vld [vmem:[#allocation239_spill] sm:$0xff] }
 0x75b   :  { %13608 = vmatpush3.bf16.msra.mxu0 %v14529_v56  ;;  %v25912_v56 = vld [vmem:[#allocation220_spill] sm:$0xff] }
 0x75c   :  { %v25913_v52 = vpack.c.bf16 %v25911_v36, %v25912_v56  ;;  %v25965_v56 = vld [vmem:[#allocation207_spill] sm:$0xff] }
 0x75e   :  { %13482 = vmatmul.mubr.msk.bf16.gmra.mrb[132].mxu0 %vm4896_vm6, %v25868_v62  ;;  %v25921_v62 = vld [vmem:[#allocation252_spill] sm:$0xff] }
 0x75f   :  { %13485 = vmatprep.mubr.msk.bf16.mxu0 %vm4896_vm6, %v25871_v38  ;;  %v25922_v32 = vpack.c.bf16 %v25920_v17, %v25921_v62  ;;  %v25924_v38 = vld [vmem:[#allocation278_spill] sm:$0xff]  ;;  %v25974_v62 = vld [vmem:[#allocation223_spill] sm:$0xff] }
 0x760   :  { %v25925_v5 = vpack.c.bf16 %v25923_v16, %v25924_v38  ;;  %v25977_v38 = vld [vmem:[#allocation34_spill] sm:$0xff] }
 0x766   :  { %13486 = vmatmul.mubr.msk.bf16.gmra.mrb[136].mxu0 %vm4896_vm6, %v25874_v48  ;;  %v25927_v48 = vld [vmem:[#allocation276_spill] sm:$0xff] }
 0x767   :  { %13489 = vmatprep.mubr.msk.bf16.mxu0 %vm4896_vm6, %v25877_v21  ;;  %v25928_v30 = vpack.c.bf16 %v25926_v1, %v25927_v48  ;;  %v25930_v21 = vld [vmem:[#allocation298_spill] sm:$0xff]  ;;  %v25980_v48 = vld [vmem:[#allocation272_spill] sm:$0xff] }
 0x768   :  { %v25931_v58 = vpack.c.bf16 %v25929_v40, %v25930_v21  ;;  %v25983_v21 = vld [vmem:[#allocation91_spill] sm:$0xff] }
 0x76e   :  { %13490 = vmatmul.mubr.msk.bf16.gmra.mrb[140].mxu0 %vm4896_vm6, %v25880_v22  ;;  %v25933_v22 = vld [vmem:[#allocation296_spill] sm:$0xff] }
 0x76f   :  { %13493 = vmatprep.mubr.msk.bf16.mxu0 %vm4896_vm6, %v25883_v3  ;;  %v25934_v6 = vpack.c.bf16 %v25932_v10, %v25933_v22  ;;  %v25936_v3 = vld [vmem:[#allocation66_spill] sm:$0xff] }
 0x770   :  { %v25937_v45 = vpack.c.bf16 %v25935_v15, %v25936_v3  ;;  %v25986_v22 = vld [vmem:[#allocation90_spill] sm:$0xff]  ;;  %v25989_v3 = vld [vmem:[#allocation123_spill] sm:$0xff] }
 0x776   :  { %13494 = vmatmul.mubr.msk.bf16.gmra.mrb[144].mxu0 %vm4896_vm6, %v25886_v51  ;;  %v25939_v51 = vld [vmem:[#allocation28_spill] sm:$0xff] }
 0x777   :  { %13497 = vmatprep.mubr.msk.bf16.mxu0 %vm4896_vm6, %v25889_v33  ;;  %v25940_v2 = vpack.c.bf16 %v25938_v7, %v25939_v51  ;;  %v25942_v33 = vld [vmem:[#allocation93_spill] sm:$0xff]  ;;  %v25992_v51 = vld [vmem:[#allocation120_spill] sm:$0xff] }
 0x778   :  { %v25943_v13 = vpack.c.bf16 %v25941_v61, %v25942_v33  ;;  %v25995_v33 = vld [vmem:[#allocation155_spill] sm:$0xff] }
 0x77e   :  { %13498 = vmatmul.mubr.msk.bf16.gmra.mrb[148].mxu0 %vm4896_vm6, %v25892_v4  ;;  %v25945_v4 = vld [vmem:[#allocation80_spill] sm:$0xff] }
 0x77f   :  { %13501 = vmatprep.mubr.msk.bf16.mxu0 %vm4896_vm6, %v25895_v39  ;;  %v25946_v0 = vpack.c.bf16 %v25944_v34, %v25945_v4  ;;  %v25948_v39 = vld [vmem:[#allocation113_spill] sm:$0xff]  ;;  %v25998_v4 = vld [vmem:[#allocation151_spill] sm:$0xff] }
 0x780   :  { %v25949_v42 = vpack.c.bf16 %v25947_v50, %v25948_v39  ;;  %v26001_v39 = vld [vmem:[#allocation173_spill] sm:$0xff] }
 0x786   :  { %13502 = vmatmul.mubr.msk.bf16.gmra.mrb[152].mxu0 %vm4896_vm6, %v25898_v31  ;;  %v25951_v31 = vld [vmem:[#allocation101_spill] sm:$0xff] }
 0x787   :  { %13505 = vmatprep.mubr.msk.bf16.mxu0 %vm4896_vm6, %v25901_v59  ;;  %v25952_v11 = vpack.c.bf16 %v25950_v19, %v25951_v31  ;;  %v25954_v59 = vld [vmem:[#allocation132_spill] sm:$0xff] }
 0x788   :  { %v25955_v26 = vpack.c.bf16 %v25953_v27, %v25954_v59  ;;  %v26004_v31 = vld [vmem:[#allocation172_spill] sm:$0xff] }
 0x789   :  { %v26007_v59 = vld [vmem:[#allocation188_spill] sm:$0xff] }
 0x78e   :  { %13506 = vmatmul.mubr.msk.bf16.gmra.mrb[156].mxu0 %vm4896_vm6, %v25904_v28  ;;  %v25957_v28 = vld [vmem:[#allocation121_spill] sm:$0xff] }
 0x78f   :  { %13509 = vmatprep.mubr.msk.bf16.mxu0 %vm4896_vm6, %v25907_v24  ;;  %v25958_v9 = vpack.c.bf16 %v25956_v8, %v25957_v28  ;;  %v25960_v24 = vld [vmem:[#allocation140_spill] sm:$0xff]  ;;  %v26010_v28 = vld [vmem:[#allocation183_spill] sm:$0xff] }
 0x790   :  { %v25961_v54 = vpack.c.bf16 %v25959_v29, %v25960_v24  ;;  %v26013_v24 = vld [vmem:[#allocation247_spill] sm:$0xff] }
 0x796   :  { %13510 = vmatmul.mubr.msk.bf16.gmra.mrb[160].mxu0 %vm4896_vm6, %v25910_v14  ;;  %v25963_v14 = vld [vmem:[#allocation144_spill] sm:$0xff] }
 0x797   :  { %13513 = vmatprep.mubr.msk.bf16.mxu0 %vm4896_vm6, %v25913_v52  ;;  %v25964_v36 = vpack.c.bf16 %v25962_v25, %v25963_v14  ;;  %v25966_v52 = vld [vmem:[#allocation197_spill] sm:$0xff]  ;;  %v26016_v14 = vld [vmem:[#allocation240_spill] sm:$0xff] }
 0x798   :  { %v25967_v49 = vpack.c.bf16 %v25965_v56, %v25966_v52  ;;  %v26019_v52 = vld [vmem:[#allocation285_spill] sm:$0xff] }
 0x79e   :  { %13514 = vmatmul.mubr.msk.bf16.gmra.mrb[164].mxu0 %vm4896_vm6, %v25916_v63  ;;  %v25969_v63 = vld [vmem:[#allocation182_spill] sm:$0xff] }
 0x79f   :  { %13517 = vmatprep.mubr.msk.bf16.mxu0 %vm4896_vm6, %v25919_v57  ;;  %v25970_v20 = vpack.c.bf16 %v25968_v53, %v25969_v63  ;;  %v25972_v57 = vld [vmem:[#allocation228_spill] sm:$0xff] }
 0x7a0   :  { %v25973_v17 = vpack.c.bf16 %v25971_v55, %v25972_v57  ;;  %v26022_v63 = vld [vmem:[#allocation280_spill] sm:$0xff]  ;;  %v26025_v57 = vld [vmem:[#allocation309_spill] sm:$0xff] }
 0x7a6   :  { %13518 = vmatmul.mubr.msk.bf16.gmra.mrb[168].mxu0 %vm4896_vm6, %v25922_v32  ;;  %v25975_v32 = vld [vmem:[#allocation213_spill] sm:$0xff] }
 0x7a7   :  { %13521 = vmatprep.mubr.msk.bf16.mxu0 %vm4896_vm6, %v25925_v5  ;;  %v25976_v16 = vpack.c.bf16 %v25974_v62, %v25975_v32  ;;  %v25978_v5 = vld [vmem:[#allocation259_spill] sm:$0xff] }
 0x7a8   :  { %v25979_v1 = vpack.c.bf16 %v25977_v38, %v25978_v5  ;;  %v26028_v32 = vld [vmem:[#allocation307_spill] sm:$0xff]  ;;  %v26031_v5 = vld [vmem:[#allocation321_spill] sm:$0xff] }
 0x7ae   :  { %13522 = vmatmul.mubr.msk.bf16.gmra.mrb[172].mxu0 %vm4896_vm6, %v25928_v30  ;;  %v25981_v30 = vld [vmem:[#allocation245_spill] sm:$0xff] }
 0x7af   :  { %13525 = vmatprep.mubr.msk.bf16.mxu0 %vm4896_vm6, %v25931_v58  ;;  %v25982_v40 = vpack.c.bf16 %v25980_v48, %v25981_v30  ;;  %v25984_v58 = vld [vmem:[#allocation82_spill] sm:$0xff]  ;;  %v26034_v30 = vld [vmem:[#allocation320_spill] sm:$0xff] }
 0x7b0   :  { %v25985_v10 = vpack.c.bf16 %v25983_v21, %v25984_v58  ;;  %v26037_v58 = vld [vmem:[#allocation333_spill] sm:$0xff] }
 0x7b6   :  { %13526 = vmatmul.mubr.msk.bf16.gmra.mrb[176].mxu0 %vm4896_vm6, %v25934_v6  ;;  %v25987_v6 = vld [vmem:[#allocation74_spill] sm:$0xff] }
 0x7b7   :  { %13529 = vmatprep.mubr.msk.bf16.mxu0 %vm4896_vm6, %v25937_v45  ;;  %v25988_v15 = vpack.c.bf16 %v25986_v22, %v25987_v6  ;;  %v25990_v45 = vld [vmem:[#allocation111_spill] sm:$0xff]  ;;  %v26040_v6 = vld [vmem:[#allocation332_spill] sm:$0xff] }
 0x7b8   :  { %v25991_v7 = vpack.c.bf16 %v25989_v3, %v25990_v45  ;;  %v26043_v45 = vpack.c.bf16 %v22298_v12, %v22281_v46  ;;  %v26055_v12 = vld [vmem:[#allocation54_spill] sm:$0xff] }
 0x7be   :  { %13530 = vmatmul.mubr.msk.bf16.gmra.mrb[180].mxu0 %vm4896_vm6, %v25940_v2  ;;  %v25993_v2 = vld [vmem:[#allocation110_spill] sm:$0xff] }
 0x7bf   :  { %13533 = vmatprep.mubr.msk.bf16.mxu0 %vm4896_vm6, %v25943_v13  ;;  %v25994_v61 = vpack.c.bf16 %v25992_v51, %v25993_v2  ;;  %v25996_v13 = vld [vmem:[#allocation143_spill] sm:$0xff]  ;;  %v26046_v2 = vld [vmem:[#allocation76_spill] sm:$0xff] }
 0x7c0   :  { %v25997_v34 = vpack.c.bf16 %v25995_v33, %v25996_v13  ;;  %v26049_v13 = vld [vmem:[#allocation87_spill] sm:$0xff] }
 0x7c6   :  { %13534 = vmatmul.mubr.msk.bf16.gmra.mrb[184].mxu0 %vm4896_vm6, %v25946_v0  ;;  %v25999_v0 = vld [vmem:[#allocation139_spill] sm:$0xff] }
 0x7c7   :  { %13537 = vmatprep.mubr.msk.bf16.mxu0 %vm4896_vm6, %v25949_v42  ;;  %v26000_v50 = vpack.c.bf16 %v25998_v4, %v25999_v0  ;;  %v26002_v42 = vld [vmem:[#allocation169_spill] sm:$0xff] }
 0x7c8   :  { %v26003_v19 = vpack.c.bf16 %v26001_v39, %v26002_v42  ;;  %v26052_v0 = vld [vmem:[#allocation49_spill] sm:$0xff]  ;;  %v26058_v42 = vld [vmem:[#allocation56_spill] sm:$0xff] }
 0x7c9   :  { %v26056_v39 = vld [vmem:[#allocation53_spill] sm:$0xff] }
 0x7ce   :  { %13538 = vmatmul.mubr.msk.bf16.gmra.mrb[188].mxu0 %vm4896_vm6, %v25952_v11  ;;  %v26005_v11 = vld [vmem:[#allocation168_spill] sm:$0xff] }
 0x7cf   :  { %13541 = vmatprep.mubr.msk.bf16.mxu0 %vm4896_vm6, %v25955_v26  ;;  %v26006_v27 = vpack.c.bf16 %v26004_v31, %v26005_v11  ;;  %v26008_v26 = vld [vmem:[#allocation180_spill] sm:$0xff]  ;;  %v26061_v11 = vld [vmem:[#allocation57_spill] sm:$0xff] }
 0x7d0   :  { %v26009_v8 = vpack.c.bf16 %v26007_v59, %v26008_v26  ;;  %v26064_v26 = vld [vmem:[#allocation59_spill] sm:$0xff] }
 0x7d6   :  { %13542 = vmatmul.mubr.msk.bf16.gmra.mrb[192].mxu0 %vm4896_vm6, %v25958_v9  ;;  %v26011_v9 = vld [vmem:[#allocation179_spill] sm:$0xff] }
 0x7d7   :  { %13545 = vmatprep.mubr.msk.bf16.mxu0 %vm4896_vm6, %v25961_v54  ;;  %v26012_v29 = vpack.c.bf16 %v26010_v28, %v26011_v9  ;;  %v26014_v54 = vld [vmem:[#allocation229_spill] sm:$0xff]  ;;  %v26067_v9 = vld [vmem:[#allocation63_spill] sm:$0xff] }
 0x7d8   :  { %v26015_v25 = vpack.c.bf16 %v26013_v24, %v26014_v54  ;;  %v26070_v54 = vld [vmem:[#allocation65_spill] sm:$0xff] }
 0x7de   :  { %13546 = vmatmul.mubr.msk.bf16.gmra.mrb[196].mxu0 %vm4896_vm6, %v25964_v36  ;;  %v26017_v36 = vld [vmem:[#allocation226_spill] sm:$0xff] }
 0x7df   :  { %13549 = vmatprep.mubr.msk.bf16.mxu0 %vm4896_vm6, %v25967_v49  ;;  %v26018_v56 = vpack.c.bf16 %v26016_v14, %v26017_v36  ;;  %v26020_v49 = vld [vmem:[#allocation273_spill] sm:$0xff]  ;;  %v26073_v36 = vld [vmem:[#allocation20_spill] sm:$0xff] }
 0x7e0   :  { %v26021_v53 = vpack.c.bf16 %v26019_v52, %v26020_v49  ;;  %v26076_v49 = vld [vmem:[#allocation24_spill] sm:$0xff] }
 0x7e6   :  { %13550 = vmatmul.mubr.msk.bf16.gmra.mrb[200].mxu0 %vm4896_vm6, %v25970_v20  ;;  %v26023_v20 = vld [vmem:[#allocation267_spill] sm:$0xff] }
 0x7e7   :  { %13553 = vmatprep.mubr.msk.bf16.mxu0 %vm4896_vm6, %v25973_v17  ;;  %v26024_v55 = vpack.c.bf16 %v26022_v63, %v26023_v20  ;;  %v26026_v17 = vld [vmem:[#allocation305_spill] sm:$0xff]  ;;  %v26079_v20 = vld [vmem:[#allocation30_spill] sm:$0xff] }
 0x7e8   :  { %v26027_v62 = vpack.c.bf16 %v26025_v57, %v26026_v17  ;;  %v26082_v17 = vld [vmem:[#allocation166_spill] sm:$0xff] }
 0x7ee   :  { %13554 = vmatmul.mubr.msk.bf16.gmra.mrb[204].mxu0 %vm4896_vm6, %v25976_v16  ;;  %v26029_v16 = vld [vmem:[#allocation300_spill] sm:$0xff] }
 0x7ef   :  { %13557 = vmatprep.mubr.msk.bf16.mxu0 %vm4896_vm6, %v25979_v1  ;;  %v26030_v38 = vpack.c.bf16 %v26028_v32, %v26029_v16  ;;  %v26032_v1 = vld [vmem:[#allocation317_spill] sm:$0xff]  ;;  %v26085_v16 = vld [vmem:[#allocation192_spill] sm:$0xff] }
 0x7f0   :  { %v26033_v48 = vpack.c.bf16 %v26031_v5, %v26032_v1  ;;  %v26088_v1 = vld [vmem:[#allocation202_spill] sm:$0xff] }
 0x7f6   :  { %13558 = vmatmul.mubr.msk.bf16.gmra.mrb[208].mxu0 %vm4896_vm6, %v25982_v40  ;;  %v26035_v40 = vld [vmem:[#allocation316_spill] sm:$0xff] }
 0x7f7   :  { %13561 = vmatprep.mubr.msk.bf16.mxu0 %vm4896_vm6, %v25985_v10  ;;  %v26036_v21 = vpack.c.bf16 %v26034_v30, %v26035_v40  ;;  %v26038_v10 = vld [vmem:[#allocation329_spill] sm:$0xff] }
 0x7f8   :  { %v26039_v22 = vpack.c.bf16 %v26037_v58, %v26038_v10  ;;  %v26091_v40 = vld [vmem:[#allocation221_spill] sm:$0xff]  ;;  %v26094_v10 = vld [vmem:[#allocation222_spill] sm:$0xff] }
 0x7fe   :  { %13562 = vmatmul.mubr.msk.bf16.gmra.mrb[212].mxu0 %vm4896_vm6, %v25988_v15  ;;  %v26041_v15 = vld [vmem:[#allocation328_spill] sm:$0xff] }
 0x7ff   :  { %13565 = vmatprep.mubr.msk.bf16.mxu0 %vm4896_vm6, %v25991_v7  ;;  %v26042_v3 = vpack.c.bf16 %v26040_v6, %v26041_v15  ;;  %v26044_v7 = vld [vmem:[#allocation8_spill] sm:$0xff]  ;;  %v26097_v15 = vld [vmem:[#allocation242_spill] sm:$0xff] }
 0x800   :  { %v26045_v51 = vpack.c.bf16 %v22291_v47, %v26044_v7  ;;  %v26057_v47 = vpack.c.bf16 %v26055_v12, %v26056_v39  ;;  %v26100_v7 = vld [vmem:[#allocation263_spill] sm:$0xff] }
 0x801   :  { %v26112_v39 = vld [vmem:[#allocation303_spill] sm:$0xff] }
 0x806   :  { %13566 = vmatmul.mubr.msk.bf16.gmra.mrb[216].mxu0 %vm4896_vm6, %v25994_v61  ;;  %v26047_v61 = vld [vmem:[#allocation79_spill] sm:$0xff] }
 0x807   :  { %13569 = vmatprep.mubr.msk.bf16.mxu0 %vm4896_vm6, %v25997_v34  ;;  %v26048_v33 = vpack.c.bf16 %v26046_v2, %v26047_v61  ;;  %v26050_v34 = vld [vmem:[#allocation78_spill] sm:$0xff]  ;;  %v26103_v61 = vld [vmem:[#allocation269_spill] sm:$0xff] }
 0x808   :  { %v26051_v4 = vpack.c.bf16 %v26049_v13, %v26050_v34  ;;  %v26106_v34 = vld [vmem:[#allocation283_spill] sm:$0xff] }
 0x80e   :  { %13570 = vmatmul.mubr.msk.bf16.gmra.mrb[220].mxu0 %vm4896_vm6, %v26000_v50  ;;  %v26053_v50 = vld [vmem:[#allocation50_spill] sm:$0xff] }
 0x80f   :  { %13573 = vmatprep.mubr.msk.bf16.mxu0 %vm4896_vm6, %v26003_v19  ;;  %v26054_v46 = vpack.c.bf16 %v26052_v0, %v26053_v50  ;;  %v26059_v19 = vld [vmem:[#allocation13_spill] sm:$0xff] }
 0x810   :  { %v26060_v31 = vpack.c.bf16 %v26058_v42, %v26059_v19  ;;  %v26109_v50 = vld [vmem:[#allocation289_spill] sm:$0xff]  ;;  %v26115_v19 = vld [vmem:[#allocation39_spill] sm:$0xff] }
 0x816   :  { %13574 = vmatmul.mubr.msk.bf16.gmra.mrb[224].mxu0 %vm4896_vm6, %v26006_v27  ;;  %v26062_v27 = vld [vmem:[#allocation55_spill] sm:$0xff] }
 0x817   :  { %13577 = vmatprep.mubr.msk.bf16.mxu0 %vm4896_vm6, %v26009_v8  ;;  %v26063_v59 = vpack.c.bf16 %v26061_v11, %v26062_v27  ;;  %v26065_v8 = vld [vmem:[#allocation62_spill] sm:$0xff]  ;;  %v26118_v27 = vld [vmem:[#allocation41_spill] sm:$0xff] }
 0x818   :  { %v26066_v28 = vpack.c.bf16 %v26064_v26, %v26065_v8  ;;  %v26121_v8 = vld [vmem:[#allocation70_spill] sm:$0xff] }
 0x81e   :  { %13578 = vmatmul.mubr.msk.bf16.gmra.mrb[228].mxu0 %vm4896_vm6, %v26012_v29  ;;  %v26068_v29 = vld [vmem:[#allocation58_spill] sm:$0xff] }
 0x81f   :  { %13581 = vmatprep.mubr.msk.bf16.mxu0 %vm4896_vm6, %v26015_v25  ;;  %v26069_v24 = vpack.c.bf16 %v26067_v9, %v26068_v29  ;;  %v26071_v25 = vld [vmem:[#allocation19_spill] sm:$0xff]  ;;  %v26124_v29 = vld [vmem:[#allocation89_spill] sm:$0xff] }
 0x820   :  { %v26072_v14 = vpack.c.bf16 %v26070_v54, %v26071_v25  ;;  %v26127_v25 = vld [vmem:[#allocation95_spill] sm:$0xff] }
 0x826   :  { %13582 = vmatmul.mubr.msk.bf16.gmra.mrb[232].mxu0 %vm4896_vm6, %v26018_v56  ;;  %v26074_v56 = vld [vmem:[#allocation64_spill] sm:$0xff] }
 0x827   :  { %13585 = vmatprep.mubr.msk.bf16.mxu0 %vm4896_vm6, %v26021_v53  ;;  %v26075_v52 = vpack.c.bf16 %v26073_v36, %v26074_v56  ;;  %v26077_v53 = vld [vmem:[#allocation33_spill] sm:$0xff] }
 0x828   :  { %v26078_v63 = vpack.c.bf16 %v26076_v49, %v26077_v53  ;;  %v26130_v56 = vld [vmem:[#allocation109_spill] sm:$0xff]  ;;  %v26133_v53 = vld [vmem:[#allocation115_spill] sm:$0xff] }
 0x82e   :  { %13586 = vmatmul.mubr.msk.bf16.gmra.mrb[236].mxu0 %vm4896_vm6, %v26024_v55  ;;  %v26080_v55 = vld [vmem:[#allocation23_spill] sm:$0xff] }
 0x82f   :  { %13589 = vmatprep.mubr.msk.bf16.mxu0 %vm4896_vm6, %v26027_v62  ;;  %v26081_v57 = vpack.c.bf16 %v26079_v20, %v26080_v55  ;;  %v26083_v62 = vld [vmem:[#allocation191_spill] sm:$0xff]  ;;  %v26136_v55 = vld [vmem:[#allocation128_spill] sm:$0xff] }
 0x830   :  { %v26084_v32 = vpack.c.bf16 %v26082_v17, %v26083_v62  ;;  %v26139_v62 = vld [vmem:[#allocation141_spill] sm:$0xff] }
 0x836   :  { %13590 = vmatmul.mubr.msk.bf16.gmra.mrb[240].mxu0 %vm4896_vm6, %v26030_v38  ;;  %v26086_v38 = vld [vmem:[#allocation165_spill] sm:$0xff] }
 0x837   :  { %13593 = vmatprep.mubr.msk.bf16.mxu0 %vm4896_vm6, %v26033_v48  ;;  %v26087_v5 = vpack.c.bf16 %v26085_v16, %v26086_v38  ;;  %v26089_v48 = vld [vmem:[#allocation211_spill] sm:$0xff]  ;;  %v26142_v38 = vld [vmem:[#allocation152_spill] sm:$0xff] }
 0x838   :  { %v26090_v30 = vpack.c.bf16 %v26088_v1, %v26089_v48  ;;  %v26145_v48 = vld [vmem:[#allocation153_spill] sm:$0xff] }
 0x83e   :  { %13594 = vmatmul.mubr.msk.bf16.gmra.mrb[244].mxu0 %vm4896_vm6, %v26036_v21  ;;  %v26092_v21 = vld [vmem:[#allocation201_spill] sm:$0xff] }
 0x83f   :  { %13597 = vmatprep.mubr.msk.bf16.mxu0 %vm4896_vm6, %v26039_v22  ;;  %v26093_v58 = vpack.c.bf16 %v26091_v40, %v26092_v21  ;;  %v26095_v22 = vld [vmem:[#allocation230_spill] sm:$0xff] }
 0x840   :  { %v26096_v6 = vpack.c.bf16 %v26094_v10, %v26095_v22  ;;  %v26148_v21 = vld [vmem:[#allocation194_spill] sm:$0xff]  ;;  %v26151_v22 = vld [vmem:[#allocation203_spill] sm:$0xff] }
 0x846   :  { %13598 = vmatmul.mubr.msk.bf16.gmra.mrb[248].mxu0 %vm4896_vm6, %v26042_v3  ;;  %v26098_v3 = vld [vmem:[#allocation233_spill] sm:$0xff] }
 0x847   :  { %13601 = vmatprep.mubr.msk.bf16.mxu0 %vm4896_vm6, %v26043_v45  ;;  %v26099_v45 = vpack.c.bf16 %v26097_v15, %v26098_v3  ;;  %v26154_v3 = vld [vmem:[#allocation224_spill] sm:$0xff] }
 0x84e   :  { %13602 = vmatmul.mubr.msk.bf16.gmra.mrb[252].mxu0 %vm4896_vm6, %v26045_v51  ;;  %v26101_v51 = vld [vmem:[#allocation261_spill] sm:$0xff] }
 0x84f   :  { %13609 = vmatprep.mubr.msk.bf16.mxu0 %vm4896_vm6, %v26048_v33  ;;  %v26102_v2 = vpack.c.bf16 %v26100_v7, %v26101_v51  ;;  %v26104_v33 = vld [vmem:[#allocation244_spill] sm:$0xff]  ;;  %v26157_v51 = vld [vmem:[#allocation234_spill] sm:$0xff] }
 0x850   :  { %v26105_v13 = vpack.c.bf16 %v26103_v61, %v26104_v33  ;;  %v26160_v33 = vld [vmem:[#allocation256_spill] sm:$0xff] }
 0x856   :  { %13610 = vmatmul.mubr.msk.bf16.vlgmr.msra.gmra.mrb[128].mxu0 %vm4896_vm6, %v26051_v4  ;;  %v26107_v4 = vld [vmem:[#allocation281_spill] sm:$0xff] }
 0x857   :  { %13613 = vmatprep.mubr.msk.bf16.mxu0 %vm4896_vm6, %v26054_v46  ;;  %v26108_v0 = vpack.c.bf16 %v26106_v34, %v26107_v4  ;;  %v26110_v46 = vld [vmem:[#allocation271_spill] sm:$0xff]  ;;  %v26163_v4 = vld [vmem:[#allocation40_spill] sm:$0xff] }
 0x858   :  { %v26111_v12 = vpack.c.bf16 %v26109_v50, %v26110_v46  ;;  %v26166_v46 = vld [vmem:[#allocation83_spill] sm:$0xff] }
 0x85e   :  { %13614 = vmatmul.mubr.msk.bf16.gmra.mrb[132].mxu0 %vm4896_vm6, %v26057_v47  ;;  %v26113_v47 = vld [vmem:[#allocation301_spill] sm:$0xff] }
 0x85f   :  { %13617 = vmatprep.mubr.msk.bf16.mxu0 %vm4896_vm6, %v26060_v31  ;;  %v26114_v42 = vpack.c.bf16 %v26112_v39, %v26113_v47  ;;  %v26116_v31 = vld [vmem:[#allocation291_spill] sm:$0xff] }
 0x860   :  { %v26117_v11 = vpack.c.bf16 %v26115_v19, %v26116_v31  ;;  %v26169_v47 = vld [vmem:[#allocation99_spill] sm:$0xff]  ;;  %v26172_v31 = vld [vmem:[#allocation114_spill] sm:$0xff] }
 0x866   :  { %13618 = vmatmul.mubr.msk.bf16.gmra.mrb[136].mxu0 %vm4896_vm6, %v26063_v59  ;;  %v26119_v59 = vld [vmem:[#allocation42_spill] sm:$0xff] }
 0x867   :  { %13621 = vmatprep.mubr.msk.bf16.mxu0 %vm4896_vm6, %v26066_v28  ;;  %v26120_v26 = vpack.c.bf16 %v26118_v27, %v26119_v59  ;;  %v26122_v28 = vld [vmem:[#allocation36_spill] sm:$0xff]  ;;  %v26175_v59 = vld [vmem:[#allocation130_spill] sm:$0xff] }
 0x868   :  { %v26123_v9 = vpack.c.bf16 %v26121_v8, %v26122_v28  ;;  %v26178_v28 = vld [vmem:[#allocation145_spill] sm:$0xff] }
 0x86e   :  { %13622 = vmatmul.mubr.msk.bf16.gmra.mrb[140].mxu0 %vm4896_vm6, %v26069_v24  ;;  %v26125_v24 = vld [vmem:[#allocation92_spill] sm:$0xff] }
 0x86f   :  { %13625 = vmatprep.mubr.msk.bf16.mxu0 %vm4896_vm6, %v26072_v14  ;;  %v26126_v54 = vpack.c.bf16 %v26124_v29, %v26125_v24  ;;  %v26128_v14 = vld [vmem:[#allocation85_spill] sm:$0xff]  ;;  %v26181_v24 = vld [vmem:[#allocation160_spill] sm:$0xff] }
 0x870   :  { %v26129_v36 = vpack.c.bf16 %v26127_v25, %v26128_v14  ;;  %v26184_v14 = vld [vmem:[#allocation170_spill] sm:$0xff] }
 0x876   :  { %13626 = vmatmul.mubr.msk.bf16.gmra.mrb[144].mxu0 %vm4896_vm6, %v26075_v52  ;;  %v26131_v52 = vld [vmem:[#allocation112_spill] sm:$0xff] }
 0x877   :  { %13629 = vmatprep.mubr.msk.bf16.mxu0 %vm4896_vm6, %v26078_v63  ;;  %v26132_v49 = vpack.c.bf16 %v26130_v56, %v26131_v52  ;;  %v26134_v63 = vld [vmem:[#allocation106_spill] sm:$0xff] }
 0x878   :  { %v26135_v20 = vpack.c.bf16 %v26133_v53, %v26134_v63  ;;  %v26187_v52 = vld [vmem:[#allocation178_spill] sm:$0xff]  ;;  %v26190_v63 = vld [vmem:[#allocation181_spill] sm:$0xff] }
 0x87e   :  { %13630 = vmatmul.mubr.msk.bf16.gmra.mrb[148].mxu0 %vm4896_vm6, %v26081_v57  ;;  %v26137_v57 = vld [vmem:[#allocation131_spill] sm:$0xff] }
 0x87f   :  { %13633 = vmatprep.mubr.msk.bf16.mxu0 %vm4896_vm6, %v26084_v32  ;;  %v26138_v17 = vpack.c.bf16 %v26136_v55, %v26137_v57  ;;  %v26140_v32 = vld [vmem:[#allocation126_spill] sm:$0xff] }
 0x880   :  { %v26141_v16 = vpack.c.bf16 %v26139_v62, %v26140_v32  ;;  %v26193_v57 = vld [vmem:[#allocation206_spill] sm:$0xff]  ;;  %v26196_v32 = vld [vmem:[#allocation236_spill] sm:$0xff] }
 0x886   :  { %13634 = vmatmul.mubr.msk.bf16.gmra.mrb[152].mxu0 %vm4896_vm6, %v26087_v5  ;;  %v26143_v5 = vld [vmem:[#allocation150_spill] sm:$0xff] }
 0x887   :  { %13637 = vmatprep.mubr.msk.bf16.mxu0 %vm4896_vm6, %v26090_v30  ;;  %v26144_v1 = vpack.c.bf16 %v26142_v38, %v26143_v5  ;;  %v26146_v30 = vld [vmem:[#allocation158_spill] sm:$0xff] }
 0x888   :  { %v26147_v40 = vpack.c.bf16 %v26145_v48, %v26146_v30  ;;  %v26199_v5 = vld [vmem:[#allocation258_spill] sm:$0xff] }
 0x889   :  { %v26202_v30 = vld [vmem:[#allocation274_spill] sm:$0xff] }
 0x88e   :  { %13638 = vmatmul.mubr.msk.bf16.gmra.mrb[156].mxu0 %vm4896_vm6, %v26093_v58  ;;  %v26149_v58 = vld [vmem:[#allocation195_spill] sm:$0xff] }
 0x88f   :  { %13641 = vmatprep.mubr.msk.bf16.mxu0 %vm4896_vm6, %v26096_v6  ;;  %v26150_v10 = vpack.c.bf16 %v26148_v21, %v26149_v58  ;;  %v26152_v6 = vld [vmem:[#allocation187_spill] sm:$0xff]  ;;  %v26205_v58 = vld [vmem:[#allocation292_spill] sm:$0xff] }
 0x890   :  { %v26153_v15 = vpack.c.bf16 %v26151_v22, %v26152_v6  ;;  %v26208_v6 = vld [vmem:[#allocation306_spill] sm:$0xff] }
 0x896   :  { %13642 = vmatmul.mubr.msk.bf16.gmra.mrb[160].mxu0 %vm4896_vm6, %v26099_v45  ;;  %v26155_v45 = vld [vmem:[#allocation227_spill] sm:$0xff] }
 0x897   :  { %13645 = vmatprep.mubr.msk.bf16.mxu0 %vm4896_vm6, %v26102_v2  ;;  %v26156_v7 = vpack.c.bf16 %v26154_v3, %v26155_v45  ;;  %v26158_v2 = vld [vmem:[#allocation218_spill] sm:$0xff]  ;;  %v23108_v45 = vld [vmem:[%s23293_s6] ss:$0 sm:$0xff] }
 0x898   :  { %v26159_v61 = vpack.c.bf16 %v26157_v51, %v26158_v2 }
 0x89e   :  { %13646 = vmatmul.mubr.msk.bf16.gmra.mrb[164].mxu0 %vm4896_vm6, %v26105_v13  ;;  %v26161_v13 = vld [vmem:[#allocation255_spill] sm:$0xff] }
 0x89f   :  { %13649 = vmatprep.mubr.msk.bf16.mxu0 %vm4896_vm6, %v26108_v0  ;;  %v26162_v34 = vpack.c.bf16 %v26160_v33, %v26161_v13  ;;  %v26164_v0 = vld [vmem:[#allocation250_spill] sm:$0xff] }
 0x8a0   :  { %v26165_v50 = vpack.c.bf16 %v26163_v4, %v26164_v0 }
 0x8a6   :  { %13650 = vmatmul.mubr.msk.bf16.gmra.mrb[168].mxu0 %vm4896_vm6, %v26111_v12  ;;  %v26167_v12 = vld [vmem:[#allocation86_spill] sm:$0xff] }
 0x8a7   :  { %13653 = vmatprep.mubr.msk.bf16.mxu0 %vm4896_vm6, %v26114_v42  ;;  %v26168_v39 = vpack.c.bf16 %v26166_v46, %v26167_v12  ;;  %v26170_v42 = vld [vmem:[#allocation43_spill] sm:$0xff]  ;;  %v26211_v12 = vld [vmem:[#allocation312_spill] sm:$0xff] }
 0x8a8   :  { %v26171_v19 = vpack.c.bf16 %v26169_v47, %v26170_v42 }
 0x8ae   :  { %13654 = vmatmul.mubr.msk.bf16.gmra.mrb[172].mxu0 %vm4896_vm6, %v26117_v11  ;;  %v26173_v11 = vld [vmem:[#allocation118_spill] sm:$0xff] }
 0x8af   :  { %13657 = vmatprep.mubr.msk.bf16.mxu0 %vm4896_vm6, %v26120_v26  ;;  %v26174_v27 = vpack.c.bf16 %v26172_v31, %v26173_v11  ;;  %v26176_v26 = vld [vmem:[#allocation103_spill] sm:$0xff] }
 0x8b0   :  { %v26177_v8 = vpack.c.bf16 %v26175_v59, %v26176_v26  ;;  %v26215_v31 = vld [vmem:[#allocation319_spill] sm:$0xff] }
 0x8b6   :  { %13658 = vmatmul.mubr.msk.bf16.gmra.mrb[176].mxu0 %vm4896_vm6, %v26123_v9  ;;  %v26179_v9 = vld [vmem:[#allocation149_spill] sm:$0xff] }
 0x8b7   :  { %13661 = vmatprep.mubr.msk.bf16.mxu0 %vm4896_vm6, %v26126_v54  ;;  %v26180_v29 = vpack.c.bf16 %v26178_v28, %v26179_v9  ;;  %v26182_v54 = vld [vmem:[#allocation133_spill] sm:$0xff] }
 0x8b8   :  { %v26183_v25 = vpack.c.bf16 %v26181_v24, %v26182_v54 }
 0x8be   :  { %13662 = vmatmul.mubr.msk.bf16.gmra.mrb[180].mxu0 %vm4896_vm6, %v26129_v36  ;;  %v26185_v36 = vld [vmem:[#allocation171_spill] sm:$0xff] }
 0x8bf   :  { %13665 = vmatprep.mubr.msk.bf16.mxu0 %vm4896_vm6, %v26132_v49  ;;  %v26186_v56 = vpack.c.bf16 %v26184_v14, %v26185_v36  ;;  %v26188_v49 = vld [vmem:[#allocation163_spill] sm:$0xff]  ;;  %v26217_v36 = vld [vmem:[#allocation324_spill] sm:$0xff] }
 0x8c0   :  { %v26189_v53 = vpack.c.bf16 %v26187_v52, %v26188_v49 }
 0x8c6   :  { %13666 = vmatmul.mubr.msk.bf16.gmra.mrb[184].mxu0 %vm4896_vm6, %v26135_v20  ;;  %v26191_v20 = vld [vmem:[#allocation186_spill] sm:$0xff] }
 0x8c7   :  { %13669 = vmatprep.mubr.msk.bf16.mxu0 %vm4896_vm6, %v26138_v17  ;;  %v26192_v55 = vpack.c.bf16 %v26190_v63, %v26191_v20  ;;  %v26194_v17 = vld [vmem:[#allocation196_spill] sm:$0xff]  ;;  %v26221_v63 = vld [vmem:[#allocation331_spill] sm:$0xff] }
 0x8c8   :  { %v26195_v62 = vpack.c.bf16 %v26193_v57, %v26194_v17 }
 0x8ce   :  { %13670 = vmatmul.mubr.msk.bf16.gmra.mrb[188].mxu0 %vm4896_vm6, %v26141_v16  ;;  %v26197_v16 = vld [vmem:[#allocation237_spill] sm:$0xff] }
 0x8cf   :  { %13673 = vmatprep.mubr.msk.bf16.mxu0 %vm4896_vm6, %v26144_v1  ;;  %v26198_v38 = vpack.c.bf16 %v26196_v32, %v26197_v16  ;;  %v26200_v1 = vld [vmem:[#allocation215_spill] sm:$0xff] }
 0x8d0   :  { %v26201_v48 = vpack.c.bf16 %v26199_v5, %v26200_v1 }
 0x8d6   :  { %13674 = vmatmul.mubr.msk.bf16.gmra.mrb[192].mxu0 %vm4896_vm6, %v26147_v40  ;;  %v26203_v40 = vld [vmem:[#allocation279_spill] sm:$0xff] }
 0x8d7   :  { %13677 = vmatprep.mubr.msk.bf16.mxu0 %vm4896_vm6, %v26150_v10  ;;  %v26204_v21 = vpack.c.bf16 %v26202_v30, %v26203_v40  ;;  %v26206_v10 = vld [vmem:[#allocation260_spill] sm:$0xff]  ;;  %v26223_v40 = vld [vmem:[#allocation7_spill] sm:$0xff] }
 0x8d8   :  { %v26207_v22 = vpack.c.bf16 %v26205_v58, %v26206_v10 }
 0x8de   :  { %13678 = vmatmul.mubr.msk.bf16.gmra.mrb[196].mxu0 %vm4896_vm6, %v26153_v15  ;;  %v26209_v15 = vld [vmem:[#allocation308_spill] sm:$0xff] }
 0x8df   :  { %13681 = vmatprep.mubr.msk.bf16.mxu0 %vm4896_vm6, %v26156_v7  ;;  %v26210_v3 = vpack.c.bf16 %v26208_v6, %v26209_v15  ;;  %v26227_v6 = vld [vmem:[#allocation335_spill] sm:$0xff] }
 0x8e6   :  { %13682 = vmatmul.mubr.msk.bf16.gmra.mrb[200].mxu0 %vm4896_vm6, %v26159_v61 }
 0x8e7   :  { %13685 = vmatprep.mubr.msk.bf16.mxu0 %vm4896_vm6, %v26162_v34 }
 0x8ee   :  { %13686 = vmatmul.mubr.msk.bf16.gmra.mrb[204].mxu0 %vm4896_vm6, %v26165_v50 }
 0x8ef   :  { %13689 = vmatprep.mubr.msk.bf16.mxu0 %vm4896_vm6, %v26168_v39  ;;  %v26212_v39 = vld [vmem:[#allocation293_spill] sm:$0xff] }
 0x8f0   :  { %v26213_v47 = vpack.c.bf16 %v26211_v12, %v26212_v39 }
 0x8f6   :  { %13690 = vmatmul.mubr.msk.bf16.gmra.mrb[208].mxu0 %vm4896_vm6, %v26171_v19  ;;  %v26214_v19 = vld [vmem:[#allocation318_spill] sm:$0xff] }
 0x8f7   :  { %13693 = vmatprep.mubr.msk.bf16.mxu0 %vm4896_vm6, %v26174_v27  ;;  %v26216_v11 = vpack.c.bf16 %v26214_v19, %v26215_v31 }
 0x8fe   :  { %13694 = vmatmul.mubr.msk.bf16.gmra.mrb[212].mxu0 %vm4896_vm6, %v26177_v8 }
 0x8ff   :  { %13697 = vmatprep.mubr.msk.bf16.mxu0 %vm4896_vm6, %v26180_v29 }
 0x906   :  { %13698 = vmatmul.mubr.msk.bf16.gmra.mrb[216].mxu0 %vm4896_vm6, %v26183_v25 }
 0x907   :  { %13701 = vmatprep.mubr.msk.bf16.mxu0 %vm4896_vm6, %v26186_v56  ;;  %v26218_v56 = vld [vmem:[#allocation313_spill] sm:$0xff] }
 0x908   :  { %v26219_v52 = vpack.c.bf16 %v26217_v36, %v26218_v56 }
 0x90e   :  { %13702 = vmatmul.mubr.msk.bf16.gmra.mrb[220].mxu0 %vm4896_vm6, %v26189_v53  ;;  %v26220_v53 = vld [vmem:[#allocation330_spill] sm:$0xff] }
 0x90f   :  { %13705 = vmatprep.mubr.msk.bf16.mxu0 %vm4896_vm6, %v26192_v55  ;;  %v26222_v20 = vpack.c.bf16 %v26220_v53, %v26221_v63 }
 0x916   :  { %13706 = vmatmul.mubr.msk.bf16.gmra.mrb[224].mxu0 %vm4896_vm6, %v26195_v62 }
 0x917   :  { %13709 = vmatprep.mubr.msk.bf16.mxu0 %vm4896_vm6, %v26198_v38 }
 0x91e   :  { %13710 = vmatmul.mubr.msk.bf16.gmra.mrb[228].mxu0 %vm4896_vm6, %v26201_v48 }
 0x91f   :  { %13713 = vmatprep.mubr.msk.bf16.mxu0 %vm4896_vm6, %v26204_v21  ;;  %v26224_v21 = vld [vmem:[#allocation325_spill] sm:$0xff] }
 0x920   :  { %v26225_v58 = vpack.c.bf16 %v26223_v40, %v26224_v21 }
 0x926   :  { %13714 = vmatmul.mubr.msk.bf16.gmra.mrb[232].mxu0 %vm4896_vm6, %v26207_v22  ;;  %v26226_v22 = vld [vmem:[#allocation334_spill] sm:$0xff] }
 0x927   :  { %13717 = vmatprep.mubr.msk.bf16.mxu0 %vm4896_vm6, %v26210_v3  ;;  %v26228_v15 = vpack.c.bf16 %v26226_v22, %v26227_v6 }
 0x929   :  { %v13611_v7 = vpop.f32.mrb[128].mxu0 }
 0x92a   :  { %v10950_v51 = vadd.f32 %v13611_v7, %v23108_v45  ;;  %v10302_v2 = vpop.f32.mrb[129].mxu0 }
 0x92b   :  { %v10948_v61 = vadd.f32 %v23108_v45, %v10302_v2  ;;  %v13612_v33 = vpop.f32.mrb[130].mxu0 }
 0x92c   :  { %v11078_v13 = vmax.f32 %v10950_v51, 0.0  ;;  %v10951_v34 = vadd.f32 %v13612_v33, %v23108_v45  ;;  %v10305_v4 = vpop.f32.mrb[131].mxu0 }
 0x92d   :  { %v11076_v0 = vmax.f32 %v10948_v61, 0.0  ;;  %v10949_v50 = vadd.f32 %v23108_v45, %v10305_v4 }
 0x92e   :  { %11206 = vst [vmem:[#allocation2 + $0x10] sm:$0xff] %v11078_v13  ;;  %v11079_v46 = vmax.f32 %v10951_v34, 0.0  ;;  %13718 = vmatmul.mubr.msk.bf16.gmra.mrb[236].mxu0 %vm4896_vm6, %v26213_v47 }
 0x92f   :  { %11204 = vst [vmem:[#allocation2] sm:$0xff] %v11076_v0  ;;  %v11077_v42 = vmax.f32 %v10949_v50, 0.0  ;;  %13721 = vmatprep.mubr.msk.bf16.mxu0 %vm4896_vm6, %v26216_v11 }
 0x930   :  { %11207 = vst [vmem:[#allocation2 + $0x18] sm:$0xff] %v11079_v46  ;;  %v26229_v46 = vpack.c.bf16 %v22327_v37, %v22263_v35 }
 0x931   :  { %11205 = vst [vmem:[#allocation2 + $0x8] sm:$0xff] %v11077_v42  ;;  %v13615_v27 = vpop.f32.mrb[132].mxu0 }
 0x932   :  { %v10954_v59 = vadd.f32 %v13615_v27, %v23108_v45  ;;  %v10318_v26 = vpop.f32.mrb[133].mxu0 }
 0x933   :  { %v10952_v8 = vadd.f32 %v23108_v45, %v10318_v26  ;;  %v13616_v28 = vpop.f32.mrb[134].mxu0 }
 0x934   :  { %v11082_v9 = vmax.f32 %v10954_v59, 0.0  ;;  %v10955_v29 = vadd.f32 %v13616_v28, %v23108_v45  ;;  %v10321_v24 = vpop.f32.mrb[135].mxu0 }
 0x935   :  { %v11080_v54 = vmax.f32 %v10952_v8, 0.0  ;;  %v10953_v25 = vadd.f32 %v23108_v45, %v10321_v24 }
 0x936   :  { %11210 = vst [vmem:[#allocation2 + $0x30] sm:$0xff] %v11082_v9  ;;  %v11083_v14 = vmax.f32 %v10955_v29, 0.0  ;;  %13722 = vmatmul.mubr.msk.bf16.gmra.mrb[240].mxu0 %vm4896_vm6, %v26219_v52 }
 0x937   :  { %11208 = vst [vmem:[#allocation2 + $0x20] sm:$0xff] %v11080_v54  ;;  %v11081_v49 = vmax.f32 %v10953_v25, 0.0  ;;  %13725 = vmatprep.mubr.msk.bf16.mxu0 %vm4896_vm6, %v26222_v20 }
 0x938   :  { %11211 = vst [vmem:[#allocation2 + $0x38] sm:$0xff] %v11083_v14 }
 0x939   :  { %11209 = vst [vmem:[#allocation2 + $0x28] sm:$0xff] %v11081_v49  ;;  %v13619_v55 = vpop.f32.mrb[136].mxu0 }
 0x93a   :  { %v10958_v57 = vadd.f32 %v13619_v55, %v23108_v45  ;;  %v10334_v17 = vpop.f32.mrb[137].mxu0 }
 0x93b   :  { %v10956_v62 = vadd.f32 %v23108_v45, %v10334_v17  ;;  %v13620_v32 = vpop.f32.mrb[138].mxu0 }
 0x93c   :  { %v11086_v16 = vmax.f32 %v10958_v57, 0.0  ;;  %v10959_v38 = vadd.f32 %v13620_v32, %v23108_v45  ;;  %v10337_v5 = vpop.f32.mrb[139].mxu0 }
 0x93d   :  { %v11084_v1 = vmax.f32 %v10956_v62, 0.0  ;;  %v10957_v48 = vadd.f32 %v23108_v45, %v10337_v5 }
 0x93e   :  { %11214 = vst [vmem:[#allocation2 + $0x50] sm:$0xff] %v11086_v16  ;;  %v11087_v30 = vmax.f32 %v10959_v38, 0.0  ;;  %13726 = vmatmul.mubr.msk.bf16.gmra.mrb[244].mxu0 %vm4896_vm6, %v26225_v58 }
 0x93f   :  { %11212 = vst [vmem:[#allocation2 + $0x40] sm:$0xff] %v11084_v1  ;;  %v11085_v10 = vmax.f32 %v10957_v48, 0.0  ;;  %13729 = vmatprep.mubr.msk.bf16.mxu0 %vm4896_vm6, %v26228_v15 }
 0x940   :  { %11215 = vst [vmem:[#allocation2 + $0x58] sm:$0xff] %v11087_v30 }
 0x941   :  { %11213 = vst [vmem:[#allocation2 + $0x48] sm:$0xff] %v11085_v10  ;;  %v13623_v3 = vpop.f32.mrb[140].mxu0 }
 0x942   :  { %v10962_v7 = vadd.f32 %v13623_v3, %v23108_v45  ;;  %v10350_v51 = vpop.f32.mrb[141].mxu0 }
 0x943   :  { %v10960_v2 = vadd.f32 %v23108_v45, %v10350_v51  ;;  %v13624_v61 = vpop.f32.mrb[142].mxu0 }
 0x944   :  { %v11090_v33 = vmax.f32 %v10962_v7, 0.0  ;;  %v10963_v13 = vadd.f32 %v13624_v61, %v23108_v45  ;;  %v10353_v34 = vpop.f32.mrb[143].mxu0 }
 0x945   :  { %v11088_v4 = vmax.f32 %v10960_v2, 0.0  ;;  %v10961_v0 = vadd.f32 %v23108_v45, %v10353_v34 }
 0x946   :  { %11218 = vst [vmem:[#allocation2 + $0x70] sm:$0xff] %v11090_v33  ;;  %v11091_v50 = vmax.f32 %v10963_v13, 0.0  ;;  %13730 = vmatmul.mubr.msk.bf16.gmra.mrb[248].mxu0 %vm4896_vm6, %v26229_v46 }
 0x947   :  { %11216 = vst [vmem:[#allocation2 + $0x60] sm:$0xff] %v11088_v4  ;;  %v11089_v12 = vmax.f32 %v10961_v0, 0.0  ;;  %13733 = vmatprep.mubr.msk.bf16.mxu0 %vm4896_vm6, %v10057_v18 }
 0x948   :  { %11219 = vst [vmem:[#allocation2 + $0x78] sm:$0xff] %v11091_v50 }
 0x949   :  { %11217 = vst [vmem:[#allocation2 + $0x68] sm:$0xff] %v11089_v12  ;;  %v13627_v39 = vpop.f32.mrb[144].mxu0 }
 0x94a   :  { %v10966_v47 = vadd.f32 %v13627_v39, %v23108_v45  ;;  %v10366_v42 = vpop.f32.mrb[145].mxu0 }
 0x94b   :  { %v10964_v19 = vadd.f32 %v23108_v45, %v10366_v42  ;;  %v13628_v31 = vpop.f32.mrb[146].mxu0 }
 0x94c   :  { %v11094_v11 = vmax.f32 %v10966_v47, 0.0  ;;  %v10967_v35 = vadd.f32 %v13628_v31, %v23108_v45  ;;  %v10369_v37 = vpop.f32.mrb[147].mxu0 }
 0x94d   :  { %v11092_v27 = vmax.f32 %v10964_v19, 0.0  ;;  %v10965_v59 = vadd.f32 %v23108_v45, %v10369_v37 }
 0x94e   :  { %11222 = vst [vmem:[#allocation2 + $0x90] sm:$0xff] %v11094_v11  ;;  %v11095_v41 = vmax.f32 %v10967_v35, 0.0  ;;  %13734 = vmatmul.mubr.msk.bf16.gmra.mrb[252].mxu0 %vm4896_vm6, %v10058_v60 }
 0x94f   :  { %11220 = vst [vmem:[#allocation2 + $0x80] sm:$0xff] %v11092_v27  ;;  %v11093_v43 = vmax.f32 %v10965_v59, 0.0 }
 0x950   :  { %11223 = vst [vmem:[#allocation2 + $0x98] sm:$0xff] %v11095_v41 }
 0x951   :  { %11221 = vst [vmem:[#allocation2 + $0x88] sm:$0xff] %v11093_v43  ;;  %v13631_v18 = vpop.f32.mrb[148].mxu0 }
 0x952   :  { %v10970_v26 = vadd.f32 %v13631_v18, %v23108_v45  ;;  %v10382_v8 = vpop.f32.mrb[149].mxu0 }
 0x953   :  { %v10968_v28 = vadd.f32 %v23108_v45, %v10382_v8  ;;  %v13632_v9 = vpop.f32.mrb[150].mxu0 }
 0x954   :  { %v11098_v29 = vmax.f32 %v10970_v26, 0.0  ;;  %v10971_v24 = vadd.f32 %v13632_v9, %v23108_v45  ;;  %v10385_v54 = vpop.f32.mrb[151].mxu0 }
 0x955   :  { %v11096_v25 = vmax.f32 %v10968_v28, 0.0  ;;  %v10969_v23 = vadd.f32 %v23108_v45, %v10385_v54 }
 0x956   :  { %11226 = vst [vmem:[#allocation2 + $0xb0] sm:$0xff] %v11098_v29  ;;  %v11099_v44 = vmax.f32 %v10971_v24, 0.0 }
 0x957   :  { %11224 = vst [vmem:[#allocation2 + $0xa0] sm:$0xff] %v11096_v25  ;;  %v11097_v60 = vmax.f32 %v10969_v23, 0.0 }
 0x958   :  { %11227 = vst [vmem:[#allocation2 + $0xb8] sm:$0xff] %v11099_v44 }
 0x959   :  { %11225 = vst [vmem:[#allocation2 + $0xa8] sm:$0xff] %v11097_v60  ;;  %v13635_v14 = vpop.f32.mrb[152].mxu0 }
 0x95a   :  { %v10974_v36 = vadd.f32 %v13635_v14, %v23108_v45  ;;  %v10398_v56 = vpop.f32.mrb[153].mxu0 }
 0x95b   :  { %v10972_v52 = vadd.f32 %v23108_v45, %v10398_v56  ;;  %v13636_v49 = vpop.f32.mrb[154].mxu0 }
 0x95c   :  { %v11102_v53 = vmax.f32 %v10974_v36, 0.0  ;;  %v10975_v63 = vadd.f32 %v13636_v49, %v23108_v45  ;;  %v10401_v20 = vpop.f32.mrb[155].mxu0 }
 0x95d   :  { %v11100_v55 = vmax.f32 %v10972_v52, 0.0  ;;  %v10973_v57 = vadd.f32 %v23108_v45, %v10401_v20 }
 0x95e   :  { %11230 = vst [vmem:[#allocation2 + $0xd0] sm:$0xff] %v11102_v53  ;;  %v11103_v17 = vmax.f32 %v10975_v63, 0.0 }
 0x95f   :  { %11228 = vst [vmem:[#allocation2 + $0xc0] sm:$0xff] %v11100_v55  ;;  %v11101_v62 = vmax.f32 %v10973_v57, 0.0 }
 0x960   :  { %11231 = vst [vmem:[#allocation2 + $0xd8] sm:$0xff] %v11103_v17 }
 0x961   :  { %11229 = vst [vmem:[#allocation2 + $0xc8] sm:$0xff] %v11101_v62  ;;  %v13639_v32 = vpop.f32.mrb[156].mxu0 }
 0x962   :  { %v10978_v16 = vadd.f32 %v13639_v32, %v23108_v45  ;;  %v10414_v38 = vpop.f32.mrb[157].mxu0 }
 0x963   :  { %v10976_v5 = vadd.f32 %v23108_v45, %v10414_v38  ;;  %v13640_v1 = vpop.f32.mrb[158].mxu0 }
 0x964   :  { %v11106_v48 = vmax.f32 %v10978_v16, 0.0  ;;  %v10979_v30 = vadd.f32 %v13640_v1, %v23108_v45  ;;  %v10417_v40 = vpop.f32.mrb[159].mxu0 }
 0x965   :  { %v11104_v21 = vmax.f32 %v10976_v5, 0.0  ;;  %v10977_v58 = vadd.f32 %v23108_v45, %v10417_v40 }
 0x966   :  { %11234 = vst [vmem:[#allocation2 + $0xf0] sm:$0xff] %v11106_v48  ;;  %v11107_v10 = vmax.f32 %v10979_v30, 0.0 }
 0x967   :  { %11232 = vst [vmem:[#allocation2 + $0xe0] sm:$0xff] %v11104_v21  ;;  %v11105_v22 = vmax.f32 %v10977_v58, 0.0 }
 0x968   :  { %11235 = vst [vmem:[#allocation2 + $0xf8] sm:$0xff] %v11107_v10 }
 0x969   :  { %11233 = vst [vmem:[#allocation2 + $0xe8] sm:$0xff] %v11105_v22  ;;  %v13643_v6 = vpop.f32.mrb[160].mxu0 }
 0x96a   :  { %v10982_v15 = vadd.f32 %v13643_v6, %v23108_v45  ;;  %v10430_v3 = vpop.f32.mrb[161].mxu0 }
 0x96b   :  { %v10980_v7 = vadd.f32 %v23108_v45, %v10430_v3  ;;  %v13644_v51 = vpop.f32.mrb[162].mxu0 }
 0x96c   :  { %v11110_v2 = vmax.f32 %v10982_v15, 0.0  ;;  %v10983_v61 = vadd.f32 %v13644_v51, %v23108_v45  ;;  %v10433_v33 = vpop.f32.mrb[163].mxu0 }
 0x96d   :  { %v11108_v13 = vmax.f32 %v10980_v7, 0.0  ;;  %v10981_v34 = vadd.f32 %v23108_v45, %v10433_v33 }
 0x96e   :  { %11238 = vst [vmem:[#allocation2 + $0x110] sm:$0xff] %v11110_v2  ;;  %v11111_v4 = vmax.f32 %v10983_v61, 0.0 }
 0x96f   :  { %11236 = vst [vmem:[#allocation2 + $0x100] sm:$0xff] %v11108_v13  ;;  %v11109_v0 = vmax.f32 %v10981_v34, 0.0 }
 0x970   :  { %11239 = vst [vmem:[#allocation2 + $0x118] sm:$0xff] %v11111_v4 }
 0x971   :  { %11237 = vst [vmem:[#allocation2 + $0x108] sm:$0xff] %v11109_v0  ;;  %v13647_v50 = vpop.f32.mrb[164].mxu0 }
 0x972   :  { %v10986_v46 = vadd.f32 %v13647_v50, %v23108_v45  ;;  %v10446_v12 = vpop.f32.mrb[165].mxu0 }
 0x973   :  { %v10984_v39 = vadd.f32 %v23108_v45, %v10446_v12  ;;  %v13648_v47 = vpop.f32.mrb[166].mxu0 }
 0x974   :  { %v11114_v42 = vmax.f32 %v10986_v46, 0.0  ;;  %v10987_v19 = vadd.f32 %v13648_v47, %v23108_v45  ;;  %v10449_v31 = vpop.f32.mrb[167].mxu0 }
 0x975   :  { %v11112_v11 = vmax.f32 %v10984_v39, 0.0  ;;  %v10985_v35 = vadd.f32 %v23108_v45, %v10449_v31 }
 0x976   :  { %11242 = vst [vmem:[#allocation2 + $0x130] sm:$0xff] %v11114_v42  ;;  %v11115_v37 = vmax.f32 %v10987_v19, 0.0 }
 0x977   :  { %11240 = vst [vmem:[#allocation2 + $0x120] sm:$0xff] %v11112_v11  ;;  %v11113_v27 = vmax.f32 %v10985_v35, 0.0 }
 0x978   :  { %11243 = vst [vmem:[#allocation2 + $0x138] sm:$0xff] %v11115_v37 }
 0x979   :  { %11241 = vst [vmem:[#allocation2 + $0x128] sm:$0xff] %v11113_v27  ;;  %v13651_v59 = vpop.f32.mrb[168].mxu0 }
 0x97a   :  { %v10990_v41 = vadd.f32 %v13651_v59, %v23108_v45  ;;  %v10462_v43 = vpop.f32.mrb[169].mxu0 }
 0x97b   :  { %v10988_v18 = vadd.f32 %v23108_v45, %v10462_v43  ;;  %v13652_v26 = vpop.f32.mrb[170].mxu0 }
 0x97c   :  { %v11118_v8 = vmax.f32 %v10990_v41, 0.0  ;;  %v10991_v28 = vadd.f32 %v13652_v26, %v23108_v45  ;;  %v10465_v9 = vpop.f32.mrb[171].mxu0 }
 0x97d   :  { %v11116_v29 = vmax.f32 %v10988_v18, 0.0  ;;  %v10989_v24 = vadd.f32 %v23108_v45, %v10465_v9 }
 0x97e   :  { %11246 = vst [vmem:[#allocation2 + $0x150] sm:$0xff] %v11118_v8  ;;  %v11119_v54 = vmax.f32 %v10991_v28, 0.0 }
 0x97f   :  { %11244 = vst [vmem:[#allocation2 + $0x140] sm:$0xff] %v11116_v29  ;;  %v11117_v25 = vmax.f32 %v10989_v24, 0.0 }
 0x980   :  { %11247 = vst [vmem:[#allocation2 + $0x158] sm:$0xff] %v11119_v54 }
 0x981   :  { %11245 = vst [vmem:[#allocation2 + $0x148] sm:$0xff] %v11117_v25  ;;  %v13655_v23 = vpop.f32.mrb[172].mxu0 }
 0x982   :  { %v10994_v44 = vadd.f32 %v13655_v23, %v23108_v45  ;;  %v10478_v60 = vpop.f32.mrb[173].mxu0 }
 0x983   :  { %v10992_v14 = vadd.f32 %v23108_v45, %v10478_v60  ;;  %v13656_v36 = vpop.f32.mrb[174].mxu0 }
 0x984   :  { %v11122_v56 = vmax.f32 %v10994_v44, 0.0  ;;  %v10995_v52 = vadd.f32 %v13656_v36, %v23108_v45  ;;  %v10481_v49 = vpop.f32.mrb[175].mxu0 }
 0x985   :  { %v11120_v53 = vmax.f32 %v10992_v14, 0.0  ;;  %v10993_v63 = vadd.f32 %v23108_v45, %v10481_v49 }
 0x986   :  { %11250 = vst [vmem:[#allocation2 + $0x170] sm:$0xff] %v11122_v56  ;;  %v11123_v20 = vmax.f32 %v10995_v52, 0.0 }
 0x987   :  { %11248 = vst [vmem:[#allocation2 + $0x160] sm:$0xff] %v11120_v53  ;;  %v11121_v55 = vmax.f32 %v10993_v63, 0.0 }
 0x988   :  { %11251 = vst [vmem:[#allocation2 + $0x178] sm:$0xff] %v11123_v20 }
 0x989   :  { %11249 = vst [vmem:[#allocation2 + $0x168] sm:$0xff] %v11121_v55  ;;  %v13659_v57 = vpop.f32.mrb[176].mxu0 }
 0x98a   :  { %v10998_v17 = vadd.f32 %v13659_v57, %v23108_v45  ;;  %v10494_v62 = vpop.f32.mrb[177].mxu0 }
 0x98b   :  { %v10996_v32 = vadd.f32 %v23108_v45, %v10494_v62  ;;  %v13660_v16 = vpop.f32.mrb[178].mxu0 }
 0x98c   :  { %v11126_v38 = vmax.f32 %v10998_v17, 0.0  ;;  %v10999_v5 = vadd.f32 %v13660_v16, %v23108_v45  ;;  %v10497_v1 = vpop.f32.mrb[179].mxu0 }
 0x98d   :  { %v11124_v48 = vmax.f32 %v10996_v32, 0.0  ;;  %v10997_v30 = vadd.f32 %v23108_v45, %v10497_v1 }
 0x98e   :  { %11254 = vst [vmem:[#allocation2 + $0x190] sm:$0xff] %v11126_v38  ;;  %v11127_v40 = vmax.f32 %v10999_v5, 0.0 }
 0x98f   :  { %11252 = vst [vmem:[#allocation2 + $0x180] sm:$0xff] %v11124_v48  ;;  %v11125_v21 = vmax.f32 %v10997_v30, 0.0 }
 0x990   :  { %11255 = vst [vmem:[#allocation2 + $0x198] sm:$0xff] %v11127_v40 }
 0x991   :  { %11253 = vst [vmem:[#allocation2 + $0x188] sm:$0xff] %v11125_v21  ;;  %v13663_v58 = vpop.f32.mrb[180].mxu0 }
 0x992   :  { %v11002_v10 = vadd.f32 %v13663_v58, %v23108_v45  ;;  %v10510_v22 = vpop.f32.mrb[181].mxu0 }
 0x993   :  { %v11000_v6 = vadd.f32 %v23108_v45, %v10510_v22  ;;  %v13664_v15 = vpop.f32.mrb[182].mxu0 }
 0x994   :  { %v11130_v3 = vmax.f32 %v11002_v10, 0.0  ;;  %v11003_v7 = vadd.f32 %v13664_v15, %v23108_v45  ;;  %v10513_v51 = vpop.f32.mrb[183].mxu0 }
 0x995   :  { %v11128_v2 = vmax.f32 %v11000_v6, 0.0  ;;  %v11001_v61 = vadd.f32 %v23108_v45, %v10513_v51 }
 0x996   :  { %11258 = vst [vmem:[#allocation2 + $0x1b0] sm:$0xff] %v11130_v3  ;;  %v11131_v33 = vmax.f32 %v11003_v7, 0.0 }
 0x997   :  { %11256 = vst [vmem:[#allocation2 + $0x1a0] sm:$0xff] %v11128_v2  ;;  %v11129_v13 = vmax.f32 %v11001_v61, 0.0 }
 0x998   :  { %11259 = vst [vmem:[#allocation2 + $0x1b8] sm:$0xff] %v11131_v33 }
 0x999   :  { %11257 = vst [vmem:[#allocation2 + $0x1a8] sm:$0xff] %v11129_v13  ;;  %v13667_v34 = vpop.f32.mrb[184].mxu0 }
 0x99a   :  { %v11006_v4 = vadd.f32 %v13667_v34, %v23108_v45  ;;  %v10526_v0 = vpop.f32.mrb[185].mxu0 }
 0x99b   :  { %v11004_v50 = vadd.f32 %v23108_v45, %v10526_v0  ;;  %v13668_v46 = vpop.f32.mrb[186].mxu0 }
 0x99c   :  { %v11134_v12 = vmax.f32 %v11006_v4, 0.0  ;;  %v11007_v39 = vadd.f32 %v13668_v46, %v23108_v45  ;;  %v10529_v47 = vpop.f32.mrb[187].mxu0 }
 0x99d   :  { %v11132_v42 = vmax.f32 %v11004_v50, 0.0  ;;  %v11005_v19 = vadd.f32 %v23108_v45, %v10529_v47 }
 0x99e   :  { %11262 = vst [vmem:[#allocation2 + $0x1d0] sm:$0xff] %v11134_v12  ;;  %v11135_v31 = vmax.f32 %v11007_v39, 0.0 }
 0x99f   :  { %11260 = vst [vmem:[#allocation2 + $0x1c0] sm:$0xff] %v11132_v42  ;;  %v11133_v11 = vmax.f32 %v11005_v19, 0.0 }
 0x9a0   :  { %11263 = vst [vmem:[#allocation2 + $0x1d8] sm:$0xff] %v11135_v31 }
 0x9a1   :  { %11261 = vst [vmem:[#allocation2 + $0x1c8] sm:$0xff] %v11133_v11  ;;  %v13671_v35 = vpop.f32.mrb[188].mxu0 }
 0x9a2   :  { %v11010_v37 = vadd.f32 %v13671_v35, %v23108_v45  ;;  %v10542_v27 = vpop.f32.mrb[189].mxu0 }
 0x9a3   :  { %v11008_v59 = vadd.f32 %v23108_v45, %v10542_v27  ;;  %v13672_v41 = vpop.f32.mrb[190].mxu0 }
 0x9a4   :  { %v11138_v43 = vmax.f32 %v11010_v37, 0.0  ;;  %v11011_v18 = vadd.f32 %v13672_v41, %v23108_v45  ;;  %v10545_v26 = vpop.f32.mrb[191].mxu0 }
 0x9a5   :  { %v11136_v8 = vmax.f32 %v11008_v59, 0.0  ;;  %v11009_v28 = vadd.f32 %v23108_v45, %v10545_v26 }
 0x9a6   :  { %11266 = vst [vmem:[#allocation2 + $0x1f0] sm:$0xff] %v11138_v43  ;;  %v11139_v9 = vmax.f32 %v11011_v18, 0.0 }
 0x9a7   :  { %11264 = vst [vmem:[#allocation2 + $0x1e0] sm:$0xff] %v11136_v8  ;;  %v11137_v29 = vmax.f32 %v11009_v28, 0.0 }
 0x9a8   :  { %11267 = vst [vmem:[#allocation2 + $0x1f8] sm:$0xff] %v11139_v9 }
 0x9a9   :  { %11265 = vst [vmem:[#allocation2 + $0x1e8] sm:$0xff] %v11137_v29  ;;  %v13675_v24 = vpop.f32.mrb[192].mxu0 }
 0x9aa   :  { %v11014_v54 = vadd.f32 %v13675_v24, %v23108_v45  ;;  %v10558_v25 = vpop.f32.mrb[193].mxu0 }
 0x9ab   :  { %v11012_v23 = vadd.f32 %v23108_v45, %v10558_v25  ;;  %v13676_v44 = vpop.f32.mrb[194].mxu0 }
 0x9ac   :  { %v11142_v60 = vmax.f32 %v11014_v54, 0.0  ;;  %v11015_v14 = vadd.f32 %v13676_v44, %v23108_v45  ;;  %v10561_v36 = vpop.f32.mrb[195].mxu0 }
 0x9ad   :  { %v11140_v56 = vmax.f32 %v11012_v23, 0.0  ;;  %v11013_v52 = vadd.f32 %v23108_v45, %v10561_v36 }
 0x9ae   :  { %11270 = vst [vmem:[#allocation2 + $0x210] sm:$0xff] %v11142_v60  ;;  %v11143_v49 = vmax.f32 %v11015_v14, 0.0 }
 0x9af   :  { %11268 = vst [vmem:[#allocation2 + $0x200] sm:$0xff] %v11140_v56  ;;  %v11141_v53 = vmax.f32 %v11013_v52, 0.0 }
 0x9b0   :  { %11271 = vst [vmem:[#allocation2 + $0x218] sm:$0xff] %v11143_v49 }
 0x9b1   :  { %11269 = vst [vmem:[#allocation2 + $0x208] sm:$0xff] %v11141_v53  ;;  %v13679_v63 = vpop.f32.mrb[196].mxu0 }
 0x9b2   :  { %v11018_v20 = vadd.f32 %v13679_v63, %v23108_v45  ;;  %v10574_v55 = vpop.f32.mrb[197].mxu0 }
 0x9b3   :  { %v11016_v57 = vadd.f32 %v23108_v45, %v10574_v55  ;;  %v13680_v17 = vpop.f32.mrb[198].mxu0 }
 0x9b4   :  { %v11146_v62 = vmax.f32 %v11018_v20, 0.0  ;;  %v11019_v32 = vadd.f32 %v13680_v17, %v23108_v45  ;;  %v10577_v16 = vpop.f32.mrb[199].mxu0 }
 0x9b5   :  { %v11144_v38 = vmax.f32 %v11016_v57, 0.0  ;;  %v11017_v5 = vadd.f32 %v23108_v45, %v10577_v16 }
 0x9b6   :  { %11274 = vst [vmem:[#allocation2 + $0x230] sm:$0xff] %v11146_v62  ;;  %v11147_v1 = vmax.f32 %v11019_v32, 0.0 }
 0x9b7   :  { %11272 = vst [vmem:[#allocation2 + $0x220] sm:$0xff] %v11144_v38  ;;  %v11145_v48 = vmax.f32 %v11017_v5, 0.0 }
 0x9b8   :  { %11275 = vst [vmem:[#allocation2 + $0x238] sm:$0xff] %v11147_v1 }
 0x9b9   :  { %11273 = vst [vmem:[#allocation2 + $0x228] sm:$0xff] %v11145_v48  ;;  %v13683_v30 = vpop.f32.mrb[200].mxu0 }
 0x9ba   :  { %v11022_v40 = vadd.f32 %v13683_v30, %v23108_v45  ;;  %v10590_v21 = vpop.f32.mrb[201].mxu0 }
 0x9bb   :  { %v11020_v58 = vadd.f32 %v23108_v45, %v10590_v21  ;;  %v13684_v10 = vpop.f32.mrb[202].mxu0 }
 0x9bc   :  { %v11150_v22 = vmax.f32 %v11022_v40, 0.0  ;;  %v11023_v6 = vadd.f32 %v13684_v10, %v23108_v45  ;;  %v10593_v15 = vpop.f32.mrb[203].mxu0 }
 0x9bd   :  { %v11148_v3 = vmax.f32 %v11020_v58, 0.0  ;;  %v11021_v7 = vadd.f32 %v23108_v45, %v10593_v15 }
 0x9be   :  { %11278 = vst [vmem:[#allocation2 + $0x250] sm:$0xff] %v11150_v22  ;;  %v11151_v51 = vmax.f32 %v11023_v6, 0.0 }
 0x9bf   :  { %11276 = vst [vmem:[#allocation2 + $0x240] sm:$0xff] %v11148_v3  ;;  %v11149_v2 = vmax.f32 %v11021_v7, 0.0 }
 0x9c0   :  { %11279 = vst [vmem:[#allocation2 + $0x258] sm:$0xff] %v11151_v51 }
 0x9c1   :  { %11277 = vst [vmem:[#allocation2 + $0x248] sm:$0xff] %v11149_v2  ;;  %v13687_v61 = vpop.f32.mrb[204].mxu0 }
 0x9c2   :  { %v11026_v33 = vadd.f32 %v13687_v61, %v23108_v45  ;;  %v10606_v13 = vpop.f32.mrb[205].mxu0 }
 0x9c3   :  { %v11024_v34 = vadd.f32 %v23108_v45, %v10606_v13  ;;  %v13688_v4 = vpop.f32.mrb[206].mxu0 }
 0x9c4   :  { %v11154_v0 = vmax.f32 %v11026_v33, 0.0  ;;  %v11027_v50 = vadd.f32 %v13688_v4, %v23108_v45  ;;  %v10609_v46 = vpop.f32.mrb[207].mxu0 }
 0x9c5   :  { %v11152_v12 = vmax.f32 %v11024_v34, 0.0  ;;  %v11025_v39 = vadd.f32 %v23108_v45, %v10609_v46 }
 0x9c6   :  { %11282 = vst [vmem:[#allocation2 + $0x270] sm:$0xff] %v11154_v0  ;;  %v11155_v47 = vmax.f32 %v11027_v50, 0.0 }
 0x9c7   :  { %11280 = vst [vmem:[#allocation2 + $0x260] sm:$0xff] %v11152_v12  ;;  %v11153_v42 = vmax.f32 %v11025_v39, 0.0 }
 0x9c8   :  { %11283 = vst [vmem:[#allocation2 + $0x278] sm:$0xff] %v11155_v47 }
 0x9c9   :  { %11281 = vst [vmem:[#allocation2 + $0x268] sm:$0xff] %v11153_v42  ;;  %v13691_v19 = vpop.f32.mrb[208].mxu0 }
 0x9ca   :  { %v11030_v31 = vadd.f32 %v13691_v19, %v23108_v45  ;;  %v10622_v11 = vpop.f32.mrb[209].mxu0 }
 0x9cb   :  { %v11028_v35 = vadd.f32 %v23108_v45, %v10622_v11  ;;  %v13692_v37 = vpop.f32.mrb[210].mxu0 }
 0x9cc   :  { %v11158_v27 = vmax.f32 %v11030_v31, 0.0  ;;  %v11031_v59 = vadd.f32 %v13692_v37, %v23108_v45  ;;  %v10625_v41 = vpop.f32.mrb[211].mxu0 }
 0x9cd   :  { %v11156_v43 = vmax.f32 %v11028_v35, 0.0  ;;  %v11029_v18 = vadd.f32 %v23108_v45, %v10625_v41 }
 0x9ce   :  { %11286 = vst [vmem:[#allocation2 + $0x290] sm:$0xff] %v11158_v27  ;;  %v11159_v26 = vmax.f32 %v11031_v59, 0.0 }
 0x9cf   :  { %11284 = vst [vmem:[#allocation2 + $0x280] sm:$0xff] %v11156_v43  ;;  %v11157_v8 = vmax.f32 %v11029_v18, 0.0 }
 0x9d0   :  { %11287 = vst [vmem:[#allocation2 + $0x298] sm:$0xff] %v11159_v26 }
 0x9d1   :  { %11285 = vst [vmem:[#allocation2 + $0x288] sm:$0xff] %v11157_v8  ;;  %v13695_v28 = vpop.f32.mrb[212].mxu0 }
 0x9d2   :  { %v11034_v9 = vadd.f32 %v13695_v28, %v23108_v45  ;;  %v10638_v29 = vpop.f32.mrb[213].mxu0 }
 0x9d3   :  { %v11032_v24 = vadd.f32 %v23108_v45, %v10638_v29  ;;  %v13696_v54 = vpop.f32.mrb[214].mxu0 }
 0x9d4   :  { %v11162_v25 = vmax.f32 %v11034_v9, 0.0  ;;  %v11035_v23 = vadd.f32 %v13696_v54, %v23108_v45  ;;  %v10641_v44 = vpop.f32.mrb[215].mxu0 }
 0x9d5   :  { %v11160_v60 = vmax.f32 %v11032_v24, 0.0  ;;  %v11033_v14 = vadd.f32 %v23108_v45, %v10641_v44 }
 0x9d6   :  { %11290 = vst [vmem:[#allocation2 + $0x2b0] sm:$0xff] %v11162_v25  ;;  %v11163_v36 = vmax.f32 %v11035_v23, 0.0 }
 0x9d7   :  { %11288 = vst [vmem:[#allocation2 + $0x2a0] sm:$0xff] %v11160_v60  ;;  %v11161_v56 = vmax.f32 %v11033_v14, 0.0 }
 0x9d8   :  { %11291 = vst [vmem:[#allocation2 + $0x2b8] sm:$0xff] %v11163_v36 }
 0x9d9   :  { %11289 = vst [vmem:[#allocation2 + $0x2a8] sm:$0xff] %v11161_v56  ;;  %v13699_v52 = vpop.f32.mrb[216].mxu0 }
 0x9da   :  { %v11038_v49 = vadd.f32 %v13699_v52, %v23108_v45  ;;  %v10654_v53 = vpop.f32.mrb[217].mxu0 }
 0x9db   :  { %v11036_v63 = vadd.f32 %v23108_v45, %v10654_v53  ;;  %v13700_v20 = vpop.f32.mrb[218].mxu0 }
 0x9dc   :  { %v11166_v55 = vmax.f32 %v11038_v49, 0.0  ;;  %v11039_v57 = vadd.f32 %v13700_v20, %v23108_v45  ;;  %v10657_v17 = vpop.f32.mrb[219].mxu0 }
 0x9dd   :  { %v11164_v62 = vmax.f32 %v11036_v63, 0.0  ;;  %v11037_v32 = vadd.f32 %v23108_v45, %v10657_v17 }
 0x9de   :  { %11294 = vst [vmem:[#allocation2 + $0x2d0] sm:$0xff] %v11166_v55  ;;  %v11167_v16 = vmax.f32 %v11039_v57, 0.0 }
 0x9df   :  { %11292 = vst [vmem:[#allocation2 + $0x2c0] sm:$0xff] %v11164_v62  ;;  %v11165_v38 = vmax.f32 %v11037_v32, 0.0 }
 0x9e0   :  { %11295 = vst [vmem:[#allocation2 + $0x2d8] sm:$0xff] %v11167_v16 }
 0x9e1   :  { %11293 = vst [vmem:[#allocation2 + $0x2c8] sm:$0xff] %v11165_v38  ;;  %v13703_v5 = vpop.f32.mrb[220].mxu0 }
 0x9e2   :  { %v11042_v1 = vadd.f32 %v13703_v5, %v23108_v45  ;;  %v10670_v48 = vpop.f32.mrb[221].mxu0 }
 0x9e3   :  { %v11040_v30 = vadd.f32 %v23108_v45, %v10670_v48  ;;  %v13704_v40 = vpop.f32.mrb[222].mxu0 }
 0x9e4   :  { %v11170_v21 = vmax.f32 %v11042_v1, 0.0  ;;  %v11043_v58 = vadd.f32 %v13704_v40, %v23108_v45  ;;  %v10673_v10 = vpop.f32.mrb[223].mxu0 }
 0x9e5   :  { %v11168_v22 = vmax.f32 %v11040_v30, 0.0  ;;  %v11041_v6 = vadd.f32 %v23108_v45, %v10673_v10 }
 0x9e6   :  { %11298 = vst [vmem:[#allocation2 + $0x2f0] sm:$0xff] %v11170_v21  ;;  %v11171_v15 = vmax.f32 %v11043_v58, 0.0 }
 0x9e7   :  { %11296 = vst [vmem:[#allocation2 + $0x2e0] sm:$0xff] %v11168_v22  ;;  %v11169_v3 = vmax.f32 %v11041_v6, 0.0 }
 0x9e8   :  { %11299 = vst [vmem:[#allocation2 + $0x2f8] sm:$0xff] %v11171_v15 }
 0x9e9   :  { %11297 = vst [vmem:[#allocation2 + $0x2e8] sm:$0xff] %v11169_v3  ;;  %v13707_v7 = vpop.f32.mrb[224].mxu0 }
 0x9ea   :  { %v11046_v51 = vadd.f32 %v13707_v7, %v23108_v45  ;;  %v10686_v2 = vpop.f32.mrb[225].mxu0 }
 0x9eb   :  { %v11044_v61 = vadd.f32 %v23108_v45, %v10686_v2  ;;  %v13708_v33 = vpop.f32.mrb[226].mxu0 }
 0x9ec   :  { %v11174_v13 = vmax.f32 %v11046_v51, 0.0  ;;  %v11047_v34 = vadd.f32 %v13708_v33, %v23108_v45  ;;  %v10689_v4 = vpop.f32.mrb[227].mxu0 }
 0x9ed   :  { %v11172_v0 = vmax.f32 %v11044_v61, 0.0  ;;  %v11045_v50 = vadd.f32 %v23108_v45, %v10689_v4 }
 0x9ee   :  { %11302 = vst [vmem:[#allocation2 + $0x310] sm:$0xff] %v11174_v13  ;;  %v11175_v46 = vmax.f32 %v11047_v34, 0.0 }
 0x9ef   :  { %11300 = vst [vmem:[#allocation2 + $0x300] sm:$0xff] %v11172_v0  ;;  %v11173_v12 = vmax.f32 %v11045_v50, 0.0 }
 0x9f0   :  { %11303 = vst [vmem:[#allocation2 + $0x318] sm:$0xff] %v11175_v46 }
 0x9f1   :  { %11301 = vst [vmem:[#allocation2 + $0x308] sm:$0xff] %v11173_v12  ;;  %v13711_v39 = vpop.f32.mrb[228].mxu0 }
 0x9f2   :  { %v11050_v47 = vadd.f32 %v13711_v39, %v23108_v45  ;;  %v10702_v42 = vpop.f32.mrb[229].mxu0 }
 0x9f3   :  { %v11048_v19 = vadd.f32 %v23108_v45, %v10702_v42  ;;  %v13712_v31 = vpop.f32.mrb[230].mxu0 }
 0x9f4   :  { %v11178_v11 = vmax.f32 %v11050_v47, 0.0  ;;  %v11051_v35 = vadd.f32 %v13712_v31, %v23108_v45  ;;  %v10705_v37 = vpop.f32.mrb[231].mxu0 }
 0x9f5   :  { %v11176_v27 = vmax.f32 %v11048_v19, 0.0  ;;  %v11049_v59 = vadd.f32 %v23108_v45, %v10705_v37 }
 0x9f6   :  { %11306 = vst [vmem:[#allocation2 + $0x330] sm:$0xff] %v11178_v11  ;;  %v11179_v41 = vmax.f32 %v11051_v35, 0.0 }
 0x9f7   :  { %11304 = vst [vmem:[#allocation2 + $0x320] sm:$0xff] %v11176_v27  ;;  %v11177_v43 = vmax.f32 %v11049_v59, 0.0 }
 0x9f8   :  { %11307 = vst [vmem:[#allocation2 + $0x338] sm:$0xff] %v11179_v41 }
 0x9f9   :  { %11305 = vst [vmem:[#allocation2 + $0x328] sm:$0xff] %v11177_v43  ;;  %v13715_v18 = vpop.f32.mrb[232].mxu0 }
 0x9fa   :  { %v11054_v26 = vadd.f32 %v13715_v18, %v23108_v45  ;;  %v10718_v8 = vpop.f32.mrb[233].mxu0 }
 0x9fb   :  { %v11052_v28 = vadd.f32 %v23108_v45, %v10718_v8  ;;  %v13716_v9 = vpop.f32.mrb[234].mxu0 }
 0x9fc   :  { %v11182_v29 = vmax.f32 %v11054_v26, 0.0  ;;  %v11055_v24 = vadd.f32 %v13716_v9, %v23108_v45  ;;  %v10721_v54 = vpop.f32.mrb[235].mxu0 }
 0x9fd   :  { %v11180_v25 = vmax.f32 %v11052_v28, 0.0  ;;  %v11053_v23 = vadd.f32 %v23108_v45, %v10721_v54  ;;  %v14537_v28 = vld [vmem:[%s23293_s6] ss:$0 sm:$0xff] }
 0x9fe   :  { %11310 = vst [vmem:[#allocation2 + $0x350] sm:$0xff] %v11182_v29  ;;  %v11183_v44 = vmax.f32 %v11055_v24, 0.0 }
 0x9ff   :  { %11308 = vst [vmem:[#allocation2 + $0x340] sm:$0xff] %v11180_v25  ;;  %v11181_v60 = vmax.f32 %v11053_v23, 0.0 }
 0xa00   :  { %11311 = vst [vmem:[#allocation2 + $0x358] sm:$0xff] %v11183_v44 }
 0xa01   :  { %11309 = vst [vmem:[#allocation2 + $0x348] sm:$0xff] %v11181_v60  ;;  %v13719_v14 = vpop.f32.mrb[236].mxu0 }
 0xa02   :  { %v11058_v36 = vadd.f32 %v13719_v14, %v23108_v45  ;;  %v10734_v56 = vpop.f32.mrb[237].mxu0 }
 0xa03   :  { %v11056_v52 = vadd.f32 %v23108_v45, %v10734_v56  ;;  %v13720_v49 = vpop.f32.mrb[238].mxu0 }
 0xa04   :  { %v11186_v53 = vmax.f32 %v11058_v36, 0.0  ;;  %v11059_v63 = vadd.f32 %v13720_v49, %v23108_v45  ;;  %v10737_v20 = vpop.f32.mrb[239].mxu0 }
 0xa05   :  { %v11184_v55 = vmax.f32 %v11056_v52, 0.0  ;;  %v11057_v57 = vadd.f32 %v23108_v45, %v10737_v20 }
 0xa06   :  { %11314 = vst [vmem:[#allocation2 + $0x370] sm:$0xff] %v11186_v53  ;;  %v11187_v17 = vmax.f32 %v11059_v63, 0.0 }
 0xa07   :  { %11312 = vst [vmem:[#allocation2 + $0x360] sm:$0xff] %v11184_v55  ;;  %v11185_v62 = vmax.f32 %v11057_v57, 0.0 }
 0xa08   :  { %11315 = vst [vmem:[#allocation2 + $0x378] sm:$0xff] %v11187_v17 }
 0xa09   :  { %11313 = vst [vmem:[#allocation2 + $0x368] sm:$0xff] %v11185_v62  ;;  %v13723_v32 = vpop.f32.mrb[240].mxu0 }
 0xa0a   :  { %v11062_v16 = vadd.f32 %v13723_v32, %v23108_v45  ;;  %v10750_v38 = vpop.f32.mrb[241].mxu0 }
 0xa0b   :  { %v11060_v5 = vadd.f32 %v23108_v45, %v10750_v38  ;;  %v13724_v1 = vpop.f32.mrb[242].mxu0 }
 0xa0c   :  { %v11190_v48 = vmax.f32 %v11062_v16, 0.0  ;;  %v11063_v30 = vadd.f32 %v13724_v1, %v23108_v45  ;;  %v10753_v40 = vpop.f32.mrb[243].mxu0 }
 0xa0d   :  { %v11188_v21 = vmax.f32 %v11060_v5, 0.0  ;;  %v11061_v58 = vadd.f32 %v23108_v45, %v10753_v40 }
 0xa0e   :  { %11318 = vst [vmem:[#allocation2 + $0x390] sm:$0xff] %v11190_v48  ;;  %v11191_v10 = vmax.f32 %v11063_v30, 0.0 }
 0xa0f   :  { %11316 = vst [vmem:[#allocation2 + $0x380] sm:$0xff] %v11188_v21  ;;  %v11189_v22 = vmax.f32 %v11061_v58, 0.0 }
 0xa10   :  { %11319 = vst [vmem:[#allocation2 + $0x398] sm:$0xff] %v11191_v10 }
 0xa11   :  { %11317 = vst [vmem:[#allocation2 + $0x388] sm:$0xff] %v11189_v22  ;;  %v13727_v6 = vpop.f32.mrb[244].mxu0 }
 0xa12   :  { %v11066_v15 = vadd.f32 %v13727_v6, %v23108_v45  ;;  %v10766_v3 = vpop.f32.mrb[245].mxu0 }
 0xa13   :  { %v11064_v7 = vadd.f32 %v23108_v45, %v10766_v3  ;;  %v13728_v51 = vpop.f32.mrb[246].mxu0 }
 0xa14   :  { %v11194_v2 = vmax.f32 %v11066_v15, 0.0  ;;  %v11067_v61 = vadd.f32 %v13728_v51, %v23108_v45  ;;  %v10769_v33 = vpop.f32.mrb[247].mxu0 }
 0xa15   :  { %v11192_v13 = vmax.f32 %v11064_v7, 0.0  ;;  %v11065_v34 = vadd.f32 %v23108_v45, %v10769_v33 }
 0xa16   :  { %11322 = vst [vmem:[#allocation2 + $0x3b0] sm:$0xff] %v11194_v2  ;;  %v11195_v4 = vmax.f32 %v11067_v61, 0.0 }
 0xa17   :  { %11320 = vst [vmem:[#allocation2 + $0x3a0] sm:$0xff] %v11192_v13  ;;  %v11193_v0 = vmax.f32 %v11065_v34, 0.0 }
 0xa18   :  { %11323 = vst [vmem:[#allocation2 + $0x3b8] sm:$0xff] %v11195_v4 }
 0xa19   :  { %11321 = vst [vmem:[#allocation2 + $0x3a8] sm:$0xff] %v11193_v0  ;;  %v13731_v50 = vpop.f32.mrb[248].mxu0 }
 0xa1a   :  { %v11070_v46 = vadd.f32 %v13731_v50, %v23108_v45  ;;  %v10782_v12 = vpop.f32.mrb[249].mxu0 }
 0xa1b   :  { %v11068_v39 = vadd.f32 %v23108_v45, %v10782_v12  ;;  %v13732_v47 = vpop.f32.mrb[250].mxu0 }
 0xa1c   :  { %v11198_v42 = vmax.f32 %v11070_v46, 0.0  ;;  %v11071_v19 = vadd.f32 %v13732_v47, %v23108_v45  ;;  %v10785_v31 = vpop.f32.mrb[251].mxu0 }
 0xa1d   :  { %v11196_v11 = vmax.f32 %v11068_v39, 0.0  ;;  %v11069_v35 = vadd.f32 %v23108_v45, %v10785_v31 }
 0xa1e   :  { %11326 = vst [vmem:[#allocation2 + $0x3d0] sm:$0xff] %v11198_v42  ;;  %v11199_v37 = vmax.f32 %v11071_v19, 0.0 }
 0xa1f   :  { %11324 = vst [vmem:[#allocation2 + $0x3c0] sm:$0xff] %v11196_v11  ;;  %v11197_v27 = vmax.f32 %v11069_v35, 0.0 }
 0xa20   :  { %11327 = vst [vmem:[#allocation2 + $0x3d8] sm:$0xff] %v11199_v37 }
 0xa21   :  { %11325 = vst [vmem:[#allocation2 + $0x3c8] sm:$0xff] %v11197_v27  ;;  %v13735_v59 = vpop.f32.mrb[252].mxu0 }
 0xa22   :  { %v11074_v41 = vadd.f32 %v13735_v59, %v23108_v45  ;;  %v10798_v43 = vpop.f32.mrb[253].mxu0 }
 0xa23   :  { %v11072_v18 = vadd.f32 %v23108_v45, %v10798_v43  ;;  %v13736_v26 = vpop.f32.mrb[254].mxu0 }
 0xa24   :  { %v11202_v8 = vmax.f32 %v11074_v41, 0.0  ;;  %v11075_v9 = vadd.f32 %v14537_v28, %v13736_v26  ;;  %v10801_v29 = vpop.f32.mrb[255].mxu0 }
 0xa25   :  { %v11200_v24 = vmax.f32 %v11072_v18, 0.0  ;;  %v11073_v54 = vadd.f32 %v14537_v28, %v10801_v29 }
 0xa26   :  { %11330 = vst [vmem:[#allocation2 + $0x3f0] sm:$0xff] %v11202_v8  ;;  %v11203_v25 = vmax.f32 %v11075_v9, 0.0 }
 0xa27   :  { %11328 = vst [vmem:[#allocation2 + $0x3e0] sm:$0xff] %v11200_v24  ;;  %v11201_v23 = vmax.f32 %v11073_v54, 0.0 }
 0xa28   :  { %11331 = vst [vmem:[#allocation2 + $0x3f8] sm:$0xff] %v11203_v25 }
 0xa29   :  { %11329 = vst [vmem:[#allocation2 + $0x3e8] sm:$0xff] %v11201_v23 }
 0xa2a   :  { %14549 = shalt.err (!%p14546_p4)
}
 0xa2b   :  { %s14550_s18 = scalar_lea.hbm %s23294_s7, 16384 }
 0xa2c   :  { %p14551_p5 = scmp.ne.s32.totalorder %s23294_s7, %s14550_s18  ;;  %p14554_p6 = scmp.lt.u32.totalorder %s14550_s18, %s23294_s7 }
 0xa2e   :  { %p14556_p7 = pnand %p14554_p6, %p14551_p5 }
 0xa30   :  { %14559 = shalt.err (!%p14556_p7)
}
 0xa31   :  { %s14564_s21 = smov 128   ;;  %s14565_s22 = smov 8  }
 0xa32   :  { %11343 = dma.vmem_to_hbm [thread:$0]  %s11338_s15, 16384, %s23294_s7, [#allocation3], %s14564_s21, %s14564_s21, %s14565_s22  }
 0xa33   :  { %14560 = dma.done.wait [#allocation3], 16384  }
 0xa34   :  { %14561 = vsyncadd [#allocation3], 4294950912 }
 0xa35   :  { %11347 = vsyncpa [#allocation3], 1 }

</bundles_post_ra>
